<compile_context>
chip_gen: v6e
topology: v6e:2x2x1
jax: 0.10.0
libtpu: 0.0.40
codegen_flags: <defaults>
</compile_context>

<pallas_src>
import functools

import jax
import jax.numpy as jnp
from jax import lax
from jax.experimental import pallas as pl
from jax.experimental.pallas import tpu as pltpu

DIV_EPS = 1e-6   # matches the 1e-06 in the PyTorch forward
BN_EPS = 1e-5    # nn.BatchNorm1d default


def _fast_recip(x):
    # EUP approximate reciprocal + one Newton-Raphson step: keeps the divide
    # off the VALU slots while retaining ~f32 accuracy.  Only used on inputs
    # that are guaranteed finite and >= ~1e-6 (no inf -> NaN hazard).
    r = pl.reciprocal(x, approx=True)
    return r * (2.0 - x * r)


def _egc_main_kernel(node_ref, edge_ref, src_ref, dst_ref,
                     wcat_ref, bcat_ref, weg_ref, beg_ref,
                     gnode_ref, bnode_ref, gedge_ref, bedge_ref,
                     x_out, m_out, ss_out,
                     node_lin, acc_num, acc_den, stats,
                     *, num_edges):
    f32 = jnp.float32
    N, F = node_ref.shape
    TE = edge_ref.shape[0]
    t = pl.program_id(0)
    last = pl.num_programs(0) - 1

    @pl.when(t == 0)
    def _init():
        # All four node-side linears in one lane-filling (4F-wide) MXU pass.
        # node_lin columns: [e_src | Bh | e_dst | x_lin]
        node_lin[...] = (jnp.dot(node_ref[...], wcat_ref[...],
                                 preferred_element_type=f32) + bcat_ref[...])
        acc_num[...] = jnp.zeros_like(acc_num)
        acc_den[...] = jnp.zeros_like(acc_den)
        stats[...] = jnp.zeros_like(stats)

    # Build per-tile one-hot connectivity in VMEM from int32 indices: HBM
    # traffic for connectivity is now O(E) instead of O(E*N).
    lane = lax.broadcasted_iota(jnp.int32, (TE, N), 1)
    S = (lane == src_ref[...]).astype(f32)            # [TE, N] edge -> src
    D = (lane == dst_ref[...]).astype(f32)            # [TE, N] edge -> dst

    # Mask for padded edges in the last tile (E padded up to a tile multiple).
    eidx = t * TE + lax.broadcasted_iota(jnp.int32, (TE, 1), 0)
    valid = (eidx < num_edges).astype(f32)            # [TE, 1]

    # Fused gather through S: e_src[src] | Bh[src] in ONE matmul.
    gat = jnp.dot(S, node_lin[:, 0:2 * F], preferred_element_type=f32)        # [TE, 2F]
    e_dst_e = jnp.dot(D, node_lin[:, 2 * F:3 * F], preferred_element_type=f32)  # [TE, F]

    # edge gate input: m = e_src[u] + e_dst[v] + edge_gate(edge_feats)
    m = (gat[:, 0:F] + e_dst_e
         + jnp.dot(edge_ref[...], weg_ref[...], preferred_element_type=f32)
         + beg_ref[...])
    # TODO(synk): at the demo F=32 this is a 32-lane masked store; production
    # hidden_features=256 makes this output lane-dense automatically.
    m_out[...] = m

    @pl.when(t == 0)
    def _set_shift():
        # First-tile per-feature mean used as shift for numerically stable
        # (shifted-sum) edge-BN statistics.
        cnt = jnp.maximum(jnp.sum(valid, axis=0, keepdims=True), 1.0)
        stats[0:1, :] = jnp.sum(m * valid, axis=0, keepdims=True) / cnt

    # Numerically stable sigmoid via EUP exp + approx reciprocal:
    #   e = exp(-|m|) in (0, 1]  ->  no overflow / NaN for any m.
    e = jnp.exp(-jnp.abs(m))
    r = _fast_recip(1.0 + e)
    sigma = jnp.where(m >= 0, r, e * r) * valid       # padded edges masked out

    # Scatter-sum through dst via transposed-LHS MXU matmuls (same D used for
    # gather above — no duplicated connectivity stream, no concatenate copy).
    dn = (((0,), (0,)), ((), ()))
    acc_num[...] += lax.dot_general(D, gat[:, F:2 * F] * sigma, dn,
                                    preferred_element_type=f32)   # [N, F]
    acc_den[...] += lax.dot_general(D, sigma, dn,
                                    preferred_element_type=f32)   # [N, F]

    # Shifted running sums for the edge BatchNorm statistics.
    dm = (m - stats[0:1, :]) * valid
    stats[1:2, :] += jnp.sum(dm, axis=0, keepdims=True)
    stats[2:3, :] += jnp.sum(dm * dm, axis=0, keepdims=True)

    @pl.when(t == last)
    def _finalize():
        # Node update: h = num / (den + eps); x = x_lin + h; BN + ReLU6 + res.
        h = acc_num[...] * _fast_recip(acc_den[...] + DIV_EPS)
        x = node_lin[:, 3 * F:4 * F] + h
        mean = jnp.mean(x, axis=0, keepdims=True)
        var = jnp.mean((x - mean) ** 2, axis=0, keepdims=True)   # biased var
        xn = (x - mean) * lax.rsqrt(var + BN_EPS) * gnode_ref[...] + bnode_ref[...]
        x_out[...] = node_ref[...] + jnp.clip(xn, 0.0, 6.0)

        # Fold the edge BatchNorm into per-feature scale/shift so the second
        # pass is a single FMA + clip.
        inv_e = 1.0 / float(num_edges)
        d = stats[1:2, :] * inv_e                      # E[m - ref]
        mean_e = stats[0:1, :] + d
        var_e = stats[2:3, :] * inv_e - d * d
        scale = gedge_ref[...] * lax.rsqrt(var_e + BN_EPS)
        ss_out[0:1, :] = scale
        ss_out[1:2, :] = bedge_ref[...] - mean_e * scale


def _edge_finalize_kernel(edge_ref, m_ref, ss_ref, y_out):
    # y = edge + ReLU6(m * scale + shift) on a lane-dense (rows, 4F) view.
    y_out[...] = edge_ref[...] + jnp.clip(
        m_ref[...] * ss_ref[0:1, :] + ss_ref[1:2, :], 0.0, 6.0)


def _row_tile(n, cap=1024, step=8):
    # Largest divisor of n that is a multiple of `step` and <= cap.
    best = min(n, step)
    d = step
    while d <= min(n, cap):
        if n % d == 0:
            best = d
        d += step
    return best


def edge_gated_graph_conv(node_feats, edge_feats, src, dst, params, *,
                          edge_tile=512):
    N, F = node_feats.shape
    E = edge_feats.shape[0]
    assert edge_tile % 32 == 0, "edge_tile must be a multiple of 32"
    TE = edge_tile

    # Pad E up to a tile multiple; padded edges are masked inside the kernel.
    E_pad = ((E + TE - 1) // TE) * TE
    pad = E_pad - E
    edge_p = jnp.pad(edge_feats, ((0, pad), (0, 0)))
    src_p = jnp.pad(src.astype(jnp.int32), (0, pad)).reshape(E_pad, 1)
    dst_p = jnp.pad(dst.astype(jnp.int32), (0, pad)).reshape(E_pad, 1)
    n_tiles = E_pad // TE

    # Fuse the four node-side linears into one [F, 4F] weight (4F == 128 for
    # the demo F=32, lane-dense MXU output). Column order:
    # [src_gate (e_src) | dst_update (Bh) | dst_gate (e_dst) | src_update (x_lin)]
    w_cat = jnp.concatenate([params["w_src_gate"], params["w_dst_update"],
                             params["w_dst_gate"], params["w_src_update"]], axis=1)
    b_cat = jnp.concatenate([params["b_src_gate"], params["b_dst_update"],
                             params["b_dst_gate"], params["b_src_update"]], axis=1)

    # TODO(synk): on v7x split the edge reduction across the two TensorCores
    # (leading size-2 'parallel' axis with per-core partial acc/stats + a tiny
    # combine); a single 'arbitrary' axis pins this loop to one core.
    # TODO(synk): for very large N add a node-tiling axis so the resident
    # node_lin / acc scratch stays within v7x's 64 MiB VMEM.
    x, m, ss = pl.pallas_call(
        functools.partial(_egc_main_kernel, num_edges=E),
        out_shape=(jax.ShapeDtypeStruct((N, F), jnp.float32),
                   jax.ShapeDtypeStruct((E_pad, F), jnp.float32),
                   jax.ShapeDtypeStruct((2, F), jnp.float32)),
        grid_spec=pltpu.PrefetchScalarGridSpec(
            num_scalar_prefetch=0,
            grid=(n_tiles,),
            in_specs=[
                pl.BlockSpec((N, F), lambda t: (0, 0)),        # node feats (resident)
                pl.BlockSpec((TE, F), lambda t: (t, 0)),       # edge feats tile
                pl.BlockSpec((TE, 1), lambda t: (t, 0)),       # src indices tile
                pl.BlockSpec((TE, 1), lambda t: (t, 0)),       # dst indices tile
                pl.BlockSpec((F, 4 * F), lambda t: (0, 0)),    # fused node weights
                pl.BlockSpec((1, 4 * F), lambda t: (0, 0)),    # fused node bias
                pl.BlockSpec((F, F), lambda t: (0, 0)),        # edge-gate weight
                pl.BlockSpec((1, F), lambda t: (0, 0)),        # edge-gate bias
                pl.BlockSpec((1, F), lambda t: (0, 0)),        # bn_nodes gamma
                pl.BlockSpec((1, F), lambda t: (0, 0)),        # bn_nodes beta
                pl.BlockSpec((1, F), lambda t: (0, 0)),        # bn_edges gamma
                pl.BlockSpec((1, F), lambda t: (0, 0)),        # bn_edges beta
            ],
            out_specs=(
                pl.BlockSpec((N, F), lambda t: (0, 0)),        # x: final node output
                pl.BlockSpec((TE, F), lambda t: (t, 0)),       # m: pre-BN edge message
                pl.BlockSpec((2, F), lambda t: (0, 0)),        # edge BN scale | shift
            ),
            scratch_shapes=[pltpu.VMEM((N, 4 * F), jnp.float32),  # fused node linears
                            pltpu.VMEM((N, F), jnp.float32),      # num accumulator
                            pltpu.VMEM((N, F), jnp.float32),      # den accumulator
                            pltpu.VMEM((3, F), jnp.float32)],     # BN shift/sum/sumsq
        ),
        compiler_params=pltpu.CompilerParams(
            dimension_semantics=("arbitrary",),   # edge axis carries accumulators
            # Re-derive per generation: leave pipeline headroom under v7x's
            # 64 MiB physical cap; v5e/v6e (128 MiB) can go higher.
            vmem_limit_bytes=48 * 1024 * 1024),
    )(node_feats, edge_p, src_p, dst_p, w_cat, b_cat,
      params["w_edge_gate"], params["b_edge_gate"],
      params["bn_nodes_gamma"], params["bn_nodes_beta"],
      params["bn_edges_gamma"], params["bn_edges_beta"])

    # Edge finalize on a lane-dense view: fold 4 edges per row so loads/stores
    # are unmasked 128-lane ops even at the demo F=32.
    E4 = E_pad // 4
    edge4 = edge_p.reshape(E4, 4 * F)
    m4 = m.reshape(E4, 4 * F)
    ss4 = jnp.tile(ss, (1, 4))
    tb = _row_tile(E4, cap=1024)
    y4 = pl.pallas_call(
        _edge_finalize_kernel,
        out_shape=jax.ShapeDtypeStruct((E4, 4 * F), jnp.float32),
        grid_spec=pltpu.PrefetchScalarGridSpec(
            num_scalar_prefetch=0,
            grid=(E4 // tb,),
            in_specs=[
                pl.BlockSpec((tb, 4 * F), lambda t: (t, 0)),   # edge feats (folded)
                pl.BlockSpec((tb, 4 * F), lambda t: (t, 0)),   # m (folded)
                pl.BlockSpec((2, 4 * F), lambda t: (0, 0)),    # scale | shift (tiled)
            ],
            out_specs=pl.BlockSpec((tb, 4 * F), lambda t: (t, 0)),
        ),
        compiler_params=pltpu.CompilerParams(
            dimension_semantics=("parallel",)),   # independent tiles (megacore)
    )(edge4, m4, ss4)
    y = y4.reshape(E_pad, F)[:E]
    return x, y


# ------------------------- pure-JAX reference -------------------------
def reference(node_feats, edge_feats, src, dst, params, num_nodes):
    def lin(x, w, b):
        return x @ w + b

    e_src = lin(node_feats, params["w_src_gate"], params["b_src_gate"])
    e_dst = lin(node_feats, params["w_dst_gate"], params["b_dst_gate"])
    m = e_src[src] + e_dst[dst] + lin(edge_feats, params["w_edge_gate"], params["b_edge_gate"])
    sigma = jax.nn.sigmoid(m)
    Bh = lin(node_feats, params["w_dst_update"], params["b_dst_update"])
    num = jax.ops.segment_sum(Bh[src] * sigma, dst, num_segments=num_nodes)
    den = jax.ops.segment_sum(sigma, dst, num_segments=num_nodes)
    h = num / (den + DIV_EPS)
    x = lin(node_feats, params["w_src_update"], params["b_src_update"]) + h

    def bn_relu6(z, gamma, beta):
        mean = jnp.mean(z, axis=0, keepdims=True)
        var = jnp.mean((z - mean) ** 2, axis=0, keepdims=True)
        zn = (z - mean) / jnp.sqrt(var + BN_EPS) * gamma + beta
        return jnp.clip(zn, 0.0, 6.0)

    x = node_feats + bn_relu6(x, params["bn_nodes_gamma"], params["bn_nodes_beta"])
    y = edge_feats + bn_relu6(m, params["bn_edges_gamma"], params["bn_edges_beta"])
    return x, y


def make_params(key, feat):
    keys = jax.random.split(key, 16)
    scale = 1.0 / jnp.sqrt(feat)

    def w(k):
        return jax.random.normal(k, (feat, feat), jnp.float32) * scale

    def b(k):
        return jax.random.normal(k, (1, feat), jnp.float32) * 0.05

    return {
        "w_src_gate": w(keys[0]), "b_src_gate": b(keys[1]),
        "w_dst_gate": w(keys[2]), "b_dst_gate": b(keys[3]),
        "w_edge_gate": w(keys[4]), "b_edge_gate": b(keys[5]),
        "w_src_update": w(keys[6]), "b_src_update": b(keys[7]),
        "w_dst_update": w(keys[8]), "b_dst_update": b(keys[9]),
        "bn_nodes_gamma": 1.0 + 0.1 * jax.random.normal(keys[10], (1, feat), jnp.float32),
        "bn_nodes_beta": 0.05 * jax.random.normal(keys[11], (1, feat), jnp.float32),
        "bn_edges_gamma": 1.0 + 0.1 * jax.random.normal(keys[12], (1, feat), jnp.float32),
        "bn_edges_beta": 0.05 * jax.random.normal(keys[13], (1, feat), jnp.float32),
    }


if __name__ == "__main__":
    key = jax.random.PRNGKey(0)
    k_node, k_edge, k_src, k_dst, k_par = jax.random.split(key, 5)

    # Small demo shapes (production uses hidden_features=256, many more edges).
    # E=1000 deliberately NOT a multiple of the edge tile to exercise the
    # padding/masking path; two 512-edge tiles exercise the accumulators.
    N, E, FEAT = 16, 1000, 32
    node_feats = jax.random.normal(k_node, (N, FEAT), jnp.float32)
    edge_feats = jax.random.normal(k_edge, (E, FEAT), jnp.float32)
    src = jax.random.randint(k_src, (E,), 0, N)
    dst = jax.random.randint(k_dst, (E,), 0, N)

    params = make_params(k_par, FEAT)

    x, y = edge_gated_graph_conv(node_feats, edge_feats, src, dst, params,
                                 edge_tile=512)
    jax.block_until_ready((x, y))

    x_ref, y_ref = reference(node_feats, edge_feats, src, dst, params, N)
    # Observed error is well below 1e-4; 1e-3 leaves margin for the EUP
    # approx-reciprocal (+ Newton step) and MXU accumulation-order differences.
    assert jnp.allclose(x, x_ref, atol=1e-3, rtol=1e-3), "node output mismatch"
    assert jnp.allclose(y, y_ref, atol=1e-3, rtol=1e-3), "edge output mismatch"

    print("KERNEL_OK")
</pallas_src>

<mosaic_0001>
module attributes {stable_mosaic.version = 11 : i64} {
  func.func @_egc_main_kernel(%arg0: i32, %arg1: memref<16x32xf32, #tpu.memory_space<vmem>>, %arg2: memref<512x32xf32, #tpu.memory_space<vmem>>, %arg3: memref<512x1xi32, #tpu.memory_space<vmem>>, %arg4: memref<512x1xi32, #tpu.memory_space<vmem>>, %arg5: memref<32x128xf32, #tpu.memory_space<vmem>>, %arg6: memref<1x128xf32, #tpu.memory_space<vmem>>, %arg7: memref<32x32xf32, #tpu.memory_space<vmem>>, %arg8: memref<1x32xf32, #tpu.memory_space<vmem>>, %arg9: memref<1x32xf32, #tpu.memory_space<vmem>>, %arg10: memref<1x32xf32, #tpu.memory_space<vmem>>, %arg11: memref<1x32xf32, #tpu.memory_space<vmem>>, %arg12: memref<1x32xf32, #tpu.memory_space<vmem>>, %arg13: memref<16x32xf32, #tpu.memory_space<vmem>>, %arg14: memref<512x32xf32, #tpu.memory_space<vmem>>, %arg15: memref<2x32xf32, #tpu.memory_space<vmem>>, %arg16: memref<16x128xf32, #tpu.memory_space<vmem>>, %arg17: memref<16x32xf32, #tpu.memory_space<vmem>>, %arg18: memref<16x32xf32, #tpu.memory_space<vmem>>, %arg19: memref<3x32xf32, #tpu.memory_space<vmem>>) attributes {dimension_semantics = [#tpu.dimension_semantics<arbitrary>], iteration_bounds = array<i64: 2>, scalar_prefetch = 0 : i64, scratch_operands = 4 : i64, tpu.core_type = #tpu.core_type<tc>, window_params = [{pipeline_mode = #tpu.pipeline_mode<synchronous>, transform_indices = @transform_0, window_bounds = array<i64: 16, 32>}, {transform_indices = @transform_1, window_bounds = array<i64: 512, 32>}, {transform_indices = @transform_2, window_bounds = array<i64: 512, 1>}, {transform_indices = @transform_3, window_bounds = array<i64: 512, 1>}, {pipeline_mode = #tpu.pipeline_mode<synchronous>, transform_indices = @transform_4, window_bounds = array<i64: 32, 128>}, {pipeline_mode = #tpu.pipeline_mode<synchronous>, transform_indices = @transform_5, window_bounds = array<i64: 1, 128>}, {pipeline_mode = #tpu.pipeline_mode<synchronous>, transform_indices = @transform_6, window_bounds = array<i64: 32, 32>}, {pipeline_mode = #tpu.pipeline_mode<synchronous>, transform_indices = @transform_7, window_bounds = array<i64: 1, 32>}, {pipeline_mode = #tpu.pipeline_mode<synchronous>, transform_indices = @transform_8, window_bounds = array<i64: 1, 32>}, {pipeline_mode = #tpu.pipeline_mode<synchronous>, transform_indices = @transform_9, window_bounds = array<i64: 1, 32>}, {pipeline_mode = #tpu.pipeline_mode<synchronous>, transform_indices = @transform_10, window_bounds = array<i64: 1, 32>}, {pipeline_mode = #tpu.pipeline_mode<synchronous>, transform_indices = @transform_11, window_bounds = array<i64: 1, 32>}, {pipeline_mode = #tpu.pipeline_mode<synchronous>, transform_indices = @transform_12, window_bounds = array<i64: 16, 32>}, {transform_indices = @transform_13, window_bounds = array<i64: 512, 32>}, {pipeline_mode = #tpu.pipeline_mode<synchronous>, transform_indices = @transform_14, window_bounds = array<i64: 2, 32>}]} {
    %c0_i32 = arith.constant 0 : i32
    %0 = arith.cmpi eq, %arg0, %c0_i32 : i32
    %1 = arith.extui %0 : i1 to i32
    %c0_i32_0 = arith.constant 0 : i32
    %2 = arith.cmpi ne, %1, %c0_i32_0 : i32
    scf.if %2 {
      %c0_44 = arith.constant 0 : index
      %c0_45 = arith.constant 0 : index
      %85 = vector.load %arg1[%c0_44, %c0_45] : memref<16x32xf32, #tpu.memory_space<vmem>>, vector<16x32xf32>
      %c0_46 = arith.constant 0 : index
      %c0_47 = arith.constant 0 : index
      %86 = vector.load %arg5[%c0_46, %c0_47] : memref<32x128xf32, #tpu.memory_space<vmem>>, vector<32x128xf32>
      %cst_48 = arith.constant dense<0.000000e+00> : vector<16x128xf32>
      %87 = tpu.matmul %85, %86, %cst_48 {dimension_numbers = #tpu.dot_dimension_numbers<[1], [0], [0], [1], [0, 0, 1, 1], [], []>} : vector<16x32xf32>, vector<32x128xf32>, vector<16x128xf32> -> vector<16x128xf32>
      %c0_49 = arith.constant 0 : index
      %c0_50 = arith.constant 0 : index
      %88 = vector.load %arg6[%c0_49, %c0_50] : memref<1x128xf32, #tpu.memory_space<vmem>>, vector<1x128xf32>
      %89 = vector.broadcast %88 : vector<1x128xf32> to vector<16x128xf32>
      %90 = arith.addf %87, %89 : vector<16x128xf32>
      %c0_51 = arith.constant 0 : index
      %c0_52 = arith.constant 0 : index
      %91 = vector.load %arg16[%c0_51, %c0_52] : memref<16x128xf32, #tpu.memory_space<vmem>>, vector<16x128xf32>
      tpu.vector_store %arg16[%c0_51, %c0_52], %90 {strides = array<i32>} : memref<16x128xf32, #tpu.memory_space<vmem>>, vector<16x128xf32>,
      %cst_53 = arith.constant 0.000000e+00 : f32
      %92 = vector.broadcast %cst_53 : f32 to vector<16x32xf32>
      %c0_54 = arith.constant 0 : index
      %c0_55 = arith.constant 0 : index
      %93 = vector.load %arg17[%c0_54, %c0_55] : memref<16x32xf32, #tpu.memory_space<vmem>>, vector<16x32xf32>
      tpu.vector_store %arg17[%c0_54, %c0_55], %92 {strides = array<i32>} : memref<16x32xf32, #tpu.memory_space<vmem>>, vector<16x32xf32>,
      %cst_56 = arith.constant 0.000000e+00 : f32
      %94 = vector.broadcast %cst_56 : f32 to vector<16x32xf32>
      %c0_57 = arith.constant 0 : index
      %c0_58 = arith.constant 0 : index
      %95 = vector.load %arg18[%c0_57, %c0_58] : memref<16x32xf32, #tpu.memory_space<vmem>>, vector<16x32xf32>
      tpu.vector_store %arg18[%c0_57, %c0_58], %94 {strides = array<i32>} : memref<16x32xf32, #tpu.memory_space<vmem>>, vector<16x32xf32>,
      %cst_59 = arith.constant 0.000000e+00 : f32
      %96 = vector.broadcast %cst_59 : f32 to vector<3x32xf32>
      %c0_60 = arith.constant 0 : index
      %c0_61 = arith.constant 0 : index
      %97 = vector.load %arg19[%c0_60, %c0_61] : memref<3x32xf32, #tpu.memory_space<vmem>>, vector<3x32xf32>
      tpu.vector_store %arg19[%c0_60, %c0_61], %96 {strides = array<i32>} : memref<3x32xf32, #tpu.memory_space<vmem>>, vector<3x32xf32>,
    } else {
    }
    %3 = tpu.iota {dimensions = array<i32: 1>} : vector<512x16xi32>
    %c0 = arith.constant 0 : index
    %c0_1 = arith.constant 0 : index
    %4 = vector.load %arg3[%c0, %c0_1] : memref<512x1xi32, #tpu.memory_space<vmem>>, vector<512x1xi32>
    %5 = vector.broadcast %4 : vector<512x1xi32> to vector<512x16xi32>
    %6 = arith.cmpi eq, %3, %5 : vector<512x16xi32>
    %7 = arith.extui %6 : vector<512x16xi1> to vector<512x16xi32>
    %8 = arith.sitofp %7 : vector<512x16xi32> to vector<512x16xf32>
    %c0_2 = arith.constant 0 : index
    %c0_3 = arith.constant 0 : index
    %9 = vector.load %arg4[%c0_2, %c0_3] : memref<512x1xi32, #tpu.memory_space<vmem>>, vector<512x1xi32>
    %10 = vector.broadcast %9 : vector<512x1xi32> to vector<512x16xi32>
    %11 = arith.cmpi eq, %3, %10 : vector<512x16xi32>
    %12 = arith.extui %11 : vector<512x16xi1> to vector<512x16xi32>
    %13 = arith.sitofp %12 : vector<512x16xi32> to vector<512x16xf32>
    %c512_i32 = arith.constant 512 : i32
    %14 = arith.muli %arg0, %c512_i32 : i32
    %15 = tpu.iota {dimensions = array<i32: 0>} : vector<512x1xi32>
    %16 = vector.broadcast %14 : i32 to vector<512x1xi32>
    %17 = arith.addi %16, %15 : vector<512x1xi32>
    %c1000_i32 = arith.constant 1000 : i32
    %18 = vector.broadcast %c1000_i32 : i32 to vector<512x1xi32>
    %19 = arith.cmpi slt, %17, %18 : vector<512x1xi32>
    %20 = arith.extui %19 : vector<512x1xi1> to vector<512x1xi32>
    %21 = arith.sitofp %20 : vector<512x1xi32> to vector<512x1xf32>
    %c0_4 = arith.constant 0 : index
    %c0_5 = arith.constant 0 : index
    %22 = vector.load %arg16[%c0_4, %c0_5] : memref<16x128xf32, #tpu.memory_space<vmem>>, vector<16x64xf32>
    %cst = arith.constant dense<0.000000e+00> : vector<512x64xf32>
    %23 = tpu.matmul %8, %22, %cst {dimension_numbers = #tpu.dot_dimension_numbers<[1], [0], [0], [1], [0, 0, 1, 1], [], []>} : vector<512x16xf32>, vector<16x64xf32>, vector<512x64xf32> -> vector<512x64xf32>
    %c0_6 = arith.constant 0 : index
    %c64 = arith.constant 64 : index
    %24 = vector.load %arg16[%c0_6, %c64] : memref<16x128xf32, #tpu.memory_space<vmem>>, vector<16x32xf32>
    %cst_7 = arith.constant dense<0.000000e+00> : vector<512x32xf32>
    %25 = tpu.matmul %13, %24, %cst_7 {dimension_numbers = #tpu.dot_dimension_numbers<[1], [0], [0], [1], [0, 0, 1, 1], [], []>} : vector<512x16xf32>, vector<16x32xf32>, vector<512x32xf32> -> vector<512x32xf32>
    %26 = vector.extract_strided_slice %23 {offsets = [0, 0], sizes = [512, 32], strides = [1, 1]} : vector<512x64xf32> to vector<512x32xf32>
    %27 = arith.addf %26, %25 : vector<512x32xf32>
    %c0_8 = arith.constant 0 : index
    %c0_9 = arith.constant 0 : index
    %28 = vector.load %arg2[%c0_8, %c0_9] : memref<512x32xf32, #tpu.memory_space<vmem>>, vector<512x32xf32>
    %c0_10 = arith.constant 0 : index
    %c0_11 = arith.constant 0 : index
    %29 = vector.load %arg7[%c0_10, %c0_11] : memref<32x32xf32, #tpu.memory_space<vmem>>, vector<32x32xf32>
    %cst_12 = arith.constant dense<0.000000e+00> : vector<512x32xf32>
    %30 = tpu.matmul %28, %29, %cst_12 {dimension_numbers = #tpu.dot_dimension_numbers<[1], [0], [0], [1], [0, 0, 1, 1], [], []>} : vector<512x32xf32>, vector<32x32xf32>, vector<512x32xf32> -> vector<512x32xf32>
    %31 = arith.addf %27, %30 : vector<512x32xf32>
    %c0_13 = arith.constant 0 : index
    %c0_14 = arith.constant 0 : index
    %32 = vector.load %arg8[%c0_13, %c0_14] : memref<1x32xf32, #tpu.memory_space<vmem>>, vector<1x32xf32>
    %33 = vector.broadcast %32 : vector<1x32xf32> to vector<512x32xf32>
    %34 = arith.addf %31, %33 : vector<512x32xf32>
    %c0_15 = arith.constant 0 : index
    %c0_16 = arith.constant 0 : index
    %35 = vector.load %arg14[%c0_15, %c0_16] : memref<512x32xf32, #tpu.memory_space<vmem>>, vector<512x32xf32>
    tpu.vector_store %arg14[%c0_15, %c0_16], %34 {strides = array<i32>} : memref<512x32xf32, #tpu.memory_space<vmem>>, vector<512x32xf32>,
    %c0_i32_17 = arith.constant 0 : i32
    %36 = arith.cmpi eq, %arg0, %c0_i32_17 : i32
    %37 = arith.extui %36 : i1 to i32
    %c0_i32_18 = arith.constant 0 : i32
    %38 = arith.cmpi ne, %37, %c0_i32_18 : i32
    scf.if %38 {
      %cst_44 = arith.constant dense<0.000000e+00> : vector<1xf32>
      %85 = vector.multi_reduction <add>, %21, %cst_44 [0] : vector<512x1xf32> to vector<1xf32>
      %86 = vector.shape_cast %85 : vector<1xf32> to vector<1x1xf32>
      %cst_45 = arith.constant 1.000000e+00 : f32
      %87 = vector.broadcast %cst_45 : f32 to vector<1x1xf32>
      %88 = arith.maximumf %86, %87 : vector<1x1xf32>
      %89 = vector.broadcast %21 : vector<512x1xf32> to vector<512x32xf32>
      %90 = arith.mulf %34, %89 : vector<512x32xf32>
      %cst_46 = arith.constant dense<0.000000e+00> : vector<32xf32>
      %91 = vector.multi_reduction <add>, %90, %cst_46 [0] : vector<512x32xf32> to vector<32xf32>
      %92 = vector.shape_cast %91 : vector<32xf32> to vector<1x32xf32>
      %93 = vector.broadcast %88 : vector<1x1xf32> to vector<1x32xf32>
      %94 = arith.divf %92, %93 : vector<1x32xf32>
      %c0_47 = arith.constant 0 : index
      %c0_48 = arith.constant 0 : index
      %95 = vector.load %arg19[%c0_47, %c0_48] : memref<3x32xf32, #tpu.memory_space<vmem>>, vector<1x32xf32>
      tpu.vector_store %arg19[%c0_47, %c0_48], %94 {strides = array<i32>} : memref<3x32xf32, #tpu.memory_space<vmem>>, vector<1x32xf32>,
    } else {
    }
    %39 = math.absf %34 : vector<512x32xf32>
    %cst_19 = arith.constant 0.000000e+00 : f32
    %40 = vector.broadcast %cst_19 : f32 to vector<512x32xf32>
    %41 = arith.subf %40, %39 : vector<512x32xf32>
    %42 = math.exp %41 : vector<512x32xf32>
    %cst_20 = arith.constant 1.000000e+00 : f32
    %43 = vector.broadcast %cst_20 : f32 to vector<512x32xf32>
    %44 = arith.addf %43, %42 : vector<512x32xf32>
    %45 = tpu.reciprocal %44 {approx = true} : vector<512x32xf32> -> vector<512x32xf32>
    %46 = arith.mulf %44, %45 : vector<512x32xf32>
    %cst_21 = arith.constant 2.000000e+00 : f32
    %47 = vector.broadcast %cst_21 : f32 to vector<512x32xf32>
    %48 = arith.subf %47, %46 : vector<512x32xf32>
    %49 = arith.mulf %45, %48 : vector<512x32xf32>
    %cst_22 = arith.constant 0.000000e+00 : f32
    %50 = vector.broadcast %cst_22 : f32 to vector<512x32xf32>
    %51 = arith.cmpf oge, %34, %50 : vector<512x32xf32>
    %52 = arith.mulf %42, %49 : vector<512x32xf32>
    %53 = arith.select %51, %49, %52 : vector<512x32xi1>, vector<512x32xf32>
    %54 = vector.broadcast %21 : vector<512x1xf32> to vector<512x32xf32>
    %55 = arith.mulf %53, %54 : vector<512x32xf32>
    %c0_23 = arith.constant 0 : index
    %c0_24 = arith.constant 0 : index
    %56 = vector.load %arg17[%c0_23, %c0_24] : memref<16x32xf32, #tpu.memory_space<vmem>>, vector<16x32xf32>
    %57 = vector.extract_strided_slice %23 {offsets = [0, 32], sizes = [512, 32], strides = [1, 1]} : vector<512x64xf32> to vector<512x32xf32>
    %58 = arith.mulf %57, %55 : vector<512x32xf32>
    %cst_25 = arith.constant dense<0.000000e+00> : vector<16x32xf32>
    %59 = tpu.matmul %13, %58, %cst_25 {dimension_numbers = #tpu.dot_dimension_numbers<[0], [0], [1], [1], [0, 1, 1, 1], [], []>} : vector<512x16xf32>, vector<512x32xf32>, vector<16x32xf32> -> vector<16x32xf32>
    %60 = arith.addf %56, %59 : vector<16x32xf32>
    %c0_26 = arith.constant 0 : index
    %c0_27 = arith.constant 0 : index
    %61 = vector.load %arg17[%c0_26, %c0_27] : memref<16x32xf32, #tpu.memory_space<vmem>>, vector<16x32xf32>
    tpu.vector_store %arg17[%c0_26, %c0_27], %60 {strides = array<i32>} : memref<16x32xf32, #tpu.memory_space<vmem>>, vector<16x32xf32>,
    %c0_28 = arith.constant 0 : index
    %c0_29 = arith.constant 0 : index
    %62 = vector.load %arg18[%c0_28, %c0_29] : memref<16x32xf32, #tpu.memory_space<vmem>>, vector<16x32xf32>
    %cst_30 = arith.constant dense<0.000000e+00> : vector<16x32xf32>
    %63 = tpu.matmul %13, %55, %cst_30 {dimension_numbers = #tpu.dot_dimension_numbers<[0], [0], [1], [1], [0, 1, 1, 1], [], []>} : vector<512x16xf32>, vector<512x32xf32>, vector<16x32xf32> -> vector<16x32xf32>
    %64 = arith.addf %62, %63 : vector<16x32xf32>
    %c0_31 = arith.constant 0 : index
    %c0_32 = arith.constant 0 : index
    %65 = vector.load %arg18[%c0_31, %c0_32] : memref<16x32xf32, #tpu.memory_space<vmem>>, vector<16x32xf32>
    tpu.vector_store %arg18[%c0_31, %c0_32], %64 {strides = array<i32>} : memref<16x32xf32, #tpu.memory_space<vmem>>, vector<16x32xf32>,
    %c0_33 = arith.constant 0 : index
    %c0_34 = arith.constant 0 : index
    %66 = vector.load %arg19[%c0_33, %c0_34] : memref<3x32xf32, #tpu.memory_space<vmem>>, vector<1x32xf32>
    %67 = vector.broadcast %66 : vector<1x32xf32> to vector<512x32xf32>
    %68 = arith.subf %34, %67 : vector<512x32xf32>
    %69 = vector.broadcast %21 : vector<512x1xf32> to vector<512x32xf32>
    %70 = arith.mulf %68, %69 : vector<512x32xf32>
    %c1 = arith.constant 1 : index
    %c0_35 = arith.constant 0 : index
    %71 = vector.load %arg19[%c1, %c0_35] : memref<3x32xf32, #tpu.memory_space<vmem>>, vector<1x32xf32>
    %cst_36 = arith.constant dense<0.000000e+00> : vector<32xf32>
    %72 = vector.multi_reduction <add>, %70, %cst_36 [0] : vector<512x32xf32> to vector<32xf32>
    %73 = vector.shape_cast %72 : vector<32xf32> to vector<1x32xf32>
    %74 = arith.addf %71, %73 : vector<1x32xf32>
    %c1_37 = arith.constant 1 : index
    %c0_38 = arith.constant 0 : index
    %75 = vector.load %arg19[%c1_37, %c0_38] : memref<3x32xf32, #tpu.memory_space<vmem>>, vector<1x32xf32>
    tpu.vector_store %arg19[%c1_37, %c0_38], %74 {strides = array<i32>} : memref<3x32xf32, #tpu.memory_space<vmem>>, vector<1x32xf32>,
    %c2 = arith.constant 2 : index
    %c0_39 = arith.constant 0 : index
    %76 = vector.load %arg19[%c2, %c0_39] : memref<3x32xf32, #tpu.memory_space<vmem>>, vector<1x32xf32>
    %77 = arith.mulf %70, %70 : vector<512x32xf32>
    %cst_40 = arith.constant dense<0.000000e+00> : vector<32xf32>
    %78 = vector.multi_reduction <add>, %77, %cst_40 [0] : vector<512x32xf32> to vector<32xf32>
    %79 = vector.shape_cast %78 : vector<32xf32> to vector<1x32xf32>
    %80 = arith.addf %76, %79 : vector<1x32xf32>
    %c2_41 = arith.constant 2 : index
    %c0_42 = arith.constant 0 : index
    %81 = vector.load %arg19[%c2_41, %c0_42] : memref<3x32xf32, #tpu.memory_space<vmem>>, vector<1x32xf32>
    tpu.vector_store %arg19[%c2_41, %c0_42], %80 {strides = array<i32>} : memref<3x32xf32, #tpu.memory_space<vmem>>, vector<1x32xf32>,
    %c1_i32 = arith.constant 1 : i32
    %82 = arith.cmpi eq, %arg0, %c1_i32 : i32
    %83 = arith.extui %82 : i1 to i32
    %c0_i32_43 = arith.constant 0 : i32
    %84 = arith.cmpi ne, %83, %c0_i32_43 : i32
    scf.if %84 {
      %c0_44 = arith.constant 0 : index
      %c0_45 = arith.constant 0 : index
      %85 = vector.load %arg17[%c0_44, %c0_45] : memref<16x32xf32, #tpu.memory_space<vmem>>, vector<16x32xf32>
      %c0_46 = arith.constant 0 : index
      %c0_47 = arith.constant 0 : index
      %86 = vector.load %arg18[%c0_46, %c0_47] : memref<16x32xf32, #tpu.memory_space<vmem>>, vector<16x32xf32>
      %cst_48 = arith.constant 9.99999997E-7 : f32
      %87 = vector.broadcast %cst_48 : f32 to vector<16x32xf32>
      %88 = arith.addf %86, %87 : vector<16x32xf32>
      %89 = tpu.reciprocal %88 {approx = true} : vector<16x32xf32> -> vector<16x32xf32>
      %90 = arith.mulf %88, %89 : vector<16x32xf32>
      %cst_49 = arith.constant 2.000000e+00 : f32
      %91 = vector.broadcast %cst_49 : f32 to vector<16x32xf32>
      %92 = arith.subf %91, %90 : vector<16x32xf32>
      %93 = arith.mulf %89, %92 : vector<16x32xf32>
      %94 = arith.mulf %85, %93 : vector<16x32xf32>
      %c0_50 = arith.constant 0 : index
      %c96 = arith.constant 96 : index
      %95 = vector.load %arg16[%c0_50, %c96] : memref<16x128xf32, #tpu.memory_space<vmem>>, vector<16x32xf32>
      %96 = arith.addf %95, %94 : vector<16x32xf32>
      %cst_51 = arith.constant dense<0.000000e+00> : vector<32xf32>
      %97 = vector.multi_reduction <add>, %96, %cst_51 [0] : vector<16x32xf32> to vector<32xf32>
      %98 = vector.shape_cast %97 : vector<32xf32> to vector<1x32xf32>
      %cst_52 = arith.constant 1.600000e+01 : f32
      %99 = vector.broadcast %cst_52 : f32 to vector<1x32xf32>
      %100 = arith.divf %98, %99 : vector<1x32xf32>
      %101 = vector.broadcast %100 : vector<1x32xf32> to vector<16x32xf32>
      %102 = arith.subf %96, %101 : vector<16x32xf32>
      %103 = arith.mulf %102, %102 : vector<16x32xf32>
      %cst_53 = arith.constant dense<0.000000e+00> : vector<32xf32>
      %104 = vector.multi_reduction <add>, %103, %cst_53 [0] : vector<16x32xf32> to vector<32xf32>
      %105 = vector.shape_cast %104 : vector<32xf32> to vector<1x32xf32>
      %cst_54 = arith.constant 1.600000e+01 : f32
      %106 = vector.broadcast %cst_54 : f32 to vector<1x32xf32>
      %107 = arith.divf %105, %106 : vector<1x32xf32>
      %108 = vector.broadcast %100 : vector<1x32xf32> to vector<16x32xf32>
      %109 = arith.subf %96, %108 : vector<16x32xf32>
      %cst_55 = arith.constant 9.99999974E-6 : f32
      %110 = vector.broadcast %cst_55 : f32 to vector<1x32xf32>
      %111 = arith.addf %107, %110 : vector<1x32xf32>
      %112 = math.rsqrt %111 : vector<1x32xf32>
      %113 = vector.broadcast %112 : vector<1x32xf32> to vector<16x32xf32>
      %114 = arith.mulf %109, %113 : vector<16x32xf32>
      %c0_56 = arith.constant 0 : index
      %c0_57 = arith.constant 0 : index
      %115 = vector.load %arg9[%c0_56, %c0_57] : memref<1x32xf32, #tpu.memory_space<vmem>>, vector<1x32xf32>
      %116 = vector.broadcast %115 : vector<1x32xf32> to vector<16x32xf32>
      %117 = arith.mulf %114, %116 : vector<16x32xf32>
      %c0_58 = arith.constant 0 : index
      %c0_59 = arith.constant 0 : index
      %118 = vector.load %arg10[%c0_58, %c0_59] : memref<1x32xf32, #tpu.memory_space<vmem>>, vector<1x32xf32>
      %119 = vector.broadcast %118 : vector<1x32xf32> to vector<16x32xf32>
      %120 = arith.addf %117, %119 : vector<16x32xf32>
      %c0_60 = arith.constant 0 : index
      %c0_61 = arith.constant 0 : index
      %121 = vector.load %arg1[%c0_60, %c0_61] : memref<16x32xf32, #tpu.memory_space<vmem>>, vector<16x32xf32>
      %cst_62 = arith.constant 0.000000e+00 : f32
      %cst_63 = arith.constant 6.000000e+00 : f32
      %122 = vector.broadcast %cst_62 : f32 to vector<16x32xf32>
      %123 = arith.maximumf %122, %120 : vector<16x32xf32>
      %124 = vector.broadcast %cst_63 : f32 to vector<16x32xf32>
      %125 = arith.minimumf %124, %123 : vector<16x32xf32>
      %126 = arith.addf %121, %125 : vector<16x32xf32>
      %c0_64 = arith.constant 0 : index
      %c0_65 = arith.constant 0 : index
      %127 = vector.load %arg13[%c0_64, %c0_65] : memref<16x32xf32, #tpu.memory_space<vmem>>, vector<16x32xf32>
      tpu.vector_store %arg13[%c0_64, %c0_65], %126 {strides = array<i32>} : memref<16x32xf32, #tpu.memory_space<vmem>>, vector<16x32xf32>,
      %c1_66 = arith.constant 1 : index
      %c0_67 = arith.constant 0 : index
      %128 = vector.load %arg19[%c1_66, %c0_67] : memref<3x32xf32, #tpu.memory_space<vmem>>, vector<1x32xf32>
      %cst_68 = arith.constant 1.000000e-03 : f32
      %129 = vector.broadcast %cst_68 : f32 to vector<1x32xf32>
      %130 = arith.mulf %128, %129 : vector<1x32xf32>
      %c0_69 = arith.constant 0 : index
      %c0_70 = arith.constant 0 : index
      %131 = vector.load %arg19[%c0_69, %c0_70] : memref<3x32xf32, #tpu.memory_space<vmem>>, vector<1x32xf32>
      %132 = arith.addf %131, %130 : vector<1x32xf32>
      %c2_71 = arith.constant 2 : index
      %c0_72 = arith.constant 0 : index
      %133 = vector.load %arg19[%c2_71, %c0_72] : memref<3x32xf32, #tpu.memory_space<vmem>>, vector<1x32xf32>
      %cst_73 = arith.constant 1.000000e-03 : f32
      %134 = vector.broadcast %cst_73 : f32 to vector<1x32xf32>
      %135 = arith.mulf %133, %134 : vector<1x32xf32>
      %136 = arith.mulf %130, %130 : vector<1x32xf32>
      %137 = arith.subf %135, %136 : vector<1x32xf32>
      %c0_74 = arith.constant 0 : index
      %c0_75 = arith.constant 0 : index
      %138 = vector.load %arg11[%c0_74, %c0_75] : memref<1x32xf32, #tpu.memory_space<vmem>>, vector<1x32xf32>
      %cst_76 = arith.constant 9.99999974E-6 : f32
      %139 = vector.broadcast %cst_76 : f32 to vector<1x32xf32>
      %140 = arith.addf %137, %139 : vector<1x32xf32>
      %141 = math.rsqrt %140 : vector<1x32xf32>
      %142 = arith.mulf %138, %141 : vector<1x32xf32>
      %c0_77 = arith.constant 0 : index
      %c0_78 = arith.constant 0 : index
      %143 = vector.load %arg15[%c0_77, %c0_78] : memref<2x32xf32, #tpu.memory_space<vmem>>, vector<1x32xf32>
      tpu.vector_store %arg15[%c0_77, %c0_78], %142 {strides = array<i32>} : memref<2x32xf32, #tpu.memory_space<vmem>>, vector<1x32xf32>,
      %c0_79 = arith.constant 0 : index
      %c0_80 = arith.constant 0 : index
      %144 = vector.load %arg12[%c0_79, %c0_80] : memref<1x32xf32, #tpu.memory_space<vmem>>, vector<1x32xf32>
      %145 = arith.mulf %132, %142 : vector<1x32xf32>
      %146 = arith.subf %144, %145 : vector<1x32xf32>
      %c1_81 = arith.constant 1 : index
      %c0_82 = arith.constant 0 : index
      %147 = vector.load %arg15[%c1_81, %c0_82] : memref<2x32xf32, #tpu.memory_space<vmem>>, vector<1x32xf32>
      tpu.vector_store %arg15[%c1_81, %c0_82], %146 {strides = array<i32>} : memref<2x32xf32, #tpu.memory_space<vmem>>, vector<1x32xf32>,
    } else {
    }
    return
  }
  func.func @transform_0(%arg0: i32) -> (i32, i32) {
    %c0_i32 = arith.constant 0 : i32
    %c0_i32_0 = arith.constant 0 : i32
    %c0_i32_1 = arith.constant 0 : i32
    return %c0_i32, %c0_i32_0 : i32, i32
  }
  func.func @transform_1(%arg0: i32) -> (i32, i32) {
    %c0_i32 = arith.constant 0 : i32
    %c0_i32_0 = arith.constant 0 : i32
    return %arg0, %c0_i32 : i32, i32
  }
  func.func @transform_2(%arg0: i32) -> (i32, i32) {
    %c0_i32 = arith.constant 0 : i32
    %c0_i32_0 = arith.constant 0 : i32
    return %arg0, %c0_i32 : i32, i32
  }
  func.func @transform_3(%arg0: i32) -> (i32, i32) {
    %c0_i32 = arith.constant 0 : i32
    %c0_i32_0 = arith.constant 0 : i32
    return %arg0, %c0_i32 : i32, i32
  }
  func.func @transform_4(%arg0: i32) -> (i32, i32) {
    %c0_i32 = arith.constant 0 : i32
    %c0_i32_0 = arith.constant 0 : i32
    %c0_i32_1 = arith.constant 0 : i32
    return %c0_i32, %c0_i32_0 : i32, i32
  }
  func.func @transform_5(%arg0: i32) -> (i32, i32) {
    %c0_i32 = arith.constant 0 : i32
    %c0_i32_0 = arith.constant 0 : i32
    %c0_i32_1 = arith.constant 0 : i32
    return %c0_i32, %c0_i32_0 : i32, i32
  }
  func.func @transform_6(%arg0: i32) -> (i32, i32) {
    %c0_i32 = arith.constant 0 : i32
    %c0_i32_0 = arith.constant 0 : i32
    %c0_i32_1 = arith.constant 0 : i32
    return %c0_i32, %c0_i32_0 : i32, i32
  }
  func.func @transform_7(%arg0: i32) -> (i32, i32) {
    %c0_i32 = arith.constant 0 : i32
    %c0_i32_0 = arith.constant 0 : i32
    %c0_i32_1 = arith.constant 0 : i32
    return %c0_i32, %c0_i32_0 : i32, i32
  }
  func.func @transform_8(%arg0: i32) -> (i32, i32) {
    %c0_i32 = arith.constant 0 : i32
    %c0_i32_0 = arith.constant 0 : i32
    %c0_i32_1 = arith.constant 0 : i32
    return %c0_i32, %c0_i32_0 : i32, i32
  }
  func.func @transform_9(%arg0: i32) -> (i32, i32) {
    %c0_i32 = arith.constant 0 : i32
    %c0_i32_0 = arith.constant 0 : i32
    %c0_i32_1 = arith.constant 0 : i32
    return %c0_i32, %c0_i32_0 : i32, i32
  }
  func.func @transform_10(%arg0: i32) -> (i32, i32) {
    %c0_i32 = arith.constant 0 : i32
    %c0_i32_0 = arith.constant 0 : i32
    %c0_i32_1 = arith.constant 0 : i32
    return %c0_i32, %c0_i32_0 : i32, i32
  }
  func.func @transform_11(%arg0: i32) -> (i32, i32) {
    %c0_i32 = arith.constant 0 : i32
    %c0_i32_0 = arith.constant 0 : i32
    %c0_i32_1 = arith.constant 0 : i32
    return %c0_i32, %c0_i32_0 : i32, i32
  }
  func.func @transform_12(%arg0: i32) -> (i32, i32) {
    %c0_i32 = arith.constant 0 : i32
    %c0_i32_0 = arith.constant 0 : i32
    %c0_i32_1 = arith.constant 0 : i32
    return %c0_i32, %c0_i32_0 : i32, i32
  }
  func.func @transform_13(%arg0: i32) -> (i32, i32) {
    %c0_i32 = arith.constant 0 : i32
    %c0_i32_0 = arith.constant 0 : i32
    return %arg0, %c0_i32 : i32, i32
  }
  func.func @transform_14(%arg0: i32) -> (i32, i32) {
    %c0_i32 = arith.constant 0 : i32
    %c0_i32_0 = arith.constant 0 : i32
    %c0_i32_1 = arith.constant 0 : i32
    return %c0_i32, %c0_i32_0 : i32, i32
  }
}

</mosaic_0001>

<bundles_post_ra>
// kernel: tpu_custom_call.1
= control target key start
LH: loop header
LB: loop body
LE: loop exit
PB: predicated region body
PF: predicated region fallthrough
CT: control target
= control target key end

     0   :  { %20 = vsyncpa [#allocation7], 0  ;;  %s12747_s0 = inlined_call_operand.vmem [shape: f32[16,32], index: 0, kind: input, shape index: {}]   ;;  %s12748_s1 = inlined_call_operand.vmem [shape: f32[1024,32], index: 1, kind: input, shape index: {}]   ;;  %s12749_s2 = inlined_call_operand.vmem [shape: s32[1024,1], index: 2, kind: input, shape index: {}]   ;;  %s12750_s3 = inlined_call_operand.vmem [shape: s32[1024,1], index: 3, kind: input, shape index: {}]   ;;  %s12751_s4 = inlined_call_operand.vmem [shape: f32[32,128], index: 4, kind: input, shape index: {}]   ;;  %s12752_s5 = inlined_call_operand.vmem [shape: f32[1,128], index: 5, kind: input, shape index: {}]   ;;  %s12753_s6 = inlined_call_operand.vmem [shape: f32[32,32], index: 6, kind: input, shape index: {}]   ;;  %s12754_s7 = inlined_call_operand.vmem [shape: f32[1,32], index: 7, kind: input, shape index: {}]   ;;  %s12755_s8 = inlined_call_operand.vmem [shape: f32[1,32], index: 8, kind: input, shape index: {}]   ;;  %s12756_s9 = inlined_call_operand.vmem [shape: f32[1,32], index: 9, kind: input, shape index: {}]   ;;  %s12757_s10 = inlined_call_operand.vmem [shape: f32[1,32], index: 10, kind: input, shape index: {}]   ;;  %s12758_s11 = inlined_call_operand.vmem [shape: f32[1,32], index: 11, kind: input, shape index: {}]   ;;  %s12759_s12 = inlined_call_operand.hbm [shape: f32[16,32], index: 12, kind: output, shape index: {0}]   ;;  %s12760_s13 = inlined_call_operand.vmem [shape: f32[1024,32], index: 13, kind: output, shape index: {1}]   ;;  %s12761_s14 = inlined_call_operand.hbm [shape: f32[2,32], index: 14, kind: output, shape index: {2}]  }
   0x1   :  { %21 = vsyncpa [#allocation9], 0  ;;  %s8379_s29 = smov 0  }
   0x2 LB: > { %s8385_s30 = sadd.s32 4294967295, %s8290_s29   ;;  %p6757_p0 = scmp.ge.s32.totalorder %s8290_s29, 1  ;;  %s8290_s29 = sphi %s8379_s29, %s27_s29  }
   0x3   : > { %p432_p1 = scmp.lt.s32.totalorder %s8290_s29, 3 }
   0x5   : > { %p433_p2 = pnand %p6757_p0, %p432_p1 }
   0x7   : > { %436 = sbr.rel (%p433_p2) target bundleno = 2163 (0x873), region = 68 }
   0xc   : > { %s6758_s15 = sshll.u32 %s8385_s30, 6  ;;  %p6766_p4 = scmp.ne.s32.totalorder %s8385_s30, 0 }
   0xd   : > { %p489_p3 = scmp.lt.s32.totalorder %s6758_s15, 127 }
   0xe   : > { %515 = sbr.rel (%p6766_p4) target bundleno = 226 (0xe2), region = 72 }
   0xf   : > { %s14161_s15 = smov (!%p489_p3, %s6758_s15), 127 }
  0x10   : > { %s6759_s16 = sshll.u32 %s14161_s15, 3 }
  0x11   : > { %s8393_s19 = scalar_lea.vmem %s12748_s1, %s6759_s16  ;;  %s8398_s22 = scalar_lea.vmem %s12749_s2, %s6759_s16 }
  0x12   : > { %s8403_s25 = scalar_lea.vmem %s12750_s3, %s6759_s16  ;;  %s8408_s28 = scalar_lea.vmem %s12760_s13, %s6759_s16 }
  0x13   : > { %v521_v0 = vld [vmem:[%s12751_s4 + $0x18] sm:$0xff]  ;;  %v520_v1 = vld [vmem:[%s12751_s4 + $0x10] sm:$0xff]  ;;  %vm529_vm0 = vcmask 261120   ;;  %vm617_vm1 = vcmask 256000   ;;  %v516_v2 = vld [vmem:[%s12747_s0] sm:$0xff]  ;;  %v8292_v3 = vmov 0.0  }
  0x14   : > { %7525 = vmatprep.subr.mxu0 %v521_v0  ;;  %613 = vst.msk [vmem:[#allocation3] sm:$0xff] %vm529_vm0, %v8292_v3  ;;  %614 = vst.msk [vmem:[#allocation3 + $0x8] sm:$0xff] %vm529_vm0, %v8292_v3  ;;  %v519_v4 = vld [vmem:[%s12751_s4 + $0x8] sm:$0xff]  ;;  %7533 = vmatprep.mubr.msk.f32.mxu0 %vm529_vm0, %v516_v2  ;;  %v518_v5 = vld [vmem:[%s12751_s4] sm:$0xff] }
  0x15   : > { %615 = vst.msk [vmem:[#allocation4] sm:$0xff] %vm529_vm0, %v8292_v3  ;;  %616 = vst.msk [vmem:[#allocation4 + $0x8] sm:$0xff] %vm529_vm0, %v8292_v3  ;;  %7526 = vmatpush3.msra.mxu0 %v521_v0  ;;  %v517_v6 = vld [vmem:[%s12747_s0 + $0x8] sm:$0xff]  ;;  %v6767_v7 = vld [vmem:[%s12752_s5] ss:$0 sm:$0xff] }
  0x16   : > { %618 = vst.msk [vmem:[#allocation5] sm:$0x7] %vm617_vm1, %v8292_v3  ;;  %7527 = vmatprep.subr.mxu0 %v520_v1 }
  0x17   : > { %7528 = vmatpush3.msra.mxu0 %v520_v1 }
  0x18   : > { %7529 = vmatprep.subr.mxu0 %v519_v4 }
  0x19   : > { %7530 = vmatpush3.msra.mxu0 %v519_v4 }
  0x1a   : > { %7531 = vmatprep.subr.mxu0 %v518_v5 }
  0x1b   : > { %7532 = vmatpush3.msra.mxu0 %v518_v5 }
  0x1c   : > { %7534 = vmatmul.mubr.msk.f32.vlgmr.msra.gmra.mxu0 %vm529_vm0, %v517_v6 }
  0xdc   : > { %v7535_v8 = vpop.f32.mrf.mxu0 }
  0xdd   : > { %v608_v9 = vadd.f32 %v7535_v8, %v6767_v7 }
  0xde   : > { %v602_v10 = vpop.f32.mrf.mxu0 }
  0xdf   : > { %612 = vst [vmem:[#allocation2 + $0x8] sm:$0xff] %v608_v9  ;;  %v603_v11 = vadd.f32 %v6767_v7, %v602_v10 }
  0xe1   : > { %611 = vst [vmem:[#allocation2] sm:$0xff] %v603_v11 }
  0xe2 PF: > { %v623_v12 = vld [vmem:[%s8398_s22 + $0x10] sm:$0xff]  ;;  %v621_v13 = vld [vmem:[%s8398_s22] sm:$0xff]  ;;  %v8293_v14 = vmov 0   ;;  %v624_v15 = vld [vmem:[%s8398_s22 + $0x18] sm:$0xff]  ;;  %v12762_v17 = vlaneseq  ;;  %s6898_s21 = sshll.u32 %s8385_s30, 9  ;;  %s8295_s26 = smov 64  }
  0xe3   : > { %7877 = vset.pattern.permute.xlu1 %v8293_v14  ;;  %7876 = vset.pattern.permute.xlu0 %v8293_v14  ;;  %v622_v16 = vld [vmem:[%s8398_s22 + $0x8] sm:$0xff]  ;;  %v625_v20 = vld [vmem:[%s8398_s22 + $0x20] sm:$0xff]  ;;  %v8450_v21 = vstv %s6898_s21  ;;  %v628_v24 = vld [vmem:[%s8398_s22 + $0x38] sm:$0xff] }
  0xe4   : > { %692 = vperm.xlu1 %7877, %v623_v12   ;;  %686 = vperm.xlu0 %7876, %v621_v13   ;;  %v8446_v18 = vshrl.u32 %v12762_v17, 7  ;;  %v626_v19 = vld [vmem:[%s8398_s22 + $0x28] sm:$0xff]  ;;  %v627_v25 = vld [vmem:[%s8398_s22 + $0x30] sm:$0xff]  ;;  %v629_v41 = vld [vmem:[%s8398_s22 + $0x40] sm:$0xff] }
  0xe5   : > { %v630_v40 = vld [vmem:[%s8398_s22 + $0x48] sm:$0xff]  ;;  %v632_v58 = vld [vmem:[%s8398_s22 + $0x58] sm:$0xff]  ;;  %v631_v59 = vld [vmem:[%s8398_s22 + $0x50] sm:$0xff] }
  0xe6   : > { %v1520_v22 = vadd.s32 8, %v8446_v18  ;;  %v1521_v23 = vadd.s32 16, %v8446_v18  ;;  %v1522_v26 = vadd.s32 24, %v8446_v18  ;;  %v8459_v27 = vadd.s32 %v8450_v21, %v8446_v18  ;;  %v8553_v4 = vld [vmem:[#allocation2 + $0x8] sm:$0xff] }
  0xe7   : > { %v1523_v28 = vadd.s32 32, %v8446_v18  ;;  %v1524_v29 = vadd.s32 40, %v8446_v18  ;;  %v1525_v30 = vadd.s32 48, %v8446_v18  ;;  %v1526_v31 = vadd.s32 56, %v8446_v18  ;;  %13235 = vst [vmem:[#allocation14_spill] sm:$0xff] %v8553_v4  ;;  %v634_v14 = vld [vmem:[%s8398_s22 + $0x68] sm:$0xff]  ;;  %7536 = vmatprep.subr.mxu0 %v8553_v4  ;;  %7840 = vmatprep.subr.mxu1 %v8553_v4 }
  0xe8   : > { %695 = vperm.xlu1 %7877, %v624_v15   ;;  %689 = vperm.xlu0 %7876, %v622_v16   ;;  %v1527_v32 = vadd.s32 64, %v8446_v18  ;;  %v1528_v33 = vadd.s32 72, %v8446_v18  ;;  %v1529_v34 = vadd.s32 80, %v8446_v18  ;;  %v8469_v35 = vadd.s32 %v8450_v21, %v1520_v22  ;;  %v8567_v9 = vld [vmem:[#allocation2] sm:$0xff] }
  0xe9   : > { %v1530_v36 = vadd.s32 88, %v8446_v18  ;;  %v1531_v37 = vadd.s32 96, %v8446_v18  ;;  %v1532_v38 = vadd.s32 104, %v8446_v18  ;;  %v8475_v39 = vadd.s32 %v8450_v21, %v1521_v23  ;;  %13237 = vst [vmem:[#allocation16_spill] sm:$0xff] %v8567_v9  ;;  %v633_v15 = vld [vmem:[%s8398_s22 + $0x60] sm:$0xff]  ;;  %7537 = vmatpush3.msra.mxu0 %v8553_v4  ;;  %7842 = vmatpush3.msra.mxu1 %v8553_v4  ;;  %v8668_v4 = vld [vmem:[%s12753_s6 + $0x18] sm:$0xff] }
  0xea   : > { %v8480_v42 = vadd.s32 112, %v8446_v18  ;;  %v8483_v43 = vadd.s32 120, %v8446_v18  ;;  %v8486_v44 = vadd.s32 128, %v8446_v18  ;;  %v8489_v45 = vadd.s32 %v8450_v21, %v1522_v26  ;;  %7538 = vmatprep.subr.mxu0 %v8567_v9  ;;  %13244 = vst [vmem:[#allocation23_spill] sm:$0xff] %v8668_v4  ;;  %7841 = vmatprep.subr.mxu1 %v8567_v9 }
  0xeb   : > { %v8492_v46 = vadd.s32 136, %v8446_v18  ;;  %v8495_v47 = vadd.s32 144, %v8446_v18  ;;  %v8498_v48 = vadd.s32 152, %v8446_v18  ;;  %v8501_v49 = vadd.s32 %v8450_v21, %v1523_v28  ;;  %7539 = vmatpush3.msra.mxu0 %v8567_v9  ;;  %7843 = vmatpush3.msra.mxu1 %v8567_v9  ;;  %v640_v9 = vld [vmem:[%s8398_s22 + $0x98] sm:$0xff] }
  0xec   : > { %701 = vperm.xlu1 %7877, %v626_v19   ;;  %698 = vperm.xlu0 %7876, %v625_v20   ;;  %v8504_v50 = vadd.s32 160, %v8446_v18  ;;  %v8507_v51 = vadd.s32 168, %v8446_v18  ;;  %v8510_v52 = vadd.s32 176, %v8446_v18  ;;  %v8513_v53 = vadd.s32 %v8450_v21, %v1524_v29 }
  0xed   : > { %v8516_v54 = vadd.s32 184, %v8446_v18  ;;  %v8519_v55 = vadd.s32 192, %v8446_v18  ;;  %v8522_v56 = vadd.s32 200, %v8446_v18  ;;  %v8525_v57 = vadd.s32 %v8450_v21, %v1525_v30  ;;  %7736 = vmatprep.subr.mxu0 %v8668_v4  ;;  %v639_v4 = vld [vmem:[%s8398_s22 + $0x90] sm:$0xff] }
  0xee   : > { %v8530_v60 = vadd.s32 208, %v8446_v18  ;;  %v8533_v61 = vadd.s32 216, %v8446_v18  ;;  %v8536_v62 = vadd.s32 224, %v8446_v18  ;;  %v8539_v63 = vadd.s32 %v8450_v21, %v1526_v31 }
  0xef   : > { %v8542_v0 = vadd.s32 232, %v8446_v18  ;;  %v8545_v1 = vadd.s32 240, %v8446_v18  ;;  %v8548_v2 = vadd.s32 248, %v8446_v18  ;;  %v8551_v3 = vadd.s32 %v8450_v21, %v1527_v32 }
  0xf0   : > { %707 = vperm.xlu1 %7877, %v628_v24   ;;  %704 = vperm.xlu0 %7876, %v627_v25   ;;  %13233 = vst [vmem:[#allocation12_spill] sm:$0xff] %v8539_v63  ;;  %v8556_v5 = vadd.s32 256, %v8446_v18  ;;  %v8559_v6 = vadd.s32 264, %v8446_v18  ;;  %v8562_v7 = vadd.s32 272, %v8446_v18  ;;  %v8565_v8 = vadd.s32 %v8450_v21, %v1528_v33  ;;  %v637_v63 = vld [vmem:[%s8398_s22 + $0x80] sm:$0xff] }
  0xf1   : > { %13234 = vst [vmem:[#allocation13_spill] sm:$0xff] %v8551_v3  ;;  %v8570_v10 = vadd.s32 280, %v8446_v18  ;;  %v8573_v11 = vadd.s32 288, %v8446_v18  ;;  %v8576_v12 = vadd.s32 296, %v8446_v18  ;;  %v8579_v13 = vadd.s32 %v8450_v21, %v1529_v34  ;;  %v638_v3 = vld [vmem:[%s8398_s22 + $0x88] sm:$0xff] }
  0xf2   : > { %13236 = vst [vmem:[#allocation15_spill] sm:$0xff] %v8565_v8  ;;  %v8585_v16 = vadd.s32 304, %v8446_v18  ;;  %v8588_v19 = vadd.s32 312, %v8446_v18  ;;  %v8591_v20 = vadd.s32 320, %v8446_v18  ;;  %v8594_v22 = vadd.s32 %v8450_v21, %v1530_v36 }
  0xf3   : > { %13238 = vst [vmem:[#allocation17_spill] sm:$0xff] %v8579_v13  ;;  %v8599_v23 = vadd.s32 328, %v8446_v18  ;;  %v8602_v24 = vadd.s32 336, %v8446_v18  ;;  %v8605_v25 = vadd.s32 344, %v8446_v18  ;;  %v8608_v26 = vadd.s32 %v8450_v21, %v1531_v37  ;;  %v636_v37 = vld [vmem:[%s8398_s22 + $0x78] sm:$0xff] }
  0xf4   : > { %713 = vperm.xlu1 %7877, %v630_v40   ;;  %710 = vperm.xlu0 %7876, %v629_v41   ;;  %13239 = vst [vmem:[#allocation18_spill] sm:$0xff] %v8594_v22  ;;  %v8613_v28 = vadd.s32 352, %v8446_v18  ;;  %v8616_v29 = vadd.s32 360, %v8446_v18  ;;  %v8619_v30 = vadd.s32 368, %v8446_v18  ;;  %v8622_v31 = vadd.s32 %v8450_v21, %v1532_v38  ;;  %v635_v40 = vld [vmem:[%s8398_s22 + $0x70] sm:$0xff] }
  0xf5   : > { %13240 = vst [vmem:[#allocation19_spill] sm:$0xff] %v8608_v26  ;;  %v8625_v32 = vadd.s32 376, %v8446_v18  ;;  %v8628_v33 = vadd.s32 384, %v8446_v18  ;;  %v8631_v34 = vadd.s32 392, %v8446_v18  ;;  %v8635_v36 = vadd.s32 %v8450_v21, %v8480_v42 }
  0xf6   : > { %13241 = vst [vmem:[#allocation20_spill] sm:$0xff] %v8622_v31  ;;  %v8641_v38 = vadd.s32 400, %v8446_v18  ;;  %v8644_v41 = vadd.s32 408, %v8446_v18  ;;  %v8654_v42 = vadd.s32 424, %v8446_v18  ;;  %v8663_v17 = vadd.s32 448, %v8446_v18 }
  0xf7   : > { %13242 = vst [vmem:[#allocation21_spill] sm:$0xff] %v8635_v36  ;;  %v1578_v36 = vadd.s32 472, %v8446_v18  ;;  %v1579_v31 = vadd.s32 480, %v8446_v18  ;;  %v1580_v26 = vadd.s32 488, %v8446_v18  ;;  %v8679_v22 = vadd.s32 %v8450_v21, %v8486_v44 }
  0xf8   : > { %719 = vperm.xlu1 %7877, %v632_v58   ;;  %716 = vperm.xlu0 %7876, %v631_v59   ;;  %v8647_v58 = vadd.s32 416, %v8446_v18  ;;  %v8651_v59 = vadd.s32 %v8450_v21, %v8483_v43  ;;  %v1576_v43 = vadd.s32 456, %v8446_v18  ;;  %v8683_v13 = vadd.s32 %v8450_v21, %v8492_v46 }
  0xf9   : > { %v8687_v8 = vadd.s32 %v8450_v21, %v8495_v47  ;;  %v8701_v44 = vadd.s32 %v8450_v21, %v8507_v51  ;;  %v8705_v46 = vadd.s32 %v8450_v21, %v8510_v52  ;;  %v8710_v47 = vadd.s32 %v8450_v21, %v8516_v54 }
  0xfa   : > { %13243 = vst [vmem:[#allocation22_spill] sm:$0xff] %v8651_v59  ;;  %v1577_v59 = vadd.s32 464, %v8446_v18  ;;  %v8722_v51 = vadd.s32 %v8450_v21, %v8530_v60  ;;  %v8726_v52 = vadd.s32 %v8450_v21, %v8533_v61  ;;  %v8730_v54 = vadd.s32 %v8450_v21, %v8536_v62 }
  0xfb   : > { %v1581_v60 = vadd.s32 496, %v8446_v18  ;;  %v8743_v61 = vadd.s32 %v8450_v21, %v8548_v2  ;;  %v8747_v62 = vadd.s32 %v8450_v21, %v8556_v5  ;;  %v8765_v2 = vadd.s32 %v8450_v21, %v8573_v11 }
  0xfc   : > { %725 = vperm.xlu1 %7877, %v634_v14   ;;  %722 = vperm.xlu0 %7876, %v633_v15   ;;  %v8657_v14 = vadd.s32 432, %v8446_v18  ;;  %v8660_v15 = vadd.s32 440, %v8446_v18  ;;  %v8773_v5 = vadd.s32 %v8450_v21, %v8585_v16  ;;  %v8789_v11 = vadd.s32 %v8450_v21, %v8602_v24 }
  0xfd   : > { %v8797_v16 = vadd.s32 %v8450_v21, %v8613_v28  ;;  %v8810_v24 = vadd.s32 %v8450_v21, %v8625_v32  ;;  %v642_v28 = vld [vmem:[%s8398_s22 + $0xa8] sm:$0xff]  ;;  %vm1648_vm2 = vcmp.lt.s32.totalorder %v8459_v27, 1000  ;;  %vm1649_vm3 = vcmp.lt.s32.totalorder %v8469_v35, 1000 }
  0xfe   : > { %v8840_v32 = vadd.s32 %v8450_v21, %v8657_v14  ;;  %v8863_v14 = vadd.s32 %v8450_v21, %v1580_v26  ;;  %vm1650_vm4 = vcmp.lt.s32.totalorder %v8475_v39, 1000  ;;  %vm1651_vm5 = vcmp.lt.s32.totalorder %v8489_v45, 1000  ;;  %v13253_v26 = vld [vmem:[#allocation12_spill] sm:$0xff] }
  0xff   : > { %13247 = vst [vmem:[#allocation26_spill] sm:$0xff] %v8797_v16  ;;  %13249 = vst [vmem:[#allocation28_spill] sm:$0xff] %v8810_v24  ;;  %v641_v16 = vld [vmem:[%s8398_s22 + $0xa0] sm:$0xff]  ;;  %vm1652_vm6 = vcmp.lt.s32.totalorder %v8501_v49, 1000  ;;  %vm1653_vm7 = vcmp.lt.s32.totalorder %v8513_v53, 1000  ;;  %vm1686_vm15 = vcmp.lt.s32.totalorder %v8773_v5, 1000 }
 0x100   : > { %731 = vperm.xlu1 %7877, %v636_v37   ;;  %728 = vperm.xlu0 %7876, %v635_v40   ;;  %v8693_v37 = vadd.s32 %v8450_v21, %v8498_v48  ;;  %v8697_v40 = vadd.s32 %v8450_v21, %v8504_v50  ;;  %v8714_v48 = vadd.s32 %v8450_v21, %v8519_v55  ;;  %vm1690_vm9 = vcmp.lt.s32.totalorder %v8789_v11, 1000 }
 0x101   : > { %v8718_v50 = vadd.s32 %v8450_v21, %v8522_v56  ;;  %v8734_v55 = vadd.s32 %v8450_v21, %v8542_v0  ;;  %v8738_v56 = vadd.s32 %v8450_v21, %v8545_v1  ;;  %v8751_v0 = vadd.s32 %v8450_v21, %v8559_v6  ;;  %13250 = vst [vmem:[#allocation29_spill] sm:$0xff] %v8863_v14  ;;  %v645_v14 = vld [vmem:[%s8398_s22 + $0xc0] sm:$0xff] }
 0x102   : > { %v8757_v1 = vadd.s32 %v8450_v21, %v8562_v7  ;;  %v8777_v6 = vadd.s32 %v8450_v21, %v8588_v19  ;;  %v8781_v7 = vadd.s32 %v8450_v21, %v8591_v20  ;;  %v8801_v19 = vadd.s32 %v8450_v21, %v8616_v29 }
 0x103   : > { %v1582_v20 = vadd.s32 504, %v8446_v18  ;;  %v8824_v18 = vadd.s32 %v8450_v21, %v8641_v38  ;;  %v8832_v29 = vadd.s32 %v8450_v21, %v8647_v58  ;;  %v8851_v38 = vadd.s32 %v8450_v21, %v1576_v43  ;;  %v13256_v43 = vld [vmem:[#allocation17_spill] sm:$0xff] }
 0x104   : > { %737 = vperm.xlu1 %7877, %v638_v3   ;;  %734 = vperm.xlu0 %7876, %v637_v63   ;;  %v8761_v63 = vadd.s32 %v8450_v21, %v8570_v10  ;;  %v8769_v3 = vadd.s32 %v8450_v21, %v8576_v12  ;;  %13245 = vst [vmem:[#allocation24_spill] sm:$0xff] %v8781_v7  ;;  %13248 = vst [vmem:[#allocation27_spill] sm:$0xff] %v8801_v19  ;;  %vm1687_vm0 = vcmp.lt.s32.totalorder %v8777_v6, 1000 }
 0x105   : > { %v8785_v10 = vadd.s32 %v8450_v21, %v8599_v23  ;;  %v8793_v12 = vadd.s32 %v8450_v21, %v8605_v25  ;;  %v8806_v23 = vadd.s32 %v8450_v21, %v8619_v30  ;;  %v8814_v25 = vadd.s32 %v8450_v21, %v8628_v33 }
 0x106   : > { %v8836_v30 = vadd.s32 %v8450_v21, %v8654_v42  ;;  %v8844_v33 = vadd.s32 %v8450_v21, %v8660_v15  ;;  %v8857_v58 = vadd.s32 %v8450_v21, %v1578_v36  ;;  %v8860_v42 = vadd.s32 %v8450_v21, %v1579_v31  ;;  %v644_v31 = vld [vmem:[%s8398_s22 + $0xb8] sm:$0xff]  ;;  %v643_v36 = vld [vmem:[%s8398_s22 + $0xb0] sm:$0xff]  ;;  %v13349_v6 = vld [vmem:[#allocation28_spill] sm:$0xff] }
 0x107   : > { %13246 = vst [vmem:[#allocation25_spill] sm:$0xff] %v8793_v12  ;;  %v8869_v15 = vadd.s32 %v8450_v21, %v1582_v20  ;;  %v13259_v20 = vld [vmem:[#allocation20_spill] sm:$0xff]  ;;  %vm1688_vm12 = vcmp.lt.s32.totalorder %v8781_v7, 1000  ;;  %vm1689_vm1 = vcmp.lt.s32.totalorder %v8785_v10, 1000  ;;  %vm1691_vm10 = vcmp.lt.s32.totalorder %v8793_v12, 1000 }
 0x108   : > { %743 = vperm.xlu1 %7877, %v640_v9   ;;  %740 = vperm.xlu0 %7876, %v639_v4   ;;  %v8820_v9 = vadd.s32 %v8450_v21, %v8631_v34  ;;  %v8828_v4 = vadd.s32 %v8450_v21, %v8644_v41  ;;  %v8848_v34 = vadd.s32 %v8450_v21, %v8663_v17  ;;  %vm1693_vm8 = vcmp.lt.s32.totalorder %v8801_v19, 1000 }
 0x109   : > { %v8854_v41 = vadd.s32 %v8450_v21, %v1577_v59  ;;  %v8866_v17 = vadd.s32 %v8450_v21, %v1581_v60  ;;  %13252 = vst [vmem:[#allocation31_spill] sm:$0xff] %v8869_v15  ;;  %v13254_v21 = vld [vmem:[#allocation13_spill] sm:$0xff]  ;;  %v13255_v59 = vld [vmem:[#allocation15_spill] sm:$0xff]  ;;  %v13257_v60 = vld [vmem:[#allocation18_spill] sm:$0xff] }
 0x10a   : > { %v13261_v15 = vld [vmem:[#allocation22_spill] sm:$0xff]  ;;  %vm13273_vm14 = vcmp.lt.s32.totalorder %v13254_v21, 1000  ;;  %vm13279_vm13 = vcmp.lt.s32.totalorder %v13257_v60, 1000 }
 0x10b   : > { %13251 = vst [vmem:[#allocation30_spill] sm:$0xff] %v8866_v17  ;;  %v646_v17 = vld [vmem:[%s8398_s22 + $0xc8] sm:$0xff] }
 0x10c   : > { %749 = vperm.xlu1 %7877, %v642_v28   ;;  %746 = vperm.xlu0 %7876, %v641_v16   ;;  %v13258_v16 = vld [vmem:[#allocation19_spill] sm:$0xff]  ;;  %v13260_v28 = vld [vmem:[#allocation21_spill] sm:$0xff] }
 0x110   : > { %755 = vperm.xlu1 %7877, %v644_v31   ;;  %752 = vperm.xlu0 %7876, %v643_v36   ;;  %v648_v31 = vld [vmem:[%s8398_s22 + $0xd8] sm:$0xff]  ;;  %v647_v36 = vld [vmem:[%s8398_s22 + $0xd0] sm:$0xff] }
 0x114   : > { %761 = vperm.xlu1 %7877, %v646_v17   ;;  %758 = vperm.xlu0 %7876, %v645_v14   ;;  %v13262_v14 = vld [vmem:[#allocation26_spill] sm:$0xff]  ;;  %v12801_v17 = vmov 0.0  }
 0x115   : > { %vm1692_vm11 = vcmp.lt.s32.totalorder %v13262_v14, 1000  ;;  %v8928_v7 = vsel %vm1648_vm2, 1.0, %v12801_v17  ;;  %v8933_v12 = vsel %vm1649_vm3, 1.0, %v12801_v17  ;;  %v8938_v19 = vsel %vm1650_vm4, 1.0, %v12801_v17 }
 0x116   : > { %13263 = vst [vmem:[#allocation12_spill] sm:$0xff] %v8928_v7  ;;  %13264 = vst [vmem:[#allocation13_spill] sm:$0xff] %v8933_v12  ;;  %v8943_v24 = vsel %vm1651_vm5, 1.0, %v12801_v17  ;;  %vm1696_vm2 = vcmp.lt.s32.totalorder %v8814_v25, 1000  ;;  %v8952_v27 = vsel %vm1652_vm6, 1.0, %v12801_v17  ;;  %v8957_v35 = vsel %vm1653_vm7, 1.0, %v12801_v17 }
 0x117   : > { %13265 = vst [vmem:[#allocation15_spill] sm:$0xff] %v8938_v19  ;;  %13266 = vst [vmem:[#allocation17_spill] sm:$0xff] %v8943_v24  ;;  %vm13269_vm4 = vcmp.lt.s32.totalorder %v8525_v57, 1000  ;;  %vm13271_vm5 = vcmp.lt.s32.totalorder %v13253_v26, 1000  ;;  %v8978_v49 = vsel %vm13273_vm14, 1.0, %v12801_v17  ;;  %v8993_v26 = vsel %vm13279_vm13, 1.0, %v12801_v17 }
 0x118   : > { %767 = vperm.xlu1 %7877, %v648_v31   ;;  %764 = vperm.xlu0 %7876, %v647_v36   ;;  %13267 = vst [vmem:[#allocation18_spill] sm:$0xff] %v8952_v27  ;;  %13268 = vst [vmem:[#allocation19_spill] sm:$0xff] %v8957_v35  ;;  %v8962_v39 = vsel %vm13269_vm4, 1.0, %v12801_v17  ;;  %v8967_v45 = vsel %vm13271_vm5, 1.0, %v12801_v17  ;;  %v650_v31 = vld [vmem:[%s8398_s22 + $0xe8] sm:$0xff]  ;;  %v649_v36 = vld [vmem:[%s8398_s22 + $0xe0] sm:$0xff] }
 0x119   : > { %13270 = vst [vmem:[#allocation20_spill] sm:$0xff] %v8962_v39  ;;  %13272 = vst [vmem:[#allocation21_spill] sm:$0xff] %v8967_v45  ;;  %vm13275_vm4 = vcmp.lt.s32.totalorder %v13255_v59, 1000  ;;  %vm13277_vm5 = vcmp.lt.s32.totalorder %v13256_v43, 1000  ;;  %vm13285_vm13 = vcmp.lt.s32.totalorder %v13260_v28, 1000  ;;  %vm13287_vm3 = vcmp.lt.s32.totalorder %v13261_v15, 1000 }
 0x11a   : > { %13274 = vst [vmem:[#allocation22_spill] sm:$0xff] %v8978_v49  ;;  %v8983_v53 = vsel %vm13275_vm4, 1.0, %v12801_v17  ;;  %v8988_v57 = vsel %vm13277_vm5, 1.0, %v12801_v17  ;;  %13280 = vst [vmem:[#allocation33_spill] sm:$0xff] %v8993_v26  ;;  %vm13281_vm4 = vcmp.lt.s32.totalorder %v13258_v16, 1000  ;;  %vm13283_vm5 = vcmp.lt.s32.totalorder %v13259_v20, 1000 }
 0x11b   : > { %13276 = vst [vmem:[#allocation26_spill] sm:$0xff] %v8983_v53  ;;  %13278 = vst [vmem:[#allocation32_spill] sm:$0xff] %v8988_v57  ;;  %v9002_v21 = vsel %vm13281_vm4, 1.0, %v12801_v17  ;;  %v9007_v59 = vsel %vm13283_vm5, 1.0, %v12801_v17  ;;  %v9012_v43 = vsel %vm13285_vm13, 1.0, %v12801_v17  ;;  %v9017_v60 = vsel %vm13287_vm3, 1.0, %v12801_v17 }
 0x11c   : > { %13282 = vst [vmem:[#allocation34_spill] sm:$0xff] %v9002_v21  ;;  %13284 = vst [vmem:[#allocation35_spill] sm:$0xff] %v9007_v59  ;;  %vm1708_vm4 = vcmp.lt.s32.totalorder %v8860_v42, 1000  ;;  %v13289_v16 = vld [vmem:[#allocation29_spill] sm:$0xff]  ;;  %v13290_v21 = vld [vmem:[#allocation30_spill] sm:$0xff]  ;;  %vm13292_vm7 = vcmp.lt.s32.totalorder %v8679_v22, 1000  ;;  %773 = vperm.xlu1 %7877, %v650_v31   ;;  %770 = vperm.xlu0 %7876, %v649_v36  }
 0x11d   : > { %13286 = vst [vmem:[#allocation36_spill] sm:$0xff] %v9012_v43  ;;  %13288 = vst [vmem:[#allocation37_spill] sm:$0xff] %v9017_v60  ;;  %vm1709_vm6 = vcmp.lt.s32.totalorder %v13289_v16, 1000  ;;  %v13291_v20 = vld [vmem:[#allocation31_spill] sm:$0xff]  ;;  %v9026_v28 = vsel %vm13292_vm7, 1.0, %v12801_v17  ;;  %vm13294_vm13 = vcmp.lt.s32.totalorder %v8683_v13, 1000 }
 0x11e   : > { %13293 = vst [vmem:[#allocation29_spill] sm:$0xff] %v9026_v28  ;;  %v9031_v15 = vsel %vm13294_vm13, 1.0, %v12801_v17  ;;  %vm13296_vm3 = vcmp.lt.s32.totalorder %v8687_v8, 1000  ;;  %vm13298_vm14 = vcmp.lt.s32.totalorder %v8693_v37, 1000  ;;  %vm13300_vm7 = vcmp.lt.s32.totalorder %v8697_v40, 1000  ;;  %v652_v31 = vld [vmem:[%s8398_s22 + $0xf8] sm:$0xff] }
 0x11f   : > { %13295 = vst [vmem:[#allocation30_spill] sm:$0xff] %v9031_v15  ;;  %v9036_v60 = vsel %vm13296_vm3, 1.0, %v12801_v17  ;;  %v9041_v43 = vsel %vm13298_vm14, 1.0, %v12801_v17  ;;  %v9046_v22 = vsel %vm13300_vm7, 1.0, %v12801_v17  ;;  %vm13302_vm13 = vcmp.lt.s32.totalorder %v8701_v44, 1000  ;;  %v651_v36 = vld [vmem:[%s8398_s22 + $0xf0] sm:$0xff] }
 0x120   : > { %13297 = vst [vmem:[#allocation31_spill] sm:$0xff] %v9036_v60  ;;  %13299 = vst [vmem:[#allocation38_spill] sm:$0xff] %v9041_v43  ;;  %v9051_v13 = vsel %vm13302_vm13, 1.0, %v12801_v17  ;;  %vm13304_vm3 = vcmp.lt.s32.totalorder %v8705_v46, 1000  ;;  %vm13306_vm14 = vcmp.lt.s32.totalorder %v8710_v47, 1000  ;;  %vm13308_vm7 = vcmp.lt.s32.totalorder %v8714_v48, 1000  ;;  %779 = vperm.xlu1 %7877, %v652_v31   ;;  %776 = vperm.xlu0 %7876, %v651_v36  }
 0x121   : > { %13301 = vst [vmem:[#allocation39_spill] sm:$0xff] %v9046_v22  ;;  %13303 = vst [vmem:[#allocation40_spill] sm:$0xff] %v9051_v13  ;;  %v9056_v8 = vsel %vm13304_vm3, 1.0, %v12801_v17  ;;  %v9061_v37 = vsel %vm13306_vm14, 1.0, %v12801_v17  ;;  %v9068_v40 = vsel %vm13308_vm7, 1.0, %v12801_v17  ;;  %vm13310_vm13 = vcmp.lt.s32.totalorder %v8718_v50, 1000 }
 0x122   : > { %13305 = vst [vmem:[#allocation41_spill] sm:$0xff] %v9056_v8  ;;  %13307 = vst [vmem:[#allocation42_spill] sm:$0xff] %v9061_v37  ;;  %v9073_v44 = vsel %vm13310_vm13, 1.0, %v12801_v17  ;;  %vm13312_vm3 = vcmp.lt.s32.totalorder %v8722_v51, 1000  ;;  %vm13314_vm14 = vcmp.lt.s32.totalorder %v8726_v52, 1000  ;;  %vm13316_vm7 = vcmp.lt.s32.totalorder %v8730_v54, 1000 }
 0x123   : > { %13309 = vst [vmem:[#allocation43_spill] sm:$0xff] %v9068_v40  ;;  %13311 = vst [vmem:[#allocation44_spill] sm:$0xff] %v9073_v44  ;;  %v9078_v46 = vsel %vm13312_vm3, 1.0, %v12801_v17  ;;  %v9083_v47 = vsel %vm13314_vm14, 1.0, %v12801_v17  ;;  %v9088_v48 = vsel %vm13316_vm7, 1.0, %v12801_v17  ;;  %vm13318_vm13 = vcmp.lt.s32.totalorder %v8734_v55, 1000 }
 0x124   : > { %13313 = vst [vmem:[#allocation45_spill] sm:$0xff] %v9078_v46  ;;  %13315 = vst [vmem:[#allocation46_spill] sm:$0xff] %v9083_v47  ;;  %v9093_v50 = vsel %vm13318_vm13, 1.0, %v12801_v17  ;;  %vm13320_vm3 = vcmp.lt.s32.totalorder %v8738_v56, 1000  ;;  %vm13322_vm14 = vcmp.lt.s32.totalorder %v8743_v61, 1000  ;;  %vm13324_vm5 = vcmp.lt.s32.totalorder %v8747_v62, 1000 }
 0x125   : > { %13317 = vst [vmem:[#allocation47_spill] sm:$0xff] %v9088_v48  ;;  %13319 = vst [vmem:[#allocation48_spill] sm:$0xff] %v9093_v50  ;;  %v9098_v51 = vsel %vm13320_vm3, 1.0, %v12801_v17  ;;  %v9103_v52 = vsel %vm13322_vm14, 1.0, %v12801_v17  ;;  %v9108_v54 = vsel %vm13324_vm5, 1.0, %v12801_v17  ;;  %vm13326_vm7 = vcmp.lt.s32.totalorder %v8751_v0, 1000 }
 0x126   : > { %13321 = vst [vmem:[#allocation49_spill] sm:$0xff] %v9098_v51  ;;  %13323 = vst [vmem:[#allocation50_spill] sm:$0xff] %v9103_v52  ;;  %v9113_v55 = vsel %vm13326_vm7, 1.0, %v12801_v17  ;;  %vm13328_vm13 = vcmp.lt.s32.totalorder %v8757_v1, 1000  ;;  %vm13330_vm3 = vcmp.lt.s32.totalorder %v8761_v63, 1000  ;;  %vm13332_vm5 = vcmp.lt.s32.totalorder %v8765_v2, 1000 }
 0x127   : > { %13325 = vst [vmem:[#allocation51_spill] sm:$0xff] %v9108_v54  ;;  %13327 = vst [vmem:[#allocation52_spill] sm:$0xff] %v9113_v55  ;;  %v9118_v56 = vsel %vm13328_vm13, 1.0, %v12801_v17  ;;  %v9123_v61 = vsel %vm13330_vm3, 1.0, %v12801_v17  ;;  %v9128_v62 = vsel %vm13332_vm5, 1.0, %v12801_v17  ;;  %vm13334_vm14 = vcmp.lt.s32.totalorder %v8769_v3, 1000 }
 0x128   : > { %13329 = vst [vmem:[#allocation53_spill] sm:$0xff] %v9118_v56  ;;  %13331 = vst [vmem:[#allocation54_spill] sm:$0xff] %v9123_v61  ;;  %v9133_v0 = vsel %vm13334_vm14, 1.0, %v12801_v17  ;;  %v9138_v1 = vsel %vm1686_vm15, 1.0, %v12801_v17  ;;  %v9143_v63 = vsel %vm1687_vm0, 1.0, %v12801_v17  ;;  %v654_v31 = vld [vmem:[%s8398_s22 + $0x108] sm:$0xff] }
 0x129   : > { %13333 = vst [vmem:[#allocation55_spill] sm:$0xff] %v9128_v62  ;;  %13335 = vst [vmem:[#allocation56_spill] sm:$0xff] %v9133_v0  ;;  %v653_v36 = vld [vmem:[%s8398_s22 + $0x100] sm:$0xff]  ;;  %v9150_v62 = vsel %vm1688_vm12, 1.0, %v12801_v17  ;;  %v9155_v3 = vsel %vm1689_vm1, 1.0, %v12801_v17  ;;  %v9160_v5 = vsel %vm1690_vm9, 1.0, %v12801_v17  ;;  %785 = vperm.xlu1 %7877, %v654_v31  }
 0x12a   : > { %13336 = vst [vmem:[#allocation57_spill] sm:$0xff] %v9138_v1  ;;  %13337 = vst [vmem:[#allocation58_spill] sm:$0xff] %v9143_v63  ;;  %v9165_v63 = vsel %vm1691_vm10, 1.0, %v12801_v17  ;;  %v9170_v2 = vsel %vm1692_vm11, 1.0, %v12801_v17  ;;  %vm13347_vm9 = vcmp.lt.s32.totalorder %v8806_v23, 1000  ;;  %vm13350_vm10 = vcmp.lt.s32.totalorder %v13349_v6, 1000  ;;  %782 = vperm.xlu0 %7876, %v653_v36  }
 0x12b   : > { %13339 = vst [vmem:[#allocation24_spill] sm:$0xff] %v9150_v62  ;;  %13340 = vst [vmem:[#allocation59_spill] sm:$0xff] %v9155_v3  ;;  %v9175_v3 = vsel %vm1693_vm8, 1.0, %v12801_v17  ;;  %v9180_v11 = vsel %vm13347_vm9, 1.0, %v12801_v17  ;;  %v9190_v14 = vsel %vm1696_vm2, 1.0, %v12801_v17  ;;  %vm13353_vm11 = vcmp.lt.s32.totalorder %v8820_v9, 1000 }
 0x12c   : > { %13341 = vst [vmem:[#allocation60_spill] sm:$0xff] %v9160_v5  ;;  %13343 = vst [vmem:[#allocation25_spill] sm:$0xff] %v9165_v63  ;;  %v9185_v63 = vsel %vm13350_vm10, 1.0, %v12801_v17  ;;  %v9195_v10 = vsel %vm13353_vm11, 1.0, %v12801_v17  ;;  %vm13355_vm8 = vcmp.lt.s32.totalorder %v8824_v18, 1000  ;;  %vm13357_vm12 = vcmp.lt.s32.totalorder %v8828_v4, 1000 }
 0x12d   : > { %13344 = vst [vmem:[#allocation61_spill] sm:$0xff] %v9170_v2  ;;  %13346 = vst [vmem:[#allocation27_spill] sm:$0xff] %v9175_v3  ;;  %v9200_v23 = vsel %vm13355_vm8, 1.0, %v12801_v17  ;;  %v9205_v6 = vsel %vm13357_vm12, 1.0, %v12801_v17  ;;  %vm13359_vm15 = vcmp.lt.s32.totalorder %v8832_v29, 1000  ;;  %vm13361_vm0 = vcmp.lt.s32.totalorder %v8836_v30, 1000 }
 0x12e   : > { %13348 = vst [vmem:[#allocation62_spill] sm:$0xff] %v9180_v11  ;;  %13351 = vst [vmem:[#allocation28_spill] sm:$0xff] %v9185_v63  ;;  %v9210_v25 = vsel %vm13359_vm15, 1.0, %v12801_v17  ;;  %v9215_v9 = vsel %vm13361_vm0, 1.0, %v12801_v17  ;;  %vm13363_vm1 = vcmp.lt.s32.totalorder %v8840_v32, 1000  ;;  %vm13365_vm2 = vcmp.lt.s32.totalorder %v8844_v33, 1000 }
 0x12f   : > { %13352 = vst [vmem:[#allocation63_spill] sm:$0xff] %v9190_v14  ;;  %13354 = vst [vmem:[#allocation64_spill] sm:$0xff] %v9195_v10  ;;  %v9220_v18 = vsel %vm13363_vm1, 1.0, %v12801_v17  ;;  %v9225_v4 = vsel %vm13365_vm2, 1.0, %v12801_v17  ;;  %v656_v29 = vld [vmem:[%s8398_s22 + $0x118] sm:$0xff]  ;;  %v655_v31 = vld [vmem:[%s8398_s22 + $0x110] sm:$0xff] }
 0x130   : > { %13356 = vst [vmem:[#allocation65_spill] sm:$0xff] %v9200_v23  ;;  %13358 = vst [vmem:[#allocation66_spill] sm:$0xff] %v9205_v6  ;;  %vm13367_vm7 = vcmp.lt.s32.totalorder %v8848_v34, 1000  ;;  %vm13369_vm13 = vcmp.lt.s32.totalorder %v8851_v38, 1000  ;;  %vm13371_vm3 = vcmp.lt.s32.totalorder %v8854_v41, 1000  ;;  %vm13373_vm5 = vcmp.lt.s32.totalorder %v8857_v58, 1000  ;;  %791 = vperm.xlu1 %7877, %v656_v29   ;;  %788 = vperm.xlu0 %7876, %v655_v31  }
 0x131   : > { %13360 = vst [vmem:[#allocation67_spill] sm:$0xff] %v9210_v25  ;;  %13362 = vst [vmem:[#allocation68_spill] sm:$0xff] %v9215_v9  ;;  %v9232_v30 = vsel %vm13367_vm7, 1.0, %v12801_v17  ;;  %v9237_v32 = vsel %vm13369_vm13, 1.0, %v12801_v17  ;;  %v9242_v33 = vsel %vm13371_vm3, 1.0, %v12801_v17  ;;  %v9247_v36 = vsel %vm13373_vm5, 1.0, %v12801_v17 }
 0x132   : > { %13364 = vst [vmem:[#allocation69_spill] sm:$0xff] %v9220_v18  ;;  %13366 = vst [vmem:[#allocation70_spill] sm:$0xff] %v9225_v4  ;;  %v9252_v34 = vsel %vm1708_vm4, 1.0, %v12801_v17  ;;  %v9257_v38 = vsel %vm1709_vm6, 1.0, %v12801_v17  ;;  %vm13377_vm14 = vcmp.lt.s32.totalorder %v13290_v21, 1000  ;;  %vm13379_vm9 = vcmp.lt.s32.totalorder %v13291_v20, 1000 }
 0x133   : > { %13368 = vst [vmem:[#allocation71_spill] sm:$0xff] %v9232_v30  ;;  %13370 = vst [vmem:[#allocation72_spill] sm:$0xff] %v9237_v32  ;;  %v9262_v41 = vsel %vm13377_vm14, 1.0, %v12801_v17  ;;  %v9267_v58 = vsel %vm13379_vm9, 1.0, %v12801_v17  ;;  %v658_v42 = vld [vmem:[%s8398_s22 + $0x128] sm:$0xff]  ;;  %v660_v16 = vld [vmem:[%s8398_s22 + $0x138] sm:$0xff] }
 0x134   : > { %13372 = vst [vmem:[#allocation73_spill] sm:$0xff] %v9242_v33  ;;  %13374 = vst [vmem:[#allocation74_spill] sm:$0xff] %v9247_v36  ;;  %797 = vperm.xlu1 %7877, %v658_v42   ;;  %v659_v21 = vld [vmem:[%s8398_s22 + $0x130] sm:$0xff]  ;;  %v661_v20 = vld [vmem:[%s8398_s22 + $0x140] sm:$0xff]  ;;  %vm1842_vm6 = vcmask 130048  }
 0x135   : > { %13375 = vst [vmem:[#allocation75_spill] sm:$0xff] %v9252_v34  ;;  %13376 = vst [vmem:[#allocation76_spill] sm:$0xff] %v9257_v38  ;;  %v657_v34 = vld [vmem:[%s8398_s22 + $0x120] sm:$0xff]  ;;  %v664_v29 = vld [vmem:[%s8398_s22 + $0x158] sm:$0xff]  ;;  %v13381_v38 = vlaneseq }
 0x136   : > { %13378 = vst [vmem:[#allocation77_spill] sm:$0xff] %v9262_v41  ;;  %13380 = vst [vmem:[#allocation78_spill] sm:$0xff] %v9267_v58  ;;  %794 = vperm.xlu0 %7876, %v657_v34   ;;  %v662_v41 = vld [vmem:[%s8398_s22 + $0x148] sm:$0xff]  ;;  %v663_v31 = vld [vmem:[%s8398_s22 + $0x150] sm:$0xff] }
 0x137   : > { %v666_v42 = vld [vmem:[%s8398_s22 + $0x168] sm:$0xff]  ;;  %v665_v34 = vld [vmem:[%s8398_s22 + $0x160] sm:$0xff]  ;;  %v676_v17 = vld [vmem:[%s8398_s22 + $0x1b8] sm:$0xff]  ;;  %v9298_v36 = vand.u32 127, %v13381_v38 }
 0x138   : > { %803 = vperm.xlu1 %7877, %v660_v16   ;;  %v668_v16 = vld [vmem:[%s8398_s22 + $0x178] sm:$0xff]  ;;  %v675_v58 = vld [vmem:[%s8398_s22 + $0x1b0] sm:$0xff]  ;;  %v1073_v33 = vld [vmem:[%s8403_s25 + $0x20] sm:$0xff] }
 0x139   : > { %v3109_v30 = vld [vmem:[%s8393_s19 + $0x140] sm:$0xff]  ;;  %v3111_v18 = vld [vmem:[%s8393_s19 + $0x150] sm:$0xff]  ;;  %v3132_v50 = vld [vmem:[%s8393_s19 + $0x1f8] sm:$0xff] }
 0x13a   : > { %800 = vperm.xlu0 %7876, %v659_v21   ;;  %v667_v21 = vld [vmem:[%s8398_s22 + $0x170] sm:$0xff]  ;;  %v3113_v25 = vld [vmem:[%s8393_s19 + $0x160] sm:$0xff] }
 0x13b   : > { %v3115_v23 = vld [vmem:[%s8393_s19 + $0x170] sm:$0xff]  ;;  %v3117_v14 = vld [vmem:[%s8393_s19 + $0x180] sm:$0xff] }
 0x13c   : > { %809 = vperm.xlu1 %7877, %v662_v41   ;;  %v670_v41 = vld [vmem:[%s8398_s22 + $0x188] sm:$0xff]  ;;  %v3119_v11 = vld [vmem:[%s8393_s19 + $0x190] sm:$0xff]  ;;  %v3121_v2 = vld [vmem:[%s8393_s19 + $0x1a0] sm:$0xff] }
 0x13d   : > { %v3123_v62 = vld [vmem:[%s8393_s19 + $0x1b0] sm:$0xff]  ;;  %v3125_v0 = vld [vmem:[%s8393_s19 + $0x1c0] sm:$0xff] }
 0x13e   : > { %806 = vperm.xlu0 %7876, %v661_v20   ;;  %v669_v20 = vld [vmem:[%s8398_s22 + $0x180] sm:$0xff]  ;;  %v3127_v56 = vld [vmem:[%s8393_s19 + $0x1d0] sm:$0xff] }
 0x13f   : > { %v3129_v54 = vld [vmem:[%s8393_s19 + $0x1e0] sm:$0xff]  ;;  %v3131_v51 = vld [vmem:[%s8393_s19 + $0x1f0] sm:$0xff] }
 0x140   : > { %815 = vperm.xlu1 %7877, %v664_v29   ;;  %v672_v29 = vld [vmem:[%s8398_s22 + $0x198] sm:$0xff] }
 0x142   : > { %812 = vperm.xlu0 %7876, %v663_v31   ;;  %v671_v31 = vld [vmem:[%s8398_s22 + $0x190] sm:$0xff] }
 0x144   : > { %821 = vperm.xlu1 %7877, %v666_v42   ;;  %v680_v42 = vld [vmem:[%s8398_s22 + $0x1d8] sm:$0xff] }
 0x146   : > { %818 = vperm.xlu0 %7876, %v665_v34   ;;  %v679_v34 = vld [vmem:[%s8398_s22 + $0x1d0] sm:$0xff] }
 0x148   : > { %827 = vperm.xlu1 %7877, %v668_v16   ;;  %v674_v16 = vld [vmem:[%s8398_s22 + $0x1a8] sm:$0xff] }
 0x14a   : > { %824 = vperm.xlu0 %7876, %v667_v21   ;;  %v673_v21 = vld [vmem:[%s8398_s22 + $0x1a0] sm:$0xff] }
 0x14c   : > { %833 = vperm.xlu1 %7877, %v670_v41   ;;  %v682_v41 = vld [vmem:[%s8398_s22 + $0x1e8] sm:$0xff] }
 0x14e   : > { %830 = vperm.xlu0 %7876, %v669_v20   ;;  %v681_v20 = vld [vmem:[%s8398_s22 + $0x1e0] sm:$0xff] }
 0x150   : > { %839 = vperm.xlu1 %7877, %v672_v29   ;;  %v684_v29 = vld [vmem:[%s8398_s22 + $0x1f8] sm:$0xff] }
 0x152   : > { %836 = vperm.xlu0 %7876, %v671_v31   ;;  %v683_v31 = vld [vmem:[%s8398_s22 + $0x1f0] sm:$0xff] }
 0x154   : > { %863 = vperm.xlu1 %7877, %v680_v42   ;;  %v678_v42 = vld [vmem:[%s8398_s22 + $0x1c8] sm:$0xff] }
 0x156   : > { %860 = vperm.xlu0 %7876, %v679_v34   ;;  %v677_v34 = vld [vmem:[%s8398_s22 + $0x1c0] sm:$0xff] }
 0x158   : > { %845 = vperm.xlu1 %7877, %v674_v16  }
 0x15a   : > { %842 = vperm.xlu0 %7876, %v673_v21  }
 0x15c   : > { %869 = vperm.xlu1 %7877, %v682_v41   ;;  %v1069_v41 = vld [vmem:[%s8403_s25] sm:$0xff] }
 0x15e   : > { %866 = vperm.xlu0 %7876, %v681_v20  }
 0x15f   : > { %v693_v16 = vpop.permute.xlu1 %692  ;;  %v687_v21 = vpop.permute.xlu0 %686 }
 0x160   : > { %851 = vperm.xlu1 %7877, %v676_v17   ;;  %vm877_vm4 = vcmp.eq.s32.totalorder %v9298_v36, %v687_v21  ;;  %v1070_v17 = vld [vmem:[%s8403_s25 + $0x8] sm:$0xff]  ;;  %vm879_vm10 = vcmp.eq.s32.totalorder %v9298_v36, %v693_v16  ;;  %v3135_v16 = vld [vmem:[%s12753_s6 + $0x10] sm:$0xff] }
 0x162   : > { %848 = vperm.xlu0 %7876, %v675_v58   ;;  %v13382_v58 = vmov 0.0  }
 0x163   : > { %v6770_v20 = vsel %vm877_vm4, 1.0, %v13382_v58 }
 0x164   : > { %875 = vperm.xlu1 %7877, %v684_v29   ;;  %7540 = vmatprep.mubr.msk.f32.mxu0 %vm1842_vm6, %v6770_v20  ;;  %v696_v29 = vpop.permute.xlu1 %695 }
 0x165   : > { %vm880_vm8 = vcmp.eq.s32.totalorder %v9298_v36, %v696_v29 }
 0x166   : > { %872 = vperm.xlu0 %7876, %v683_v31   ;;  %v690_v31 = vpop.permute.xlu0 %689  ;;  %v6773_v29 = vsel %vm880_vm8, 1.0, %v13382_v58 }
 0x167   : > { %vm878_vm11 = vcmp.eq.s32.totalorder %v9298_v36, %v690_v31 }
 0x168   : > { %857 = vperm.xlu1 %7877, %v678_v42   ;;  %v6771_v38 = vsel %vm878_vm11, 1.0, %v13382_v58  ;;  %v1071_v42 = vld [vmem:[%s8403_s25 + $0x10] sm:$0xff]  ;;  %v702_v21 = vpop.permute.xlu1 %701 }
 0x169   : > { %7541 = vmatmul.mubr.msk.f32.vlgmr.msra.gmra.mxu0 %vm1842_vm6, %v6771_v38  ;;  %v1072_v38 = vld [vmem:[%s8403_s25 + $0x18] sm:$0xff]  ;;  %vm882_vm15 = vcmp.eq.s32.totalorder %v9298_v36, %v702_v21 }
 0x16a   : > { %854 = vperm.xlu0 %7876, %v677_v34   ;;  %v6772_v34 = vsel %vm879_vm10, 1.0, %v13382_v58  ;;  %v699_v20 = vpop.permute.xlu0 %698 }
 0x16b   : > { %7543 = vmatprep.mubr.msk.f32.mxu0 %vm1842_vm6, %v6772_v34  ;;  %vm881_vm12 = vcmp.eq.s32.totalorder %v9298_v36, %v699_v20  ;;  %v3134_v34 = vld [vmem:[%s12753_s6 + $0x8] sm:$0xff] }
 0x16c   : > { %1137 = vperm.xlu1 %7877, %v1070_v17   ;;  %v13383_v17 = vld [vmem:[#allocation23_spill] sm:$0xff]  ;;  %v6774_v31 = vsel %vm881_vm12, 1.0, %v13382_v58  ;;  %v708_v20 = vpop.permute.xlu1 %707 }
 0x16d   : > { %7737 = vmatpush3.msra.mxu0 %v13383_v17  ;;  %vm884_vm1 = vcmp.eq.s32.totalorder %v9298_v36, %v708_v20 }
 0x16e   : > { %1134 = vperm.xlu0 %7876, %v1069_v41   ;;  %v13384_v41 = vld [vmem:[#allocation14_spill] sm:$0xff]  ;;  %7738 = vmatprep.subr.mxu0 %v3135_v16  ;;  %v705_v17 = vpop.permute.xlu0 %704 }
 0x16f   : > { %7544 = vmatmul.mubr.msk.f32.gmra.mxu0 %vm1842_vm6, %v6773_v29  ;;  %vm883_vm0 = vcmp.eq.s32.totalorder %v9298_v36, %v705_v17  ;;  %v1074_v29 = vld [vmem:[%s8403_s25 + $0x28] sm:$0xff] }
 0x170   : > { %2424 = vrot.lane.b32.xlu1 %v13384_v41, %s8295_s26  ;;  %7546 = vmatprep.mubr.msk.f32.mxu0 %vm1842_vm6, %v6774_v31  ;;  %v6775_v41 = vsel %vm882_vm15, 1.0, %v13382_v58  ;;  %v6776_v21 = vsel %vm883_vm0, 1.0, %v13382_v58  ;;  %v714_v31 = vpop.permute.xlu1 %713 }
 0x171   : > { %7739 = vmatpush3.msra.mxu0 %v3135_v16  ;;  %v3133_v16 = vld [vmem:[%s12753_s6] sm:$0xff]  ;;  %vm886_vm7 = vcmp.eq.s32.totalorder %v9298_v36, %v714_v31 }
 0x172   : > { %1140 = vperm.xlu0 %7876, %v1071_v42   ;;  %v13385_v42 = vld [vmem:[#allocation16_spill] sm:$0xff]  ;;  %7740 = vmatprep.subr.mxu0 %v3134_v34  ;;  %v711_v17 = vpop.permute.xlu0 %710 }
 0x173   : > { %7547 = vmatmul.mubr.msk.f32.gmra.mxu0 %vm1842_vm6, %v6775_v41  ;;  %vm885_vm2 = vcmp.eq.s32.totalorder %v9298_v36, %v711_v17  ;;  %v1075_v41 = vld [vmem:[%s8403_s25 + $0x30] sm:$0xff]  ;;  %v1077_v17 = vld [vmem:[%s8403_s25 + $0x40] sm:$0xff] }
 0x174   : > { %2422 = vrot.lane.b32.xlu1 %v13385_v42, %s8295_s26  ;;  %7549 = vmatprep.mubr.msk.f32.mxu0 %vm1842_vm6, %v6776_v21  ;;  %v6778_v20 = vsel %vm885_vm2, 1.0, %v13382_v58  ;;  %v1076_v42 = vld [vmem:[%s8403_s25 + $0x38] sm:$0xff]  ;;  %v720_v32 = vpop.permute.xlu1 %719 }
 0x175   : > { %7741 = vmatpush3.msra.mxu0 %v3134_v34  ;;  %vm888_vm3 = vcmp.eq.s32.totalorder %v9298_v36, %v720_v32 }
 0x176   : > { %1143 = vperm.xlu0 %7876, %v1072_v38   ;;  %v6777_v38 = vsel %vm884_vm1, 1.0, %v13382_v58  ;;  %7742 = vmatprep.subr.mxu0 %v3133_v16  ;;  %v717_v21 = vpop.permute.xlu0 %716 }
 0x177   : > { %7550 = vmatmul.mubr.msk.f32.gmra.mxu0 %vm1842_vm6, %v6777_v38  ;;  %vm887_vm13 = vcmp.eq.s32.totalorder %v9298_v36, %v717_v21 }
 0x178   : > { %1149 = vperm.xlu1 %7877, %v1074_v29   ;;  %7552 = vmatprep.mubr.msk.f32.mxu0 %vm1842_vm6, %v6778_v20  ;;  %v6780_v34 = vsel %vm887_vm13, 1.0, %v13382_v58  ;;  %v1078_v29 = vld [vmem:[%s8403_s25 + $0x48] sm:$0xff]  ;;  %v726_v31 = vpop.permute.xlu1 %725 }
 0x179   : > { %7743 = vmatpush3.msra.mxu0 %v3133_v16  ;;  %v6781_v16 = vsel %vm888_vm3, 1.0, %v13382_v58  ;;  %vm890_vm14 = vcmp.eq.s32.totalorder %v9298_v36, %v726_v31 }
 0x17a   : > { %1146 = vperm.xlu0 %7876, %v1073_v33   ;;  %v6779_v33 = vsel %vm886_vm7, 1.0, %v13382_v58  ;;  %v723_v38 = vpop.permute.xlu0 %722 }
 0x17b   : > { %7553 = vmatmul.mubr.msk.f32.gmra.mxu0 %vm1842_vm6, %v6779_v33  ;;  %vm889_vm5 = vcmp.eq.s32.totalorder %v9298_v36, %v723_v38  ;;  %v6783_v33 = vsel %vm890_vm14, 1.0, %v13382_v58 }
 0x17c   : > { %1155 = vperm.xlu1 %7877, %v1076_v42   ;;  %7555 = vmatprep.mubr.msk.f32.mxu0 %vm1842_vm6, %v6780_v34  ;;  %v6782_v20 = vsel %vm889_vm5, 1.0, %v13382_v58  ;;  %v1080_v42 = vld [vmem:[%s8403_s25 + $0x58] sm:$0xff]  ;;  %v732_v32 = vpop.permute.xlu1 %731 }
 0x17d   : > { %vm892_vm4 = vcmp.eq.s32.totalorder %v9298_v36, %v732_v32 }
 0x17e   : > { %1152 = vperm.xlu0 %7876, %v1075_v41   ;;  %v1079_v41 = vld [vmem:[%s8403_s25 + $0x50] sm:$0xff]  ;;  %v729_v21 = vpop.permute.xlu0 %728 }
 0x17f   : > { %7556 = vmatmul.mubr.msk.f32.gmra.mxu0 %vm1842_vm6, %v6781_v16  ;;  %vm891_vm9 = vcmp.eq.s32.totalorder %v9298_v36, %v729_v21  ;;  %v6785_v16 = vsel %vm892_vm4, 1.0, %v13382_v58 }
 0x180   : > { %1161 = vperm.xlu1 %7877, %v1078_v29   ;;  %7558 = vmatprep.mubr.msk.f32.mxu0 %vm1842_vm6, %v6782_v20  ;;  %v6784_v34 = vsel %vm891_vm9, 1.0, %v13382_v58  ;;  %v1082_v29 = vld [vmem:[%s8403_s25 + $0x68] sm:$0xff]  ;;  %v738_v31 = vpop.permute.xlu1 %737 }
 0x181   : > { %vm894_vm11 = vcmp.eq.s32.totalorder %v9298_v36, %v738_v31 }
 0x182   : > { %1158 = vperm.xlu0 %7876, %v1077_v17   ;;  %v1081_v17 = vld [vmem:[%s8403_s25 + $0x60] sm:$0xff]  ;;  %v735_v38 = vpop.permute.xlu0 %734 }
 0x183   : > { %7559 = vmatmul.mubr.msk.f32.gmra.mxu0 %vm1842_vm6, %v6783_v33  ;;  %vm893_vm10 = vcmp.eq.s32.totalorder %v9298_v36, %v735_v38  ;;  %v6787_v33 = vsel %vm894_vm11, 1.0, %v13382_v58 }
 0x184   : > { %1167 = vperm.xlu1 %7877, %v1080_v42   ;;  %7561 = vmatprep.mubr.msk.f32.mxu0 %vm1842_vm6, %v6784_v34  ;;  %v6786_v20 = vsel %vm893_vm10, 1.0, %v13382_v58  ;;  %v1084_v42 = vld [vmem:[%s8403_s25 + $0x78] sm:$0xff]  ;;  %v744_v32 = vpop.permute.xlu1 %743 }
 0x185   : > { %vm896_vm12 = vcmp.eq.s32.totalorder %v9298_v36, %v744_v32 }
 0x186   : > { %1164 = vperm.xlu0 %7876, %v1079_v41   ;;  %v1083_v41 = vld [vmem:[%s8403_s25 + $0x70] sm:$0xff]  ;;  %v741_v21 = vpop.permute.xlu0 %740 }
 0x187   : > { %7562 = vmatmul.mubr.msk.f32.gmra.mxu0 %vm1842_vm6, %v6785_v16  ;;  %vm895_vm8 = vcmp.eq.s32.totalorder %v9298_v36, %v741_v21  ;;  %v6789_v16 = vsel %vm896_vm12, 1.0, %v13382_v58 }
 0x188   : > { %1173 = vperm.xlu1 %7877, %v1082_v29   ;;  %7564 = vmatprep.mubr.msk.f32.mxu0 %vm1842_vm6, %v6786_v20  ;;  %v6788_v34 = vsel %vm895_vm8, 1.0, %v13382_v58  ;;  %v1086_v29 = vld [vmem:[%s8403_s25 + $0x88] sm:$0xff]  ;;  %v750_v31 = vpop.permute.xlu1 %749 }
 0x189   : > { %vm898_vm0 = vcmp.eq.s32.totalorder %v9298_v36, %v750_v31 }
 0x18a   : > { %1170 = vperm.xlu0 %7876, %v1081_v17   ;;  %v1085_v17 = vld [vmem:[%s8403_s25 + $0x80] sm:$0xff]  ;;  %v747_v38 = vpop.permute.xlu0 %746 }
 0x18b   : > { %7565 = vmatmul.mubr.msk.f32.gmra.mxu0 %vm1842_vm6, %v6787_v33  ;;  %vm897_vm15 = vcmp.eq.s32.totalorder %v9298_v36, %v747_v38  ;;  %v6791_v33 = vsel %vm898_vm0, 1.0, %v13382_v58 }
 0x18c   : > { %1179 = vperm.xlu1 %7877, %v1084_v42   ;;  %7567 = vmatprep.mubr.msk.f32.mxu0 %vm1842_vm6, %v6788_v34  ;;  %v6790_v20 = vsel %vm897_vm15, 1.0, %v13382_v58  ;;  %v1088_v42 = vld [vmem:[%s8403_s25 + $0x98] sm:$0xff]  ;;  %v756_v32 = vpop.permute.xlu1 %755 }
 0x18d   : > { %vm900_vm2 = vcmp.eq.s32.totalorder %v9298_v36, %v756_v32 }
 0x18e   : > { %1176 = vperm.xlu0 %7876, %v1083_v41   ;;  %v1087_v41 = vld [vmem:[%s8403_s25 + $0x90] sm:$0xff]  ;;  %v753_v21 = vpop.permute.xlu0 %752 }
 0x18f   : > { %7568 = vmatmul.mubr.msk.f32.gmra.mxu0 %vm1842_vm6, %v6789_v16  ;;  %vm899_vm1 = vcmp.eq.s32.totalorder %v9298_v36, %v753_v21  ;;  %v6793_v16 = vsel %vm900_vm2, 1.0, %v13382_v58 }
 0x190   : > { %1185 = vperm.xlu1 %7877, %v1086_v29   ;;  %7570 = vmatprep.mubr.msk.f32.mxu0 %vm1842_vm6, %v6790_v20  ;;  %v6792_v34 = vsel %vm899_vm1, 1.0, %v13382_v58  ;;  %v1090_v29 = vld [vmem:[%s8403_s25 + $0xa8] sm:$0xff]  ;;  %v762_v31 = vpop.permute.xlu1 %761 }
 0x191   : > { %vm902_vm13 = vcmp.eq.s32.totalorder %v9298_v36, %v762_v31 }
 0x192   : > { %1182 = vperm.xlu0 %7876, %v1085_v17   ;;  %v1089_v17 = vld [vmem:[%s8403_s25 + $0xa0] sm:$0xff]  ;;  %v759_v38 = vpop.permute.xlu0 %758 }
 0x193   : > { %7571 = vmatmul.mubr.msk.f32.gmra.mxu0 %vm1842_vm6, %v6791_v33  ;;  %vm901_vm7 = vcmp.eq.s32.totalorder %v9298_v36, %v759_v38  ;;  %v6795_v33 = vsel %vm902_vm13, 1.0, %v13382_v58 }
 0x194   : > { %1191 = vperm.xlu1 %7877, %v1088_v42   ;;  %7573 = vmatprep.mubr.msk.f32.mxu0 %vm1842_vm6, %v6792_v34  ;;  %v6794_v20 = vsel %vm901_vm7, 1.0, %v13382_v58  ;;  %v1092_v42 = vld [vmem:[%s8403_s25 + $0xb8] sm:$0xff]  ;;  %v768_v32 = vpop.permute.xlu1 %767 }
 0x195   : > { %vm904_vm5 = vcmp.eq.s32.totalorder %v9298_v36, %v768_v32 }
 0x196   : > { %1188 = vperm.xlu0 %7876, %v1087_v41   ;;  %v1091_v41 = vld [vmem:[%s8403_s25 + $0xb0] sm:$0xff]  ;;  %v765_v21 = vpop.permute.xlu0 %764 }
 0x197   : > { %7574 = vmatmul.mubr.msk.f32.gmra.mxu0 %vm1842_vm6, %v6793_v16  ;;  %vm903_vm3 = vcmp.eq.s32.totalorder %v9298_v36, %v765_v21  ;;  %v6797_v16 = vsel %vm904_vm5, 1.0, %v13382_v58 }
 0x198   : > { %1197 = vperm.xlu1 %7877, %v1090_v29   ;;  %7576 = vmatprep.mubr.msk.f32.mxu0 %vm1842_vm6, %v6794_v20  ;;  %v6796_v34 = vsel %vm903_vm3, 1.0, %v13382_v58  ;;  %v1094_v29 = vld [vmem:[%s8403_s25 + $0xc8] sm:$0xff]  ;;  %v774_v31 = vpop.permute.xlu1 %773 }
 0x199   : > { %vm906_vm9 = vcmp.eq.s32.totalorder %v9298_v36, %v774_v31 }
 0x19a   : > { %1194 = vperm.xlu0 %7876, %v1089_v17   ;;  %v1093_v17 = vld [vmem:[%s8403_s25 + $0xc0] sm:$0xff]  ;;  %v771_v38 = vpop.permute.xlu0 %770 }
 0x19b   : > { %7577 = vmatmul.mubr.msk.f32.gmra.mxu0 %vm1842_vm6, %v6795_v33  ;;  %vm905_vm14 = vcmp.eq.s32.totalorder %v9298_v36, %v771_v38  ;;  %v6799_v33 = vsel %vm906_vm9, 1.0, %v13382_v58 }
 0x19c   : > { %1203 = vperm.xlu1 %7877, %v1092_v42   ;;  %7579 = vmatprep.mubr.msk.f32.mxu0 %vm1842_vm6, %v6796_v34  ;;  %v6798_v20 = vsel %vm905_vm14, 1.0, %v13382_v58  ;;  %v1096_v42 = vld [vmem:[%s8403_s25 + $0xd8] sm:$0xff]  ;;  %v780_v32 = vpop.permute.xlu1 %779 }
 0x19d   : > { %vm908_vm10 = vcmp.eq.s32.totalorder %v9298_v36, %v780_v32 }
 0x19e   : > { %1200 = vperm.xlu0 %7876, %v1091_v41   ;;  %v1095_v41 = vld [vmem:[%s8403_s25 + $0xd0] sm:$0xff]  ;;  %v777_v21 = vpop.permute.xlu0 %776 }
 0x19f   : > { %7580 = vmatmul.mubr.msk.f32.gmra.mxu0 %vm1842_vm6, %v6797_v16  ;;  %vm907_vm4 = vcmp.eq.s32.totalorder %v9298_v36, %v777_v21  ;;  %v6801_v16 = vsel %vm908_vm10, 1.0, %v13382_v58 }
 0x1a0   : > { %1209 = vperm.xlu1 %7877, %v1094_v29   ;;  %7582 = vmatprep.mubr.msk.f32.mxu0 %vm1842_vm6, %v6798_v20  ;;  %v6800_v34 = vsel %vm907_vm4, 1.0, %v13382_v58  ;;  %v1098_v29 = vld [vmem:[%s8403_s25 + $0xe8] sm:$0xff] }
 0x1a2   : > { %1206 = vperm.xlu0 %7876, %v1093_v17   ;;  %v1097_v17 = vld [vmem:[%s8403_s25 + $0xe0] sm:$0xff] }
 0x1a3   : > { %7583 = vmatmul.mubr.msk.f32.gmra.mxu0 %vm1842_vm6, %v6799_v33 }
 0x1a4   : > { %1215 = vperm.xlu1 %7877, %v1096_v42   ;;  %v786_v31 = vpop.permute.xlu1 %785  ;;  %7585 = vmatprep.mubr.msk.f32.mxu0 %vm1842_vm6, %v6800_v34  ;;  %v1100_v42 = vld [vmem:[%s8403_s25 + $0xf8] sm:$0xff] }
 0x1a5   : > { %v783_v38 = vpop.permute.xlu0 %782  ;;  %vm910_vm8 = vcmp.eq.s32.totalorder %v9298_v36, %v786_v31 }
 0x1a6   : > { %1212 = vperm.xlu0 %7876, %v1095_v41   ;;  %vm909_vm11 = vcmp.eq.s32.totalorder %v9298_v36, %v783_v38  ;;  %v1099_v41 = vld [vmem:[%s8403_s25 + $0xf0] sm:$0xff]  ;;  %v6803_v33 = vsel %vm910_vm8, 1.0, %v13382_v58 }
 0x1a7   : > { %v6802_v20 = vsel %vm909_vm11, 1.0, %v13382_v58  ;;  %7586 = vmatmul.mubr.msk.f32.gmra.mxu0 %vm1842_vm6, %v6801_v16 }
 0x1a8   : > { %1221 = vperm.xlu1 %7877, %v1098_v29   ;;  %7588 = vmatprep.mubr.msk.f32.mxu0 %vm1842_vm6, %v6802_v20  ;;  %v1102_v29 = vld [vmem:[%s8403_s25 + $0x108] sm:$0xff] }
 0x1aa   : > { %1218 = vperm.xlu0 %7876, %v1097_v17   ;;  %v1101_v17 = vld [vmem:[%s8403_s25 + $0x100] sm:$0xff] }
 0x1ab   : > { %v792_v32 = vpop.permute.xlu1 %791  ;;  %v789_v21 = vpop.permute.xlu0 %788  ;;  %7589 = vmatmul.mubr.msk.f32.gmra.mxu0 %vm1842_vm6, %v6803_v33 }
 0x1ac   : > { %vm911_vm12 = vcmp.eq.s32.totalorder %v9298_v36, %v789_v21  ;;  %1227 = vperm.xlu1 %7877, %v1100_v42   ;;  %vm912_vm15 = vcmp.eq.s32.totalorder %v9298_v36, %v792_v32  ;;  %v1104_v42 = vld [vmem:[%s8403_s25 + $0x118] sm:$0xff] }
 0x1ad   : > { %v6804_v34 = vsel %vm911_vm12, 1.0, %v13382_v58  ;;  %v6805_v16 = vsel %vm912_vm15, 1.0, %v13382_v58 }
 0x1ae   : > { %1224 = vperm.xlu0 %7876, %v1099_v41   ;;  %7591 = vmatprep.mubr.msk.f32.mxu0 %vm1842_vm6, %v6804_v34  ;;  %v1103_v41 = vld [vmem:[%s8403_s25 + $0x110] sm:$0xff] }
 0x1af   : > { %v798_v31 = vpop.permute.xlu1 %797  ;;  %7592 = vmatmul.mubr.msk.f32.gmra.mxu0 %vm1842_vm6, %v6805_v16 }
 0x1b0   : > { %1233 = vperm.xlu1 %7877, %v1102_v29   ;;  %vm914_vm1 = vcmp.eq.s32.totalorder %v9298_v36, %v798_v31  ;;  %v1106_v29 = vld [vmem:[%s8403_s25 + $0x128] sm:$0xff] }
 0x1b1   : > { %v795_v38 = vpop.permute.xlu0 %794  ;;  %v6807_v33 = vsel %vm914_vm1, 1.0, %v13382_v58 }
 0x1b2   : > { %vm913_vm0 = vcmp.eq.s32.totalorder %v9298_v36, %v795_v38  ;;  %1230 = vperm.xlu0 %7876, %v1101_v17   ;;  %v1105_v17 = vld [vmem:[%s8403_s25 + $0x120] sm:$0xff] }
 0x1b3   : > { %v6806_v20 = vsel %vm913_vm0, 1.0, %v13382_v58  ;;  %v804_v32 = vpop.permute.xlu1 %803 }
 0x1b4   : > { %7594 = vmatprep.mubr.msk.f32.mxu0 %vm1842_vm6, %v6806_v20  ;;  %1239 = vperm.xlu1 %7877, %v1104_v42   ;;  %vm916_vm7 = vcmp.eq.s32.totalorder %v9298_v36, %v804_v32  ;;  %v1108_v42 = vld [vmem:[%s8403_s25 + $0x138] sm:$0xff] }
 0x1b5   : > { %v801_v21 = vpop.permute.xlu0 %800  ;;  %7595 = vmatmul.mubr.msk.f32.gmra.mxu0 %vm1842_vm6, %v6807_v33  ;;  %v6809_v16 = vsel %vm916_vm7, 1.0, %v13382_v58 }
 0x1b6   : > { %vm915_vm2 = vcmp.eq.s32.totalorder %v9298_v36, %v801_v21  ;;  %1236 = vperm.xlu0 %7876, %v1103_v41   ;;  %v1107_v41 = vld [vmem:[%s8403_s25 + $0x130] sm:$0xff] }
 0x1b7   : > { %v6808_v34 = vsel %vm915_vm2, 1.0, %v13382_v58  ;;  %v810_v31 = vpop.permute.xlu1 %809 }
 0x1b8   : > { %7597 = vmatprep.mubr.msk.f32.mxu0 %vm1842_vm6, %v6808_v34  ;;  %1245 = vperm.xlu1 %7877, %v1106_v29   ;;  %vm918_vm3 = vcmp.eq.s32.totalorder %v9298_v36, %v810_v31  ;;  %v1110_v29 = vld [vmem:[%s8403_s25 + $0x148] sm:$0xff] }
 0x1b9   : > { %v807_v38 = vpop.permute.xlu0 %806  ;;  %7598 = vmatmul.mubr.msk.f32.gmra.mxu0 %vm1842_vm6, %v6809_v16  ;;  %v6811_v33 = vsel %vm918_vm3, 1.0, %v13382_v58 }
 0x1ba   : > { %vm917_vm13 = vcmp.eq.s32.totalorder %v9298_v36, %v807_v38  ;;  %1242 = vperm.xlu0 %7876, %v1105_v17   ;;  %v1109_v17 = vld [vmem:[%s8403_s25 + $0x140] sm:$0xff] }
 0x1bb   : > { %v6810_v20 = vsel %vm917_vm13, 1.0, %v13382_v58  ;;  %v816_v32 = vpop.permute.xlu1 %815 }
 0x1bc   : > { %7600 = vmatprep.mubr.msk.f32.mxu0 %vm1842_vm6, %v6810_v20  ;;  %1251 = vperm.xlu1 %7877, %v1108_v42   ;;  %vm920_vm14 = vcmp.eq.s32.totalorder %v9298_v36, %v816_v32  ;;  %v1112_v42 = vld [vmem:[%s8403_s25 + $0x158] sm:$0xff] }
 0x1bd   : > { %v813_v21 = vpop.permute.xlu0 %812  ;;  %7601 = vmatmul.mubr.msk.f32.gmra.mxu0 %vm1842_vm6, %v6811_v33  ;;  %v6813_v16 = vsel %vm920_vm14, 1.0, %v13382_v58 }
 0x1be   : > { %vm919_vm5 = vcmp.eq.s32.totalorder %v9298_v36, %v813_v21  ;;  %1248 = vperm.xlu0 %7876, %v1107_v41   ;;  %v1111_v41 = vld [vmem:[%s8403_s25 + $0x150] sm:$0xff] }
 0x1bf   : > { %v6812_v34 = vsel %vm919_vm5, 1.0, %v13382_v58  ;;  %v822_v31 = vpop.permute.xlu1 %821 }
 0x1c0   : > { %7603 = vmatprep.mubr.msk.f32.mxu0 %vm1842_vm6, %v6812_v34  ;;  %1257 = vperm.xlu1 %7877, %v1110_v29   ;;  %vm922_vm4 = vcmp.eq.s32.totalorder %v9298_v36, %v822_v31  ;;  %v1114_v29 = vld [vmem:[%s8403_s25 + $0x168] sm:$0xff] }
 0x1c1   : > { %v819_v38 = vpop.permute.xlu0 %818  ;;  %7604 = vmatmul.mubr.msk.f32.gmra.mxu0 %vm1842_vm6, %v6813_v16  ;;  %v6815_v33 = vsel %vm922_vm4, 1.0, %v13382_v58 }
 0x1c2   : > { %vm921_vm9 = vcmp.eq.s32.totalorder %v9298_v36, %v819_v38  ;;  %1254 = vperm.xlu0 %7876, %v1109_v17   ;;  %v1113_v17 = vld [vmem:[%s8403_s25 + $0x160] sm:$0xff] }
 0x1c3   : > { %v6814_v20 = vsel %vm921_vm9, 1.0, %v13382_v58  ;;  %v828_v32 = vpop.permute.xlu1 %827 }
 0x1c4   : > { %7606 = vmatprep.mubr.msk.f32.mxu0 %vm1842_vm6, %v6814_v20  ;;  %1263 = vperm.xlu1 %7877, %v1112_v42   ;;  %vm924_vm11 = vcmp.eq.s32.totalorder %v9298_v36, %v828_v32  ;;  %v1116_v42 = vld [vmem:[%s8403_s25 + $0x178] sm:$0xff] }
 0x1c5   : > { %v825_v21 = vpop.permute.xlu0 %824  ;;  %7607 = vmatmul.mubr.msk.f32.gmra.mxu0 %vm1842_vm6, %v6815_v33  ;;  %v6817_v16 = vsel %vm924_vm11, 1.0, %v13382_v58 }
 0x1c6   : > { %vm923_vm10 = vcmp.eq.s32.totalorder %v9298_v36, %v825_v21  ;;  %1260 = vperm.xlu0 %7876, %v1111_v41   ;;  %v1115_v41 = vld [vmem:[%s8403_s25 + $0x170] sm:$0xff] }
 0x1c7   : > { %v6816_v34 = vsel %vm923_vm10, 1.0, %v13382_v58  ;;  %v834_v31 = vpop.permute.xlu1 %833 }
 0x1c8   : > { %7609 = vmatprep.mubr.msk.f32.mxu0 %vm1842_vm6, %v6816_v34  ;;  %1269 = vperm.xlu1 %7877, %v1114_v29   ;;  %vm926_vm12 = vcmp.eq.s32.totalorder %v9298_v36, %v834_v31  ;;  %v1118_v29 = vld [vmem:[%s8403_s25 + $0x188] sm:$0xff] }
 0x1c9   : > { %v831_v38 = vpop.permute.xlu0 %830  ;;  %7610 = vmatmul.mubr.msk.f32.gmra.mxu0 %vm1842_vm6, %v6817_v16  ;;  %v6819_v33 = vsel %vm926_vm12, 1.0, %v13382_v58  ;;  %vm3137_vm12 = vcmask 261120  }
 0x1ca   : > { %vm925_vm8 = vcmp.eq.s32.totalorder %v9298_v36, %v831_v38  ;;  %1266 = vperm.xlu0 %7876, %v1113_v17   ;;  %v1117_v17 = vld [vmem:[%s8403_s25 + $0x180] sm:$0xff] }
 0x1cb   : > { %v6818_v20 = vsel %vm925_vm8, 1.0, %v13382_v58  ;;  %v840_v32 = vpop.permute.xlu1 %839 }
 0x1cc   : > { %7612 = vmatprep.mubr.msk.f32.mxu0 %vm1842_vm6, %v6818_v20  ;;  %1275 = vperm.xlu1 %7877, %v1116_v42   ;;  %vm928_vm0 = vcmp.eq.s32.totalorder %v9298_v36, %v840_v32  ;;  %v1119_v32 = vld [vmem:[%s8403_s25 + $0x190] sm:$0xff] }
 0x1cd   : > { %v837_v21 = vpop.permute.xlu0 %836  ;;  %7613 = vmatmul.mubr.msk.f32.gmra.mxu0 %vm1842_vm6, %v6819_v33  ;;  %v6821_v16 = vsel %vm928_vm0, 1.0, %v13382_v58 }
 0x1ce   : > { %vm927_vm15 = vcmp.eq.s32.totalorder %v9298_v36, %v837_v21  ;;  %1272 = vperm.xlu0 %7876, %v1115_v41   ;;  %v1120_v41 = vld [vmem:[%s8403_s25 + $0x198] sm:$0xff] }
 0x1cf   : > { %v6820_v34 = vsel %vm927_vm15, 1.0, %v13382_v58  ;;  %v864_v31 = vpop.permute.xlu1 %863 }
 0x1d0   : > { %7615 = vmatprep.mubr.msk.f32.mxu0 %vm1842_vm6, %v6820_v34  ;;  %vm936_vm1 = vcmp.eq.s32.totalorder %v9298_v36, %v864_v31  ;;  %1281 = vperm.xlu1 %7877, %v1118_v29   ;;  %v1121_v31 = vld [vmem:[%s8403_s25 + $0x1a0] sm:$0xff] }
 0x1d1   : > { %v861_v38 = vpop.permute.xlu0 %860  ;;  %v6829_v20 = vsel %vm936_vm1, 1.0, %v13382_v58  ;;  %7616 = vmatmul.mubr.msk.f32.gmra.mxu0 %vm1842_vm6, %v6821_v16 }
 0x1d2   : > { %vm935_vm2 = vcmp.eq.s32.totalorder %v9298_v36, %v861_v38  ;;  %1278 = vperm.xlu0 %7876, %v1117_v17   ;;  %v1122_v17 = vld [vmem:[%s8403_s25 + $0x1a8] sm:$0xff] }
 0x1d3   : > { %v6828_v42 = vsel %vm935_vm2, 1.0, %v13382_v58  ;;  %v846_v21 = vpop.permute.xlu1 %845 }
 0x1d4   : > { %7627 = vmatprep.mubr.msk.f32.mxu1 %vm1842_vm6, %v6828_v42  ;;  %vm930_vm7 = vcmp.eq.s32.totalorder %v9298_v36, %v846_v21  ;;  %1287 = vperm.xlu1 %7877, %v1120_v41   ;;  %v1124_v41 = vld [vmem:[%s8403_s25 + $0x1b8] sm:$0xff] }
 0x1d5   : > { %v843_v33 = vpop.permute.xlu0 %842  ;;  %7628 = vmatmul.mubr.msk.f32.vlgmr.msra.gmra.mxu1 %vm1842_vm6, %v6829_v20  ;;  %v6823_v34 = vsel %vm930_vm7, 1.0, %v13382_v58 }
 0x1d6   : > { %vm929_vm13 = vcmp.eq.s32.totalorder %v9298_v36, %v843_v33  ;;  %1284 = vperm.xlu0 %7876, %v1119_v32   ;;  %v1123_v32 = vld [vmem:[%s8403_s25 + $0x1b0] sm:$0xff] }
 0x1d7   : > { %v6822_v29 = vsel %vm929_vm13, 1.0, %v13382_v58  ;;  %v870_v38 = vpop.permute.xlu1 %869 }
 0x1d8   : > { %7618 = vmatprep.mubr.msk.f32.mxu0 %vm1842_vm6, %v6822_v29  ;;  %vm938_vm3 = vcmp.eq.s32.totalorder %v9298_v36, %v870_v38  ;;  %1293 = vperm.xlu1 %7877, %v1122_v17   ;;  %v1126_v17 = vld [vmem:[%s8403_s25 + $0x1c8] sm:$0xff] }
 0x1d9   : > { %v867_v16 = vpop.permute.xlu0 %866  ;;  %7619 = vmatmul.mubr.msk.f32.gmra.mxu0 %vm1842_vm6, %v6823_v34  ;;  %v6831_v20 = vsel %vm938_vm3, 1.0, %v13382_v58 }
 0x1da   : > { %vm937_vm5 = vcmp.eq.s32.totalorder %v9298_v36, %v867_v16  ;;  %1290 = vperm.xlu0 %7876, %v1121_v31   ;;  %v1125_v31 = vld [vmem:[%s8403_s25 + $0x1c0] sm:$0xff] }
 0x1db   : > { %v6830_v42 = vsel %vm937_vm5, 1.0, %v13382_v58  ;;  %v852_v21 = vpop.permute.xlu1 %851 }
 0x1dc   : > { %7630 = vmatprep.mubr.msk.f32.mxu1 %vm1842_vm6, %v6830_v42  ;;  %vm932_vm14 = vcmp.eq.s32.totalorder %v9298_v36, %v852_v21  ;;  %1299 = vperm.xlu1 %7877, %v1124_v41   ;;  %v1128_v41 = vld [vmem:[%s8403_s25 + $0x1d8] sm:$0xff] }
 0x1dd   : > { %v849_v33 = vpop.permute.xlu0 %848  ;;  %7631 = vmatmul.mubr.msk.f32.gmra.mxu1 %vm1842_vm6, %v6831_v20  ;;  %v6825_v34 = vsel %vm932_vm14, 1.0, %v13382_v58 }
 0x1de   : > { %vm931_vm9 = vcmp.eq.s32.totalorder %v9298_v36, %v849_v33  ;;  %1296 = vperm.xlu0 %7876, %v1123_v32   ;;  %v1127_v32 = vld [vmem:[%s8403_s25 + $0x1d0] sm:$0xff] }
 0x1df   : > { %v6824_v29 = vsel %vm931_vm9, 1.0, %v13382_v58  ;;  %v876_v38 = vpop.permute.xlu1 %875 }
 0x1e0   : > { %7621 = vmatprep.mubr.msk.f32.mxu0 %vm1842_vm6, %v6824_v29  ;;  %vm940_vm4 = vcmp.eq.s32.totalorder %v9298_v36, %v876_v38  ;;  %1305 = vperm.xlu1 %7877, %v1126_v17   ;;  %v1130_v17 = vld [vmem:[%s8403_s25 + $0x1e8] sm:$0xff]  ;;  %v3069_v38 = vld [vmem:[%s8393_s19] sm:$0xff] }
 0x1e1   : > { %v873_v16 = vpop.permute.xlu0 %872  ;;  %7622 = vmatmul.mubr.msk.f32.gmra.mxu0 %vm1842_vm6, %v6825_v34  ;;  %v6833_v20 = vsel %vm940_vm4, 1.0, %v13382_v58 }
 0x1e2   : > { %vm939_vm10 = vcmp.eq.s32.totalorder %v9298_v36, %v873_v16  ;;  %1302 = vperm.xlu0 %7876, %v1125_v31   ;;  %v1129_v31 = vld [vmem:[%s8403_s25 + $0x1e0] sm:$0xff] }
 0x1e3   : > { %v6832_v42 = vsel %vm939_vm10, 1.0, %v13382_v58  ;;  %v858_v21 = vpop.permute.xlu1 %857 }
 0x1e4   : > { %7633 = vmatprep.mubr.msk.f32.mxu1 %vm1842_vm6, %v6832_v42  ;;  %vm934_vm11 = vcmp.eq.s32.totalorder %v9298_v36, %v858_v21  ;;  %1311 = vperm.xlu1 %7877, %v1128_v41   ;;  %v3070_v42 = vld [vmem:[%s8393_s19 + $0x8] sm:$0xff]  ;;  %v1131_v21 = vld [vmem:[%s8403_s25 + $0x1f0] sm:$0xff] }
 0x1e5   : > { %v855_v33 = vpop.permute.xlu0 %854  ;;  %7634 = vmatmul.mubr.msk.f32.gmra.mxu1 %vm1842_vm6, %v6833_v20  ;;  %v6827_v34 = vsel %vm934_vm11, 1.0, %v13382_v58 }
 0x1e6   : > { %vm933_vm8 = vcmp.eq.s32.totalorder %v9298_v36, %v855_v33  ;;  %1308 = vperm.xlu0 %7876, %v1127_v32   ;;  %v1132_v32 = vld [vmem:[%s8403_s25 + $0x1f8] sm:$0xff] }
 0x1e7   : > { %v6826_v29 = vsel %vm933_vm8, 1.0, %v13382_v58  ;;  %v1138_v16 = vpop.permute.xlu1 %1137 }
 0x1e8   : > { %7624 = vmatprep.mubr.msk.f32.mxu0 %vm1842_vm6, %v6826_v29  ;;  %1317 = vperm.xlu1 %7877, %v1130_v17   ;;  %v3072_v17 = vld [vmem:[%s8393_s19 + $0x18] sm:$0xff]  ;;  %vm1326_vm0 = vcmp.eq.s32.totalorder %v9298_v36, %v1138_v16 }
 0x1e9   : > { %v1135_v20 = vpop.permute.xlu0 %1134  ;;  %7625 = vmatmul.mubr.msk.f32.gmra.mxu0 %vm1842_vm6, %v6827_v34  ;;  %v3071_v34 = vld [vmem:[%s8393_s19 + $0x10] sm:$0xff] }
 0x1ea   : > { %vm1325_vm15 = vcmp.eq.s32.totalorder %v9298_v36, %v1135_v20  ;;  %1314 = vperm.xlu0 %7876, %v1129_v31   ;;  %7744 = vmatprep.mubr.msk.f32.mxu0 %vm3137_vm12, %v3069_v38  ;;  %v3073_v31 = vld [vmem:[%s8393_s19 + $0x20] sm:$0xff] }
 0x1eb   : > { %v9570_v41 = vsel %vm1325_vm15, 1.0, %v13382_v58  ;;  %v2425_v33 = vpop.permute.xlu1 %2424 }
 0x1ec   : > { %13386 = vst [vmem:[#allocation23_spill] sm:$0xff] %v9570_v41  ;;  %7640 = vmatprep.mubr.msk.f32.mxu1 %vm1842_vm6, %v9570_v41  ;;  %1323 = vperm.xlu1 %7877, %v1132_v32   ;;  %v9588_v32 = vsel %vm1326_vm0, 1.0, %v13382_v58  ;;  %v3107_v41 = vld [vmem:[%s8393_s19 + $0x130] sm:$0xff] }
 0x1ed   : > { %v1141_v29 = vpop.permute.xlu0 %1140  ;;  %7745 = vmatmul.mubr.msk.f32.vlgmr.msra.gmra.mxu0 %vm3137_vm12, %v3070_v42  ;;  %7636 = vmatprep.subr.mxu1 %v2425_v33  ;;  %v3074_v42 = vld [vmem:[%s8393_s19 + $0x28] sm:$0xff]  ;;  %13387 = vst [vmem:[#allocation14_spill] sm:$0xff] %v9588_v32 }
 0x1ee   : > { %1320 = vperm.xlu0 %7876, %v1131_v21   ;;  %7637 = vmatpush3.msra.mxu1 %v2425_v33  ;;  %vm1327_vm1 = vcmp.eq.s32.totalorder %v9298_v36, %v1141_v29  ;;  %v3075_v21 = vld [vmem:[%s8393_s19 + $0x30] sm:$0xff] }
 0x1ef   : > { %7747 = vmatprep.mubr.msk.f32.mxu0 %vm3137_vm12, %v3071_v34  ;;  %v2423_v38 = vpop.permute.xlu1 %2422  ;;  %v9592_v16 = vsel %vm1327_vm1, 1.0, %v13382_v58  ;;  %v3076_v34 = vld [vmem:[%s8393_s19 + $0x38] sm:$0xff] }
 0x1f0   : > { %7638 = vmatprep.subr.mxu1 %v2423_v38  ;;  %13388 = vst [vmem:[#allocation16_spill] sm:$0xff] %v9592_v16 }
 0x1f1   : > { %v1144_v20 = vpop.permute.xlu0 %1143  ;;  %7748 = vmatmul.mubr.msk.f32.gmra.mxu0 %vm3137_vm12, %v3072_v17  ;;  %7639 = vmatpush3.msra.mxu1 %v2423_v38  ;;  %v3077_v38 = vld [vmem:[%s8393_s19 + $0x40] sm:$0xff] }
 0x1f2   : > { %7750 = vmatprep.mubr.msk.f32.mxu0 %vm3137_vm12, %v3073_v31  ;;  %vm1328_vm2 = vcmp.eq.s32.totalorder %v9298_v36, %v1144_v20  ;;  %7641 = vmatmul.mubr.msk.f32.vlgmr.msra.gmra.mxu1 %vm1842_vm6, %v9588_v32  ;;  %v3093_v32 = vld [vmem:[%s8393_s19 + $0xc0] sm:$0xff] }
 0x1f3   : > { %v1150_v33 = vpop.permute.xlu1 %1149  ;;  %7643 = vmatprep.mubr.msk.f32.mxu1 %vm1842_vm6, %v9592_v16  ;;  %v9604_v17 = vsel %vm1328_vm2, 1.0, %v13382_v58 }
 0x1f4   : > { %13389 = vst [vmem:[#allocation79_spill] sm:$0xff] %v9604_v17  ;;  %vm1330_vm13 = vcmp.eq.s32.totalorder %v9298_v36, %v1150_v33 }
 0x1f5   : > { %v1147_v29 = vpop.permute.xlu0 %1146  ;;  %7751 = vmatmul.mubr.msk.f32.gmra.mxu0 %vm3137_vm12, %v3074_v42 }
 0x1f6   : > { %vm1329_vm7 = vcmp.eq.s32.totalorder %v9298_v36, %v1147_v29  ;;  %7753 = vmatprep.mubr.msk.f32.mxu0 %vm3137_vm12, %v3075_v21  ;;  %7644 = vmatmul.mubr.msk.f32.gmra.mxu1 %vm1842_vm6, %v9604_v17  ;;  %v3078_v21 = vld [vmem:[%s8393_s19 + $0x48] sm:$0xff]  ;;  %v9620_v29 = vsel %vm1330_vm13, 1.0, %v13382_v58  ;;  %v3079_v17 = vld [vmem:[%s8393_s19 + $0x50] sm:$0xff] }
 0x1f7   : > { %v9607_v31 = vsel %vm1329_vm7, 1.0, %v13382_v58  ;;  %v1156_v20 = vpop.permute.xlu1 %1155  ;;  %13391 = vst [vmem:[#allocation81_spill] sm:$0xff] %v9620_v29 }
 0x1f8   : > { %13390 = vst [vmem:[#allocation80_spill] sm:$0xff] %v9607_v31  ;;  %7646 = vmatprep.mubr.msk.f32.mxu1 %vm1842_vm6, %v9607_v31  ;;  %vm1332_vm5 = vcmp.eq.s32.totalorder %v9298_v36, %v1156_v20 }
 0x1f9   : > { %v1153_v42 = vpop.permute.xlu0 %1152  ;;  %7754 = vmatmul.mubr.msk.f32.gmra.mxu0 %vm3137_vm12, %v3076_v34 }
 0x1fa   : > { %vm1331_vm3 = vcmp.eq.s32.totalorder %v9298_v36, %v1153_v42  ;;  %7756 = vmatprep.mubr.msk.f32.mxu0 %vm3137_vm12, %v3077_v38  ;;  %7647 = vmatmul.mubr.msk.f32.gmra.mxu1 %vm1842_vm6, %v9620_v29  ;;  %v3080_v38 = vld [vmem:[%s8393_s19 + $0x58] sm:$0xff]  ;;  %v9636_v42 = vsel %vm1332_vm5, 1.0, %v13382_v58  ;;  %v3081_v29 = vld [vmem:[%s8393_s19 + $0x60] sm:$0xff] }
 0x1fb   : > { %v9623_v33 = vsel %vm1331_vm3, 1.0, %v13382_v58  ;;  %v1162_v31 = vpop.permute.xlu1 %1161  ;;  %13393 = vst [vmem:[#allocation83_spill] sm:$0xff] %v9636_v42 }
 0x1fc   : > { %13392 = vst [vmem:[#allocation82_spill] sm:$0xff] %v9623_v33  ;;  %7649 = vmatprep.mubr.msk.f32.mxu1 %vm1842_vm6, %v9623_v33  ;;  %vm1334_vm9 = vcmp.eq.s32.totalorder %v9298_v36, %v1162_v31 }
 0x1fd   : > { %v1159_v34 = vpop.permute.xlu0 %1158  ;;  %7757 = vmatmul.mubr.msk.f32.gmra.mxu0 %vm3137_vm12, %v3078_v21 }
 0x1fe   : > { %vm1333_vm14 = vcmp.eq.s32.totalorder %v9298_v36, %v1159_v34  ;;  %7759 = vmatprep.mubr.msk.f32.mxu0 %vm3137_vm12, %v3079_v17  ;;  %7650 = vmatmul.mubr.msk.f32.gmra.mxu1 %vm1842_vm6, %v9636_v42  ;;  %v3082_v17 = vld [vmem:[%s8393_s19 + $0x68] sm:$0xff]  ;;  %v9652_v34 = vsel %vm1334_vm9, 1.0, %v13382_v58  ;;  %v3083_v42 = vld [vmem:[%s8393_s19 + $0x70] sm:$0xff] }
 0x1ff   : > { %v9639_v20 = vsel %vm1333_vm14, 1.0, %v13382_v58  ;;  %v1168_v33 = vpop.permute.xlu1 %1167  ;;  %13395 = vst [vmem:[#allocation85_spill] sm:$0xff] %v9652_v34 }
 0x200   : > { %13394 = vst [vmem:[#allocation84_spill] sm:$0xff] %v9639_v20  ;;  %7652 = vmatprep.mubr.msk.f32.mxu1 %vm1842_vm6, %v9639_v20  ;;  %vm1336_vm10 = vcmp.eq.s32.totalorder %v9298_v36, %v1168_v33 }
 0x201   : > { %v1165_v21 = vpop.permute.xlu0 %1164  ;;  %7760 = vmatmul.mubr.msk.f32.gmra.mxu0 %vm3137_vm12, %v3080_v38 }
 0x202   : > { %vm1335_vm4 = vcmp.eq.s32.totalorder %v9298_v36, %v1165_v21  ;;  %7762 = vmatprep.mubr.msk.f32.mxu0 %vm3137_vm12, %v3081_v29  ;;  %7653 = vmatmul.mubr.msk.f32.gmra.mxu1 %vm1842_vm6, %v9652_v34  ;;  %v3084_v29 = vld [vmem:[%s8393_s19 + $0x78] sm:$0xff]  ;;  %v9668_v21 = vsel %vm1336_vm10, 1.0, %v13382_v58  ;;  %v3085_v34 = vld [vmem:[%s8393_s19 + $0x80] sm:$0xff] }
 0x203   : > { %v9655_v31 = vsel %vm1335_vm4, 1.0, %v13382_v58  ;;  %v1174_v20 = vpop.permute.xlu1 %1173  ;;  %13397 = vst [vmem:[#allocation87_spill] sm:$0xff] %v9668_v21 }
 0x204   : > { %13396 = vst [vmem:[#allocation86_spill] sm:$0xff] %v9655_v31  ;;  %7655 = vmatprep.mubr.msk.f32.mxu1 %vm1842_vm6, %v9655_v31  ;;  %vm1338_vm8 = vcmp.eq.s32.totalorder %v9298_v36, %v1174_v20 }
 0x205   : > { %v1171_v38 = vpop.permute.xlu0 %1170  ;;  %7763 = vmatmul.mubr.msk.f32.gmra.mxu0 %vm3137_vm12, %v3082_v17 }
 0x206   : > { %vm1337_vm11 = vcmp.eq.s32.totalorder %v9298_v36, %v1171_v38  ;;  %7765 = vmatprep.mubr.msk.f32.mxu0 %vm3137_vm12, %v3083_v42  ;;  %7656 = vmatmul.mubr.msk.f32.gmra.mxu1 %vm1842_vm6, %v9668_v21  ;;  %v3086_v42 = vld [vmem:[%s8393_s19 + $0x88] sm:$0xff]  ;;  %v9684_v38 = vsel %vm1338_vm8, 1.0, %v13382_v58  ;;  %v3087_v21 = vld [vmem:[%s8393_s19 + $0x90] sm:$0xff] }
 0x207   : > { %v9671_v33 = vsel %vm1337_vm11, 1.0, %v13382_v58  ;;  %v1180_v31 = vpop.permute.xlu1 %1179  ;;  %13399 = vst [vmem:[#allocation89_spill] sm:$0xff] %v9684_v38 }
 0x208   : > { %13398 = vst [vmem:[#allocation88_spill] sm:$0xff] %v9671_v33  ;;  %7658 = vmatprep.mubr.msk.f32.mxu1 %vm1842_vm6, %v9671_v33  ;;  %vm1340_vm0 = vcmp.eq.s32.totalorder %v9298_v36, %v1180_v31 }
 0x209   : > { %v1177_v17 = vpop.permute.xlu0 %1176  ;;  %7766 = vmatmul.mubr.msk.f32.gmra.mxu0 %vm3137_vm12, %v3084_v29 }
 0x20a   : > { %vm1339_vm15 = vcmp.eq.s32.totalorder %v9298_v36, %v1177_v17  ;;  %7768 = vmatprep.mubr.msk.f32.mxu0 %vm3137_vm12, %v3085_v34  ;;  %7659 = vmatmul.mubr.msk.f32.gmra.mxu1 %vm1842_vm6, %v9684_v38  ;;  %v3088_v34 = vld [vmem:[%s8393_s19 + $0x98] sm:$0xff]  ;;  %v9700_v17 = vsel %vm1340_vm0, 1.0, %v13382_v58  ;;  %v3089_v38 = vld [vmem:[%s8393_s19 + $0xa0] sm:$0xff] }
 0x20b   : > { %v9687_v20 = vsel %vm1339_vm15, 1.0, %v13382_v58  ;;  %v1186_v33 = vpop.permute.xlu1 %1185  ;;  %13401 = vst [vmem:[#allocation91_spill] sm:$0xff] %v9700_v17 }
 0x20c   : > { %13400 = vst [vmem:[#allocation90_spill] sm:$0xff] %v9687_v20  ;;  %7661 = vmatprep.mubr.msk.f32.mxu1 %vm1842_vm6, %v9687_v20  ;;  %vm1342_vm2 = vcmp.eq.s32.totalorder %v9298_v36, %v1186_v33 }
 0x20d   : > { %v1183_v29 = vpop.permute.xlu0 %1182  ;;  %7769 = vmatmul.mubr.msk.f32.gmra.mxu0 %vm3137_vm12, %v3086_v42 }
 0x20e   : > { %vm1341_vm1 = vcmp.eq.s32.totalorder %v9298_v36, %v1183_v29  ;;  %7771 = vmatprep.mubr.msk.f32.mxu0 %vm3137_vm12, %v3087_v21  ;;  %7662 = vmatmul.mubr.msk.f32.gmra.mxu1 %vm1842_vm6, %v9700_v17  ;;  %v3090_v21 = vld [vmem:[%s8393_s19 + $0xa8] sm:$0xff]  ;;  %v9716_v29 = vsel %vm1342_vm2, 1.0, %v13382_v58  ;;  %v3091_v17 = vld [vmem:[%s8393_s19 + $0xb0] sm:$0xff] }
 0x20f   : > { %v9703_v31 = vsel %vm1341_vm1, 1.0, %v13382_v58  ;;  %v1192_v20 = vpop.permute.xlu1 %1191  ;;  %13403 = vst [vmem:[#allocation93_spill] sm:$0xff] %v9716_v29 }
 0x210   : > { %13402 = vst [vmem:[#allocation92_spill] sm:$0xff] %v9703_v31  ;;  %7664 = vmatprep.mubr.msk.f32.mxu1 %vm1842_vm6, %v9703_v31  ;;  %vm1344_vm13 = vcmp.eq.s32.totalorder %v9298_v36, %v1192_v20 }
 0x211   : > { %v1189_v42 = vpop.permute.xlu0 %1188  ;;  %7772 = vmatmul.mubr.msk.f32.gmra.mxu0 %vm3137_vm12, %v3088_v34 }
 0x212   : > { %vm1343_vm7 = vcmp.eq.s32.totalorder %v9298_v36, %v1189_v42  ;;  %7774 = vmatprep.mubr.msk.f32.mxu0 %vm3137_vm12, %v3089_v38  ;;  %7665 = vmatmul.mubr.msk.f32.gmra.mxu1 %vm1842_vm6, %v9716_v29  ;;  %v3092_v38 = vld [vmem:[%s8393_s19 + $0xb8] sm:$0xff]  ;;  %v9732_v42 = vsel %vm1344_vm13, 1.0, %v13382_v58 }
 0x213   : > { %v9719_v33 = vsel %vm1343_vm7, 1.0, %v13382_v58  ;;  %v1198_v16 = vpop.permute.xlu1 %1197  ;;  %13405 = vst [vmem:[#allocation95_spill] sm:$0xff] %v9732_v42 }
 0x214   : > { %13404 = vst [vmem:[#allocation94_spill] sm:$0xff] %v9719_v33  ;;  %7667 = vmatprep.mubr.msk.f32.mxu1 %vm1842_vm6, %v9719_v33  ;;  %vm1346_vm5 = vcmp.eq.s32.totalorder %v9298_v36, %v1198_v16 }
 0x215   : > { %v1195_v34 = vpop.permute.xlu0 %1194  ;;  %7775 = vmatmul.mubr.msk.f32.gmra.mxu0 %vm3137_vm12, %v3090_v21 }
 0x216   : > { %vm1345_vm3 = vcmp.eq.s32.totalorder %v9298_v36, %v1195_v34  ;;  %7777 = vmatprep.mubr.msk.f32.mxu0 %vm3137_vm12, %v3091_v17  ;;  %7668 = vmatmul.mubr.msk.f32.gmra.mxu1 %vm1842_vm6, %v9732_v42  ;;  %v3094_v17 = vld [vmem:[%s8393_s19 + $0xc8] sm:$0xff]  ;;  %v9748_v34 = vsel %vm1346_vm5, 1.0, %v13382_v58  ;;  %v3095_v42 = vld [vmem:[%s8393_s19 + $0xd0] sm:$0xff] }
 0x217   : > { %v9735_v20 = vsel %vm1345_vm3, 1.0, %v13382_v58  ;;  %v1204_v33 = vpop.permute.xlu1 %1203  ;;  %13407 = vst [vmem:[#allocation97_spill] sm:$0xff] %v9748_v34 }
 0x218   : > { %13406 = vst [vmem:[#allocation96_spill] sm:$0xff] %v9735_v20  ;;  %7670 = vmatprep.mubr.msk.f32.mxu1 %vm1842_vm6, %v9735_v20  ;;  %vm1348_vm9 = vcmp.eq.s32.totalorder %v9298_v36, %v1204_v33 }
 0x219   : > { %v1201_v21 = vpop.permute.xlu0 %1200  ;;  %7778 = vmatmul.mubr.msk.f32.gmra.mxu0 %vm3137_vm12, %v3092_v38 }
 0x21a   : > { %vm1347_vm14 = vcmp.eq.s32.totalorder %v9298_v36, %v1201_v21  ;;  %7780 = vmatprep.mubr.msk.f32.mxu0 %vm3137_vm12, %v3093_v32  ;;  %7671 = vmatmul.mubr.msk.f32.gmra.mxu1 %vm1842_vm6, %v9748_v34  ;;  %v3096_v32 = vld [vmem:[%s8393_s19 + $0xd8] sm:$0xff]  ;;  %v9764_v21 = vsel %vm1348_vm9, 1.0, %v13382_v58  ;;  %v3097_v34 = vld [vmem:[%s8393_s19 + $0xe0] sm:$0xff] }
 0x21b   : > { %v9751_v16 = vsel %vm1347_vm14, 1.0, %v13382_v58  ;;  %v1210_v20 = vpop.permute.xlu1 %1209  ;;  %13409 = vst [vmem:[#allocation99_spill] sm:$0xff] %v9764_v21 }
 0x21c   : > { %13408 = vst [vmem:[#allocation98_spill] sm:$0xff] %v9751_v16  ;;  %7673 = vmatprep.mubr.msk.f32.mxu1 %vm1842_vm6, %v9751_v16  ;;  %vm1350_vm10 = vcmp.eq.s32.totalorder %v9298_v36, %v1210_v20 }
 0x21d   : > { %v1207_v38 = vpop.permute.xlu0 %1206  ;;  %7781 = vmatmul.mubr.msk.f32.gmra.mxu0 %vm3137_vm12, %v3094_v17 }
 0x21e   : > { %vm1349_vm4 = vcmp.eq.s32.totalorder %v9298_v36, %v1207_v38  ;;  %7783 = vmatprep.mubr.msk.f32.mxu0 %vm3137_vm12, %v3095_v42  ;;  %7674 = vmatmul.mubr.msk.f32.gmra.mxu1 %vm1842_vm6, %v9764_v21  ;;  %v3098_v42 = vld [vmem:[%s8393_s19 + $0xe8] sm:$0xff]  ;;  %v9780_v38 = vsel %vm1350_vm10, 1.0, %v13382_v58  ;;  %v3099_v21 = vld [vmem:[%s8393_s19 + $0xf0] sm:$0xff] }
 0x21f   : > { %v9767_v33 = vsel %vm1349_vm4, 1.0, %v13382_v58  ;;  %v1216_v16 = vpop.permute.xlu1 %1215  ;;  %13411 = vst [vmem:[#allocation101_spill] sm:$0xff] %v9780_v38 }
 0x220   : > { %13410 = vst [vmem:[#allocation100_spill] sm:$0xff] %v9767_v33  ;;  %7676 = vmatprep.mubr.msk.f32.mxu1 %vm1842_vm6, %v9767_v33  ;;  %vm1352_vm8 = vcmp.eq.s32.totalorder %v9298_v36, %v1216_v16 }
 0x221   : > { %v1213_v17 = vpop.permute.xlu0 %1212  ;;  %7784 = vmatmul.mubr.msk.f32.gmra.mxu0 %vm3137_vm12, %v3096_v32 }
 0x222   : > { %vm1351_vm11 = vcmp.eq.s32.totalorder %v9298_v36, %v1213_v17  ;;  %7786 = vmatprep.mubr.msk.f32.mxu0 %vm3137_vm12, %v3097_v34  ;;  %7677 = vmatmul.mubr.msk.f32.gmra.mxu1 %vm1842_vm6, %v9780_v38  ;;  %v3100_v34 = vld [vmem:[%s8393_s19 + $0xf8] sm:$0xff]  ;;  %v9796_v17 = vsel %vm1352_vm8, 1.0, %v13382_v58  ;;  %v3101_v38 = vld [vmem:[%s8393_s19 + $0x100] sm:$0xff] }
 0x223   : > { %v9783_v20 = vsel %vm1351_vm11, 1.0, %v13382_v58  ;;  %v1222_v33 = vpop.permute.xlu1 %1221  ;;  %13413 = vst [vmem:[#allocation103_spill] sm:$0xff] %v9796_v17 }
 0x224   : > { %13412 = vst [vmem:[#allocation102_spill] sm:$0xff] %v9783_v20  ;;  %7679 = vmatprep.mubr.msk.f32.mxu1 %vm1842_vm6, %v9783_v20  ;;  %vm1354_vm0 = vcmp.eq.s32.totalorder %v9298_v36, %v1222_v33 }
 0x225   : > { %v1219_v32 = vpop.permute.xlu0 %1218  ;;  %7787 = vmatmul.mubr.msk.f32.gmra.mxu0 %vm3137_vm12, %v3098_v42 }
 0x226   : > { %vm1353_vm15 = vcmp.eq.s32.totalorder %v9298_v36, %v1219_v32  ;;  %7789 = vmatprep.mubr.msk.f32.mxu0 %vm3137_vm12, %v3099_v21  ;;  %7680 = vmatmul.mubr.msk.f32.gmra.mxu1 %vm1842_vm6, %v9796_v17  ;;  %v3102_v21 = vld [vmem:[%s8393_s19 + $0x108] sm:$0xff]  ;;  %v9812_v32 = vsel %vm1354_vm0, 1.0, %v13382_v58  ;;  %v3103_v17 = vld [vmem:[%s8393_s19 + $0x110] sm:$0xff] }
 0x227   : > { %v9799_v16 = vsel %vm1353_vm15, 1.0, %v13382_v58  ;;  %v1228_v20 = vpop.permute.xlu1 %1227  ;;  %13415 = vst [vmem:[#allocation105_spill] sm:$0xff] %v9812_v32 }
 0x228   : > { %13414 = vst [vmem:[#allocation104_spill] sm:$0xff] %v9799_v16  ;;  %7682 = vmatprep.mubr.msk.f32.mxu1 %vm1842_vm6, %v9799_v16  ;;  %vm1356_vm2 = vcmp.eq.s32.totalorder %v9298_v36, %v1228_v20 }
 0x229   : > { %v1225_v42 = vpop.permute.xlu0 %1224  ;;  %7790 = vmatmul.mubr.msk.f32.gmra.mxu0 %vm3137_vm12, %v3100_v34  ;;  %v9835_v29 = vpop.f32.mrf.mxu0 }
 0x22a   : > { %vm1355_vm1 = vcmp.eq.s32.totalorder %v9298_v36, %v1225_v42  ;;  %7792 = vmatprep.mubr.msk.f32.mxu0 %vm3137_vm12, %v3101_v38  ;;  %7683 = vmatmul.mubr.msk.f32.gmra.mxu1 %vm1842_vm6, %v9812_v32  ;;  %v3104_v38 = vld [vmem:[%s8393_s19 + $0x118] sm:$0xff]  ;;  %v9828_v42 = vsel %vm1356_vm2, 1.0, %v13382_v58  ;;  %v3105_v32 = vld [vmem:[%s8393_s19 + $0x120] sm:$0xff]  ;;  %13419 = vst [vmem:[#allocation109_spill] sm:$0xff] %v9835_v29 }
 0x22b   : > { %v9815_v33 = vsel %vm1355_vm1, 1.0, %v13382_v58  ;;  %v1234_v16 = vpop.permute.xlu1 %1233  ;;  %13417 = vst [vmem:[#allocation107_spill] sm:$0xff] %v9828_v42 }
 0x22c   : > { %13416 = vst [vmem:[#allocation106_spill] sm:$0xff] %v9815_v33  ;;  %7685 = vmatprep.mubr.msk.f32.mxu1 %vm1842_vm6, %v9815_v33  ;;  %vm1358_vm13 = vcmp.eq.s32.totalorder %v9298_v36, %v1234_v16  ;;  %v3106_v16 = vld [vmem:[%s8393_s19 + $0x128] sm:$0xff] }
 0x22d   : > { %v1231_v34 = vpop.permute.xlu0 %1230  ;;  %7793 = vmatmul.mubr.msk.f32.gmra.mxu0 %vm3137_vm12, %v3102_v21  ;;  %v9848_v33 = vsel %vm1358_vm13, 1.0, %v13382_v58 }
 0x22e   : > { %vm1357_vm7 = vcmp.eq.s32.totalorder %v9298_v36, %v1231_v34  ;;  %7795 = vmatprep.mubr.msk.f32.mxu0 %vm3137_vm12, %v3103_v17  ;;  %7686 = vmatmul.mubr.msk.f32.gmra.mxu1 %vm1842_vm6, %v9828_v42  ;;  %v9843_v17 = vpop.f32.mrf.mxu0  ;;  %13421 = vst [vmem:[#allocation111_spill] sm:$0xff] %v9848_v33 }
 0x22f   : > { %v9831_v20 = vsel %vm1357_vm7, 1.0, %v13382_v58  ;;  %v1240_v21 = vpop.permute.xlu1 %1239  ;;  %13420 = vst [vmem:[#allocation110_spill] sm:$0xff] %v9843_v17 }
 0x230   : > { %13418 = vst [vmem:[#allocation108_spill] sm:$0xff] %v9831_v20  ;;  %7688 = vmatprep.mubr.msk.f32.mxu1 %vm1842_vm6, %v9831_v20  ;;  %vm1360_vm5 = vcmp.eq.s32.totalorder %v9298_v36, %v1240_v21  ;;  %v9855_v20 = vpop.f32.mrf.mxu0  ;;  %v3108_v21 = vld [vmem:[%s8393_s19 + $0x138] sm:$0xff] }
 0x231   : > { %v1237_v34 = vpop.permute.xlu0 %1236  ;;  %7796 = vmatmul.mubr.msk.f32.gmra.mxu0 %vm3137_vm12, %v3104_v38  ;;  %13423 = vst [vmem:[#allocation113_spill] sm:$0xff] %v9855_v20  ;;  %v9868_v31 = vsel %vm1360_vm5, 1.0, %v13382_v58 }
 0x232   : > { %vm1359_vm3 = vcmp.eq.s32.totalorder %v9298_v36, %v1237_v34  ;;  %7798 = vmatprep.mubr.msk.f32.mxu0 %vm3137_vm12, %v3105_v32  ;;  %7689 = vmatmul.mubr.msk.f32.gmra.mxu1 %vm1842_vm6, %v9848_v33  ;;  %v9863_v32 = vpop.f32.mrf.mxu0  ;;  %13425 = vst [vmem:[#allocation115_spill] sm:$0xff] %v9868_v31 }
 0x233   : > { %v9851_v42 = vsel %vm1359_vm3, 1.0, %v13382_v58  ;;  %v1246_v38 = vpop.permute.xlu1 %1245  ;;  %13424 = vst [vmem:[#allocation114_spill] sm:$0xff] %v9863_v32 }
 0x234   : > { %13422 = vst [vmem:[#allocation112_spill] sm:$0xff] %v9851_v42  ;;  %7691 = vmatprep.mubr.msk.f32.mxu1 %vm1842_vm6, %v9851_v42  ;;  %vm1362_vm9 = vcmp.eq.s32.totalorder %v9298_v36, %v1246_v38  ;;  %v9875_v42 = vpop.f32.mrf.mxu0  ;;  %v3110_v38 = vld [vmem:[%s8393_s19 + $0x148] sm:$0xff] }
 0x235   : > { %v1243_v34 = vpop.permute.xlu0 %1242  ;;  %7799 = vmatmul.mubr.msk.f32.gmra.mxu0 %vm3137_vm12, %v3106_v16  ;;  %13427 = vst [vmem:[#allocation117_spill] sm:$0xff] %v9875_v42  ;;  %v9888_v4 = vsel %vm1362_vm9, 1.0, %v13382_v58 }
 0x236   : > { %vm1361_vm14 = vcmp.eq.s32.totalorder %v9298_v36, %v1243_v34  ;;  %7801 = vmatprep.mubr.msk.f32.mxu0 %vm3137_vm12, %v3107_v41  ;;  %7692 = vmatmul.mubr.msk.f32.gmra.mxu1 %vm1842_vm6, %v9868_v31  ;;  %v9883_v41 = vpop.f32.mrf.mxu0  ;;  %13429 = vst [vmem:[#allocation119_spill] sm:$0xff] %v9888_v4 }
 0x237   : > { %v9871_v33 = vsel %vm1361_vm14, 1.0, %v13382_v58  ;;  %v1252_v16 = vpop.permute.xlu1 %1251  ;;  %13428 = vst [vmem:[#allocation118_spill] sm:$0xff] %v9883_v41 }
 0x238   : > { %13426 = vst [vmem:[#allocation116_spill] sm:$0xff] %v9871_v33  ;;  %7694 = vmatprep.mubr.msk.f32.mxu1 %vm1842_vm6, %v9871_v33  ;;  %vm1364_vm10 = vcmp.eq.s32.totalorder %v9298_v36, %v1252_v16  ;;  %v9895_v33 = vpop.f32.mrf.mxu0  ;;  %v3112_v16 = vld [vmem:[%s8393_s19 + $0x158] sm:$0xff] }
 0x239   : > { %v1249_v34 = vpop.permute.xlu0 %1248  ;;  %7802 = vmatmul.mubr.msk.f32.gmra.mxu0 %vm3137_vm12, %v3108_v21  ;;  %13431 = vst [vmem:[#allocation121_spill] sm:$0xff] %v9895_v33  ;;  %v9908_v9 = vsel %vm1364_vm10, 1.0, %v13382_v58 }
 0x23a   : > { %vm1363_vm4 = vcmp.eq.s32.totalorder %v9298_v36, %v1249_v34  ;;  %7804 = vmatprep.mubr.msk.f32.mxu0 %vm3137_vm12, %v3109_v30  ;;  %7695 = vmatmul.mubr.msk.f32.gmra.mxu1 %vm1842_vm6, %v9888_v4  ;;  %v9903_v30 = vpop.f32.mrf.mxu0  ;;  %13433 = vst [vmem:[#allocation123_spill] sm:$0xff] %v9908_v9 }
 0x23b   : > { %v9891_v31 = vsel %vm1363_vm4, 1.0, %v13382_v58  ;;  %v1258_v21 = vpop.permute.xlu1 %1257  ;;  %13432 = vst [vmem:[#allocation122_spill] sm:$0xff] %v9903_v30 }
 0x23c   : > { %13430 = vst [vmem:[#allocation120_spill] sm:$0xff] %v9891_v31  ;;  %7697 = vmatprep.mubr.msk.f32.mxu1 %vm1842_vm6, %v9891_v31  ;;  %vm1366_vm8 = vcmp.eq.s32.totalorder %v9298_v36, %v1258_v21  ;;  %v9915_v31 = vpop.f32.mrf.mxu0  ;;  %v3114_v21 = vld [vmem:[%s8393_s19 + $0x168] sm:$0xff] }
 0x23d   : > { %v1255_v34 = vpop.permute.xlu0 %1254  ;;  %7805 = vmatmul.mubr.msk.f32.gmra.mxu0 %vm3137_vm12, %v3110_v38  ;;  %13435 = vst [vmem:[#allocation125_spill] sm:$0xff] %v9915_v31  ;;  %v9928_v6 = vsel %vm1366_vm8, 1.0, %v13382_v58 }
 0x23e   : > { %vm1365_vm11 = vcmp.eq.s32.totalorder %v9298_v36, %v1255_v34  ;;  %7807 = vmatprep.mubr.msk.f32.mxu0 %vm3137_vm12, %v3111_v18  ;;  %7698 = vmatmul.mubr.msk.f32.gmra.mxu1 %vm1842_vm6, %v9908_v9  ;;  %v9923_v18 = vpop.f32.mrf.mxu0  ;;  %13437 = vst [vmem:[#allocation127_spill] sm:$0xff] %v9928_v6 }
 0x23f   : > { %v9911_v4 = vsel %vm1365_vm11, 1.0, %v13382_v58  ;;  %v1264_v38 = vpop.permute.xlu1 %1263  ;;  %13436 = vst [vmem:[#allocation126_spill] sm:$0xff] %v9923_v18 }
 0x240   : > { %13434 = vst [vmem:[#allocation124_spill] sm:$0xff] %v9911_v4  ;;  %7700 = vmatprep.mubr.msk.f32.mxu1 %vm1842_vm6, %v9911_v4  ;;  %vm1368_vm0 = vcmp.eq.s32.totalorder %v9298_v36, %v1264_v38  ;;  %v9935_v4 = vpop.f32.mrf.mxu0  ;;  %v3116_v38 = vld [vmem:[%s8393_s19 + $0x178] sm:$0xff] }
 0x241   : > { %v1261_v34 = vpop.permute.xlu0 %1260  ;;  %7808 = vmatmul.mubr.msk.f32.gmra.mxu0 %vm3137_vm12, %v3112_v16  ;;  %13439 = vst [vmem:[#allocation129_spill] sm:$0xff] %v9935_v4  ;;  %v9948_v10 = vsel %vm1368_vm0, 1.0, %v13382_v58 }
 0x242   : > { %vm1367_vm15 = vcmp.eq.s32.totalorder %v9298_v36, %v1261_v34  ;;  %7810 = vmatprep.mubr.msk.f32.mxu0 %vm3137_vm12, %v3113_v25  ;;  %7701 = vmatmul.mubr.msk.f32.gmra.mxu1 %vm1842_vm6, %v9928_v6  ;;  %v9943_v25 = vpop.f32.mrf.mxu0  ;;  %13441 = vst [vmem:[#allocation131_spill] sm:$0xff] %v9948_v10 }
 0x243   : > { %v9931_v9 = vsel %vm1367_vm15, 1.0, %v13382_v58  ;;  %v1270_v16 = vpop.permute.xlu1 %1269  ;;  %13440 = vst [vmem:[#allocation130_spill] sm:$0xff] %v9943_v25 }
 0x244   : > { %13438 = vst [vmem:[#allocation128_spill] sm:$0xff] %v9931_v9  ;;  %7703 = vmatprep.mubr.msk.f32.mxu1 %vm1842_vm6, %v9931_v9  ;;  %vm1370_vm2 = vcmp.eq.s32.totalorder %v9298_v36, %v1270_v16  ;;  %v9955_v9 = vpop.f32.mrf.mxu0  ;;  %v3118_v16 = vld [vmem:[%s8393_s19 + $0x188] sm:$0xff] }
 0x245   : > { %v1267_v34 = vpop.permute.xlu0 %1266  ;;  %7811 = vmatmul.mubr.msk.f32.gmra.mxu0 %vm3137_vm12, %v3114_v21  ;;  %13443 = vst [vmem:[#allocation133_spill] sm:$0xff] %v9955_v9  ;;  %v9968_v63 = vsel %vm1370_vm2, 1.0, %v13382_v58 }
 0x246   : > { %vm1369_vm1 = vcmp.eq.s32.totalorder %v9298_v36, %v1267_v34  ;;  %7813 = vmatprep.mubr.msk.f32.mxu0 %vm3137_vm12, %v3115_v23  ;;  %7704 = vmatmul.mubr.msk.f32.gmra.mxu1 %vm1842_vm6, %v9948_v10  ;;  %v9963_v23 = vpop.f32.mrf.mxu0  ;;  %13445 = vst [vmem:[#allocation135_spill] sm:$0xff] %v9968_v63 }
 0x247   : > { %v9951_v6 = vsel %vm1369_vm1, 1.0, %v13382_v58  ;;  %v1276_v21 = vpop.permute.xlu1 %1275  ;;  %13444 = vst [vmem:[#allocation134_spill] sm:$0xff] %v9963_v23 }
 0x248   : > { %13442 = vst [vmem:[#allocation132_spill] sm:$0xff] %v9951_v6  ;;  %7706 = vmatprep.mubr.msk.f32.mxu1 %vm1842_vm6, %v9951_v6  ;;  %vm1372_vm13 = vcmp.eq.s32.totalorder %v9298_v36, %v1276_v21  ;;  %v9975_v6 = vpop.f32.mrf.mxu0  ;;  %v3120_v21 = vld [vmem:[%s8393_s19 + $0x198] sm:$0xff] }
 0x249   : > { %v1273_v34 = vpop.permute.xlu0 %1272  ;;  %7814 = vmatmul.mubr.msk.f32.gmra.mxu0 %vm3137_vm12, %v3116_v38  ;;  %13447 = vst [vmem:[#allocation137_spill] sm:$0xff] %v9975_v6  ;;  %v9988_v3 = vsel %vm1372_vm13, 1.0, %v13382_v58 }
 0x24a   : > { %vm1371_vm7 = vcmp.eq.s32.totalorder %v9298_v36, %v1273_v34  ;;  %7816 = vmatprep.mubr.msk.f32.mxu0 %vm3137_vm12, %v3117_v14  ;;  %7707 = vmatmul.mubr.msk.f32.gmra.mxu1 %vm1842_vm6, %v9968_v63  ;;  %v9983_v14 = vpop.f32.mrf.mxu0  ;;  %13449 = vst [vmem:[#allocation139_spill] sm:$0xff] %v9988_v3 }
 0x24b   : > { %v9971_v10 = vsel %vm1371_vm7, 1.0, %v13382_v58  ;;  %v1282_v38 = vpop.permute.xlu1 %1281  ;;  %13448 = vst [vmem:[#allocation138_spill] sm:$0xff] %v9983_v14 }
 0x24c   : > { %13446 = vst [vmem:[#allocation136_spill] sm:$0xff] %v9971_v10  ;;  %7709 = vmatprep.mubr.msk.f32.mxu1 %vm1842_vm6, %v9971_v10  ;;  %vm1374_vm5 = vcmp.eq.s32.totalorder %v9298_v36, %v1282_v38  ;;  %v9995_v10 = vpop.f32.mrf.mxu0  ;;  %v3122_v38 = vld [vmem:[%s8393_s19 + $0x1a8] sm:$0xff] }
 0x24d   : > { %v1279_v34 = vpop.permute.xlu0 %1278  ;;  %7817 = vmatmul.mubr.msk.f32.gmra.mxu0 %vm3137_vm12, %v3118_v16  ;;  %13451 = vst [vmem:[#allocation141_spill] sm:$0xff] %v9995_v10  ;;  %v10008_v5 = vsel %vm1374_vm5, 1.0, %v13382_v58 }
 0x24e   : > { %vm1373_vm3 = vcmp.eq.s32.totalorder %v9298_v36, %v1279_v34  ;;  %7819 = vmatprep.mubr.msk.f32.mxu0 %vm3137_vm12, %v3119_v11  ;;  %7710 = vmatmul.mubr.msk.f32.gmra.mxu1 %vm1842_vm6, %v9988_v3  ;;  %v10003_v11 = vpop.f32.mrf.mxu0  ;;  %13453 = vst [vmem:[#allocation143_spill] sm:$0xff] %v10008_v5 }
 0x24f   : > { %v9991_v63 = vsel %vm1373_vm3, 1.0, %v13382_v58  ;;  %v1288_v16 = vpop.permute.xlu1 %1287  ;;  %13452 = vst [vmem:[#allocation142_spill] sm:$0xff] %v10003_v11 }
 0x250   : > { %13450 = vst [vmem:[#allocation140_spill] sm:$0xff] %v9991_v63  ;;  %7712 = vmatprep.mubr.msk.f32.mxu1 %vm1842_vm6, %v9991_v63  ;;  %vm1376_vm9 = vcmp.eq.s32.totalorder %v9298_v36, %v1288_v16  ;;  %v10015_v63 = vpop.f32.mrf.mxu0  ;;  %v3124_v16 = vld [vmem:[%s8393_s19 + $0x1b8] sm:$0xff] }
 0x251   : > { %v1285_v34 = vpop.permute.xlu0 %1284  ;;  %7820 = vmatmul.mubr.msk.f32.gmra.mxu0 %vm3137_vm12, %v3120_v21  ;;  %13455 = vst [vmem:[#allocation145_spill] sm:$0xff] %v10015_v63  ;;  %v10028_v1 = vsel %vm1376_vm9, 1.0, %v13382_v58 }
 0x252   : > { %vm1375_vm14 = vcmp.eq.s32.totalorder %v9298_v36, %v1285_v34  ;;  %7822 = vmatprep.mubr.msk.f32.mxu0 %vm3137_vm12, %v3121_v2  ;;  %7713 = vmatmul.mubr.msk.f32.gmra.mxu1 %vm1842_vm6, %v10008_v5  ;;  %v10023_v2 = vpop.f32.mrf.mxu0  ;;  %13457 = vst [vmem:[#allocation147_spill] sm:$0xff] %v10028_v1 }
 0x253   : > { %v10011_v3 = vsel %vm1375_vm14, 1.0, %v13382_v58  ;;  %v1294_v21 = vpop.permute.xlu1 %1293  ;;  %13456 = vst [vmem:[#allocation146_spill] sm:$0xff] %v10023_v2 }
 0x254   : > { %13454 = vst [vmem:[#allocation144_spill] sm:$0xff] %v10011_v3  ;;  %7715 = vmatprep.mubr.msk.f32.mxu1 %vm1842_vm6, %v10011_v3  ;;  %vm1378_vm10 = vcmp.eq.s32.totalorder %v9298_v36, %v1294_v21  ;;  %v10035_v3 = vpop.f32.mrf.mxu0  ;;  %v3126_v21 = vld [vmem:[%s8393_s19 + $0x1c8] sm:$0xff] }
 0x255   : > { %v1291_v34 = vpop.permute.xlu0 %1290  ;;  %7823 = vmatmul.mubr.msk.f32.gmra.mxu0 %vm3137_vm12, %v3122_v38  ;;  %13459 = vst [vmem:[#allocation149_spill] sm:$0xff] %v10035_v3  ;;  %v10048_v61 = vsel %vm1378_vm10, 1.0, %v13382_v58 }
 0x256   : > { %vm1377_vm4 = vcmp.eq.s32.totalorder %v9298_v36, %v1291_v34  ;;  %7825 = vmatprep.mubr.msk.f32.mxu0 %vm3137_vm12, %v3123_v62  ;;  %7716 = vmatmul.mubr.msk.f32.gmra.mxu1 %vm1842_vm6, %v10028_v1  ;;  %v10043_v62 = vpop.f32.mrf.mxu0  ;;  %13461 = vst [vmem:[#allocation151_spill] sm:$0xff] %v10048_v61 }
 0x257   : > { %v10031_v5 = vsel %vm1377_vm4, 1.0, %v13382_v58  ;;  %v1300_v38 = vpop.permute.xlu1 %1299  ;;  %13460 = vst [vmem:[#allocation150_spill] sm:$0xff] %v10043_v62 }
 0x258   : > { %13458 = vst [vmem:[#allocation148_spill] sm:$0xff] %v10031_v5  ;;  %7718 = vmatprep.mubr.msk.f32.mxu1 %vm1842_vm6, %v10031_v5  ;;  %vm1380_vm8 = vcmp.eq.s32.totalorder %v9298_v36, %v1300_v38  ;;  %v10055_v5 = vpop.f32.mrf.mxu0  ;;  %v3128_v38 = vld [vmem:[%s8393_s19 + $0x1d8] sm:$0xff] }
 0x259   : > { %v1297_v34 = vpop.permute.xlu0 %1296  ;;  %7826 = vmatmul.mubr.msk.f32.gmra.mxu0 %vm3137_vm12, %v3124_v16  ;;  %13463 = vst [vmem:[#allocation153_spill] sm:$0xff] %v10055_v5  ;;  %v10068_v55 = vsel %vm1380_vm8, 1.0, %v13382_v58 }
 0x25a   : > { %vm1379_vm11 = vcmp.eq.s32.totalorder %v9298_v36, %v1297_v34  ;;  %7828 = vmatprep.mubr.msk.f32.mxu0 %vm3137_vm12, %v3125_v0  ;;  %7719 = vmatmul.mubr.msk.f32.gmra.mxu1 %vm1842_vm6, %v10048_v61  ;;  %v10063_v0 = vpop.f32.mrf.mxu0  ;;  %13465 = vst [vmem:[#allocation155_spill] sm:$0xff] %v10068_v55 }
 0x25b   : > { %v10051_v1 = vsel %vm1379_vm11, 1.0, %v13382_v58  ;;  %v1306_v16 = vpop.permute.xlu1 %1305  ;;  %13464 = vst [vmem:[#allocation154_spill] sm:$0xff] %v10063_v0 }
 0x25c   : > { %13462 = vst [vmem:[#allocation152_spill] sm:$0xff] %v10051_v1  ;;  %7721 = vmatprep.mubr.msk.f32.mxu1 %vm1842_vm6, %v10051_v1  ;;  %vm1382_vm0 = vcmp.eq.s32.totalorder %v9298_v36, %v1306_v16  ;;  %v10075_v1 = vpop.f32.mrf.mxu0  ;;  %v3130_v16 = vld [vmem:[%s8393_s19 + $0x1e8] sm:$0xff] }
 0x25d   : > { %v1303_v34 = vpop.permute.xlu0 %1302  ;;  %7829 = vmatmul.mubr.msk.f32.gmra.mxu0 %vm3137_vm12, %v3126_v21  ;;  %13467 = vst [vmem:[#allocation157_spill] sm:$0xff] %v10075_v1  ;;  %v10088_v52 = vsel %vm1382_vm0, 1.0, %v13382_v58 }
 0x25e   : > { %vm1381_vm15 = vcmp.eq.s32.totalorder %v9298_v36, %v1303_v34  ;;  %7831 = vmatprep.mubr.msk.f32.mxu0 %vm3137_vm12, %v3127_v56  ;;  %7722 = vmatmul.mubr.msk.f32.gmra.mxu1 %vm1842_vm6, %v10068_v55  ;;  %v10083_v56 = vpop.f32.mrf.mxu0  ;;  %13469 = vst [vmem:[#allocation159_spill] sm:$0xff] %v10088_v52 }
 0x25f   : > { %v10071_v61 = vsel %vm1381_vm15, 1.0, %v13382_v58  ;;  %v1312_v21 = vpop.permute.xlu1 %1311  ;;  %13468 = vst [vmem:[#allocation158_spill] sm:$0xff] %v10083_v56 }
 0x260   : > { %13466 = vst [vmem:[#allocation156_spill] sm:$0xff] %v10071_v61  ;;  %7724 = vmatprep.mubr.msk.f32.mxu1 %vm1842_vm6, %v10071_v61  ;;  %vm1384_vm2 = vcmp.eq.s32.totalorder %v9298_v36, %v1312_v21  ;;  %v10095_v61 = vpop.f32.mrf.mxu0 }
 0x261   : > { %v1309_v34 = vpop.permute.xlu0 %1308  ;;  %7832 = vmatmul.mubr.msk.f32.gmra.mxu0 %vm3137_vm12, %v3128_v38  ;;  %13471 = vst [vmem:[#allocation161_spill] sm:$0xff] %v10095_v61  ;;  %v10108_v21 = vsel %vm1384_vm2, 1.0, %v13382_v58 }
 0x262   : > { %vm1383_vm1 = vcmp.eq.s32.totalorder %v9298_v36, %v1309_v34  ;;  %7834 = vmatprep.mubr.msk.f32.mxu0 %vm3137_vm12, %v3129_v54  ;;  %7725 = vmatmul.mubr.msk.f32.gmra.mxu1 %vm1842_vm6, %v10088_v52  ;;  %v10103_v54 = vpop.f32.mrf.mxu0  ;;  %13473 = vst [vmem:[#allocation163_spill] sm:$0xff] %v10108_v21 }
 0x263   : > { %v10091_v55 = vsel %vm1383_vm1, 1.0, %v13382_v58  ;;  %v1318_v38 = vpop.permute.xlu1 %1317  ;;  %13472 = vst [vmem:[#allocation162_spill] sm:$0xff] %v10103_v54 }
 0x264   : > { %13470 = vst [vmem:[#allocation160_spill] sm:$0xff] %v10091_v55  ;;  %7727 = vmatprep.mubr.msk.f32.mxu1 %vm1842_vm6, %v10091_v55  ;;  %vm1386_vm13 = vcmp.eq.s32.totalorder %v9298_v36, %v1318_v38  ;;  %v10114_v52 = vpop.f32.mrf.mxu0 }
 0x265   : > { %v1315_v34 = vpop.permute.xlu0 %1314  ;;  %7835 = vmatmul.mubr.msk.f32.gmra.mxu0 %vm3137_vm12, %v3130_v16  ;;  %13475 = vst [vmem:[#allocation165_spill] sm:$0xff] %v10114_v52  ;;  %v10124_v55 = vsel %vm1386_vm13, 1.0, %v13382_v58 }
 0x266   : > { %vm1385_vm7 = vcmp.eq.s32.totalorder %v9298_v36, %v1315_v34  ;;  %7837 = vmatprep.mubr.msk.f32.mxu0 %vm3137_vm12, %v3131_v51  ;;  %7728 = vmatmul.mubr.msk.f32.gmra.mxu1 %vm1842_vm6, %v10108_v21  ;;  %v10121_v34 = vpop.f32.mrf.mxu0  ;;  %13477 = vst [vmem:[#allocation167_spill] sm:$0xff] %v10124_v55 }
 0x267   : > { %v10111_v48 = vsel %vm1385_vm7, 1.0, %v13382_v58  ;;  %v1324_v16 = vpop.permute.xlu1 %1323  ;;  %13476 = vst [vmem:[#allocation166_spill] sm:$0xff] %v10121_v34 }
 0x268   : > { %13474 = vst [vmem:[#allocation164_spill] sm:$0xff] %v10111_v48  ;;  %7730 = vmatprep.mubr.msk.f32.mxu1 %vm1842_vm6, %v10111_v48  ;;  %vm1388_vm5 = vcmp.eq.s32.totalorder %v9298_v36, %v1324_v16  ;;  %v10131_v21 = vpop.f32.mrf.mxu0 }
 0x269   : > { %7838 = vmatmul.mubr.msk.f32.gmra.mxu0 %vm3137_vm12, %v3132_v50  ;;  %v1321_v51 = vpop.permute.xlu0 %1320  ;;  %13479 = vst [vmem:[#allocation169_spill] sm:$0xff] %v10131_v21  ;;  %v10140_v48 = vsel %vm1388_vm5, 1.0, %v13382_v58 }
 0x26a   : > { %vm1387_vm3 = vcmp.eq.s32.totalorder %v9298_v36, %v1321_v51  ;;  %7731 = vmatmul.mubr.msk.f32.gmra.mxu1 %vm1842_vm6, %v10124_v55  ;;  %v10137_v50 = vpop.f32.mrf.mxu0  ;;  %13481 = vst [vmem:[#allocation171_spill] sm:$0xff] %v10140_v48 }
 0x26b   : > { %v10129_v38 = vsel %vm1387_vm3, 1.0, %v13382_v58  ;;  %13480 = vst [vmem:[#allocation170_spill] sm:$0xff] %v10137_v50 }
 0x26c   : > { %13478 = vst [vmem:[#allocation168_spill] sm:$0xff] %v10129_v38  ;;  %7733 = vmatprep.mubr.msk.f32.mxu1 %vm1842_vm6, %v10129_v38  ;;  %v10142_v47 = vpop.f32.mrf.mxu0 }
 0x26d   : > { %13482 = vst [vmem:[#allocation172_spill] sm:$0xff] %v10142_v47 }
 0x26e   : > { %7734 = vmatmul.mubr.msk.f32.gmra.mxu1 %vm1842_vm6, %v10140_v48  ;;  %v10146_v36 = vpop.f32.mrf.mxu0 }
 0x26f   : > { %13483 = vst [vmem:[#allocation173_spill] sm:$0xff] %v10146_v36 }
 0x270   : > { %v10148_v16 = vpop.f32.mrf.mxu0 }
 0x271   : > { %13484 = vst [vmem:[#allocation174_spill] sm:$0xff] %v10148_v16 }
 0x272   : > { %v10150_v51 = vpop.f32.mrf.mxu0 }
 0x273   : > { %13485 = vst [vmem:[#allocation175_spill] sm:$0xff] %v10150_v51 }
 0x275   : > { %v10152_v55 = vpop.f32.mrf.mxu0 }
 0x276   : > { %13486 = vst [vmem:[#allocation176_spill] sm:$0xff] %v10152_v55 }
 0x277   : > { %v10154_v46 = vpop.f32.mrf.mxu0 }
 0x278   : > { %13487 = vst [vmem:[#allocation177_spill] sm:$0xff] %v10154_v46 }
 0x279   : > { %v10156_v38 = vpop.f32.mrf.mxu0 }
 0x27a   : > { %13488 = vst [vmem:[#allocation178_spill] sm:$0xff] %v10156_v38 }
 0x27b   : > { %v10158_v44 = vpop.f32.mrf.mxu0 }
 0x27c   : > { %13489 = vst [vmem:[#allocation179_spill] sm:$0xff] %v10158_v44 }
 0x27d   : > { %v10160_v58 = vpop.f32.mrf.mxu0 }
 0x27e   : > { %13490 = vst [vmem:[#allocation180_spill] sm:$0xff] %v10160_v58 }
 0x27f   : > { %v10162_v40 = vpop.f32.mrf.mxu0 }
 0x280   : > { %13491 = vst [vmem:[#allocation181_spill] sm:$0xff] %v10162_v40 }
 0x281   : > { %v10164_v37 = vpop.f32.mrf.mxu0 }
 0x282   : > { %13492 = vst [vmem:[#allocation182_spill] sm:$0xff] %v10164_v37 }
 0x283   : > { %v10166_v48 = vpop.f32.mrf.mxu0 }
 0x284   : > { %13493 = vst [vmem:[#allocation183_spill] sm:$0xff] %v10166_v48 }
 0x285   : > { %v10168_v8 = vpop.f32.mrf.mxu0 }
 0x286   : > { %13494 = vst [vmem:[#allocation184_spill] sm:$0xff] %v10168_v8 }
 0x287   : > { %v10170_v13 = vpop.f32.mrf.mxu0 }
 0x288   : > { %13495 = vst [vmem:[#allocation185_spill] sm:$0xff] %v10170_v13 }
 0x289   : > { %v10172_v22 = vpop.f32.mrf.mxu0 }
 0x28a   : > { %13496 = vst [vmem:[#allocation186_spill] sm:$0xff] %v10172_v22 }
 0x28b   : > { %v10174_v43 = vpop.f32.mrf.mxu0 }
 0x28c   : > { %13497 = vst [vmem:[#allocation187_spill] sm:$0xff] %v10174_v43 }
 0x28d   : > { %v10176_v60 = vpop.f32.mrf.mxu0 }
 0x28e   : > { %13498 = vst [vmem:[#allocation188_spill] sm:$0xff] %v10176_v60 }
 0x28f   : > { %v10178_v15 = vpop.f32.mrf.mxu0 }
 0x290   : > { %13499 = vst [vmem:[#allocation189_spill] sm:$0xff] %v10178_v15 }
 0x291   : > { %v10180_v28 = vpop.f32.mrf.mxu0 }
 0x292   : > { %13500 = vst [vmem:[#allocation190_spill] sm:$0xff] %v10180_v28 }
 0x293   : > { %v10182_v59 = vpop.f32.mrf.mxu0 }
 0x294   : > { %13501 = vst [vmem:[#allocation191_spill] sm:$0xff] %v10182_v59 }
 0x295   : > { %v10188_v53 = vpop.f32.mrf.mxu1 }
 0x296   : > { %13504 = vst [vmem:[#allocation194_spill] sm:$0xff] %v10188_v53 }
 0x297   : > { %v10192_v45 = vpop.f32.mrf.mxu1 }
 0x298   : > { %13506 = vst [vmem:[#allocation196_spill] sm:$0xff] %v10192_v45 }
 0x299   : > { %v10184_v26 = vpop.f32.mrf.mxu0 }
 0x29a   : > { %13502 = vst [vmem:[#allocation192_spill] sm:$0xff] %v10184_v26 }
 0x29b   : > { %v10186_v57 = vpop.f32.mrf.mxu0 }
 0x29c   : > { %13503 = vst [vmem:[#allocation193_spill] sm:$0xff] %v10186_v57 }
 0x29d   : > { %v10196_v35 = vpop.f32.mrf.mxu1 }
 0x29e   : > { %13508 = vst [vmem:[#allocation198_spill] sm:$0xff] %v10196_v35 }
 0x29f   : > { %v10202_v19 = vpop.f32.mrf.mxu1 }
 0x2a0   : > { %13511 = vst [vmem:[#allocation201_spill] sm:$0xff] %v10202_v19 }
 0x2a1   : > { %v10190_v49 = vpop.f32.mrf.mxu0 }
 0x2a2   : > { %13505 = vst [vmem:[#allocation195_spill] sm:$0xff] %v10190_v49 }
 0x2a3   : > { %v10194_v39 = vpop.f32.mrf.mxu0 }
 0x2a4   : > { %13507 = vst [vmem:[#allocation197_spill] sm:$0xff] %v10194_v39 }
 0x2a5   : > { %v10204_v7 = vpop.f32.mrf.mxu1 }
 0x2a6   : > { %13512 = vst [vmem:[#allocation202_spill] sm:$0xff] %v10204_v7 }
 0x2a7   : > { %v10206_v53 = vpop.f32.mrf.mxu1 }
 0x2a8   : > { %13513 = vst [vmem:[#allocation203_spill] sm:$0xff] %v10206_v53 }
 0x2a9   : > { %v10198_v27 = vpop.f32.mrf.mxu0 }
 0x2aa   : > { %13509 = vst [vmem:[#allocation199_spill] sm:$0xff] %v10198_v27 }
 0x2ab   : > { %v10200_v24 = vpop.f32.mrf.mxu0 }
 0x2ac   : > { %13510 = vst [vmem:[#allocation200_spill] sm:$0xff] %v10200_v24  ;;  %v10212_v24 = vld [vmem:[%s12754_s7] ss:$0 sm:$0xff] }
 0x2ad   : > { %v7746_v12 = vpop.f32.mrf.mxu0 }
 0x2af   : > { %v3396_v57 = vpop.f32.mrf.mxu0 }
 0x2b1   : > { %v7749_v26 = vpop.f32.mrf.mxu0 }
 0x2b2   : > { %v7642_v45 = vpop.f32.mrf.mxu1 }
 0x2b3   : > { %v3406_v49 = vpop.f32.mrf.mxu0  ;;  %v3006_v39 = vadd.f32 %v7642_v45, %v9835_v29 }
 0x2b4   : > { %v2686_v35 = vpop.f32.mrf.mxu1 }
 0x2b5   : > { %v7752_v59 = vpop.f32.mrf.mxu0  ;;  %v3005_v19 = vadd.f32 %v2686_v35, %v9843_v17  ;;  %v3716_v7 = vadd.f32 %v7746_v12, %v3006_v39 }
 0x2b6   : > { %v7645_v28 = vpop.f32.mrf.mxu1 }
 0x2b7   : > { %v3416_v27 = vpop.f32.mrf.mxu0  ;;  %v10216_v53 = vadd.f32 %v10212_v24, %v3716_v7  ;;  %v3008_v15 = vadd.f32 %v7645_v28, %v9855_v20  ;;  %v3715_v45 = vadd.f32 %v3396_v57, %v3005_v19 }
 0x2b8   : > { %v2696_v60 = vpop.f32.mrf.mxu1 }
 0x2b9   : > { %13514 = vst [vmem:[#allocation204_spill] sm:$0xff] %v10216_v53  ;;  %v7755_v29 = vpop.f32.mrf.mxu0  ;;  %3851 = vst.msk [vmem:[%s8408_s28 + $0x8] sm:$0xff] %vm3137_vm12, %v10216_v53  ;;  %v10223_v43 = vadd.f32 %v10212_v24, %v3715_v45  ;;  %v3007_v35 = vadd.f32 %v2696_v60, %v9863_v32  ;;  %v3718_v12 = vadd.f32 %v7749_v26, %v3008_v15 }
 0x2ba   : > { %v7648_v17 = vpop.f32.mrf.mxu1 }
 0x2bb   : > { %13515 = vst [vmem:[#allocation205_spill] sm:$0xff] %v10223_v43  ;;  %v3426_v39 = vpop.f32.mrf.mxu0  ;;  %3850 = vst.msk [vmem:[%s8408_s28] sm:$0xff] %vm3137_vm12, %v10223_v43  ;;  %v10230_v7 = vadd.f32 %v10212_v24, %v3718_v12  ;;  %v3010_v19 = vadd.f32 %v7648_v17, %v9875_v42  ;;  %v3717_v57 = vadd.f32 %v3406_v49, %v3007_v35 }
 0x2bc   : > { %v2706_v20 = vpop.f32.mrf.mxu1 }
 0x2bd   : > { %13516 = vst [vmem:[#allocation206_spill] sm:$0xff] %v10230_v7  ;;  %v7758_v28 = vpop.f32.mrf.mxu0  ;;  %3853 = vst.msk [vmem:[%s8408_s28 + $0x18] sm:$0xff] %vm3137_vm12, %v10230_v7  ;;  %v10237_v60 = vadd.f32 %v10212_v24, %v3717_v57  ;;  %v3009_v26 = vadd.f32 %v2706_v20, %v9883_v41  ;;  %v3720_v15 = vadd.f32 %v7752_v59, %v3010_v19 }
 0x2be   : > { %v7651_v32 = vpop.f32.mrf.mxu1 }
 0x2bf   : > { %13517 = vst [vmem:[#allocation207_spill] sm:$0xff] %v10237_v60  ;;  %v3436_v45 = vpop.f32.mrf.mxu0  ;;  %3852 = vst.msk [vmem:[%s8408_s28 + $0x10] sm:$0xff] %vm3137_vm12, %v10237_v60  ;;  %v10244_v17 = vadd.f32 %v10212_v24, %v3720_v15  ;;  %v3012_v49 = vadd.f32 %v7651_v32, %v9895_v33  ;;  %v3719_v35 = vadd.f32 %v3416_v27, %v3009_v26 }
 0x2c0   : > { %v2716_v42 = vpop.f32.mrf.mxu1 }
 0x2c1   : > { %13518 = vst [vmem:[#allocation208_spill] sm:$0xff] %v10244_v17  ;;  %v7761_v12 = vpop.f32.mrf.mxu0  ;;  %3855 = vst.msk [vmem:[%s8408_s28 + $0x28] sm:$0xff] %vm3137_vm12, %v10244_v17  ;;  %v10251_v20 = vadd.f32 %v10212_v24, %v3719_v35  ;;  %v3011_v59 = vadd.f32 %v2716_v42, %v9903_v30  ;;  %v3722_v19 = vadd.f32 %v7755_v29, %v3012_v49 }
 0x2c2   : > { %v7654_v41 = vpop.f32.mrf.mxu1 }
 0x2c3   : > { %13519 = vst [vmem:[#allocation209_spill] sm:$0xff] %v10251_v20  ;;  %v3446_v57 = vpop.f32.mrf.mxu0  ;;  %3854 = vst.msk [vmem:[%s8408_s28 + $0x20] sm:$0xff] %vm3137_vm12, %v10251_v20  ;;  %v10258_v32 = vadd.f32 %v10212_v24, %v3722_v19  ;;  %v3014_v27 = vadd.f32 %v7654_v41, %v9915_v31  ;;  %v3721_v26 = vadd.f32 %v3426_v39, %v3011_v59 }
 0x2c4   : > { %v2726_v33 = vpop.f32.mrf.mxu1 }
 0x2c5   : > { %13520 = vst [vmem:[#allocation210_spill] sm:$0xff] %v10258_v32  ;;  %v7764_v15 = vpop.f32.mrf.mxu0  ;;  %3857 = vst.msk [vmem:[%s8408_s28 + $0x38] sm:$0xff] %vm3137_vm12, %v10258_v32  ;;  %v10265_v42 = vadd.f32 %v10212_v24, %v3721_v26  ;;  %v3013_v29 = vadd.f32 %v2726_v33, %v9923_v18  ;;  %v3724_v49 = vadd.f32 %v7758_v28, %v3014_v27 }
 0x2c6   : > { %v7657_v30 = vpop.f32.mrf.mxu1 }
 0x2c7   : > { %13521 = vst [vmem:[#allocation211_spill] sm:$0xff] %v10265_v42  ;;  %v3456_v35 = vpop.f32.mrf.mxu0  ;;  %3856 = vst.msk [vmem:[%s8408_s28 + $0x30] sm:$0xff] %vm3137_vm12, %v10265_v42  ;;  %v10272_v41 = vadd.f32 %v10212_v24, %v3724_v49  ;;  %v3016_v39 = vadd.f32 %v7657_v30, %v9935_v4  ;;  %v3723_v59 = vadd.f32 %v3436_v45, %v3013_v29 }
 0x2c8   : > { %v2736_v31 = vpop.f32.mrf.mxu1 }
 0x2c9   : > { %13522 = vst [vmem:[#allocation212_spill] sm:$0xff] %v10272_v41  ;;  %v7767_v19 = vpop.f32.mrf.mxu0  ;;  %3859 = vst.msk [vmem:[%s8408_s28 + $0x48] sm:$0xff] %vm3137_vm12, %v10272_v41  ;;  %v10279_v33 = vadd.f32 %v10212_v24, %v3723_v59  ;;  %v3015_v28 = vadd.f32 %v2736_v31, %v9943_v25  ;;  %v3726_v27 = vadd.f32 %v7761_v12, %v3016_v39 }
 0x2ca   : > { %v7660_v18 = vpop.f32.mrf.mxu1 }
 0x2cb   : > { %13523 = vst [vmem:[#allocation213_spill] sm:$0xff] %v10279_v33  ;;  %v3466_v26 = vpop.f32.mrf.mxu0  ;;  %3858 = vst.msk [vmem:[%s8408_s28 + $0x40] sm:$0xff] %vm3137_vm12, %v10279_v33  ;;  %v10286_v30 = vadd.f32 %v10212_v24, %v3726_v27  ;;  %v3018_v45 = vadd.f32 %v7660_v18, %v9955_v9  ;;  %v3725_v29 = vadd.f32 %v3446_v57, %v3015_v28 }
 0x2cc   : > { %v2746_v4 = vpop.f32.mrf.mxu1 }
 0x2cd   : > { %13524 = vst [vmem:[#allocation214_spill] sm:$0xff] %v10286_v30  ;;  %v7770_v49 = vpop.f32.mrf.mxu0  ;;  %3861 = vst.msk [vmem:[%s8408_s28 + $0x58] sm:$0xff] %vm3137_vm12, %v10286_v30  ;;  %v10293_v31 = vadd.f32 %v10212_v24, %v3725_v29  ;;  %v3017_v12 = vadd.f32 %v2746_v4, %v9963_v23  ;;  %v3728_v39 = vadd.f32 %v7764_v15, %v3018_v45 }
 0x2ce   : > { %v7663_v25 = vpop.f32.mrf.mxu1 }
 0x2cf   : > { %13525 = vst [vmem:[#allocation215_spill] sm:$0xff] %v10293_v31  ;;  %v3476_v59 = vpop.f32.mrf.mxu0  ;;  %3860 = vst.msk [vmem:[%s8408_s28 + $0x50] sm:$0xff] %vm3137_vm12, %v10293_v31  ;;  %v10300_v18 = vadd.f32 %v10212_v24, %v3728_v39  ;;  %v3020_v57 = vadd.f32 %v7663_v25, %v9975_v6  ;;  %v3727_v28 = vadd.f32 %v3456_v35, %v3017_v12 }
 0x2d0   : > { %v2756_v9 = vpop.f32.mrf.mxu1 }
 0x2d1   : > { %13526 = vst [vmem:[#allocation216_spill] sm:$0xff] %v10300_v18  ;;  %v7773_v27 = vpop.f32.mrf.mxu0  ;;  %3863 = vst.msk [vmem:[%s8408_s28 + $0x68] sm:$0xff] %vm3137_vm12, %v10300_v18  ;;  %v10307_v4 = vadd.f32 %v10212_v24, %v3727_v28  ;;  %v3019_v15 = vadd.f32 %v2756_v9, %v9983_v14  ;;  %v3730_v45 = vadd.f32 %v7767_v19, %v3020_v57 }
 0x2d2   : > { %v7666_v23 = vpop.f32.mrf.mxu1 }
 0x2d3   : > { %13527 = vst [vmem:[#allocation217_spill] sm:$0xff] %v10307_v4  ;;  %v3486_v29 = vpop.f32.mrf.mxu0  ;;  %3862 = vst.msk [vmem:[%s8408_s28 + $0x60] sm:$0xff] %vm3137_vm12, %v10307_v4  ;;  %v10314_v25 = vadd.f32 %v10212_v24, %v3730_v45  ;;  %v3022_v35 = vadd.f32 %v7666_v23, %v9995_v10  ;;  %v3729_v12 = vadd.f32 %v3466_v26, %v3019_v15 }
 0x2d4   : > { %v2766_v6 = vpop.f32.mrf.mxu1 }
 0x2d5   : > { %13528 = vst [vmem:[#allocation218_spill] sm:$0xff] %v10314_v25  ;;  %v7776_v39 = vpop.f32.mrf.mxu0  ;;  %3865 = vst.msk [vmem:[%s8408_s28 + $0x78] sm:$0xff] %vm3137_vm12, %v10314_v25  ;;  %v10321_v9 = vadd.f32 %v10212_v24, %v3729_v12  ;;  %v3021_v19 = vadd.f32 %v2766_v6, %v10003_v11  ;;  %v3732_v57 = vadd.f32 %v7770_v49, %v3022_v35 }
 0x2d6   : > { %v7669_v14 = vpop.f32.mrf.mxu1 }
 0x2d7   : > { %13529 = vst [vmem:[#allocation219_spill] sm:$0xff] %v10321_v9  ;;  %v3496_v28 = vpop.f32.mrf.mxu0  ;;  %3864 = vst.msk [vmem:[%s8408_s28 + $0x70] sm:$0xff] %vm3137_vm12, %v10321_v9  ;;  %v10328_v23 = vadd.f32 %v10212_v24, %v3732_v57  ;;  %v3024_v26 = vadd.f32 %v7669_v14, %v10015_v63  ;;  %v3731_v15 = vadd.f32 %v3476_v59, %v3021_v19 }
 0x2d8   : > { %v2776_v10 = vpop.f32.mrf.mxu1 }
 0x2d9   : > { %13530 = vst [vmem:[#allocation220_spill] sm:$0xff] %v10328_v23  ;;  %v7779_v45 = vpop.f32.mrf.mxu0  ;;  %3867 = vst.msk [vmem:[%s8408_s28 + $0x88] sm:$0xff] %vm3137_vm12, %v10328_v23  ;;  %v10335_v6 = vadd.f32 %v10212_v24, %v3731_v15  ;;  %v3023_v49 = vadd.f32 %v2776_v10, %v10023_v2  ;;  %v3734_v35 = vadd.f32 %v7773_v27, %v3024_v26 }
 0x2da   : > { %v7672_v11 = vpop.f32.mrf.mxu1 }
 0x2db   : > { %13531 = vst [vmem:[#allocation221_spill] sm:$0xff] %v10335_v6  ;;  %v3506_v12 = vpop.f32.mrf.mxu0  ;;  %3866 = vst.msk [vmem:[%s8408_s28 + $0x80] sm:$0xff] %vm3137_vm12, %v10335_v6  ;;  %v10342_v14 = vadd.f32 %v10212_v24, %v3734_v35  ;;  %v3026_v59 = vadd.f32 %v7672_v11, %v10035_v3  ;;  %v3733_v19 = vadd.f32 %v3486_v29, %v3023_v49 }
 0x2dc   : > { %v2786_v63 = vpop.f32.mrf.mxu1 }
 0x2dd   : > { %13532 = vst [vmem:[#allocation222_spill] sm:$0xff] %v10342_v14  ;;  %v7782_v57 = vpop.f32.mrf.mxu0  ;;  %3869 = vst.msk [vmem:[%s8408_s28 + $0x98] sm:$0xff] %vm3137_vm12, %v10342_v14  ;;  %v10349_v10 = vadd.f32 %v10212_v24, %v3733_v19  ;;  %v3025_v27 = vadd.f32 %v2786_v63, %v10043_v62  ;;  %v3736_v26 = vadd.f32 %v7776_v39, %v3026_v59 }
 0x2de   : > { %v7675_v2 = vpop.f32.mrf.mxu1 }
 0x2df   : > { %13533 = vst [vmem:[#allocation223_spill] sm:$0xff] %v10349_v10  ;;  %v3516_v15 = vpop.f32.mrf.mxu0  ;;  %3868 = vst.msk [vmem:[%s8408_s28 + $0x90] sm:$0xff] %vm3137_vm12, %v10349_v10  ;;  %v10356_v11 = vadd.f32 %v10212_v24, %v3736_v26  ;;  %v3028_v29 = vadd.f32 %v7675_v2, %v10055_v5  ;;  %v3735_v49 = vadd.f32 %v3496_v28, %v3025_v27 }
 0x2e0   : > { %v2796_v3 = vpop.f32.mrf.mxu1 }
 0x2e1   : > { %13534 = vst [vmem:[#allocation224_spill] sm:$0xff] %v10356_v11  ;;  %v7785_v35 = vpop.f32.mrf.mxu0  ;;  %3871 = vst.msk [vmem:[%s8408_s28 + $0xa8] sm:$0xff] %vm3137_vm12, %v10356_v11  ;;  %v10363_v63 = vadd.f32 %v10212_v24, %v3735_v49  ;;  %v3027_v39 = vadd.f32 %v2796_v3, %v10063_v0  ;;  %v3738_v59 = vadd.f32 %v7779_v45, %v3028_v29 }
 0x2e2   : > { %v7678_v62 = vpop.f32.mrf.mxu1 }
 0x2e3   : > { %13535 = vst [vmem:[#allocation225_spill] sm:$0xff] %v10363_v63  ;;  %v3526_v19 = vpop.f32.mrf.mxu0  ;;  %3870 = vst.msk [vmem:[%s8408_s28 + $0xa0] sm:$0xff] %vm3137_vm12, %v10363_v63  ;;  %v10370_v2 = vadd.f32 %v10212_v24, %v3738_v59  ;;  %v3030_v28 = vadd.f32 %v7678_v62, %v10075_v1  ;;  %v3737_v27 = vadd.f32 %v3506_v12, %v3027_v39 }
 0x2e4   : > { %v2806_v5 = vpop.f32.mrf.mxu1 }
 0x2e5   : > { %13536 = vst [vmem:[#allocation226_spill] sm:$0xff] %v10370_v2  ;;  %v7788_v26 = vpop.f32.mrf.mxu0  ;;  %3873 = vst.msk [vmem:[%s8408_s28 + $0xb8] sm:$0xff] %vm3137_vm12, %v10370_v2  ;;  %v10377_v3 = vadd.f32 %v10212_v24, %v3737_v27  ;;  %v3029_v45 = vadd.f32 %v2806_v5, %v10083_v56  ;;  %v3740_v29 = vadd.f32 %v7782_v57, %v3030_v28 }
 0x2e6   : > { %v7681_v0 = vpop.f32.mrf.mxu1 }
 0x2e7   : > { %13537 = vst [vmem:[#allocation227_spill] sm:$0xff] %v10377_v3  ;;  %v3536_v49 = vpop.f32.mrf.mxu0  ;;  %3872 = vst.msk [vmem:[%s8408_s28 + $0xb0] sm:$0xff] %vm3137_vm12, %v10377_v3  ;;  %v10384_v62 = vadd.f32 %v10212_v24, %v3740_v29  ;;  %v3032_v12 = vadd.f32 %v7681_v0, %v10095_v61  ;;  %v3739_v39 = vadd.f32 %v3516_v15, %v3029_v45 }
 0x2e8   : > { %v2816_v1 = vpop.f32.mrf.mxu1 }
 0x2e9   : > { %13538 = vst [vmem:[#allocation228_spill] sm:$0xff] %v10384_v62  ;;  %v7791_v59 = vpop.f32.mrf.mxu0  ;;  %3875 = vst.msk [vmem:[%s8408_s28 + $0xc8] sm:$0xff] %vm3137_vm12, %v10384_v62  ;;  %v10391_v5 = vadd.f32 %v10212_v24, %v3739_v39  ;;  %v3031_v57 = vadd.f32 %v2816_v1, %v10103_v54  ;;  %v3742_v28 = vadd.f32 %v7785_v35, %v3032_v12 }
 0x2ea   : > { %v7684_v56 = vpop.f32.mrf.mxu1 }
 0x2eb   : > { %13539 = vst [vmem:[#allocation229_spill] sm:$0xff] %v10391_v5  ;;  %v3546_v27 = vpop.f32.mrf.mxu0  ;;  %3874 = vst.msk [vmem:[%s8408_s28 + $0xc0] sm:$0xff] %vm3137_vm12, %v10391_v5  ;;  %v10398_v0 = vadd.f32 %v10212_v24, %v3742_v28  ;;  %v3034_v15 = vadd.f32 %v7684_v56, %v10114_v52  ;;  %v3741_v45 = vadd.f32 %v3526_v19, %v3031_v57 }
 0x2ec   : > { %v2826_v61 = vpop.f32.mrf.mxu1 }
 0x2ed   : > { %13540 = vst [vmem:[#allocation230_spill] sm:$0xff] %v10398_v0  ;;  %v7794_v29 = vpop.f32.mrf.mxu0  ;;  %3877 = vst.msk [vmem:[%s8408_s28 + $0xd8] sm:$0xff] %vm3137_vm12, %v10398_v0  ;;  %v10405_v1 = vadd.f32 %v10212_v24, %v3741_v45  ;;  %v3033_v35 = vadd.f32 %v2826_v61, %v10121_v34  ;;  %v3744_v12 = vadd.f32 %v7788_v26, %v3034_v15 }
 0x2ee   : > { %v7687_v54 = vpop.f32.mrf.mxu1 }
 0x2ef   : > { %13541 = vst [vmem:[#allocation231_spill] sm:$0xff] %v10405_v1  ;;  %v3556_v39 = vpop.f32.mrf.mxu0  ;;  %3876 = vst.msk [vmem:[%s8408_s28 + $0xd0] sm:$0xff] %vm3137_vm12, %v10405_v1  ;;  %v10412_v56 = vadd.f32 %v10212_v24, %v3744_v12  ;;  %v3036_v19 = vadd.f32 %v7687_v54, %v10131_v21  ;;  %v3743_v57 = vadd.f32 %v3536_v49, %v3033_v35 }
 0x2f0   : > { %v2836_v52 = vpop.f32.mrf.mxu1 }
 0x2f1   : > { %13542 = vst [vmem:[#allocation232_spill] sm:$0xff] %v10412_v56  ;;  %v7797_v28 = vpop.f32.mrf.mxu0  ;;  %3879 = vst.msk [vmem:[%s8408_s28 + $0xe8] sm:$0xff] %vm3137_vm12, %v10412_v56  ;;  %v10419_v61 = vadd.f32 %v10212_v24, %v3743_v57  ;;  %v3035_v26 = vadd.f32 %v2836_v52, %v10137_v50  ;;  %v3746_v15 = vadd.f32 %v7791_v59, %v3036_v19 }
 0x2f2   : > { %v7690_v34 = vpop.f32.mrf.mxu1 }
 0x2f3   : > { %13543 = vst [vmem:[#allocation233_spill] sm:$0xff] %v10419_v61  ;;  %v3566_v45 = vpop.f32.mrf.mxu0  ;;  %3878 = vst.msk [vmem:[%s8408_s28 + $0xe0] sm:$0xff] %vm3137_vm12, %v10419_v61  ;;  %v10426_v54 = vadd.f32 %v10212_v24, %v3746_v15  ;;  %v3038_v49 = vadd.f32 %v7690_v34, %v10142_v47  ;;  %v3745_v35 = vadd.f32 %v3546_v27, %v3035_v26 }
 0x2f4   : > { %v2846_v21 = vpop.f32.mrf.mxu1 }
 0x2f5   : > { %13544 = vst [vmem:[#allocation234_spill] sm:$0xff] %v10426_v54  ;;  %v7800_v12 = vpop.f32.mrf.mxu0  ;;  %3881 = vst.msk [vmem:[%s8408_s28 + $0xf8] sm:$0xff] %vm3137_vm12, %v10426_v54  ;;  %v10433_v52 = vadd.f32 %v10212_v24, %v3745_v35  ;;  %v3037_v59 = vadd.f32 %v2846_v21, %v10146_v36  ;;  %v3748_v19 = vadd.f32 %v7794_v29, %v3038_v49 }
 0x2f6   : > { %v7693_v50 = vpop.f32.mrf.mxu1 }
 0x2f7   : > { %13545 = vst [vmem:[#allocation235_spill] sm:$0xff] %v10433_v52  ;;  %v3576_v57 = vpop.f32.mrf.mxu0  ;;  %3880 = vst.msk [vmem:[%s8408_s28 + $0xf0] sm:$0xff] %vm3137_vm12, %v10433_v52  ;;  %v10440_v34 = vadd.f32 %v10212_v24, %v3748_v19  ;;  %v3040_v27 = vadd.f32 %v7693_v50, %v10148_v16  ;;  %v3747_v26 = vadd.f32 %v3556_v39, %v3037_v59 }
 0x2f8   : > { %v2856_v47 = vpop.f32.mrf.mxu1 }
 0x2f9   : > { %13546 = vst [vmem:[#allocation236_spill] sm:$0xff] %v10440_v34  ;;  %v7803_v15 = vpop.f32.mrf.mxu0  ;;  %3883 = vst.msk [vmem:[%s8408_s28 + $0x108] sm:$0xff] %vm3137_vm12, %v10440_v34  ;;  %v10447_v21 = vadd.f32 %v10212_v24, %v3747_v26  ;;  %v3039_v29 = vadd.f32 %v2856_v47, %v10150_v51  ;;  %v3750_v49 = vadd.f32 %v7797_v28, %v3040_v27 }
 0x2fa   : > { %v7696_v36 = vpop.f32.mrf.mxu1 }
 0x2fb   : > { %13547 = vst [vmem:[#allocation237_spill] sm:$0xff] %v10447_v21  ;;  %v3586_v35 = vpop.f32.mrf.mxu0  ;;  %3882 = vst.msk [vmem:[%s8408_s28 + $0x100] sm:$0xff] %vm3137_vm12, %v10447_v21  ;;  %v10454_v50 = vadd.f32 %v10212_v24, %v3750_v49  ;;  %v3042_v39 = vadd.f32 %v7696_v36, %v10152_v55  ;;  %v3749_v59 = vadd.f32 %v3566_v45, %v3039_v29 }
 0x2fc   : > { %v2866_v16 = vpop.f32.mrf.mxu1 }
 0x2fd   : > { %13548 = vst [vmem:[#allocation238_spill] sm:$0xff] %v10454_v50  ;;  %v7806_v19 = vpop.f32.mrf.mxu0  ;;  %3885 = vst.msk [vmem:[%s8408_s28 + $0x118] sm:$0xff] %vm3137_vm12, %v10454_v50  ;;  %v10461_v47 = vadd.f32 %v10212_v24, %v3749_v59  ;;  %v3041_v28 = vadd.f32 %v2866_v16, %v10154_v46  ;;  %v3752_v27 = vadd.f32 %v7800_v12, %v3042_v39 }
 0x2fe   : > { %v7699_v51 = vpop.f32.mrf.mxu1 }
 0x2ff   : > { %13549 = vst [vmem:[#allocation239_spill] sm:$0xff] %v10461_v47  ;;  %v3596_v26 = vpop.f32.mrf.mxu0  ;;  %3884 = vst.msk [vmem:[%s8408_s28 + $0x110] sm:$0xff] %vm3137_vm12, %v10461_v47  ;;  %v10468_v36 = vadd.f32 %v10212_v24, %v3752_v27  ;;  %v3044_v45 = vadd.f32 %v7699_v51, %v10156_v38  ;;  %v3751_v29 = vadd.f32 %v3576_v57, %v3041_v28 }
 0x300   : > { %v2876_v55 = vpop.f32.mrf.mxu1 }
 0x301   : > { %13550 = vst [vmem:[#allocation240_spill] sm:$0xff] %v10468_v36  ;;  %v7809_v49 = vpop.f32.mrf.mxu0  ;;  %3887 = vst.msk [vmem:[%s8408_s28 + $0x128] sm:$0xff] %vm3137_vm12, %v10468_v36  ;;  %v10475_v16 = vadd.f32 %v10212_v24, %v3751_v29  ;;  %v3043_v12 = vadd.f32 %v2876_v55, %v10158_v44  ;;  %v3754_v39 = vadd.f32 %v7803_v15, %v3044_v45 }
 0x302   : > { %v7702_v46 = vpop.f32.mrf.mxu1 }
 0x303   : > { %13551 = vst [vmem:[#allocation241_spill] sm:$0xff] %v10475_v16  ;;  %v3606_v59 = vpop.f32.mrf.mxu0  ;;  %3886 = vst.msk [vmem:[%s8408_s28 + $0x120] sm:$0xff] %vm3137_vm12, %v10475_v16  ;;  %v10482_v51 = vadd.f32 %v10212_v24, %v3754_v39  ;;  %v3046_v57 = vadd.f32 %v7702_v46, %v10160_v58  ;;  %v3753_v28 = vadd.f32 %v3586_v35, %v3043_v12 }
 0x304   : > { %v2886_v38 = vpop.f32.mrf.mxu1 }
 0x305   : > { %13552 = vst [vmem:[#allocation242_spill] sm:$0xff] %v10482_v51  ;;  %v7812_v27 = vpop.f32.mrf.mxu0  ;;  %3889 = vst.msk [vmem:[%s8408_s28 + $0x138] sm:$0xff] %vm3137_vm12, %v10482_v51  ;;  %v10489_v55 = vadd.f32 %v10212_v24, %v3753_v28  ;;  %v3045_v15 = vadd.f32 %v2886_v38, %v10162_v40  ;;  %v3756_v45 = vadd.f32 %v7806_v19, %v3046_v57 }
 0x306   : > { %v7705_v44 = vpop.f32.mrf.mxu1 }
 0x307   : > { %13553 = vst [vmem:[#allocation243_spill] sm:$0xff] %v10489_v55  ;;  %v3616_v29 = vpop.f32.mrf.mxu0  ;;  %3888 = vst.msk [vmem:[%s8408_s28 + $0x130] sm:$0xff] %vm3137_vm12, %v10489_v55  ;;  %v10496_v46 = vadd.f32 %v10212_v24, %v3756_v45  ;;  %v3048_v35 = vadd.f32 %v7705_v44, %v10164_v37  ;;  %v3755_v12 = vadd.f32 %v3596_v26, %v3045_v15 }
 0x308   : > { %v2896_v58 = vpop.f32.mrf.mxu1 }
 0x309   : > { %13554 = vst [vmem:[#allocation244_spill] sm:$0xff] %v10496_v46  ;;  %v7815_v39 = vpop.f32.mrf.mxu0  ;;  %3891 = vst.msk [vmem:[%s8408_s28 + $0x148] sm:$0xff] %vm3137_vm12, %v10496_v46  ;;  %v10503_v38 = vadd.f32 %v10212_v24, %v3755_v12  ;;  %v3047_v19 = vadd.f32 %v2896_v58, %v10166_v48  ;;  %v3758_v57 = vadd.f32 %v7809_v49, %v3048_v35 }
 0x30a   : > { %v7708_v40 = vpop.f32.mrf.mxu1 }
 0x30b   : > { %13555 = vst [vmem:[#allocation245_spill] sm:$0xff] %v10503_v38  ;;  %v3626_v28 = vpop.f32.mrf.mxu0  ;;  %3890 = vst.msk [vmem:[%s8408_s28 + $0x140] sm:$0xff] %vm3137_vm12, %v10503_v38  ;;  %v10510_v44 = vadd.f32 %v10212_v24, %v3758_v57  ;;  %v3050_v26 = vadd.f32 %v7708_v40, %v10168_v8  ;;  %v3757_v15 = vadd.f32 %v3606_v59, %v3047_v19 }
 0x30c   : > { %v2906_v37 = vpop.f32.mrf.mxu1 }
 0x30d   : > { %13556 = vst [vmem:[#allocation246_spill] sm:$0xff] %v10510_v44  ;;  %v7818_v45 = vpop.f32.mrf.mxu0  ;;  %3893 = vst.msk [vmem:[%s8408_s28 + $0x158] sm:$0xff] %vm3137_vm12, %v10510_v44  ;;  %v10517_v58 = vadd.f32 %v10212_v24, %v3757_v15  ;;  %v3049_v49 = vadd.f32 %v2906_v37, %v10170_v13  ;;  %v3760_v35 = vadd.f32 %v7812_v27, %v3050_v26  ;;  %v13560_v27 = vld [vmem:[#allocation187_spill] sm:$0xff] }
 0x30e   : > { %v7711_v48 = vpop.f32.mrf.mxu1 }
 0x30f   : > { %13557 = vst [vmem:[#allocation247_spill] sm:$0xff] %v10517_v58  ;;  %v3636_v12 = vpop.f32.mrf.mxu0  ;;  %3892 = vst.msk [vmem:[%s8408_s28 + $0x150] sm:$0xff] %vm3137_vm12, %v10517_v58  ;;  %v10524_v40 = vadd.f32 %v10212_v24, %v3760_v35  ;;  %v3052_v59 = vadd.f32 %v7711_v48, %v10172_v22  ;;  %v3759_v19 = vadd.f32 %v3616_v29, %v3049_v49  ;;  %v13562_v29 = vld [vmem:[#allocation188_spill] sm:$0xff] }
 0x310   : > { %v2916_v8 = vpop.f32.mrf.mxu1 }
 0x311   : > { %13558 = vst [vmem:[#allocation248_spill] sm:$0xff] %v10524_v40  ;;  %v7821_v57 = vpop.f32.mrf.mxu0  ;;  %3895 = vst.msk [vmem:[%s8408_s28 + $0x168] sm:$0xff] %vm3137_vm12, %v10524_v40  ;;  %v10531_v37 = vadd.f32 %v10212_v24, %v3759_v19  ;;  %v3051_v26 = vadd.f32 %v2916_v8, %v13560_v27  ;;  %v3762_v15 = vadd.f32 %v7815_v39, %v3052_v59  ;;  %v13564_v39 = vld [vmem:[#allocation189_spill] sm:$0xff] }
 0x312   : > { %v7714_v44 = vpop.f32.mrf.mxu1 }
 0x313   : > { %13559 = vst [vmem:[#allocation249_spill] sm:$0xff] %v10531_v37  ;;  %v3646_v13 = vpop.f32.mrf.mxu0  ;;  %3894 = vst.msk [vmem:[%s8408_s28 + $0x160] sm:$0xff] %vm3137_vm12, %v10531_v37  ;;  %v10538_v48 = vadd.f32 %v10212_v24, %v3762_v15  ;;  %v3054_v49 = vadd.f32 %v7714_v44, %v13562_v29  ;;  %v3761_v35 = vadd.f32 %v3626_v28, %v3051_v26  ;;  %v13566_v28 = vld [vmem:[#allocation190_spill] sm:$0xff] }
 0x314   : > { %v2926_v40 = vpop.f32.mrf.mxu1 }
 0x315   : > { %13561 = vst [vmem:[#allocation250_spill] sm:$0xff] %v10538_v48  ;;  %v7824_v22 = vpop.f32.mrf.mxu0  ;;  %3897 = vst.msk [vmem:[%s8408_s28 + $0x178] sm:$0xff] %vm3137_vm12, %v10538_v48  ;;  %v10545_v8 = vadd.f32 %v10212_v24, %v3761_v35  ;;  %v3053_v59 = vadd.f32 %v2926_v40, %v13564_v39  ;;  %v3764_v19 = vadd.f32 %v7818_v45, %v3054_v49  ;;  %v13568_v45 = vld [vmem:[#allocation191_spill] sm:$0xff] }
 0x316   : > { %v7717_v37 = vpop.f32.mrf.mxu1 }
 0x317   : > { %13563 = vst [vmem:[#allocation251_spill] sm:$0xff] %v10545_v8  ;;  %v3656_v27 = vpop.f32.mrf.mxu0  ;;  %3896 = vst.msk [vmem:[%s8408_s28 + $0x170] sm:$0xff] %vm3137_vm12, %v10545_v8  ;;  %v10552_v44 = vadd.f32 %v10212_v24, %v3764_v19  ;;  %v3056_v26 = vadd.f32 %v7717_v37, %v13566_v28  ;;  %v3763_v15 = vadd.f32 %v3636_v12, %v3053_v59  ;;  %v13570_v12 = vld [vmem:[#allocation192_spill] sm:$0xff] }
 0x318   : > { %v2936_v48 = vpop.f32.mrf.mxu1 }
 0x319   : > { %13565 = vst [vmem:[#allocation252_spill] sm:$0xff] %v10552_v44  ;;  %v7827_v29 = vpop.f32.mrf.mxu0  ;;  %3899 = vst.msk [vmem:[%s8408_s28 + $0x188] sm:$0xff] %vm3137_vm12, %v10552_v44  ;;  %v10559_v40 = vadd.f32 %v10212_v24, %v3763_v15  ;;  %v3055_v49 = vadd.f32 %v2936_v48, %v13568_v45  ;;  %v3766_v35 = vadd.f32 %v7821_v57, %v3056_v26  ;;  %v13572_v57 = vld [vmem:[#allocation193_spill] sm:$0xff] }
 0x31a   : > { %v7720_v8 = vpop.f32.mrf.mxu1 }
 0x31b   : > { %13567 = vst [vmem:[#allocation253_spill] sm:$0xff] %v10559_v40  ;;  %v3666_v39 = vpop.f32.mrf.mxu0  ;;  %3898 = vst.msk [vmem:[%s8408_s28 + $0x180] sm:$0xff] %vm3137_vm12, %v10559_v40  ;;  %v10566_v37 = vadd.f32 %v10212_v24, %v3766_v35  ;;  %v3058_v59 = vadd.f32 %v7720_v8, %v13570_v12  ;;  %v3765_v19 = vadd.f32 %v3646_v13, %v3055_v49  ;;  %v13574_v13 = vld [vmem:[#allocation195_spill] sm:$0xff] }
 0x31c   : > { %v2946_v44 = vpop.f32.mrf.mxu1 }
 0x31d   : > { %13569 = vst [vmem:[#allocation254_spill] sm:$0xff] %v10566_v37  ;;  %v7830_v28 = vpop.f32.mrf.mxu0  ;;  %3901 = vst.msk [vmem:[%s8408_s28 + $0x198] sm:$0xff] %vm3137_vm12, %v10566_v37  ;;  %v10573_v48 = vadd.f32 %v10212_v24, %v3765_v19  ;;  %v3057_v26 = vadd.f32 %v2946_v44, %v13572_v57  ;;  %v3768_v15 = vadd.f32 %v7824_v22, %v3058_v59  ;;  %v13576_v22 = vld [vmem:[#allocation197_spill] sm:$0xff] }
 0x31e   : > { %v7723_v40 = vpop.f32.mrf.mxu1 }
 0x31f   : > { %13571 = vst [vmem:[#allocation255_spill] sm:$0xff] %v10573_v48  ;;  %v3676_v45 = vpop.f32.mrf.mxu0  ;;  %3900 = vst.msk [vmem:[%s8408_s28 + $0x190] sm:$0xff] %vm3137_vm12, %v10573_v48  ;;  %v10580_v8 = vadd.f32 %v10212_v24, %v3768_v15  ;;  %v3060_v49 = vadd.f32 %v7723_v40, %v13574_v13  ;;  %v3767_v35 = vadd.f32 %v3656_v27, %v3057_v26  ;;  %v13578_v40 = vld [vmem:[#allocation199_spill] sm:$0xff] }
 0x320   : > { %v2956_v37 = vpop.f32.mrf.mxu1 }
 0x321   : > { %13573 = vst [vmem:[#allocation256_spill] sm:$0xff] %v10580_v8  ;;  %v7833_v12 = vpop.f32.mrf.mxu0  ;;  %3903 = vst.msk [vmem:[%s8408_s28 + $0x1a8] sm:$0xff] %vm3137_vm12, %v10580_v8  ;;  %v10587_v44 = vadd.f32 %v10212_v24, %v3767_v35  ;;  %v3059_v59 = vadd.f32 %v2956_v37, %v13576_v22  ;;  %v3770_v19 = vadd.f32 %v7827_v29, %v3060_v49  ;;  %v13580_v29 = vld [vmem:[#allocation200_spill] sm:$0xff] }
 0x322   : > { %v7726_v57 = vpop.f32.mrf.mxu1 }
 0x323   : > { %13575 = vst [vmem:[#allocation257_spill] sm:$0xff] %v10587_v44  ;;  %v3686_v48 = vpop.f32.mrf.mxu0  ;;  %3902 = vst.msk [vmem:[%s8408_s28 + $0x1a0] sm:$0xff] %vm3137_vm12, %v10587_v44  ;;  %v10594_v27 = vadd.f32 %v10212_v24, %v3770_v19  ;;  %v3062_v26 = vadd.f32 %v7726_v57, %v13578_v40  ;;  %v3769_v15 = vadd.f32 %v3666_v39, %v3059_v59  ;;  %v13582_v39 = vld [vmem:[#allocation194_spill] sm:$0xff] }
 0x324   : > { %v2966_v13 = vpop.f32.mrf.mxu1 }
 0x325   : > { %13577 = vst [vmem:[#allocation258_spill] sm:$0xff] %v10594_v27  ;;  %3905 = vst.msk [vmem:[%s8408_s28 + $0x1b8] sm:$0xff] %vm3137_vm12, %v10594_v27  ;;  %v10601_v35 = vadd.f32 %v10212_v24, %v3769_v15  ;;  %v3061_v37 = vadd.f32 %v2966_v13, %v13580_v29  ;;  %v3772_v49 = vadd.f32 %v7830_v28, %v3062_v26  ;;  %v7836_v8 = vpop.f32.mrf.mxu0  ;;  %v13584_v28 = vld [vmem:[#allocation196_spill] sm:$0xff] }
 0x326   : > { %v7729_v22 = vpop.f32.mrf.mxu1 }
 0x327   : > { %13579 = vst [vmem:[#allocation259_spill] sm:$0xff] %v10601_v35  ;;  %3904 = vst.msk [vmem:[%s8408_s28 + $0x1b0] sm:$0xff] %vm3137_vm12, %v10601_v35  ;;  %v10608_v19 = vadd.f32 %v10212_v24, %v3772_v49  ;;  %v3064_v59 = vadd.f32 %v7729_v22, %v13582_v39  ;;  %v3771_v57 = vadd.f32 %v3676_v45, %v3061_v37  ;;  %v3696_v27 = vpop.f32.mrf.mxu0  ;;  %v13586_v45 = vld [vmem:[#allocation198_spill] sm:$0xff] }
 0x328   : > { %v2976_v40 = vpop.f32.mrf.mxu1 }
 0x329   : > { %13581 = vst [vmem:[#allocation260_spill] sm:$0xff] %v10608_v19  ;;  %3907 = vst.msk [vmem:[%s8408_s28 + $0x1c8] sm:$0xff] %vm3137_vm12, %v10608_v19  ;;  %v10615_v15 = vadd.f32 %v10212_v24, %v3771_v57  ;;  %v3063_v26 = vadd.f32 %v2976_v40, %v13584_v28  ;;  %v3774_v13 = vadd.f32 %v7833_v12, %v3064_v59  ;;  %v13588_v12 = vld [vmem:[#allocation201_spill] sm:$0xff]  ;;  %v7839_v19 = vpop.f32.mrf.mxu0 }
 0x32a   : > { %v7732_v29 = vpop.f32.mrf.mxu1 }
 0x32b   : > { %13583 = vst [vmem:[#allocation261_spill] sm:$0xff] %v10615_v15  ;;  %3906 = vst.msk [vmem:[%s8408_s28 + $0x1c0] sm:$0xff] %vm3137_vm12, %v10615_v15  ;;  %v10622_v49 = vadd.f32 %v10212_v24, %v3774_v13  ;;  %v3066_v37 = vadd.f32 %v7732_v29, %v13586_v45  ;;  %v3773_v22 = vadd.f32 %v3686_v48, %v3063_v26  ;;  %v13590_v26 = vld [vmem:[#allocation202_spill] sm:$0xff] }
 0x32c   : > { %v2986_v39 = vpop.f32.mrf.mxu1 }
 0x32d   : > { %13585 = vst [vmem:[#allocation262_spill] sm:$0xff] %v10622_v49  ;;  %3909 = vst.msk [vmem:[%s8408_s28 + $0x1d8] sm:$0xff] %vm3137_vm12, %v10622_v49  ;;  %v10629_v57 = vadd.f32 %v10212_v24, %v3773_v22  ;;  %v3065_v59 = vadd.f32 %v2986_v39, %v13588_v12  ;;  %v3776_v40 = vadd.f32 %v7836_v8, %v3066_v37  ;;  %v13592_v8 = vld [vmem:[#allocation203_spill] sm:$0xff]  ;;  %v3706_v12 = vpop.f32.mrf.mxu0 }
 0x32e   : > { %v7735_v28 = vpop.f32.mrf.mxu1 }
 0x32f   : > { %13587 = vst [vmem:[#allocation263_spill] sm:$0xff] %v10629_v57  ;;  %3908 = vst.msk [vmem:[%s8408_s28 + $0x1d0] sm:$0xff] %vm3137_vm12, %v10629_v57  ;;  %v10636_v48 = vadd.f32 %v10212_v24, %v3776_v40  ;;  %v3068_v13 = vadd.f32 %v7735_v28, %v13590_v26  ;;  %v3775_v29 = vadd.f32 %v3696_v27, %v3065_v59 }
 0x330   : > { %v2996_v45 = vpop.f32.mrf.mxu1 }
 0x331   : > { %13589 = vst [vmem:[#allocation264_spill] sm:$0xff] %v10636_v48  ;;  %3911 = vst.msk [vmem:[%s8408_s28 + $0x1e8] sm:$0xff] %vm3137_vm12, %v10636_v48  ;;  %v10643_v22 = vadd.f32 %v10212_v24, %v3775_v29  ;;  %v3067_v37 = vadd.f32 %v2996_v45, %v13592_v8  ;;  %v3778_v39 = vadd.f32 %v7839_v19, %v3068_v13 }
 0x333   : > { %13591 = vst [vmem:[#allocation265_spill] sm:$0xff] %v10643_v22  ;;  %3910 = vst.msk [vmem:[%s8408_s28 + $0x1e0] sm:$0xff] %vm3137_vm12, %v10643_v22  ;;  %v10650_v40 = vadd.f32 %v10212_v24, %v3778_v39  ;;  %v3777_v49 = vadd.f32 %v3706_v12, %v3067_v37  ;;  %3916 = sbr.rel (%p6766_p4) target bundleno = 982 (0x3d6), region = 76 }
 0x335   : > { %13593 = vst [vmem:[#allocation266_spill] sm:$0xff] %v10650_v40  ;;  %3913 = vst.msk [vmem:[%s8408_s28 + $0x1f8] sm:$0xff] %vm3137_vm12, %v10650_v40  ;;  %v10656_v27 = vadd.f32 %v10212_v24, %v3777_v49 }
 0x337   : > { %13594 = vst [vmem:[#allocation267_spill] sm:$0xff] %v10656_v27  ;;  %3912 = vst.msk [vmem:[%s8408_s28 + $0x1f0] sm:$0xff] %vm3137_vm12, %v10656_v27 }
 0x338   : > { %v13595_v19 = vld [vmem:[#allocation12_spill] sm:$0xff]  ;;  %v13596_v59 = vld [vmem:[#allocation13_spill] sm:$0xff]  ;;  %v13597_v26 = vld [vmem:[#allocation15_spill] sm:$0xff]  ;;  %vm4186_vm6 = vcmask 253952  }
 0x339   : > { %v3917_v28 = vadd.f32 %v13596_v59, %v13595_v19  ;;  %v13598_v29 = vld [vmem:[#allocation17_spill] sm:$0xff]  ;;  %v13599_v8 = vld [vmem:[#allocation18_spill] sm:$0xff]  ;;  %v13600_v39 = vld [vmem:[#allocation19_spill] sm:$0xff]  ;;  %v3987_v57 = vmul.f32 %v13595_v19, %v10223_v43  ;;  %v3988_v15 = vmul.f32 %v13596_v59, %v10216_v53 }
 0x33a   : > { %v13601_v40 = vld [vmem:[#allocation20_spill] sm:$0xff]  ;;  %v13602_v49 = vld [vmem:[#allocation21_spill] sm:$0xff]  ;;  %v13603_v22 = vld [vmem:[#allocation22_spill] sm:$0xff] }
 0x33b   : > { %v3918_v13 = vadd.f32 %v13597_v26, %v3917_v28  ;;  %v3989_v28 = vmul.f32 %v13597_v26, %v10237_v60  ;;  %v4052_v19 = vsel %vm3137_vm12, %v3988_v15, 0.0  ;;  %v13606_v53 = vld [vmem:[#allocation33_spill] sm:$0xff]  ;;  %v13607_v60 = vld [vmem:[#allocation34_spill] sm:$0xff]  ;;  %v13608_v15 = vld [vmem:[#allocation35_spill] sm:$0xff] }
 0x33d   : > { %v3919_v45 = vadd.f32 %v13598_v29, %v3918_v13  ;;  %v13604_v13 = vld [vmem:[#allocation26_spill] sm:$0xff]  ;;  %v4054_v59 = vsel %vm3137_vm12, %v3989_v28, 0.0  ;;  %v3994_v28 = vmul.f32 %v13602_v49, %v10258_v32 }
 0x33f   : > { %v3920_v37 = vadd.f32 %v13599_v8, %v3919_v45  ;;  %v3990_v45 = vmul.f32 %v13598_v29, %v10230_v7 }
 0x341   : > { %v3921_v12 = vadd.f32 %v13600_v39, %v3920_v37  ;;  %v13605_v37 = vld [vmem:[#allocation32_spill] sm:$0xff]  ;;  %v4056_v26 = vsel %vm3137_vm12, %v3990_v45, 0.0 }
 0x343   : > { %v3922_v24 = vadd.f32 %v13601_v40, %v3921_v12 }
 0x345   : > { %v3923_v48 = vadd.f32 %v13602_v49, %v3922_v24  ;;  %v3991_v24 = vmul.f32 %v13599_v8, %v10251_v20  ;;  %v3993_v8 = vmul.f32 %v13601_v40, %v10265_v42  ;;  %v13610_v40 = vld [vmem:[#allocation37_spill] sm:$0xff] }
 0x346   : > { %v13611_v49 = vld [vmem:[#allocation29_spill] sm:$0xff] }
 0x347   : > { %v3924_v27 = vadd.f32 %v13603_v22, %v3923_v48  ;;  %v4051_v48 = vsel %vm3137_vm12, %v3987_v57, 0.0  ;;  %v4058_v57 = vsel %vm3137_vm12, %v3991_v24, 0.0  ;;  %v3996_v24 = vmul.f32 %v13604_v13, %v10272_v41 }
 0x348   : > { %v4053_v43 = vadd.f32 %v4052_v19, %v4051_v48 }
 0x349   : > { %v3925_v35 = vadd.f32 %v13604_v13, %v3924_v27  ;;  %v3992_v27 = vmul.f32 %v13600_v39, %v10244_v17  ;;  %v13609_v39 = vld [vmem:[#allocation36_spill] sm:$0xff]  ;;  %v13613_v13 = vld [vmem:[#allocation31_spill] sm:$0xff] }
 0x34a   : > { %v4055_v29 = vadd.f32 %v4054_v59, %v4053_v43  ;;  %v3995_v43 = vmul.f32 %v13603_v22, %v10279_v33  ;;  %v13612_v22 = vld [vmem:[#allocation30_spill] sm:$0xff] }
 0x34b   : > { %v3926_v12 = vadd.f32 %v13605_v37, %v3925_v35 }
 0x34c   : > { %v4057_v7 = vadd.f32 %v4056_v26, %v4055_v29  ;;  %v4064_v26 = vsel %vm3137_vm12, %v3994_v28, 0.0  ;;  %v3999_v28 = vmul.f32 %v13607_v60, %v10307_v4 }
 0x34d   : > { %v3927_v44 = vadd.f32 %v13606_v53, %v3926_v12  ;;  %v4060_v12 = vsel %vm3137_vm12, %v3992_v27, 0.0  ;;  %v4066_v27 = vsel %vm3137_vm12, %v3995_v43, 0.0  ;;  %v4000_v43 = vmul.f32 %v13608_v15, %v10300_v18 }
 0x34e   : > { %v4059_v19 = vadd.f32 %v4058_v57, %v4057_v7  ;;  %v3997_v7 = vmul.f32 %v13605_v37, %v10293_v31  ;;  %v13614_v37 = vld [vmem:[#allocation38_spill] sm:$0xff] }
 0x34f   : > { %v3928_v35 = vadd.f32 %v13607_v60, %v3927_v44  ;;  %v4062_v44 = vsel %vm3137_vm12, %v3993_v8, 0.0  ;;  %v3998_v8 = vmul.f32 %v13606_v53, %v10286_v30  ;;  %v13615_v53 = vld [vmem:[#allocation39_spill] sm:$0xff]  ;;  %v13616_v60 = vld [vmem:[#allocation40_spill] sm:$0xff] }
 0x350   : > { %v4061_v45 = vadd.f32 %v4060_v12, %v4059_v19 }
 0x351   : > { %v3929_v48 = vadd.f32 %v13608_v15, %v3928_v35  ;;  %v13617_v15 = vld [vmem:[#allocation41_spill] sm:$0xff] }
 0x352   : > { %v4063_v29 = vadd.f32 %v4062_v44, %v4061_v45  ;;  %v4070_v44 = vsel %vm3137_vm12, %v3997_v7, 0.0  ;;  %v4002_v7 = vmul.f32 %v13610_v40, %v10314_v25 }
 0x353   : > { %v3930_v20 = vadd.f32 %v13609_v39, %v3929_v48 }
 0x354   : > { %v4065_v57 = vadd.f32 %v4064_v26, %v4063_v29  ;;  %v4072_v26 = vsel %vm3137_vm12, %v3998_v8, 0.0  ;;  %v4003_v8 = vmul.f32 %v13611_v49, %v10335_v6 }
 0x355   : > { %v3931_v59 = vadd.f32 %v13610_v40, %v3930_v20  ;;  %v4068_v20 = vsel %vm3137_vm12, %v3996_v24, 0.0  ;;  %v4001_v24 = vmul.f32 %v13609_v39, %v10321_v9  ;;  %v13618_v39 = vld [vmem:[#allocation42_spill] sm:$0xff]  ;;  %v13619_v40 = vld [vmem:[#allocation43_spill] sm:$0xff] }
 0x356   : > { %v4067_v12 = vadd.f32 %v4066_v27, %v4065_v57  ;;  %v4074_v27 = vsel %vm3137_vm12, %v3999_v28, 0.0  ;;  %v4004_v28 = vmul.f32 %v13612_v22, %v10328_v23 }
 0x357   : > { %v3932_v35 = vadd.f32 %v13611_v49, %v3931_v59  ;;  %v13620_v49 = vld [vmem:[#allocation44_spill] sm:$0xff] }
 0x358   : > { %v4069_v45 = vadd.f32 %v4068_v20, %v4067_v12  ;;  %v4076_v20 = vsel %vm3137_vm12, %v4000_v43, 0.0  ;;  %v4005_v43 = vmul.f32 %v13613_v13, %v10349_v10 }
 0x359   : > { %v3933_v48 = vadd.f32 %v13612_v22, %v3932_v35  ;;  %v13621_v22 = vld [vmem:[#allocation45_spill] sm:$0xff] }
 0x35a   : > { %v4071_v29 = vadd.f32 %v4070_v44, %v4069_v45  ;;  %v4078_v44 = vsel %vm3137_vm12, %v4001_v24, 0.0  ;;  %v4006_v24 = vmul.f32 %v13614_v37, %v10342_v14 }
 0x35b   : > { %v3934_v19 = vadd.f32 %v13613_v13, %v3933_v48  ;;  %v13622_v13 = vld [vmem:[#allocation46_spill] sm:$0xff] }
 0x35c   : > { %v4073_v57 = vadd.f32 %v4072_v26, %v4071_v29  ;;  %v4080_v26 = vsel %vm3137_vm12, %v4002_v7, 0.0  ;;  %v4007_v7 = vmul.f32 %v13615_v53, %v10363_v63 }
 0x35d   : > { %v3935_v59 = vadd.f32 %v13614_v37, %v3934_v19  ;;  %v13623_v37 = vld [vmem:[#allocation47_spill] sm:$0xff] }
 0x35e   : > { %v4075_v12 = vadd.f32 %v4074_v27, %v4073_v57  ;;  %v4082_v27 = vsel %vm3137_vm12, %v4003_v8, 0.0  ;;  %v4008_v8 = vmul.f32 %v13616_v60, %v10356_v11 }
 0x35f   : > { %v3936_v35 = vadd.f32 %v13615_v53, %v3935_v59  ;;  %v13624_v53 = vld [vmem:[#allocation48_spill] sm:$0xff] }
 0x360   : > { %v4077_v45 = vadd.f32 %v4076_v20, %v4075_v12  ;;  %v4084_v20 = vsel %vm3137_vm12, %v4004_v28, 0.0  ;;  %v4009_v28 = vmul.f32 %v13617_v15, %v10377_v3 }
 0x361   : > { %v3937_v48 = vadd.f32 %v13616_v60, %v3936_v35  ;;  %v13625_v60 = vld [vmem:[#allocation49_spill] sm:$0xff] }
 0x362   : > { %v4079_v29 = vadd.f32 %v4078_v44, %v4077_v45  ;;  %v4086_v44 = vsel %vm3137_vm12, %v4005_v43, 0.0  ;;  %v4010_v43 = vmul.f32 %v13618_v39, %v10370_v2 }
 0x363   : > { %v3938_v19 = vadd.f32 %v13617_v15, %v3937_v48  ;;  %v13626_v15 = vld [vmem:[#allocation50_spill] sm:$0xff] }
 0x364   : > { %v4081_v57 = vadd.f32 %v4080_v26, %v4079_v29  ;;  %v4088_v26 = vsel %vm3137_vm12, %v4006_v24, 0.0  ;;  %v4011_v24 = vmul.f32 %v13619_v40, %v10391_v5 }
 0x365   : > { %v3939_v59 = vadd.f32 %v13618_v39, %v3938_v19  ;;  %v13627_v39 = vld [vmem:[#allocation51_spill] sm:$0xff] }
 0x366   : > { %v4083_v12 = vadd.f32 %v4082_v27, %v4081_v57  ;;  %v4090_v27 = vsel %vm3137_vm12, %v4007_v7, 0.0  ;;  %v4012_v7 = vmul.f32 %v13620_v49, %v10384_v62 }
 0x367   : > { %v3940_v35 = vadd.f32 %v13619_v40, %v3939_v59  ;;  %v13628_v40 = vld [vmem:[#allocation52_spill] sm:$0xff] }
 0x368   : > { %v4085_v45 = vadd.f32 %v4084_v20, %v4083_v12  ;;  %v4092_v20 = vsel %vm3137_vm12, %v4008_v8, 0.0  ;;  %v4013_v8 = vmul.f32 %v13621_v22, %v10405_v1 }
 0x369   : > { %v3941_v48 = vadd.f32 %v13620_v49, %v3940_v35  ;;  %v13629_v49 = vld [vmem:[#allocation53_spill] sm:$0xff] }
 0x36a   : > { %v4087_v29 = vadd.f32 %v4086_v44, %v4085_v45  ;;  %v4094_v44 = vsel %vm3137_vm12, %v4009_v28, 0.0  ;;  %v4014_v28 = vmul.f32 %v13622_v13, %v10398_v0 }
 0x36b   : > { %v3942_v19 = vadd.f32 %v13621_v22, %v3941_v48  ;;  %v13630_v22 = vld [vmem:[#allocation54_spill] sm:$0xff] }
 0x36c   : > { %v4089_v57 = vadd.f32 %v4088_v26, %v4087_v29  ;;  %v4096_v26 = vsel %vm3137_vm12, %v4010_v43, 0.0  ;;  %v4015_v43 = vmul.f32 %v13623_v37, %v10419_v61 }
 0x36d   : > { %v3943_v59 = vadd.f32 %v13622_v13, %v3942_v19  ;;  %v13631_v13 = vld [vmem:[#allocation55_spill] sm:$0xff] }
 0x36e   : > { %v4091_v12 = vadd.f32 %v4090_v27, %v4089_v57  ;;  %v4098_v27 = vsel %vm3137_vm12, %v4011_v24, 0.0  ;;  %v4016_v24 = vmul.f32 %v13624_v53, %v10412_v56 }
 0x36f   : > { %v3944_v35 = vadd.f32 %v13623_v37, %v3943_v59  ;;  %v13632_v37 = vld [vmem:[#allocation56_spill] sm:$0xff] }
 0x370   : > { %v4093_v45 = vadd.f32 %v4092_v20, %v4091_v12  ;;  %v4100_v20 = vsel %vm3137_vm12, %v4012_v7, 0.0  ;;  %v4017_v7 = vmul.f32 %v13625_v60, %v10433_v52 }
 0x371   : > { %v3945_v48 = vadd.f32 %v13624_v53, %v3944_v35  ;;  %v13633_v53 = vld [vmem:[#allocation57_spill] sm:$0xff] }
 0x372   : > { %v4095_v29 = vadd.f32 %v4094_v44, %v4093_v45  ;;  %v4102_v44 = vsel %vm3137_vm12, %v4013_v8, 0.0  ;;  %v4018_v8 = vmul.f32 %v13626_v15, %v10426_v54 }
 0x373   : > { %v3946_v19 = vadd.f32 %v13625_v60, %v3945_v48  ;;  %v13634_v60 = vld [vmem:[#allocation58_spill] sm:$0xff] }
 0x374   : > { %v4097_v57 = vadd.f32 %v4096_v26, %v4095_v29  ;;  %v4104_v26 = vsel %vm3137_vm12, %v4014_v28, 0.0  ;;  %v4019_v28 = vmul.f32 %v13627_v39, %v10447_v21 }
 0x375   : > { %v3947_v59 = vadd.f32 %v13626_v15, %v3946_v19  ;;  %v13635_v15 = vld [vmem:[#allocation24_spill] sm:$0xff] }
 0x376   : > { %v4099_v12 = vadd.f32 %v4098_v27, %v4097_v57  ;;  %v4106_v27 = vsel %vm3137_vm12, %v4015_v43, 0.0  ;;  %v4020_v43 = vmul.f32 %v13628_v40, %v10440_v34 }
 0x377   : > { %v3948_v35 = vadd.f32 %v13627_v39, %v3947_v59  ;;  %v13636_v39 = vld [vmem:[#allocation59_spill] sm:$0xff] }
 0x378   : > { %v4101_v45 = vadd.f32 %v4100_v20, %v4099_v12  ;;  %v4108_v20 = vsel %vm3137_vm12, %v4016_v24, 0.0  ;;  %v4021_v24 = vmul.f32 %v13629_v49, %v10461_v47 }
 0x379   : > { %v3949_v48 = vadd.f32 %v13628_v40, %v3948_v35  ;;  %v13637_v40 = vld [vmem:[#allocation60_spill] sm:$0xff] }
 0x37a   : > { %v4103_v29 = vadd.f32 %v4102_v44, %v4101_v45  ;;  %v4110_v44 = vsel %vm3137_vm12, %v4017_v7, 0.0  ;;  %v4022_v7 = vmul.f32 %v13630_v22, %v10454_v50 }
 0x37b   : > { %v3950_v19 = vadd.f32 %v13629_v49, %v3949_v48  ;;  %v13638_v49 = vld [vmem:[#allocation25_spill] sm:$0xff] }
 0x37c   : > { %v4105_v57 = vadd.f32 %v4104_v26, %v4103_v29  ;;  %v4112_v26 = vsel %vm3137_vm12, %v4018_v8, 0.0  ;;  %v4023_v8 = vmul.f32 %v13631_v13, %v10475_v16 }
 0x37d   : > { %v3951_v59 = vadd.f32 %v13630_v22, %v3950_v19  ;;  %v13639_v22 = vld [vmem:[#allocation61_spill] sm:$0xff] }
 0x37e   : > { %v4107_v12 = vadd.f32 %v4106_v27, %v4105_v57  ;;  %v4114_v27 = vsel %vm3137_vm12, %v4019_v28, 0.0  ;;  %v4024_v28 = vmul.f32 %v13632_v37, %v10468_v36 }
 0x37f   : > { %v3952_v35 = vadd.f32 %v13631_v13, %v3951_v59  ;;  %v13640_v13 = vld [vmem:[#allocation27_spill] sm:$0xff] }
 0x380   : > { %v4109_v45 = vadd.f32 %v4108_v20, %v4107_v12  ;;  %v4116_v20 = vsel %vm3137_vm12, %v4020_v43, 0.0  ;;  %v4025_v43 = vmul.f32 %v13633_v53, %v10489_v55 }
 0x381   : > { %v3953_v48 = vadd.f32 %v13632_v37, %v3952_v35  ;;  %v13641_v37 = vld [vmem:[#allocation62_spill] sm:$0xff] }
 0x382   : > { %v4111_v29 = vadd.f32 %v4110_v44, %v4109_v45  ;;  %v4118_v44 = vsel %vm3137_vm12, %v4021_v24, 0.0  ;;  %v4026_v24 = vmul.f32 %v13634_v60, %v10482_v51 }
 0x383   : > { %v3954_v19 = vadd.f32 %v13633_v53, %v3953_v48  ;;  %v13642_v53 = vld [vmem:[#allocation28_spill] sm:$0xff] }
 0x384   : > { %v4113_v57 = vadd.f32 %v4112_v26, %v4111_v29  ;;  %v4120_v26 = vsel %vm3137_vm12, %v4022_v7, 0.0  ;;  %v4027_v7 = vmul.f32 %v13635_v15, %v10503_v38 }
 0x385   : > { %v3955_v59 = vadd.f32 %v13634_v60, %v3954_v19  ;;  %v13643_v60 = vld [vmem:[#allocation63_spill] sm:$0xff] }
 0x386   : > { %v4115_v12 = vadd.f32 %v4114_v27, %v4113_v57  ;;  %v4122_v27 = vsel %vm3137_vm12, %v4023_v8, 0.0  ;;  %v4028_v8 = vmul.f32 %v13636_v39, %v10496_v46 }
 0x387   : > { %v3956_v35 = vadd.f32 %v13635_v15, %v3955_v59  ;;  %v13644_v15 = vld [vmem:[#allocation64_spill] sm:$0xff] }
 0x388   : > { %v4117_v45 = vadd.f32 %v4116_v20, %v4115_v12  ;;  %v4124_v20 = vsel %vm3137_vm12, %v4024_v28, 0.0  ;;  %v4029_v28 = vmul.f32 %v13637_v40, %v10517_v58 }
 0x389   : > { %v3957_v48 = vadd.f32 %v13636_v39, %v3956_v35  ;;  %v13646_v39 = vld [vmem:[#allocation65_spill] sm:$0xff] }
 0x38a   : > { %v4119_v29 = vadd.f32 %v4118_v44, %v4117_v45  ;;  %v4126_v44 = vsel %vm3137_vm12, %v4025_v43, 0.0  ;;  %v13645_v43 = vld [vmem:[#allocation246_spill] sm:$0xff] }
 0x38b   : > { %v3958_v19 = vadd.f32 %v13637_v40, %v3957_v48  ;;  %v13648_v40 = vld [vmem:[#allocation66_spill] sm:$0xff] }
 0x38c   : > { %v4121_v57 = vadd.f32 %v4120_v26, %v4119_v29  ;;  %v4128_v26 = vsel %vm3137_vm12, %v4026_v24, 0.0  ;;  %v13647_v24 = vld [vmem:[#allocation249_spill] sm:$0xff] }
 0x38d   : > { %v3959_v59 = vadd.f32 %v13638_v49, %v3958_v19 }
 0x38e   : > { %v4123_v12 = vadd.f32 %v4122_v27, %v4121_v57  ;;  %v4130_v27 = vsel %vm3137_vm12, %v4027_v7, 0.0  ;;  %v13649_v7 = vld [vmem:[#allocation248_spill] sm:$0xff] }
 0x38f   : > { %v3960_v35 = vadd.f32 %v13639_v22, %v3959_v59 }
 0x390   : > { %v4125_v45 = vadd.f32 %v4124_v20, %v4123_v12  ;;  %v4030_v20 = vmul.f32 %v13638_v49, %v13645_v43  ;;  %v4132_v12 = vsel %vm3137_vm12, %v4028_v8, 0.0  ;;  %v13650_v49 = vld [vmem:[#allocation67_spill] sm:$0xff] }
 0x391   : > { %v3961_v48 = vadd.f32 %v13640_v13, %v3960_v35  ;;  %v13651_v8 = vld [vmem:[#allocation251_spill] sm:$0xff] }
 0x392   : > { %v4127_v29 = vadd.f32 %v4126_v44, %v4125_v45  ;;  %v4031_v44 = vmul.f32 %v13639_v22, %v13647_v24  ;;  %v4134_v45 = vsel %vm3137_vm12, %v4029_v28, 0.0  ;;  %v13652_v22 = vld [vmem:[#allocation68_spill] sm:$0xff]  ;;  %v13653_v28 = vld [vmem:[#allocation250_spill] sm:$0xff] }
 0x393   : > { %v3962_v19 = vadd.f32 %v13641_v37, %v3961_v48 }
 0x394   : > { %v4129_v57 = vadd.f32 %v4128_v26, %v4127_v29  ;;  %v4032_v26 = vmul.f32 %v13640_v13, %v13649_v7  ;;  %v4136_v29 = vsel %vm3137_vm12, %v4030_v20, 0.0  ;;  %v13654_v13 = vld [vmem:[#allocation69_spill] sm:$0xff] }
 0x395   : > { %v3963_v59 = vadd.f32 %v13642_v53, %v3962_v19  ;;  %v13655_v20 = vld [vmem:[#allocation253_spill] sm:$0xff] }
 0x396   : > { %v4131_v19 = vadd.f32 %v4130_v27, %v4129_v57  ;;  %v4033_v27 = vmul.f32 %v13641_v37, %v13651_v8  ;;  %v4138_v57 = vsel %vm3137_vm12, %v4031_v44, 0.0  ;;  %v13656_v37 = vld [vmem:[#allocation70_spill] sm:$0xff]  ;;  %v13657_v44 = vld [vmem:[#allocation252_spill] sm:$0xff] }
 0x397   : > { %v3964_v35 = vadd.f32 %v13643_v60, %v3963_v59 }
 0x398   : > { %v4133_v59 = vadd.f32 %v4132_v12, %v4131_v19  ;;  %v4034_v12 = vmul.f32 %v13642_v53, %v13653_v28  ;;  %v13658_v53 = vld [vmem:[#allocation71_spill] sm:$0xff] }
 0x399   : > { %v3965_v48 = vadd.f32 %v13644_v15, %v3964_v35 }
 0x39a   : > { %v4135_v35 = vadd.f32 %v4134_v45, %v4133_v59  ;;  %v4035_v45 = vmul.f32 %v13643_v60, %v13655_v20  ;;  %v13660_v60 = vld [vmem:[#allocation72_spill] sm:$0xff] }
 0x39b   : > { %v3966_v21 = vadd.f32 %v13646_v39, %v3965_v48 }
 0x39c   : > { %v4137_v48 = vadd.f32 %v4136_v29, %v4135_v35  ;;  %v4036_v29 = vmul.f32 %v13644_v15, %v13657_v44  ;;  %v4144_v35 = vsel %vm3137_vm12, %v4034_v12, 0.0  ;;  %v13662_v15 = vld [vmem:[#allocation73_spill] sm:$0xff] }
 0x39d   : > { %v3967_v34 = vadd.f32 %v13648_v40, %v3966_v21  ;;  %v4140_v21 = vsel %vm3137_vm12, %v4032_v26, 0.0  ;;  %v13659_v26 = vld [vmem:[#allocation255_spill] sm:$0xff]  ;;  %v13663_v12 = vld [vmem:[#allocation257_spill] sm:$0xff] }
 0x39e   : > { %v4139_v19 = vadd.f32 %v4138_v57, %v4137_v48  ;;  %v4037_v57 = vmul.f32 %v13646_v39, %v13659_v26  ;;  %v4146_v48 = vsel %vm3137_vm12, %v4035_v45, 0.0  ;;  %v13664_v39 = vld [vmem:[#allocation74_spill] sm:$0xff]  ;;  %v13665_v45 = vld [vmem:[#allocation256_spill] sm:$0xff] }
 0x39f   : > { %v3968_v43 = vadd.f32 %v13650_v49, %v3967_v34  ;;  %v4142_v34 = vsel %vm3137_vm12, %v4033_v27, 0.0  ;;  %v13661_v27 = vld [vmem:[#allocation254_spill] sm:$0xff] }
 0x3a0   : > { %v4141_v59 = vadd.f32 %v4140_v21, %v4139_v19  ;;  %v4038_v21 = vmul.f32 %v13648_v40, %v13661_v27  ;;  %v4148_v19 = vsel %vm3137_vm12, %v4036_v29, 0.0  ;;  %v13666_v40 = vld [vmem:[#allocation75_spill] sm:$0xff] }
 0x3a1   : > { %v3969_v24 = vadd.f32 %v13652_v22, %v3968_v43  ;;  %v13667_v29 = vld [vmem:[#allocation259_spill] sm:$0xff] }
 0x3a2   : > { %v4143_v43 = vadd.f32 %v4142_v34, %v4141_v59  ;;  %v4039_v34 = vmul.f32 %v13650_v49, %v13663_v12  ;;  %v4150_v59 = vsel %vm3137_vm12, %v4037_v57, 0.0  ;;  %v13668_v49 = vld [vmem:[#allocation76_spill] sm:$0xff]  ;;  %v13669_v57 = vld [vmem:[#allocation258_spill] sm:$0xff] }
 0x3a3   : > { %v3970_v7 = vadd.f32 %v13654_v13, %v3969_v24 }
 0x3a4   : > { %v4145_v24 = vadd.f32 %v4144_v35, %v4143_v43  ;;  %v4040_v35 = vmul.f32 %v13652_v22, %v13665_v45  ;;  %v4152_v43 = vsel %vm3137_vm12, %v4038_v21, 0.0  ;;  %v13670_v22 = vld [vmem:[#allocation77_spill] sm:$0xff] }
 0x3a5   : > { %v3971_v8 = vadd.f32 %v13656_v37, %v3970_v7  ;;  %v13671_v21 = vld [vmem:[#allocation261_spill] sm:$0xff] }
 0x3a6   : > { %v4147_v7 = vadd.f32 %v4146_v48, %v4145_v24  ;;  %v4041_v48 = vmul.f32 %v13654_v13, %v13667_v29  ;;  %v4154_v24 = vsel %vm3137_vm12, %v4039_v34, 0.0  ;;  %v13672_v13 = vld [vmem:[#allocation78_spill] sm:$0xff]  ;;  %v13673_v34 = vld [vmem:[#allocation260_spill] sm:$0xff] }
 0x3a7   : > { %v3972_v28 = vadd.f32 %v13658_v53, %v3971_v8 }
 0x3a8   : > { %v4149_v8 = vadd.f32 %v4148_v19, %v4147_v7  ;;  %v4042_v19 = vmul.f32 %v13656_v37, %v13669_v57  ;;  %v4156_v7 = vsel %vm3137_vm12, %v4040_v35, 0.0  ;;  %v13674_v57 = vld [vmem:[#allocation263_spill] sm:$0xff] }
 0x3a9   : > { %v3973_v20 = vadd.f32 %v13660_v60, %v3972_v28  ;;  %v4045_v35 = vmul.f32 %v13662_v15, %v13674_v57 }
 0x3aa   : > { %v4151_v28 = vadd.f32 %v4150_v59, %v4149_v8  ;;  %v4043_v59 = vmul.f32 %v13658_v53, %v13671_v21  ;;  %v4158_v8 = vsel %vm3137_vm12, %v4041_v48, 0.0  ;;  %v13675_v53 = vld [vmem:[#allocation262_spill] sm:$0xff]  ;;  %v13676_v21 = vld [vmem:[#allocation265_spill] sm:$0xff] }
 0x3ab   : > { %v3974_v44 = vadd.f32 %v13662_v15, %v3973_v20  ;;  %v4046_v48 = vmul.f32 %v13664_v39, %v13675_v53 }
 0x3ac   : > { %v4153_v20 = vadd.f32 %v4152_v43, %v4151_v28  ;;  %v4044_v43 = vmul.f32 %v13660_v60, %v13673_v34  ;;  %v4160_v28 = vsel %vm3137_vm12, %v4042_v19, 0.0  ;;  %v4047_v60 = vmul.f32 %v13666_v40, %v13676_v21  ;;  %v13677_v34 = vld [vmem:[#allocation264_spill] sm:$0xff] }
 0x3ad   : > { %v3975_v26 = vadd.f32 %v13664_v39, %v3974_v44  ;;  %v4166_v19 = vsel %vm3137_vm12, %v4045_v35, 0.0  ;;  %v4048_v15 = vmul.f32 %v13668_v49, %v13677_v34 }
 0x3ae   : > { %v4155_v44 = vadd.f32 %v4154_v24, %v4153_v20  ;;  %v4162_v24 = vsel %vm3137_vm12, %v4043_v59, 0.0  ;;  %v4168_v59 = vsel %vm3137_vm12, %v4046_v48, 0.0 }
 0x3af   : > { %v3976_v27 = vadd.f32 %v13666_v40, %v3975_v26  ;;  %v4172_v35 = vsel %vm3137_vm12, %v4048_v15, 0.0 }
 0x3b0   : > { %v4157_v26 = vadd.f32 %v4156_v7, %v4155_v44  ;;  %v4164_v7 = vsel %vm3137_vm12, %v4044_v43, 0.0  ;;  %v4170_v43 = vsel %vm3137_vm12, %v4047_v60, 0.0 }
 0x3b1   : > { %v3977_v12 = vadd.f32 %v13668_v49, %v3976_v27 }
 0x3b2   : > { %v4159_v27 = vadd.f32 %v4158_v8, %v4157_v26 }
 0x3b3   : > { %v3978_v45 = vadd.f32 %v13670_v22, %v3977_v12 }
 0x3b4   : > { %v4161_v20 = vadd.f32 %v4160_v28, %v4159_v27  ;;  %v13678_v27 = vld [vmem:[#allocation267_spill] sm:$0xff] }
 0x3b5   : > { %v3979_v29 = vadd.f32 %v13672_v13, %v3978_v45  ;;  %v4049_v39 = vmul.f32 %v13670_v22, %v13678_v27 }
 0x3b6   : > { %v4163_v44 = vadd.f32 %v4162_v24, %v4161_v20  ;;  %v13679_v24 = vld [vmem:[#allocation266_spill] sm:$0xff] }
 0x3b7   : > { %v3980_v37 = vrot.slane %v3979_v29, 4  ;;  %v4050_v40 = vmul.f32 %v13672_v13, %v13679_v24  ;;  %v4174_v49 = vsel %vm3137_vm12, %v4049_v39, 0.0 }
 0x3b8   : > { %v4165_v8 = vadd.f32 %v4164_v7, %v4163_v44 }
 0x3b9   : > { %v3981_v12 = vadd.f32 %v3980_v37, %v3979_v29  ;;  %v4176_v48 = vsel %vm3137_vm12, %v4050_v40, 0.0 }
 0x3ba   : > { %v4167_v29 = vadd.f32 %v4166_v19, %v4165_v8 }
 0x3bb   : > { %v3982_v45 = vrot.slane %v3981_v12, 2 }
 0x3bc   : > { %v4169_v37 = vadd.f32 %v4168_v59, %v4167_v29 }
 0x3bd   : > { %v3983_v26 = vadd.f32 %v3982_v45, %v3981_v12 }
 0x3be   : > { %v4171_v20 = vadd.f32 %v4170_v43, %v4169_v37 }
 0x3bf   : > { %v3984_v28 = vrot.slane %v3983_v26, 1 }
 0x3c0   : > { %v4173_v53 = vadd.f32 %v4172_v35, %v4171_v20 }
 0x3c1   : > { %v3985_v57 = vadd.f32 %v3984_v28, %v3983_v26 }
 0x3c2   : > { %v4175_v7 = vadd.f32 %v4174_v49, %v4173_v53 }
 0x3c3   : > { %v3986_v12 = vmax.f32 %v3985_v57, 1.0 }
 0x3c4   : > { %v4177_v44 = vadd.f32 %v4176_v48, %v4175_v7 }
 0x3c5   : > { %7878 = vrcp.f32 %v3986_v12 }
 0x3c6   : > { %v4178_v22 = vrot.slane %v4177_v44, 4 }
 0x3c8   : > { %v4179_v45 = vadd.f32 %v4178_v22, %v4177_v44 }
 0x3ca   : > { %v4180_v21 = vrot.slane %v4179_v45, 2 }
 0x3cc   : > { %v4181_v60 = vadd.f32 %v4180_v21, %v4179_v45 }
 0x3ce   : > { %v4182_v19 = vrot.slane %v4181_v60, 1 }
 0x3d0   : > { %v4183_v26 = vadd.f32 %v4182_v19, %v4181_v60 }
 0x3d2   : > { %v7879_v8 = vpop.eup %7878 }
 0x3d3   : > { %v4185_v13 = vmul.f32 %v7879_v8, %v4183_v26 }
 0x3d5   : > { %4187 = vst.msk [vmem:[#allocation5] sm:$0x1] %vm4186_vm6, %v4185_v13 }
 0x3d6 PF: > { %v4219_v34 = vand.u32 2147483647, %v10426_v54  ;;  %v4218_v15 = vand.u32 2147483647, %v10433_v52  ;;  %v4203_v59 = vand.u32 2147483647, %v10314_v25 }
 0x3d7   : > { %v4202_v29 = vand.u32 2147483647, %v10321_v9  ;;  %v4217_v39 = vand.u32 2147483647, %v10412_v56  ;;  %v4201_v57 = vand.u32 2147483647, %v10300_v18 }
 0x3d8   : > { %v4283_v28 = vsub.f32 0.0, %v4219_v34  ;;  %v4282_v27 = vsub.f32 0.0, %v4218_v15  ;;  %v4267_v43 = vsub.f32 0.0, %v4203_v59  ;;  %v4216_v48 = vand.u32 2147483647, %v10419_v61  ;;  %s8296_s28 = smov 32  }
 0x3d9   : > { %v4266_v37 = vsub.f32 0.0, %v4202_v29  ;;  %v4281_v35 = vsub.f32 0.0, %v4217_v39  ;;  %v4265_v49 = vsub.f32 0.0, %v4201_v57  ;;  %v4200_v7 = vand.u32 2147483647, %v10307_v4  ;;  %s8297_s20 = smov 96  }
 0x3da   : > { %v4378_v24 = vmul.f32 1.442695, %v4283_v28  ;;  %v4376_v40 = vmul.f32 1.442695, %v4282_v27  ;;  %v4346_v20 = vmul.f32 1.442695, %v4267_v43 }
 0x3db   : > { %v4344_v12 = vmul.f32 1.442695, %v4266_v37  ;;  %v4374_v53 = vmul.f32 1.442695, %v4281_v35  ;;  %v4342_v44 = vmul.f32 1.442695, %v4265_v49 }
 0x3dc   : > { %7964 = vpow2.f32 %v4378_v24  ;;  %v4215_v22 = vand.u32 2147483647, %v10398_v0  ;;  %v4280_v45 = vsub.f32 0.0, %v4216_v48  ;;  %v4264_v21 = vsub.f32 0.0, %v4200_v7  ;;  %p7158_p5 = scmp.ne.s32.totalorder %s8385_s30, 1 }
 0x3dd   : > { %7966 = vpow2.f32 %v4376_v40  ;;  %v4199_v19 = vand.u32 2147483647, %v10286_v30  ;;  %v4214_v13 = vand.u32 2147483647, %v10405_v1  ;;  %v4198_v29 = vand.u32 2147483647, %v10293_v31 }
 0x3de   : > { %7968 = vpow2.f32 %v4346_v20  ;;  %v4279_v60 = vsub.f32 0.0, %v4215_v22  ;;  %v4372_v8 = vmul.f32 1.442695, %v4280_v45  ;;  %v4340_v26 = vmul.f32 1.442695, %v4264_v21  ;;  %s8298_s16 = smov (!%p7158_p5), 96  }
 0x3df   : > { %7970 = vpow2.f32 %v4344_v12  ;;  %v4263_v15 = vsub.f32 0.0, %v4199_v19  ;;  %v4278_v59 = vsub.f32 0.0, %v4214_v13  ;;  %v4213_v27 = vand.u32 2147483647, %v10384_v62  ;;  %s8299_s18 = smov (!%p7158_p5), 32  }
 0x3e0   : > { %7972 = vpow2.f32 %v4374_v53  ;;  %v4370_v34 = vmul.f32 1.442695, %v4279_v60  ;;  %v4262_v43 = vsub.f32 0.0, %v4198_v29  ;;  %v4197_v37 = vand.u32 2147483647, %v10272_v41 }
 0x3e1   : > { %7974 = vpow2.f32 %v4342_v44  ;;  %v4338_v28 = vmul.f32 1.442695, %v4263_v15  ;;  %v4368_v39 = vmul.f32 1.442695, %v4278_v59  ;;  %v4277_v57 = vsub.f32 0.0, %v4213_v27 }
 0x3e2   : > { %7976 = vpow2.f32 %v4372_v8  ;;  %v4212_v24 = vand.u32 2147483647, %v10391_v5  ;;  %v4336_v40 = vmul.f32 1.442695, %v4262_v43  ;;  %v4261_v35 = vsub.f32 0.0, %v4197_v37 }
 0x3e3   : > { %7978 = vpow2.f32 %v4340_v26  ;;  %v4366_v20 = vmul.f32 1.442695, %v4277_v57  ;;  %v4196_v21 = vand.u32 2147483647, %v10279_v33  ;;  %v4211_v13 = vand.u32 2147483647, %v10370_v2 }
 0x3e4   : > { %7980 = vpow2.f32 %v4370_v34  ;;  %v4276_v12 = vsub.f32 0.0, %v4212_v24  ;;  %v4334_v49 = vmul.f32 1.442695, %v4261_v35  ;;  %v4195_v43 = vand.u32 2147483647, %v10258_v32 }
 0x3e5   : > { %7982 = vpow2.f32 %v4338_v28  ;;  %v4260_v28 = vsub.f32 0.0, %v4196_v21  ;;  %v4275_v24 = vsub.f32 0.0, %v4211_v13  ;;  %v4193_v47 = vand.u32 2147483647, %v10244_v17 }
 0x3e6   : > { %7984 = vpow2.f32 %v4368_v39  ;;  %v4364_v48 = vmul.f32 1.442695, %v4276_v12  ;;  %v4194_v12 = vand.u32 2147483647, %v10265_v42  ;;  %v4259_v16 = vsub.f32 0.0, %v4195_v43  ;;  %v13683_v42 = vld [vmem:[#allocation209_spill] sm:$0xff] }
 0x3e7   : > { %7986 = vpow2.f32 %v4336_v40  ;;  %v4210_v40 = vand.u32 2147483647, %v10377_v3  ;;  %v4332_v13 = vmul.f32 1.442695, %v4260_v28  ;;  %v4362_v55 = vmul.f32 1.442695, %v4275_v24 }
 0x3e8   : > { %7988 = vpow2.f32 %v4366_v20  ;;  %v4258_v46 = vsub.f32 0.0, %v4194_v12  ;;  %vm4795_vm14 = vcmp.ge.f32.partialorder %v10426_v54, 0.0  ;;  %v4208_v24 = vand.u32 2147483647, %v10363_v63  ;;  %v13721_v54 = vld [vmem:[#allocation207_spill] sm:$0xff] }
 0x3e9   : > { %v10934_v53 = vpop.eup %7964  ;;  %7990 = vpow2.f32 %v4334_v49  ;;  %v4209_v49 = vand.u32 2147483647, %v10356_v11  ;;  %v4274_v51 = vsub.f32 0.0, %v4210_v40  ;;  %v4257_v11 = vsub.f32 0.0, %v4193_v47 }
 0x3ea   : > { %v10936_v7 = vpop.eup %7966  ;;  %v10939_v44 = vadd.f32 1.0, %v10934_v53  ;;  %7992 = vpow2.f32 %v4364_v48  ;;  %vm4794_vm9 = vcmp.ge.f32.partialorder %v10433_v52, 0.0  ;;  %v4192_v3 = vand.u32 2147483647, %v13683_v42  ;;  %v13722_v52 = vld [vmem:[#allocation26_spill] sm:$0xff] }
 0x3eb   : > { %v10941_v22 = vpop.eup %7968  ;;  %v10944_v45 = vadd.f32 1.0, %v10936_v7  ;;  %v4273_v58 = vsub.f32 0.0, %v4209_v49  ;;  %v4330_v49 = vmul.f32 1.442695, %v4259_v16  ;;  %vm4779_vm4 = vcmp.ge.f32.partialorder %v10314_v25, 0.0  ;;  %v13731_v25 = vld [vmem:[#allocation266_spill] sm:$0xff] }
 0x3ec   : > { %v10947_v60 = vpop.eup %7970  ;;  %7994 = vrcp.f32 %v10939_v44  ;;  %v10951_v19 = vadd.f32 1.0, %v10941_v22  ;;  %v4207_v63 = vand.u32 2147483647, %v10342_v14  ;;  %vm4778_vm10 = vcmp.ge.f32.partialorder %v10321_v9, 0.0 }
 0x3ed   : > { %v10953_v8 = vpop.eup %7972  ;;  %7996 = vrcp.f32 %v10944_v45  ;;  %v10957_v26 = vadd.f32 1.0, %v10947_v60  ;;  %v4328_v16 = vmul.f32 1.442695, %v4258_v46  ;;  %v11038_v42 = vmul.f32 1.442695, %v4273_v58 }
 0x3ee   : > { %v10960_v34 = vpop.eup %7974  ;;  %7998 = vrcp.f32 %v10951_v19  ;;  %v10964_v15 = vadd.f32 1.0, %v10953_v8  ;;  %vm4793_vm11 = vcmp.ge.f32.partialorder %v10412_v56, 0.0  ;;  %v11045_v14 = vsub.f32 0.0, %v4208_v24 }
 0x3ef   : > { %v10966_v59 = vpop.eup %7976  ;;  %8000 = vrcp.f32 %v10957_v26  ;;  %v10970_v29 = vadd.f32 1.0, %v10960_v34  ;;  %13684 = vst [vmem:[#allocation271_spill] sm:$0xff] %v11038_v42  ;;  %vm4777_vm8 = vcmp.ge.f32.partialorder %v10300_v18, 0.0  ;;  %v11049_v46 = vsub.f32 0.0, %v4192_v3 }
 0x3f0   : > { %v10972_v27 = vpop.eup %7978  ;;  %8002 = vrcp.f32 %v10964_v15  ;;  %v10976_v39 = vadd.f32 1.0, %v10966_v59  ;;  %13686 = vst [vmem:[#allocation273_spill] sm:$0xff] %v11045_v14  ;;  %vm4792_vm15 = vcmp.ge.f32.partialorder %v10419_v61, 0.0  ;;  %vm4776_vm0 = vcmp.ge.f32.partialorder %v10307_v4, 0.0  ;;  %v13727_v61 = vld [vmem:[#allocation221_spill] sm:$0xff] }
 0x3f1   : > { %v10979_v37 = vpop.eup %7980  ;;  %8004 = vrcp.f32 %v10970_v29  ;;  %v10983_v57 = vadd.f32 1.0, %v10972_v27  ;;  %13687 = vst [vmem:[#allocation274_spill] sm:$0xff] %v11049_v46  ;;  %vm4791_vm1 = vcmp.ge.f32.partialorder %v10398_v0, 0.0  ;;  %vm4775_vm2 = vcmp.ge.f32.partialorder %v10286_v30, 0.0 }
 0x3f2   : > { %v10986_v35 = vpop.eup %7982  ;;  %8006 = vrcp.f32 %v10976_v39  ;;  %v10990_v20 = vadd.f32 1.0, %v10979_v37  ;;  %vm4790_vm7 = vcmp.ge.f32.partialorder %v10405_v1, 0.0  ;;  %vm4774_vm13 = vcmp.ge.f32.partialorder %v10293_v31, 0.0 }
 0x3f3   : > { %v10994_v48 = vpop.eup %7984  ;;  %8008 = vrcp.f32 %v10983_v57  ;;  %v10998_v21 = vadd.f32 1.0, %v10986_v35  ;;  %vm4789_vm3 = vcmp.ge.f32.partialorder %v10384_v62, 0.0  ;;  %vm4773_vm5 = vcmp.ge.f32.partialorder %v10272_v41, 0.0 }
 0x3f4   : > { %8010 = vrcp.f32 %v10990_v20  ;;  %v11003_v50 = vadd.f32 1.0, %v10994_v48  ;;  %v11005_v36 = vpop.eup %7986  ;;  %vm4788_vm6 = vcmp.ge.f32.partialorder %v10391_v5, 0.0 }
 0x3f5   : > { %8012 = vrcp.f32 %v10998_v21  ;;  %v11008_v38 = vpop.eup %7988  ;;  %v11012_v28 = vadd.f32 1.0, %v11005_v36 }
 0x3f6   : > { %13680 = vst [vmem:[#allocation268_spill] sm:$0xff] %v11008_v38  ;;  %8014 = vrcp.f32 %v11003_v50  ;;  %v11014_v17 = vpop.eup %7990  ;;  %v11018_v43 = vadd.f32 1.0, %v11008_v38 }
 0x3f7   : > { %13681 = vst [vmem:[#allocation269_spill] sm:$0xff] %v11014_v17  ;;  %8016 = vpow2.f32 %v4332_v13  ;;  %v11021_v40 = vpop.eup %7992  ;;  %v11026_v12 = vadd.f32 1.0, %v11014_v17  ;;  %v4360_v13 = vmul.f32 1.442695, %v4274_v51  ;;  %v11043_v51 = vmul.f32 1.442695, %v4257_v11 }
 0x3f8   : > { %13682 = vst [vmem:[#allocation270_spill] sm:$0xff] %v11021_v40  ;;  %8018 = vrcp.f32 %v11012_v28  ;;  %v11032_v47 = vadd.f32 1.0, %v11021_v40  ;;  %v11053_v11 = vsub.f32 0.0, %v4207_v63 }
 0x3f9   : > { %v7995_v32 = vpop.eup %7994  ;;  %8020 = vrcp.f32 %v11018_v43  ;;  %13685 = vst [vmem:[#allocation272_spill] sm:$0xff] %v11043_v51 }
 0x3fa   : > { %v7997_v2 = vpop.eup %7996  ;;  %v4603_v33 = vmul.f32 %v7995_v32, %v10939_v44  ;;  %8022 = vrcp.f32 %v11026_v12 }
 0x3fb   : > { %v7999_v6 = vpop.eup %7998  ;;  %v4602_v23 = vmul.f32 %v7997_v2, %v10944_v45  ;;  %8024 = vrcp.f32 %v11032_v47 }
 0x3fc   : > { %v8001_v40 = vpop.eup %8000  ;;  %v4667_v44 = vsub.f32 2.0, %v4603_v33  ;;  %v4587_v10 = vmul.f32 %v7999_v6, %v10951_v19  ;;  %8026 = vpow2.f32 %v4362_v55 }
 0x3fd   : > { %v8003_v58 = vpop.eup %8002  ;;  %v4666_v42 = vsub.f32 2.0, %v4602_v23  ;;  %v4586_v45 = vmul.f32 %v8001_v40, %v10957_v26  ;;  %8028 = vpow2.f32 %v4330_v49 }
 0x3fe   : > { %v8005_v24 = vpop.eup %8004  ;;  %v4731_v51 = vmul.f32 %v7995_v32, %v4667_v44  ;;  %v4651_v17 = vsub.f32 2.0, %v4587_v10  ;;  %v4601_v33 = vmul.f32 %v8003_v58, %v10964_v15  ;;  %8030 = vpow2.f32 %v4360_v13 }
 0x3ff   : > { %v8007_v19 = vpop.eup %8006  ;;  %v4730_v38 = vmul.f32 %v7997_v2, %v4666_v42  ;;  %v4650_v55 = vsub.f32 2.0, %v4586_v45  ;;  %v4585_v3 = vmul.f32 %v8005_v24, %v10970_v29  ;;  %8032 = vpow2.f32 %v4328_v16  ;;  %v13688_v16 = vld [vmem:[#allocation50_spill] sm:$0xff]  ;;  %v13690_v45 = vld [vmem:[#allocation49_spill] sm:$0xff] }
 0x400   : > { %v8009_v23 = vpop.eup %8008  ;;  %v4859_v26 = vmul.f32 %v10934_v53, %v4731_v51  ;;  %v4715_v46 = vmul.f32 %v7999_v6, %v4651_v17  ;;  %v4665_v14 = vsub.f32 2.0, %v4601_v33  ;;  %v4600_v63 = vmul.f32 %v8007_v19, %v10976_v39  ;;  %v13728_v0 = vld [vmem:[#allocation272_spill] sm:$0xff] }
 0x401   : > { %v8011_v32 = vpop.eup %8010  ;;  %v4858_v10 = vmul.f32 %v10936_v7, %v4730_v38  ;;  %v4714_v15 = vmul.f32 %v8001_v40, %v4650_v55  ;;  %v4649_v49 = vsub.f32 2.0, %v4585_v3  ;;  %v4584_v42 = vmul.f32 %v8009_v23, %v10983_v57 }
 0x402   : > { %v8013_v2 = vpop.eup %8012  ;;  %v4923_v29 = vsel %vm4795_vm14, %v4731_v51, %v4859_v26  ;;  %v4843_v13 = vmul.f32 %v10941_v22, %v4715_v46  ;;  %v4729_v53 = vmul.f32 %v8003_v58, %v4665_v14  ;;  %v4664_v17 = vsub.f32 2.0, %v4600_v63 }
 0x403   : > { %v8015_v6 = vpop.eup %8014  ;;  %v11066_v39 = vmul.f32 %v13688_v16, %v4923_v29  ;;  %v4922_v44 = vsel %vm4794_vm9, %v4730_v38, %v4858_v10  ;;  %v4842_v7 = vmul.f32 %v10947_v60, %v4714_v15  ;;  %v4713_v40 = vmul.f32 %v8005_v24, %v4649_v49  ;;  %v13692_v38 = vld [vmem:[#allocation37_spill] sm:$0xff]  ;;  %v13696_v29 = vld [vmem:[#allocation48_spill] sm:$0xff] }
 0x404   : > { %v11072_v57 = vpop.eup %8016  ;;  %v11075_v51 = vmul.f32 %v13690_v45, %v4922_v44  ;;  %v4907_v14 = vsel %vm4779_vm4, %v4715_v46, %v4843_v13  ;;  %v4857_v22 = vmul.f32 %v10953_v8, %v4729_v53  ;;  %v4728_v58 = vmul.f32 %v8007_v19, %v4664_v17  ;;  %v13694_v8 = vld [vmem:[#allocation36_spill] sm:$0xff]  ;;  %v13698_v44 = vld [vmem:[#allocation35_spill] sm:$0xff] }
 0x405   : > { %13689 = vst [vmem:[#allocation275_spill] sm:$0xff] %v11066_v39  ;;  %v8019_v33 = vpop.eup %8018  ;;  %5148 = vrot.lane.b32.xlu0 %v11066_v39, %s8296_s28  ;;  %v11084_v60 = vmul.f32 %v13692_v38, %v4907_v14  ;;  %v4906_v24 = vsel %vm4778_vm10, %v4714_v15, %v4842_v7  ;;  %v4841_v55 = vmul.f32 %v10960_v34, %v4713_v40  ;;  %v4648_v3 = vsub.f32 2.0, %v4584_v42 }
 0x406   : > { %13691 = vst [vmem:[#allocation276_spill] sm:$0xff] %v11075_v51  ;;  %v8021_v46 = vpop.eup %8020  ;;  %5146 = vrot.lane.b32.xlu1 %v11075_v51, %s8296_s28  ;;  %v11092_v19 = vmul.f32 %v13694_v8, %v4906_v24  ;;  %v4921_v26 = vsel %vm4793_vm11, %v4729_v53, %v4857_v22  ;;  %v4856_v63 = vmul.f32 %v10966_v59, %v4728_v58 }
 0x407   : > { %13693 = vst [vmem:[#allocation277_spill] sm:$0xff] %v11084_v60  ;;  %v4599_v10 = vmul.f32 %v8011_v32, %v10990_v20  ;;  %v8023_v49 = vpop.eup %8022  ;;  %v11099_v15 = vmul.f32 %v13696_v29, %v4921_v26  ;;  %v4905_v34 = vsel %vm4777_vm8, %v4713_v40, %v4841_v55  ;;  %v4712_v42 = vmul.f32 %v8009_v23, %v4648_v3 }
 0x408   : > { %13695 = vst [vmem:[#allocation278_spill] sm:$0xff] %v11092_v19  ;;  %v4583_v13 = vmul.f32 %v8013_v2, %v10998_v21  ;;  %v8025_v17 = vpop.eup %8024  ;;  %v11106_v7 = vmul.f32 %v13698_v44, %v4905_v34  ;;  %v4920_v59 = vsel %vm4792_vm15, %v4728_v58, %v4856_v63  ;;  %v4598_v53 = vmul.f32 %v8015_v6, %v11003_v50  ;;  %v13700_v21 = vld [vmem:[#allocation47_spill] sm:$0xff]  ;;  %v13736_v44 = vld [vmem:[#allocation226_spill] sm:$0xff] }
 0x409   : > { %13697 = vst [vmem:[#allocation279_spill] sm:$0xff] %v11099_v15  ;;  %v4663_v20 = vsub.f32 2.0, %v4599_v10  ;;  %v11113_v40 = vpop.eup %8026  ;;  %5116 = vrot.lane.b32.xlu0 %v11084_v60, %s8296_s28  ;;  %v11118_v23 = vmul.f32 %v13700_v21, %v4920_v59  ;;  %v4840_v14 = vmul.f32 %v10972_v27, %v4712_v42  ;;  %v4582_v58 = vmul.f32 %v8019_v33, %v11012_v28  ;;  %v13702_v59 = vld [vmem:[#allocation34_spill] sm:$0xff]  ;;  %v13725_v21 = vld [vmem:[#allocation204_spill] sm:$0xff] }
 0x40a   : > { %13699 = vst [vmem:[#allocation280_spill] sm:$0xff] %v11106_v7  ;;  %v4647_v22 = vsub.f32 2.0, %v4583_v13  ;;  %v11123_v50 = vpop.eup %8028  ;;  %5114 = vrot.lane.b32.xlu1 %v11092_v19, %s8296_s28  ;;  %v4662_v55 = vsub.f32 2.0, %v4598_v53  ;;  %v4597_v3 = vmul.f32 %v8021_v46, %v11018_v43  ;;  %v4581_v26 = vmul.f32 %v8023_v49, %v11026_v12  ;;  %v13761_v19 = vld [vmem:[#allocation225_spill] sm:$0xff]  ;;  %v13762_v60 = vld [vmem:[#allocation246_spill] sm:$0xff] }
 0x40b   : > { %13701 = vst [vmem:[#allocation281_spill] sm:$0xff] %v11118_v23  ;;  %v4727_v24 = vmul.f32 %v8011_v32, %v4663_v20  ;;  %v11129_v63 = vpop.eup %8030  ;;  %v4904_v27 = vsel %vm4776_vm0, %v4712_v42, %v4840_v14  ;;  %v4646_v28 = vsub.f32 2.0, %v4582_v58  ;;  %v4596_v34 = vmul.f32 %v8025_v17, %v11032_v47  ;;  %v13704_v58 = vld [vmem:[#allocation273_spill] sm:$0xff] }
 0x40c   : > { %v4711_v10 = vmul.f32 %v8013_v2, %v4647_v22  ;;  %v11134_v13 = vpop.eup %8032  ;;  %v11137_v16 = vmul.f32 %v13702_v59, %v4904_v27  ;;  %v4726_v20 = vmul.f32 %v8015_v6, %v4662_v55  ;;  %v4661_v43 = vsub.f32 2.0, %v4597_v3  ;;  %v13705_v3 = vld [vmem:[#allocation268_spill] sm:$0xff] }
 0x40d   : > { %v4855_v32 = vmul.f32 %v10979_v37, %v4727_v24  ;;  %5144 = vrot.lane.b32.xlu0 %v11099_v15, %s8296_s28  ;;  %v4710_v53 = vmul.f32 %v8019_v33, %v4646_v28  ;;  %v4645_v42 = vsub.f32 2.0, %v4581_v26  ;;  %v4660_v2 = vsub.f32 2.0, %v4596_v34  ;;  %v13706_v28 = vld [vmem:[#allocation274_spill] sm:$0xff] }
 0x40e   : > { %13703 = vst [vmem:[#allocation282_spill] sm:$0xff] %v11137_v16  ;;  %v4839_v12 = vmul.f32 %v10986_v35, %v4711_v10  ;;  %5112 = vrot.lane.b32.xlu1 %v11106_v7, %s8296_s28  ;;  %v4854_v37 = vmul.f32 %v10994_v48, %v4726_v20  ;;  %v4725_v6 = vmul.f32 %v8021_v46, %v4661_v43  ;;  %v11150_v14 = vadd.f32 1.0, %v11072_v57  ;;  %v13708_v48 = vld [vmem:[#allocation46_spill] sm:$0xff]  ;;  %v13710_v43 = vld [vmem:[#allocation269_spill] sm:$0xff] }
 0x40f   : > { %v4919_v47 = vsel %vm4791_vm1, %v4727_v24, %v4855_v32  ;;  %v4838_v33 = vmul.f32 %v11005_v36, %v4710_v53  ;;  %v4709_v22 = vmul.f32 %v8023_v49, %v4645_v42  ;;  %v4356_v55 = vmul.f32 1.442695, %v13704_v58  ;;  %v13707_v24 = vld [vmem:[#allocation206_spill] sm:$0xff]  ;;  %v13711_v36 = vld [vmem:[#allocation223_spill] sm:$0xff] }
 0x410   : > { %v4903_v35 = vsel %vm4775_vm2, %v4711_v10, %v4839_v12  ;;  %v4853_v26 = vmul.f32 %v13705_v3, %v4725_v6  ;;  %v4724_v27 = vmul.f32 %v8025_v17, %v4660_v2  ;;  %v4324_v34 = vmul.f32 1.442695, %v13706_v28  ;;  %v13712_v17 = vld [vmem:[#allocation33_spill] sm:$0xff]  ;;  %v13760_v7 = vld [vmem:[#allocation262_spill] sm:$0xff] }
 0x411   : > { %v4191_v32 = vand.u32 2147483647, %v13707_v24  ;;  %5142 = vrot.lane.b32.xlu0 %v11118_v23, %s8296_s28  ;;  %v11162_v46 = vmul.f32 %v13708_v48, %v4919_v47  ;;  %v4837_v10 = vmul.f32 %v13710_v43, %v4709_v22  ;;  %8034 = vrcp.f32 %v11150_v14  ;;  %v13726_v48 = vld [vmem:[#allocation271_spill] sm:$0xff] }
 0x412   : > { %v4206_v49 = vand.u32 2147483647, %v13711_v36  ;;  %5110 = vrot.lane.b32.xlu1 %v11137_v16, %s8296_s28  ;;  %v11170_v12 = vmul.f32 %v13712_v17, %v4903_v35  ;;  %v4918_v42 = vsel %vm4790_vm7, %v4726_v20, %v4854_v37  ;;  %v11175_v2 = vadd.f32 1.0, %v11113_v40  ;;  %v13714_v37 = vld [vmem:[#allocation270_spill] sm:$0xff]  ;;  %v13759_v16 = vld [vmem:[#allocation208_spill] sm:$0xff] }
 0x413   : > { %13709 = vst [vmem:[#allocation273_spill] sm:$0xff] %v11162_v46  ;;  %v4354_v47 = vmul.f32 1.442695, %v11053_v11  ;;  %v4902_v58 = vsel %vm4774_vm13, %v4710_v53, %v4838_v33  ;;  %v4917_v3 = vsel %vm4789_vm3, %v4725_v6, %v4853_v26  ;;  %v11183_v28 = vadd.f32 1.0, %v11123_v50  ;;  %v13715_v53 = vld [vmem:[#allocation45_spill] sm:$0xff] }
 0x414   : > { %13713 = vst [vmem:[#allocation268_spill] sm:$0xff] %v11170_v12  ;;  %v11186_v35 = vadd.f32 1.0, %v11129_v63  ;;  %v4901_v20 = vsel %vm4773_vm5, %v4709_v22, %v4837_v10  ;;  %v4852_v43 = vmul.f32 %v13714_v37, %v4724_v27  ;;  %8036 = vrcp.f32 %v11175_v2  ;;  %v13717_v22 = vld [vmem:[#allocation32_spill] sm:$0xff] }
 0x415   : > { %v11193_v11 = vadd.f32 1.0, %v11134_v13  ;;  %5140 = vrot.lane.b32.xlu0 %v11162_v46, %s8296_s28  ;;  %v11198_v6 = vmul.f32 %v13715_v53, %v4918_v42  ;;  %8038 = vrcp.f32 %v11183_v28  ;;  %v4255_v33 = vsub.f32 0.0, %v4191_v32  ;;  %v13719_v37 = vld [vmem:[#allocation44_spill] sm:$0xff] }
 0x416   : > { %v4270_v26 = vsub.f32 0.0, %v4206_v49  ;;  %5108 = vrot.lane.b32.xlu1 %v11170_v12, %s8296_s28  ;;  %v11204_v10 = vmul.f32 %v13717_v22, %v4902_v58  ;;  %v11207_v45 = vmul.f32 %v13719_v37, %v4917_v3  ;;  %8040 = vrcp.f32 %v11186_v35  ;;  %v13724_v32 = vld [vmem:[#allocation220_spill] sm:$0xff] }
 0x417   : > { %13716 = vst [vmem:[#allocation274_spill] sm:$0xff] %v11198_v6  ;;  %v4190_v29 = vand.u32 2147483647, %v13721_v54  ;;  %v11212_v42 = vmul.f32 %v13722_v52, %v4901_v20  ;;  %8042 = vrcp.f32 %v11193_v11  ;;  %v4205_v49 = vand.u32 2147483647, %v13724_v32  ;;  %v13757_v12 = vld [vmem:[#allocation224_spill] sm:$0xff] }
 0x418   : > { %13718 = vst [vmem:[#allocation269_spill] sm:$0xff] %v11204_v10  ;;  %13720 = vst [vmem:[#allocation270_spill] sm:$0xff] %v11207_v45  ;;  %v4189_v56 = vand.u32 2147483647, %v13725_v21  ;;  %v4916_v58 = vsel %vm4788_vm6, %v4724_v27, %v4852_v43  ;;  %8044 = vpow2.f32 %v13726_v48  ;;  %v4204_v53 = vand.u32 2147483647, %v13727_v61 }
 0x419   : > { %13723 = vst [vmem:[#allocation283_spill] sm:$0xff] %v11212_v42  ;;  %v4254_v3 = vsub.f32 0.0, %v4190_v29  ;;  %5138 = vrot.lane.b32.xlu0 %v11198_v6, %s8296_s28  ;;  %8046 = vpow2.f32 %v13728_v0  ;;  %v4322_v20 = vmul.f32 1.442695, %v4255_v33  ;;  %v4269_v37 = vsub.f32 0.0, %v4205_v49  ;;  %v13729_v27 = vld [vmem:[#allocation205_spill] sm:$0xff] }
 0x41a   : > { %v4253_v1 = vsub.f32 0.0, %v4189_v56  ;;  %5106 = vrot.lane.b32.xlu1 %v11204_v10, %s8296_s28  ;;  %8048 = vpow2.f32 %v4356_v55  ;;  %v4352_v62 = vmul.f32 1.442695, %v4270_v26  ;;  %v4268_v5 = vsub.f32 0.0, %v4204_v53  ;;  %v13730_v48 = vld [vmem:[#allocation213_spill] sm:$0xff]  ;;  %v13732_v56 = vld [vmem:[#allocation43_spill] sm:$0xff] }
 0x41b   : > { %v4188_v43 = vand.u32 2147483647, %v13729_v27  ;;  %8050 = vpow2.f32 %v4324_v34  ;;  %v4320_v29 = vmul.f32 1.442695, %v4254_v3  ;;  %vm4772_vm14 = vcmp.ge.f32.partialorder %v13730_v48, 0.0  ;;  %v13734_v53 = vld [vmem:[#allocation250_spill] sm:$0xff] }
 0x41c   : > { %8052 = vpow2.f32 %v4354_v47  ;;  %v4350_v38 = vmul.f32 1.442695, %v4269_v37  ;;  %v4251_v0 = vand.u32 2147483647, %v13731_v25  ;;  %v11232_v33 = vmul.f32 %v13732_v56, %v4916_v58  ;;  %v13735_v37 = vld [vmem:[#allocation267_spill] sm:$0xff]  ;;  %v13755_v10 = vld [vmem:[#allocation265_spill] sm:$0xff] }
 0x41d   : > { %v4252_v8 = vsub.f32 0.0, %v4188_v43  ;;  %5136 = vrot.lane.b32.xlu0 %v11207_v45, %s8296_s28  ;;  %8054 = vpow2.f32 %v4322_v20  ;;  %v4318_v55 = vmul.f32 1.442695, %v4253_v1  ;;  %v4235_v26 = vand.u32 2147483647, %v13734_v53  ;;  %v13737_v20 = vld [vmem:[#allocation210_spill] sm:$0xff] }
 0x41e   : > { %13733 = vst [vmem:[#allocation204_spill] sm:$0xff] %v11232_v33  ;;  %v8035_v49 = vpop.eup %8034  ;;  %5104 = vrot.lane.b32.xlu1 %v11212_v42, %s8296_s28  ;;  %8056 = vpow2.f32 %v4352_v62  ;;  %v4348_v34 = vmul.f32 1.442695, %v4268_v5  ;;  %v4315_v47 = vsub.f32 0.0, %v4251_v0  ;;  %v4250_v3 = vand.u32 2147483647, %v13735_v37 }
 0x41f   : > { %v4580_v43 = vmul.f32 %v8035_v49, %v11150_v14  ;;  %vm4787_vm9 = vcmp.ge.f32.partialorder %v13736_v44, 0.0  ;;  %8058 = vpow2.f32 %v4320_v29  ;;  %v4316_v58 = vmul.f32 1.442695, %v4252_v8  ;;  %v13738_v5 = vld [vmem:[#allocation227_spill] sm:$0xff]  ;;  %v13758_v48 = vld [vmem:[#allocation249_spill] sm:$0xff] }
 0x420   : > { %v4299_v56 = vsub.f32 0.0, %v4235_v26  ;;  %vm4771_vm4 = vcmp.ge.f32.partialorder %v13737_v20, 0.0  ;;  %8060 = vpow2.f32 %v4350_v38  ;;  %v4442_v1 = vmul.f32 1.442695, %v4315_v47  ;;  %v13739_v29 = vld [vmem:[#allocation211_spill] sm:$0xff] }
 0x421   : > { %v4314_v9 = vsub.f32 0.0, %v4250_v3  ;;  %v8037_v59 = vpop.eup %8036  ;;  %5134 = vrot.lane.b32.xlu0 %v11232_v33, %s8296_s28  ;;  %v4644_v62 = vsub.f32 2.0, %v4580_v43  ;;  %vm4786_vm10 = vcmp.ge.f32.partialorder %v13738_v5, 0.0  ;;  %8062 = vpow2.f32 %v4318_v55  ;;  %v13740_v3 = vld [vmem:[#allocation251_spill] sm:$0xff] }
 0x422   : > { %v4410_v0 = vmul.f32 1.442695, %v4299_v56  ;;  %v8039_v14 = vpop.eup %8038  ;;  %v4595_v18 = vmul.f32 %v8037_v59, %v11175_v2  ;;  %vm4770_vm11 = vcmp.ge.f32.partialorder %v13739_v29, 0.0  ;;  %8064 = vpow2.f32 %v4348_v34  ;;  %v13741_v56 = vld [vmem:[#allocation264_spill] sm:$0xff] }
 0x423   : > { %v4440_v8 = vmul.f32 1.442695, %v4314_v9  ;;  %v8041_v26 = vpop.eup %8040  ;;  %v4708_v38 = vmul.f32 %v8035_v49, %v4644_v62  ;;  %v4579_v47 = vmul.f32 %v8039_v14, %v11183_v28  ;;  %8066 = vpow2.f32 %v4316_v58 }
 0x424   : > { %v8043_v4 = vpop.eup %8042  ;;  %v4659_v43 = vsub.f32 2.0, %v4595_v18  ;;  %v4594_v22 = vmul.f32 %v8041_v26, %v11186_v35  ;;  %8068 = vpow2.f32 %v4442_v1  ;;  %v13754_v31 = vand.u32 2147483647, %v13741_v56 }
 0x425   : > { %v11250_v30 = vpop.eup %8044  ;;  %v4836_v2 = vmul.f32 %v11072_v57, %v4708_v38  ;;  %v4643_v34 = vsub.f32 2.0, %v4579_v47  ;;  %v4578_v9 = vmul.f32 %v8043_v4, %v11193_v11  ;;  %8070 = vpow2.f32 %v4410_v0  ;;  %v13742_v0 = vld [vmem:[#allocation22_spill] sm:$0xff] }
 0x426   : > { %v11254_v49 = vpop.eup %8046  ;;  %v4723_v28 = vmul.f32 %v8037_v59, %v4659_v43  ;;  %v4658_v58 = vsub.f32 2.0, %v4594_v22  ;;  %v11257_v62 = vadd.f32 1.0, %v11250_v30  ;;  %8072 = vpow2.f32 %v4440_v8 }
 0x427   : > { %v11259_v18 = vpop.eup %8048  ;;  %v4900_v35 = vsel %vm4772_vm14, %v4708_v38, %v4836_v2  ;;  %v4707_v1 = vmul.f32 %v8039_v14, %v4643_v34  ;;  %v4642_v55 = vsub.f32 2.0, %v4578_v9  ;;  %v11264_v57 = vadd.f32 1.0, %v11254_v49 }
 0x428   : > { %v11266_v11 = vpop.eup %8050  ;;  %v11269_v47 = vmul.f32 %v13742_v0, %v4900_v35  ;;  %v4851_v59 = vmul.f32 %v11113_v40, %v4723_v28  ;;  %v4722_v22 = vmul.f32 %v8041_v26, %v4658_v58  ;;  %8074 = vrcp.f32 %v11257_v62 }
 0x429   : > { %v11273_v8 = vpop.eup %8052  ;;  %v4835_v43 = vmul.f32 %v11123_v50, %v4707_v1  ;;  %v4706_v38 = vmul.f32 %v8043_v4, %v4642_v55  ;;  %8076 = vrcp.f32 %v11264_v57  ;;  %v11278_v14 = vadd.f32 1.0, %v11259_v18  ;;  %v13744_v55 = vld [vmem:[#allocation42_spill] sm:$0xff] }
 0x42a   : > { %13743 = vst [vmem:[#allocation271_spill] sm:$0xff] %v11269_v47  ;;  %v11280_v2 = vpop.eup %8054  ;;  %5102 = vrot.lane.b32.xlu1 %v11269_v47, %s8296_s28  ;;  %v4915_v40 = vsel %vm4787_vm9, %v4723_v28, %v4851_v59  ;;  %v4850_v26 = vmul.f32 %v11129_v63, %v4722_v22  ;;  %v11288_v34 = vadd.f32 1.0, %v11266_v11  ;;  %v11291_v4 = vadd.f32 1.0, %v11273_v8  ;;  %v13746_v63 = vld [vmem:[#allocation21_spill] sm:$0xff]  ;;  %v13753_v47 = vld [vmem:[#allocation248_spill] sm:$0xff] }
 0x42b   : > { %v11293_v50 = vpop.eup %8056  ;;  %v11296_v9 = vmul.f32 %v13744_v55, %v4915_v40  ;;  %v4899_v58 = vsel %vm4771_vm4, %v4707_v1, %v4835_v43  ;;  %v4834_v35 = vmul.f32 %v11134_v13, %v4706_v38  ;;  %8078 = vrcp.f32 %v11278_v14  ;;  %v13748_v13 = vld [vmem:[#allocation41_spill] sm:$0xff] }
 0x42c   : > { %v11302_v28 = vpop.eup %8058  ;;  %v11305_v59 = vmul.f32 %v13746_v63, %v4899_v58  ;;  %v4914_v17 = vsel %vm4786_vm10, %v4722_v22, %v4850_v26  ;;  %8080 = vrcp.f32 %v11288_v34  ;;  %v11311_v40 = vadd.f32 1.0, %v11280_v2  ;;  %v13750_v58 = vld [vmem:[#allocation20_spill] sm:$0xff] }
 0x42d   : > { %13745 = vst [vmem:[#allocation272_spill] sm:$0xff] %v11296_v9  ;;  %v11313_v55 = vpop.eup %8060  ;;  %5132 = vrot.lane.b32.xlu0 %v11296_v9, %s8296_s28  ;;  %v11318_v1 = vmul.f32 %v13748_v13, %v4914_v17  ;;  %v4898_v43 = vsel %vm4770_vm11, %v4706_v38, %v4834_v35  ;;  %8082 = vrcp.f32 %v11291_v4  ;;  %v11324_v22 = vadd.f32 1.0, %v11293_v50 }
 0x42e   : > { %13747 = vst [vmem:[#allocation205_spill] sm:$0xff] %v11305_v59  ;;  %v11326_v26 = vpop.eup %8062  ;;  %5100 = vrot.lane.b32.xlu1 %v11305_v59, %s8296_s28  ;;  %v11331_v44 = vmul.f32 %v13750_v58, %v4898_v43  ;;  %8084 = vrcp.f32 %v11311_v40  ;;  %v11335_v17 = vadd.f32 1.0, %v11302_v28  ;;  %v11338_v38 = vadd.f32 1.0, %v11313_v55 }
 0x42f   : > { %13749 = vst [vmem:[#allocation284_spill] sm:$0xff] %v11318_v1  ;;  %v11340_v35 = vpop.eup %8064  ;;  %8086 = vrcp.f32 %v11324_v22  ;;  %v11344_v13 = vadd.f32 1.0, %v11326_v26  ;;  %v13752_v59 = vand.u32 2147483647, %v13740_v3  ;;  %v4233_v33 = vand.u32 2147483647, %v13753_v47 }
 0x430   : > { %13751 = vst [vmem:[#allocation285_spill] sm:$0xff] %v11331_v44  ;;  %v11346_v5 = vpop.eup %8066  ;;  %8088 = vrcp.f32 %v11335_v17  ;;  %v11350_v43 = vadd.f32 1.0, %v11340_v35  ;;  %v4313_v45 = vsub.f32 0.0, %v13754_v31  ;;  %v4248_v0 = vand.u32 2147483647, %v13755_v10 }
 0x431   : > { %v4298_v9 = vsub.f32 0.0, %v13752_v59  ;;  %v11355_v42 = vpop.eup %8068  ;;  %5130 = vrot.lane.b32.xlu0 %v11318_v1, %s8296_s28  ;;  %8090 = vrcp.f32 %v11338_v38  ;;  %v11361_v52 = vadd.f32 1.0, %v11346_v5  ;;  %v4297_v1 = vsub.f32 0.0, %v4233_v33 }
 0x432   : > { %v11366_v41 = vpop.eup %8070  ;;  %5098 = vrot.lane.b32.xlu1 %v11331_v44, %s8296_s28  ;;  %8092 = vrcp.f32 %v11344_v13  ;;  %v11372_v59 = vadd.f32 1.0, %v11355_v42  ;;  %vm4785_vm8 = vcmp.ge.f32.partialorder %v13757_v12, 0.0  ;;  %v4312_v63 = vsub.f32 0.0, %v4248_v0  ;;  %v13799_v12 = vld [vmem:[#allocation261_spill] sm:$0xff] }
 0x433   : > { %v11374_v6 = vpop.eup %8072  ;;  %8094 = vrcp.f32 %v11350_v43  ;;  %v11379_v31 = vadd.f32 1.0, %v11366_v41  ;;  %v4232_v46 = vand.u32 2147483647, %v13758_v48  ;;  %vm4769_vm15 = vcmp.ge.f32.partialorder %v13759_v16, 0.0  ;;  %v13830_v16 = vld [vmem:[#allocation255_spill] sm:$0xff] }
 0x434   : > { %13756 = vst [vmem:[#allocation286_spill] sm:$0xff] %v11374_v6  ;;  %8096 = vrcp.f32 %v11361_v52  ;;  %v11385_v44 = vadd.f32 1.0, %v11374_v6  ;;  %v4408_v33 = vmul.f32 1.442695, %v4298_v9  ;;  %v4438_v20 = vmul.f32 1.442695, %v4313_v45 }
 0x435   : > { %v8075_v58 = vpop.eup %8074  ;;  %8098 = vrcp.f32 %v11372_v59  ;;  %v4296_v23 = vsub.f32 0.0, %v4232_v46  ;;  %v4247_v29 = vand.u32 2147483647, %v13760_v7  ;;  %vm4784_vm0 = vcmp.ge.f32.partialorder %v13761_v19, 0.0  ;;  %v13763_v9 = vld [vmem:[#allocation209_spill] sm:$0xff]  ;;  %v13764_v7 = vld [vmem:[#allocation222_spill] sm:$0xff] }
 0x436   : > { %v8077_v15 = vpop.eup %8076  ;;  %v4593_v0 = vmul.f32 %v8075_v58, %v11257_v62  ;;  %8100 = vrcp.f32 %v11379_v31  ;;  %v4406_v51 = vmul.f32 1.442695, %v4297_v1  ;;  %v4231_v39 = vand.u32 2147483647, %v13762_v60 }
 0x437   : > { %v4577_v48 = vmul.f32 %v8077_v15, %v11264_v57  ;;  %vm4768_vm1 = vcmp.ge.f32.partialorder %v13763_v9, 0.0  ;;  %8102 = vrcp.f32 %v11385_v44  ;;  %v4436_v45 = vmul.f32 1.442695, %v4312_v63 }
 0x438   : > { %v8079_v46 = vpop.eup %8078  ;;  %v4657_v10 = vsub.f32 2.0, %v4593_v0  ;;  %vm4783_vm2 = vcmp.ge.f32.partialorder %v13764_v7, 0.0  ;;  %8104 = vpow2.f32 %v4408_v33  ;;  %v4404_v62 = vmul.f32 1.442695, %v4296_v23 }
 0x439   : > { %v8081_v47 = vpop.eup %8080  ;;  %v4641_v56 = vsub.f32 2.0, %v4577_v48  ;;  %v4592_v3 = vmul.f32 %v8079_v46, %v11278_v14  ;;  %vm4767_vm7 = vcmp.ge.f32.partialorder %v13707_v24, 0.0  ;;  %8106 = vpow2.f32 %v4438_v20  ;;  %v13831_v24 = vld [vmem:[#allocation74_spill] sm:$0xff] }
 0x43a   : > { %v11399_v1 = vsub.f32 0.0, %v4247_v29  ;;  %v8083_v57 = vpop.eup %8082  ;;  %v4721_v60 = vmul.f32 %v8075_v58, %v4657_v10  ;;  %v4576_v37 = vmul.f32 %v8081_v47, %v11288_v34  ;;  %8108 = vpow2.f32 %v4406_v51 }
 0x43b   : > { %v11402_v63 = vsub.f32 0.0, %v4231_v39  ;;  %v8085_v0 = vpop.eup %8084  ;;  %v4705_v6 = vmul.f32 %v8077_v15, %v4641_v56  ;;  %v4656_v33 = vsub.f32 2.0, %v4592_v3  ;;  %v4591_v23 = vmul.f32 %v8083_v57, %v11291_v4 }
 0x43c   : > { %vm4782_vm13 = vcmp.ge.f32.partialorder %v13711_v36, 0.0  ;;  %8110 = vpow2.f32 %v4436_v45  ;;  %v8087_v48 = vpop.eup %8086  ;;  %v4849_v20 = vmul.f32 %v11250_v30, %v4721_v60  ;;  %v4640_v29 = vsub.f32 2.0, %v4576_v37  ;;  %v13811_v36 = vld [vmem:[#allocation249_spill] sm:$0xff] }
 0x43d   : > { %v4575_v14 = vmul.f32 %v8085_v0, %v11311_v40  ;;  %vm4766_vm3 = vcmp.ge.f32.partialorder %v13721_v54, 0.0  ;;  %8112 = vpow2.f32 %v4404_v62  ;;  %v8089_v51 = vpop.eup %8088  ;;  %v4833_v39 = vmul.f32 %v11254_v49, %v4705_v6  ;;  %v13765_v40 = vld [vmem:[#allocation40_spill] sm:$0xff] }
 0x43e   : > { %v4720_v10 = vmul.f32 %v8079_v46, %v4656_v33  ;;  %v4655_v15 = vsub.f32 2.0, %v4591_v23  ;;  %v4590_v3 = vmul.f32 %v8087_v48, %v11324_v22  ;;  %v8091_v56 = vpop.eup %8090  ;;  %v4913_v34 = vsel %vm4785_vm8, %v4721_v60, %v4849_v20  ;;  %v13767_v33 = vld [vmem:[#allocation19_spill] sm:$0xff] }
 0x43f   : > { %v4704_v4 = vmul.f32 %v8081_v47, %v4640_v29  ;;  %v4639_v58 = vsub.f32 2.0, %v4575_v14  ;;  %v4574_v30 = vmul.f32 %v8089_v51, %v11335_v17  ;;  %vm4781_vm5 = vcmp.ge.f32.partialorder %v13724_v32, 0.0  ;;  %v8093_v37 = vpop.eup %8092 }
 0x440   : > { %v11416_v45 = vmul.f32 %v13765_v40, %v4913_v34  ;;  %v4897_v49 = vsel %vm4769_vm15, %v4705_v6, %v4833_v39  ;;  %v4848_v46 = vmul.f32 %v11259_v18, %v4720_v10  ;;  %v4719_v22 = vmul.f32 %v8083_v57, %v4655_v15  ;;  %v8095_v62 = vpop.eup %8094 }
 0x441   : > { %v11422_v23 = vmul.f32 %v13767_v33, %v4897_v49  ;;  %v4832_v60 = vmul.f32 %v11266_v11, %v4704_v4  ;;  %v4703_v47 = vmul.f32 %v8085_v0, %v4639_v58  ;;  %v4654_v17 = vsub.f32 2.0, %v4590_v3  ;;  %v8097_v20 = vpop.eup %8096  ;;  %v13769_v11 = vld [vmem:[#allocation39_spill] sm:$0xff]  ;;  %v13771_v3 = vld [vmem:[#allocation18_spill] sm:$0xff] }
 0x442   : > { %13766 = vst [vmem:[#allocation287_spill] sm:$0xff] %v11416_v45  ;;  %5128 = vrot.lane.b32.xlu0 %v11416_v45, %s8296_s28  ;;  %v4912_v29 = vsel %vm4784_vm0, %v4720_v10, %v4848_v46  ;;  %v4847_v6 = vmul.f32 %v11273_v8, %v4719_v22  ;;  %v4638_v14 = vsub.f32 2.0, %v4574_v30  ;;  %v4589_v18 = vmul.f32 %v8091_v56, %v11338_v38  ;;  %v8099_v57 = vpop.eup %8098  ;;  %v13773_v46 = vld [vmem:[#allocation38_spill] sm:$0xff] }
 0x443   : > { %13768 = vst [vmem:[#allocation288_spill] sm:$0xff] %v11422_v23  ;;  %vm4765_vm6 = vcmp.ge.f32.partialorder %v13725_v21, 0.0  ;;  %5096 = vrot.lane.b32.xlu1 %v11422_v23, %s8296_s28  ;;  %v11435_v0 = vmul.f32 %v13769_v11, %v4912_v29  ;;  %v4896_v39 = vsel %vm4768_vm1, %v4704_v4, %v4832_v60  ;;  %v4831_v15 = vmul.f32 %v11280_v2, %v4703_v47  ;;  %v8101_v8 = vpop.eup %8100 }
 0x444   : > { %v4718_v10 = vmul.f32 %v8087_v48, %v4654_v17  ;;  %vm4780_vm14 = vcmp.ge.f32.partialorder %v13727_v61, 0.0  ;;  %v11442_v38 = vmul.f32 %v13771_v3, %v4896_v39  ;;  %v4911_v34 = vsel %vm4783_vm2, %v4719_v22, %v4847_v6  ;;  %v8103_v49 = vpop.eup %8102 }
 0x445   : > { %13770 = vst [vmem:[#allocation289_spill] sm:$0xff] %v11435_v0  ;;  %v4702_v58 = vmul.f32 %v8089_v51, %v4638_v14  ;;  %v4653_v30 = vsub.f32 2.0, %v4589_v18  ;;  %v11447_v29 = vmul.f32 %v13773_v46, %v4911_v34  ;;  %v4895_v4 = vsel %vm4767_vm7, %v4703_v47, %v4831_v15  ;;  %v11454_v60 = vpop.eup %8104  ;;  %v13775_v51 = vld [vmem:[#allocation17_spill] sm:$0xff] }
 0x446   : > { %13772 = vst [vmem:[#allocation290_spill] sm:$0xff] %v11442_v38  ;;  %v4846_v2 = vmul.f32 %v11293_v50, %v4718_v10  ;;  %v4573_v48 = vmul.f32 %v8093_v37, %v11344_v13  ;;  %vm4764_vm9 = vcmp.ge.f32.partialorder %v13729_v27, 0.0  ;;  %5126 = vrot.lane.b32.xlu0 %v11435_v0, %s8296_s28  ;;  %v11459_v22 = vmul.f32 %v13775_v51, %v4895_v4  ;;  %v11463_v47 = vpop.eup %8106  ;;  %v13777_v4 = vld [vmem:[#allocation31_spill] sm:$0xff] }
 0x447   : > { %13774 = vst [vmem:[#allocation291_spill] sm:$0xff] %v11447_v29  ;;  %v4830_v17 = vmul.f32 %v11302_v28, %v4702_v58  ;;  %v4717_v6 = vmul.f32 %v8091_v56, %v4653_v30  ;;  %v4588_v14 = vmul.f32 %v8095_v62, %v11350_v43  ;;  %5094 = vrot.lane.b32.xlu1 %v11442_v38, %s8296_s28  ;;  %v11471_v15 = vpop.eup %8108  ;;  %v4434_v34 = vmul.f32 1.442695, %v11399_v1 }
 0x448   : > { %13776 = vst [vmem:[#allocation292_spill] sm:$0xff] %v11459_v22  ;;  %v4910_v50 = vsel %vm4782_vm13, %v4718_v10, %v4846_v2  ;;  %v4637_v13 = vsub.f32 2.0, %v4573_v48  ;;  %v4572_v18 = vmul.f32 %v8097_v20, %v11361_v52  ;;  %v4635_v39 = vmul.f32 %v8099_v57, %v11372_v59 }
 0x449   : > { %v4894_v28 = vsel %vm4766_vm3, %v4702_v58, %v4830_v17  ;;  %v4845_v43 = vmul.f32 %v11313_v55, %v4717_v6  ;;  %v4652_v56 = vsub.f32 2.0, %v4588_v14  ;;  %v11477_v30 = vpop.eup %8110  ;;  %v11480_v40 = vmul.f32 %v13777_v4, %v4910_v50  ;;  %v13779_v17 = vld [vmem:[#allocation15_spill] sm:$0xff]  ;;  %v13800_v4 = vld [vmem:[#allocation245_spill] sm:$0xff] }
 0x44a   : > { %v4701_v10 = vmul.f32 %v8093_v37, %v4637_v13  ;;  %v4636_v2 = vsub.f32 2.0, %v4572_v18  ;;  %v4699_v52 = vsub.f32 2.0, %v4635_v39  ;;  %v11482_v48 = vpop.eup %8112  ;;  %5124 = vrot.lane.b32.xlu0 %v11447_v29, %s8296_s28  ;;  %v4619_v58 = vmul.f32 %v8101_v8, %v11379_v31  ;;  %v13781_v31 = vld [vmem:[#allocation30_spill] sm:$0xff] }
 0x44b   : > { %13778 = vst [vmem:[#allocation293_spill] sm:$0xff] %v11480_v40  ;;  %v4909_v59 = vsel %vm4781_vm5, %v4717_v6, %v4845_v43  ;;  %v4716_v55 = vmul.f32 %v8095_v62, %v4652_v56  ;;  %v4634_v1 = vmul.f32 %v8103_v49, %v11385_v44  ;;  %5092 = vrot.lane.b32.xlu1 %v11459_v22, %s8296_s28  ;;  %v11498_v62 = vadd.f32 1.0, %v11454_v60  ;;  %v13783_v56 = vld [vmem:[#allocation13_spill] sm:$0xff] }
 0x44c   : > { %v11493_v37 = vmul.f32 %v13779_v17, %v4894_v28  ;;  %v4829_v14 = vmul.f32 %v11326_v26, %v4701_v10  ;;  %v4700_v50 = vmul.f32 %v8097_v20, %v4636_v2  ;;  %v4763_v13 = vmul.f32 %v8099_v57, %v4699_v52 }
 0x44d   : > { %v4844_v18 = vmul.f32 %v11340_v35, %v4716_v55  ;;  %v4683_v39 = vsub.f32 2.0, %v4619_v58  ;;  %v4698_v11 = vsub.f32 2.0, %v4634_v1  ;;  %v11501_v6 = vmul.f32 %v13781_v31, %v4909_v59  ;;  %v13787_v58 = vld [vmem:[#allocation286_spill] sm:$0xff]  ;;  %v13809_v31 = vld [vmem:[#allocation243_spill] sm:$0xff] }
 0x44e   : > { %13780 = vst [vmem:[#allocation294_spill] sm:$0xff] %v11493_v37  ;;  %v4893_v44 = vsel %vm4765_vm6, %v4701_v10, %v4829_v14  ;;  %v4828_v28 = vmul.f32 %v11346_v5, %v4700_v50  ;;  %v11507_v43 = vadd.f32 1.0, %v11463_v47  ;;  %5122 = vrot.lane.b32.xlu0 %v11480_v40, %s8296_s28  ;;  %v4891_v35 = vmul.f32 %v11355_v42, %v4763_v13  ;;  %v13785_v5 = vld [vmem:[#allocation29_spill] sm:$0xff]  ;;  %v13789_v14 = vld [vmem:[#allocation12_spill] sm:$0xff] }
 0x44f   : > { %13782 = vst [vmem:[#allocation295_spill] sm:$0xff] %v11501_v6  ;;  %v4908_v26 = vsel %vm4780_vm14, %v4716_v55, %v4844_v18  ;;  %v4747_v20 = vmul.f32 %v8101_v8, %v4683_v39  ;;  %v4762_v57 = vmul.f32 %v8103_v49, %v4698_v11  ;;  %5090 = vrot.lane.b32.xlu1 %v11493_v37, %s8296_s28  ;;  %vm4827_vm4 = vcmp.ge.f32.partialorder %v13731_v25, 0.0  ;;  %v13791_v18 = vld [vmem:[#allocation267_spill] sm:$0xff] }
 0x450   : > { %v11517_v10 = vmul.f32 %v13783_v56, %v4893_v44  ;;  %vm4811_vm10 = vcmp.ge.f32.partialorder %v13734_v53, 0.0  ;;  %8114 = vrcp.f32 %v11498_v62  ;;  %v11523_v2 = vmul.f32 %v13785_v5, %v4908_v26  ;;  %v13792_v44 = vld [vmem:[#allocation247_spill] sm:$0xff] }
 0x451   : > { %v4892_v42 = vsel %vm4764_vm9, %v4700_v50, %v4828_v28  ;;  %v4875_v11 = vmul.f32 %v11366_v41, %v4747_v20  ;;  %v4402_v8 = vmul.f32 1.442695, %v11402_v63  ;;  %8116 = vrcp.f32 %v11507_v43  ;;  %v13788_v41 = vld [vmem:[#allocation263_spill] sm:$0xff]  ;;  %v13793_v28 = vld [vmem:[#allocation78_spill] sm:$0xff] }
 0x452   : > { %13784 = vst [vmem:[#allocation296_spill] sm:$0xff] %v11517_v10  ;;  %13786 = vst [vmem:[#allocation297_spill] sm:$0xff] %v11523_v2  ;;  %v11531_v49 = vadd.f32 1.0, %v11471_v15  ;;  %v11534_v52 = vadd.f32 1.0, %v11477_v30  ;;  %v11537_v59 = vadd.f32 1.0, %v11482_v48  ;;  %5120 = vrot.lane.b32.xlu0 %v11501_v6, %s8296_s28  ;;  %v4955_v55 = vsel %vm4827_vm4, %v4763_v13, %v4891_v35  ;;  %v13795_v35 = vld [vmem:[#allocation260_spill] sm:$0xff] }
 0x453   : > { %v4890_v1 = vmul.f32 %v13787_v58, %v4762_v57  ;;  %8118 = vpow2.f32 %v4434_v34  ;;  %v4246_v63 = vand.u32 2147483647, %v13788_v41  ;;  %5088 = vrot.lane.b32.xlu1 %v11517_v10, %s8296_s28  ;;  %v11546_v50 = vmul.f32 %v13789_v14, %v4892_v42  ;;  %v13796_v58 = vld [vmem:[#allocation244_spill] sm:$0xff]  ;;  %v13801_v10 = vld [vmem:[#allocation77_spill] sm:$0xff] }
 0x454   : > { %vm4826_vm11 = vcmp.ge.f32.partialorder %v13791_v18, 0.0  ;;  %8120 = vrcp.f32 %v11531_v49  ;;  %v4939_v39 = vsel %vm4811_vm10, %v4747_v20, %v4875_v11  ;;  %v4230_v34 = vand.u32 2147483647, %v13792_v44 }
 0x455   : > { %13790 = vst [vmem:[#allocation286_spill] sm:$0xff] %v11546_v50  ;;  %8122 = vrcp.f32 %v11534_v52  ;;  %v4310_v13 = vsub.f32 0.0, %v4246_v63  ;;  %v11555_v26 = vmul.f32 %v13793_v28, %v4955_v55  ;;  %v4245_v42 = vand.u32 2147483647, %v13795_v35  ;;  %v13797_v63 = vld [vmem:[#allocation28_spill] sm:$0xff] }
 0x456   : > { %8124 = vrcp.f32 %v11537_v59  ;;  %v4229_v25 = vand.u32 2147483647, %v13796_v58  ;;  %5118 = vrot.lane.b32.xlu0 %v11523_v2, %s8296_s28  ;;  %v4954_v18 = vsel %vm4826_vm11, %v4762_v57, %v4890_v1  ;;  %v4294_v11 = vsub.f32 0.0, %v4230_v34 }
 0x457   : > { %13794 = vst [vmem:[#allocation298_spill] sm:$0xff] %v11555_v26  ;;  %8126 = vpow2.f32 %v4402_v8  ;;  %v4432_v20 = vmul.f32 1.442695, %v4310_v13  ;;  %5086 = vrot.lane.b32.xlu1 %v11546_v50, %s8296_s28  ;;  %v11565_v53 = vmul.f32 %v13797_v63, %v4939_v39  ;;  %v4309_v55 = vsub.f32 0.0, %v4245_v42  ;;  %v13803_v13 = vld [vmem:[#allocation258_spill] sm:$0xff] }
 0x458   : > { %v4293_v28 = vsub.f32 0.0, %v4229_v25  ;;  %v4244_v46 = vand.u32 2147483647, %v13799_v12  ;;  %v4400_v19 = vmul.f32 1.442695, %v4294_v11  ;;  %v11570_v2 = vmul.f32 %v13801_v10, %v4954_v18  ;;  %v13804_v25 = vld [vmem:[#allocation242_spill] sm:$0xff] }
 0x459   : > { %13798 = vst [vmem:[#allocation299_spill] sm:$0xff] %v11565_v53  ;;  %8128 = vpow2.f32 %v4432_v20  ;;  %v4228_v7 = vand.u32 2147483647, %v13800_v4  ;;  %v4430_v57 = vmul.f32 1.442695, %v4309_v55  ;;  %v13805_v20 = vld [vmem:[#allocation251_spill] sm:$0xff] }
 0x45a   : > { %13802 = vst [vmem:[#allocation300_spill] sm:$0xff] %v11570_v2  ;;  %v4398_v8 = vmul.f32 1.442695, %v4293_v28  ;;  %v4308_v1 = vsub.f32 0.0, %v4244_v46  ;;  %5212 = vrot.lane.b32.xlu0 %v11555_v26, %s8296_s28  ;;  %8130 = vpow2.f32 %v4400_v19  ;;  %v4243_v34 = vand.u32 2147483647, %v13803_v13 }
 0x45b   : > { %v4292_v39 = vsub.f32 0.0, %v4228_v7  ;;  %v4227_v42 = vand.u32 2147483647, %v13804_v25  ;;  %5180 = vrot.lane.b32.xlu1 %v11565_v53, %s8296_s28  ;;  %vm4810_vm8 = vcmp.ge.f32.partialorder %v13805_v20, 0.0  ;;  %8132 = vpow2.f32 %v4430_v57  ;;  %v13806_v11 = vld [vmem:[#allocation259_spill] sm:$0xff]  ;;  %v13807_v7 = vld [vmem:[#allocation264_spill] sm:$0xff] }
 0x45c   : > { %v4428_v18 = vmul.f32 1.442695, %v4308_v1  ;;  %v4242_v55 = vand.u32 2147483647, %v13806_v11  ;;  %8134 = vpow2.f32 %v4398_v8  ;;  %v4307_v10 = vsub.f32 0.0, %v4243_v34  ;;  %v13808_v53 = vld [vmem:[#allocation248_spill] sm:$0xff] }
 0x45d   : > { %v8115_v28 = vpop.eup %8114  ;;  %v4396_v46 = vmul.f32 1.442695, %v4292_v39  ;;  %v4291_v63 = vsub.f32 0.0, %v4227_v42  ;;  %vm4825_vm15 = vcmp.ge.f32.partialorder %v13807_v7, 0.0  ;;  %vm4809_vm0 = vcmp.ge.f32.partialorder %v13808_v53, 0.0  ;;  %v13810_v42 = vld [vmem:[#allocation265_spill] sm:$0xff] }
 0x45e   : > { %v4618_v19 = vmul.f32 %v8115_v28, %v11498_v62  ;;  %8136 = vpow2.f32 %v4428_v18  ;;  %v4306_v26 = vsub.f32 0.0, %v4242_v55  ;;  %v8117_v50 = vpop.eup %8116  ;;  %5210 = vrot.lane.b32.xlu0 %v11570_v2, %s8296_s28  ;;  %v4426_v57 = vmul.f32 1.442695, %v4307_v10  ;;  %v13812_v10 = vld [vmem:[#allocation256_spill] sm:$0xff] }
 0x45f   : > { %8138 = vpow2.f32 %v4396_v46  ;;  %v4394_v1 = vmul.f32 1.442695, %v4291_v63  ;;  %v4226_v8 = vand.u32 2147483647, %v13809_v31  ;;  %v4633_v62 = vmul.f32 %v8117_v50, %v11507_v43 }
 0x460   : > { %v11586_v39 = vpop.eup %8118  ;;  %v4682_v34 = vsub.f32 2.0, %v4618_v19  ;;  %vm4824_vm1 = vcmp.ge.f32.partialorder %v13810_v42, 0.0  ;;  %v4424_v18 = vmul.f32 1.442695, %v4306_v26  ;;  %vm4808_vm2 = vcmp.ge.f32.partialorder %v13811_v36, 0.0  ;;  %v13826_v36 = vld [vmem:[#allocation254_spill] sm:$0xff] }
 0x461   : > { %v8121_v55 = vpop.eup %8120  ;;  %v11592_v2 = vadd.f32 1.0, %v11586_v39  ;;  %8140 = vpow2.f32 %v4426_v57  ;;  %v4290_v46 = vsub.f32 0.0, %v4226_v8  ;;  %v4241_v63 = vand.u32 2147483647, %v13812_v10 }
 0x462   : > { %v8123_v6 = vpop.eup %8122  ;;  %v4746_v37 = vmul.f32 %v8115_v28, %v4682_v34  ;;  %v4697_v5 = vsub.f32 2.0, %v4633_v62  ;;  %v4617_v19 = vmul.f32 %v8121_v55, %v11531_v49  ;;  %8142 = vpow2.f32 %v4394_v1 }
 0x463   : > { %v8125_v43 = vpop.eup %8124  ;;  %v4632_v32 = vmul.f32 %v8123_v6, %v11534_v52  ;;  %8144 = vrcp.f32 %v11592_v2  ;;  %v4392_v26 = vmul.f32 1.442695, %v4290_v46  ;;  %v4305_v40 = vsub.f32 0.0, %v4241_v63 }
 0x464   : > { %v11598_v22 = vpop.eup %8126  ;;  %v4874_v57 = vmul.f32 %v11454_v60, %v4746_v37  ;;  %v4761_v8 = vmul.f32 %v8117_v50, %v4697_v5  ;;  %v4681_v61 = vsub.f32 2.0, %v4617_v19  ;;  %v4616_v29 = vmul.f32 %v8125_v43, %v11537_v59  ;;  %v13813_v60 = vld [vmem:[#allocation62_spill] sm:$0xff] }
 0x465   : > { %v4696_v28 = vsub.f32 2.0, %v4632_v32  ;;  %v11603_v34 = vadd.f32 1.0, %v11598_v22  ;;  %8146 = vpow2.f32 %v4424_v18  ;;  %v4422_v49 = vmul.f32 1.442695, %v4305_v40 }
 0x466   : > { %v11605_v1 = vpop.eup %8128  ;;  %v4938_v52 = vsel %vm4810_vm8, %v4746_v37, %v4874_v57  ;;  %v4889_v62 = vmul.f32 %v11463_v47, %v4761_v8  ;;  %v4745_v46 = vmul.f32 %v8121_v55, %v4681_v61  ;;  %v4680_v63 = vsub.f32 2.0, %v4616_v29  ;;  %v13815_v29 = vld [vmem:[#allocation76_spill] sm:$0xff] }
 0x467   : > { %v11611_v5 = vmul.f32 %v13813_v60, %v4938_v52  ;;  %v4760_v50 = vmul.f32 %v8123_v6, %v4696_v28  ;;  %8148 = vrcp.f32 %v11603_v34  ;;  %v11615_v32 = vadd.f32 1.0, %v11605_v1  ;;  %v11617_v59 = vpop.eup %8130 }
 0x468   : > { %v4953_v40 = vsel %vm4825_vm15, %v4761_v8, %v4889_v62  ;;  %v4873_v37 = vmul.f32 %v11471_v15, %v4745_v46  ;;  %v4744_v18 = vmul.f32 %v8125_v43, %v4680_v63  ;;  %8150 = vpow2.f32 %v4392_v26  ;;  %v11622_v61 = vpop.eup %8132  ;;  %v13819_v62 = vld [vmem:[#allocation75_spill] sm:$0xff] }
 0x469   : > { %13814 = vst [vmem:[#allocation301_spill] sm:$0xff] %v11611_v5  ;;  %5178 = vrot.lane.b32.xlu1 %v11611_v5, %s8296_s28  ;;  %v11627_v47 = vmul.f32 %v13815_v29, %v4953_v40  ;;  %v4888_v6 = vmul.f32 %v11477_v30, %v4760_v50  ;;  %8152 = vrcp.f32 %v11615_v32  ;;  %v11632_v55 = vadd.f32 1.0, %v11617_v59  ;;  %v11634_v19 = vpop.eup %8134  ;;  %v13817_v30 = vld [vmem:[#allocation27_spill] sm:$0xff] }
 0x46a   : > { %v4937_v15 = vsel %vm4809_vm0, %v4745_v46, %v4873_v37  ;;  %v4872_v43 = vmul.f32 %v11482_v48, %v4744_v18  ;;  %v11640_v26 = vadd.f32 1.0, %v11622_v61  ;;  %8154 = vpow2.f32 %v4422_v49 }
 0x46b   : > { %13816 = vst [vmem:[#allocation302_spill] sm:$0xff] %v11627_v47  ;;  %v11642_v57 = vpop.eup %8136  ;;  %5208 = vrot.lane.b32.xlu0 %v11627_v47, %s8296_s28  ;;  %v11647_v8 = vmul.f32 %v13817_v30, %v4937_v15  ;;  %v4952_v28 = vsel %vm4824_vm1, %v4760_v50, %v4888_v6  ;;  %8156 = vrcp.f32 %v11632_v55  ;;  %v11653_v52 = vadd.f32 1.0, %v11634_v19  ;;  %v13821_v50 = vld [vmem:[#allocation61_spill] sm:$0xff] }
 0x46c   : > { %v11655_v48 = vpop.eup %8138  ;;  %v11658_v49 = vmul.f32 %v13819_v62, %v4952_v28  ;;  %v4936_v46 = vsel %vm4808_vm2, %v4744_v18, %v4872_v43  ;;  %8158 = vrcp.f32 %v11640_v26  ;;  %v11664_v63 = vadd.f32 1.0, %v11642_v57  ;;  %v13823_v18 = vld [vmem:[#allocation240_spill] sm:$0xff]  ;;  %v13824_v43 = vld [vmem:[#allocation257_spill] sm:$0xff] }
 0x46d   : > { %13818 = vst [vmem:[#allocation303_spill] sm:$0xff] %v11647_v8  ;;  %5176 = vrot.lane.b32.xlu1 %v11647_v8, %s8296_s28  ;;  %v11669_v40 = vmul.f32 %v13821_v50, %v4936_v46  ;;  %8160 = vrcp.f32 %v11653_v52  ;;  %v11673_v37 = vadd.f32 1.0, %v11655_v48  ;;  %v4225_v15 = vand.u32 2147483647, %v13823_v18  ;;  %v13825_v62 = vld [vmem:[#allocation241_spill] sm:$0xff] }
 0x46e   : > { %13820 = vst [vmem:[#allocation304_spill] sm:$0xff] %v11658_v49  ;;  %v11675_v6 = vpop.eup %8140  ;;  %8162 = vrcp.f32 %v11664_v63  ;;  %v4240_v28 = vand.u32 2147483647, %v13824_v43  ;;  %v4224_v7 = vand.u32 2147483647, %v13825_v62  ;;  %vm4822_vm3 = vcmp.ge.f32.partialorder %v13788_v41, 0.0 }
 0x46f   : > { %13822 = vst [vmem:[#allocation305_spill] sm:$0xff] %v11669_v40  ;;  %v11680_v29 = vpop.eup %8142  ;;  %5206 = vrot.lane.b32.xlu0 %v11658_v49, %s8296_s28  ;;  %8164 = vrcp.f32 %v11673_v37  ;;  %v11686_v46 = vadd.f32 1.0, %v11675_v6  ;;  %v4289_v30 = vsub.f32 0.0, %v4225_v15  ;;  %v4239_v49 = vand.u32 2147483647, %v13826_v36 }
 0x470   : > { %v8145_v42 = vpop.eup %8144  ;;  %v11690_v60 = vadd.f32 1.0, %v11680_v29  ;;  %v4304_v20 = vsub.f32 0.0, %v4240_v28  ;;  %v4288_v53 = vsub.f32 0.0, %v4224_v7  ;;  %vm4806_vm5 = vcmp.ge.f32.partialorder %v13792_v44, 0.0 }
 0x471   : > { %5174 = vrot.lane.b32.xlu1 %v11669_v40, %s8296_s28  ;;  %v4631_v50 = vmul.f32 %v8145_v42, %v11592_v2  ;;  %8166 = vrcp.f32 %v11686_v46  ;;  %v4390_v47 = vmul.f32 1.442695, %v4289_v30  ;;  %v13827_v40 = vld [vmem:[#allocation262_spill] sm:$0xff]  ;;  %v4303_v7 = vsub.f32 0.0, %v4239_v49 }
 0x472   : > { %v11697_v8 = vpop.eup %8146  ;;  %8168 = vrcp.f32 %v11690_v60  ;;  %v4420_v5 = vmul.f32 1.442695, %v4304_v20  ;;  %v4388_v28 = vmul.f32 1.442695, %v4288_v53  ;;  %vm4823_vm7 = vcmp.ge.f32.partialorder %v13827_v40, 0.0  ;;  %v13828_v2 = vld [vmem:[#allocation246_spill] sm:$0xff] }
 0x473   : > { %v4695_v38 = vsub.f32 2.0, %v4631_v50  ;;  %v11701_v15 = vadd.f32 1.0, %v11697_v8  ;;  %vm4807_vm13 = vcmp.ge.f32.partialorder %v13828_v2, 0.0  ;;  %8170 = vpow2.f32 %v4390_v47  ;;  %v13829_v30 = vld [vmem:[#allocation238_spill] sm:$0xff] }
 0x474   : > { %v8149_v0 = vpop.eup %8148  ;;  %v4223_v50 = vand.u32 2147483647, %v13829_v30  ;;  %vm4821_vm6 = vcmp.ge.f32.partialorder %v13795_v35, 0.0  ;;  %vm4805_vm14 = vcmp.ge.f32.partialorder %v13796_v58, 0.0  ;;  %v4238_v51 = vand.u32 2147483647, %v13830_v16 }
 0x475   : > { %v11705_v23 = vpop.eup %8150  ;;  %v4759_v45 = vmul.f32 %v8145_v42, %v4695_v38  ;;  %v4615_v33 = vmul.f32 %v8149_v0, %v11603_v34  ;;  %8172 = vrcp.f32 %v11701_v15  ;;  %vm4820_vm9 = vcmp.ge.f32.partialorder %v13799_v12, 0.0 }
 0x476   : > { %v8153_v20 = vpop.eup %8152  ;;  %v11712_v53 = vadd.f32 1.0, %v11705_v23  ;;  %8174 = vpow2.f32 %v4420_v5  ;;  %v4418_v5 = vmul.f32 1.442695, %v4303_v7  ;;  %v11735_v7 = vsub.f32 0.0, %v4223_v50 }
 0x477   : > { %v11715_v47 = vpop.eup %8154  ;;  %v4887_v49 = vmul.f32 %v11586_v39, %v4759_v45  ;;  %v4679_v38 = vsub.f32 2.0, %v4615_v33  ;;  %v4630_v42 = vmul.f32 %v8153_v20, %v11615_v32  ;;  %8176 = vpow2.f32 %v4388_v28  ;;  %v11744_v50 = vpop.permute.xlu0 %5148 }
 0x478   : > { %v8157_v34 = vpop.eup %8156  ;;  %8178 = vrcp.f32 %v11712_v53  ;;  %v11723_v3 = vadd.f32 1.0, %v11715_v47  ;;  %vm4804_vm4 = vcmp.ge.f32.partialorder %v13800_v4, 0.0  ;;  %vm4819_vm10 = vcmp.ge.f32.partialorder %v13803_v13, 0.0 }
 0x479   : > { %v8159_v9 = vpop.eup %8158  ;;  %v4951_v33 = vsel %vm4823_vm7, %v4759_v45, %v4887_v49  ;;  %v4743_v39 = vmul.f32 %v8149_v0, %v4679_v38  ;;  %v4694_v32 = vsub.f32 2.0, %v4630_v42  ;;  %v4614_v17 = vmul.f32 %v8157_v34, %v11632_v55 }
 0x47a   : > { %v8161_v28 = vpop.eup %8160  ;;  %v11731_v56 = vmul.f32 %v13831_v24, %v4951_v33  ;;  %v4629_v14 = vmul.f32 %v8159_v9, %v11640_v26  ;;  %8180 = vrcp.f32 %v11723_v3  ;;  %v11746_v42 = vsub.f32 0.0, %v4238_v51 }
 0x47b   : > { %v8163_v54 = vpop.eup %8162  ;;  %v4871_v40 = vmul.f32 %v11598_v22, %v4743_v39  ;;  %v4758_v45 = vmul.f32 %v8153_v20, %v4694_v32  ;;  %v4678_v0 = vsub.f32 2.0, %v4614_v17  ;;  %v4613_v49 = vmul.f32 %v8161_v28, %v11653_v52  ;;  %v13833_v32 = vld [vmem:[#allocation25_spill] sm:$0xff] }
 0x47c   : > { %13832 = vst [vmem:[#allocation306_spill] sm:$0xff] %v11731_v56  ;;  %v8165_v55 = vpop.eup %8164  ;;  %5204 = vrot.lane.b32.xlu0 %v11731_v56, %s8296_s28  ;;  %v4693_v38 = vsub.f32 2.0, %v4629_v14  ;;  %v4628_v26 = vmul.f32 %v8163_v54, %v11664_v63  ;;  %8182 = vpow2.f32 %v4418_v5  ;;  %vm4803_vm11 = vcmp.ge.f32.partialorder %v13804_v25, 0.0 }
 0x47d   : > { %v4935_v22 = vsel %vm4807_vm13, %v4743_v39, %v4871_v40  ;;  %v4886_v17 = vmul.f32 %v11605_v1, %v4758_v45  ;;  %v4742_v52 = vmul.f32 %v8157_v34, %v4678_v0  ;;  %v4677_v20 = vsub.f32 2.0, %v4613_v49  ;;  %v11760_v34 = vpop.permute.xlu1 %5146 }
 0x47e   : > { %v8167_v33 = vpop.eup %8166  ;;  %v11752_v24 = vmul.f32 %v13833_v32, %v4935_v22  ;;  %v4757_v14 = vmul.f32 %v8159_v9, %v4693_v38  ;;  %v4692_v63 = vsub.f32 2.0, %v4628_v26  ;;  %v4612_v56 = vmul.f32 %v8165_v55, %v11673_v37  ;;  %v13834_v9 = vld [vmem:[#allocation73_spill] sm:$0xff] }
 0x47f   : > { %v8169_v5 = vpop.eup %8168  ;;  %v4950_v51 = vsel %vm4822_vm3, %v4758_v45, %v4886_v17  ;;  %v4870_v40 = vmul.f32 %v11617_v59, %v4742_v52  ;;  %v4741_v39 = vmul.f32 %v8161_v28, %v4677_v20  ;;  %v4627_v1 = vmul.f32 %v8167_v33, %v11686_v46  ;;  %v13835_v17 = vld [vmem:[#allocation60_spill] sm:$0xff]  ;;  %v11783_v20 = vpop.permute.xlu0 %5116 }
 0x480   : > { %5172 = vrot.lane.b32.xlu1 %v11752_v24, %s8296_s28  ;;  %v11765_v0 = vmul.f32 %v13834_v9, %v4950_v51  ;;  %v4885_v37 = vmul.f32 %v11622_v61, %v4757_v14  ;;  %v4756_v49 = vmul.f32 %v8163_v54, %v4692_v63  ;;  %v4676_v38 = vsub.f32 2.0, %v4612_v56  ;;  %v11768_v26 = vpop.eup %8170 }
 0x481   : > { %v4934_v59 = vsel %vm4806_vm5, %v4742_v52, %v4870_v40  ;;  %v4869_v28 = vmul.f32 %v11634_v19, %v4741_v39  ;;  %v4691_v46 = vsub.f32 2.0, %v4627_v1  ;;  %v4611_v45 = vmul.f32 %v8169_v5, %v11690_v60  ;;  %v13836_v60 = vld [vmem:[#allocation72_spill] sm:$0xff]  ;;  %v11811_v9 = vpop.permute.xlu1 %5114 }
 0x482   : > { %vm4818_vm8 = vcmp.ge.f32.partialorder %v13806_v11, 0.0  ;;  %v8173_v22 = vpop.eup %8172  ;;  %5202 = vrot.lane.b32.xlu0 %v11765_v0, %s8296_s28  ;;  %v11778_v61 = vmul.f32 %v13835_v17, %v4934_v59  ;;  %v4949_v54 = vsel %vm4821_vm6, %v4757_v14, %v4885_v37  ;;  %v4884_v56 = vmul.f32 %v11642_v57, %v4756_v49  ;;  %v13837_v57 = vld [vmem:[#allocation59_spill] sm:$0xff] }
 0x483   : > { %v4740_v52 = vmul.f32 %v8165_v55, %v4676_v38  ;;  %v11785_v19 = vpop.eup %8174  ;;  %v11788_v63 = vmul.f32 %v13836_v60, %v4949_v54  ;;  %v4933_v51 = vsel %vm4805_vm14, %v4741_v39, %v4869_v28  ;;  %v4755_v40 = vmul.f32 %v8167_v33, %v4691_v46  ;;  %v13838_v33 = vld [vmem:[#allocation71_spill] sm:$0xff]  ;;  %v11832_v60 = vpop.permute.xlu0 %5144 }
 0x484   : > { %v4675_v1 = vsub.f32 2.0, %v4611_v45  ;;  %vm4802_vm15 = vcmp.ge.f32.partialorder %v13809_v31, 0.0  ;;  %v11793_v59 = vpop.eup %8176  ;;  %5170 = vrot.lane.b32.xlu1 %v11778_v61, %s8296_s28  ;;  %v11798_v55 = vmul.f32 %v13837_v57, %v4933_v51  ;;  %v4948_v14 = vsel %vm4820_vm9, %v4756_v49, %v4884_v56 }
 0x485   : > { %v4868_v37 = vmul.f32 %v11655_v48, %v4740_v52  ;;  %v4626_v38 = vmul.f32 %v8173_v22, %v11701_v15  ;;  %v8179_v39 = vpop.eup %8178  ;;  %v11805_v28 = vmul.f32 %v13838_v33, %v4948_v14  ;;  %v4883_v46 = vmul.f32 %v11675_v6, %v4755_v40 }
 0x486   : > { %v4739_v45 = vmul.f32 %v8169_v5, %v4675_v1  ;;  %v11809_v54 = vadd.f32 1.0, %v11768_v26  ;;  %5200 = vrot.lane.b32.xlu0 %v11788_v63, %s8296_s28  ;;  %v4610_v15 = vmul.f32 %v8179_v39, %v11712_v53  ;;  %v11819_v56 = vadd.f32 1.0, %v11785_v19 }
 0x487   : > { %v4932_v48 = vsel %vm4804_vm4, %v4740_v52, %v4868_v37  ;;  %v4690_v49 = vsub.f32 2.0, %v4626_v38  ;;  %v8181_v51 = vpop.eup %8180  ;;  %v4947_v6 = vsel %vm4819_vm10, %v4755_v40, %v4883_v46  ;;  %v4386_v1 = vmul.f32 1.442695, %v11735_v7  ;;  %v13839_v52 = vld [vmem:[#allocation24_spill] sm:$0xff] }
 0x488   : > { %v4867_v5 = vmul.f32 %v11680_v29, %v4739_v45  ;;  %8184 = vrcp.f32 %v11809_v54  ;;  %5168 = vrot.lane.b32.xlu1 %v11798_v55, %s8296_s28  ;;  %v11829_v14 = vmul.f32 %v13839_v52, %v4932_v48  ;;  %v4674_v37 = vsub.f32 2.0, %v4610_v15  ;;  %v13841_v15 = vld [vmem:[#allocation58_spill] sm:$0xff] }
 0x489   : > { %v4754_v53 = vmul.f32 %v8173_v22, %v4690_v49  ;;  %v4625_v38 = vmul.f32 %v8181_v51, %v11723_v3  ;;  %v11834_v41 = vpop.eup %8182  ;;  %8186 = vrcp.f32 %v11819_v56  ;;  %v4480_v7 = vadd.f32 1.0, %v11793_v59  ;;  %v13840_v22 = vld [vmem:[#allocation70_spill] sm:$0xff] }
 0x48a   : > { %v4931_v29 = vsel %vm4803_vm11, %v4739_v45, %v4867_v5  ;;  %v4416_v40 = vmul.f32 1.442695, %v11746_v42  ;;  %5198 = vrot.lane.b32.xlu0 %v11805_v28, %s8296_s28  ;;  %v11844_v46 = vmul.f32 %v13840_v22, %v4947_v6  ;;  %v4738_v48 = vmul.f32 %v8179_v39, %v4674_v37  ;;  %v13842_v5 = vld [vmem:[#allocation239_spill] sm:$0xff]  ;;  %v11854_v42 = vpop.permute.xlu1 %5112 }
 0x48b   : > { %v4882_v3 = vmul.f32 %v11697_v8, %v4754_v53  ;;  %v4689_v49 = vsub.f32 2.0, %v4625_v38  ;;  %v11848_v33 = vmul.f32 %v13841_v15, %v4931_v29  ;;  %8188 = vrcp.f32 %v4480_v7  ;;  %v13843_v38 = vld [vmem:[#allocation69_spill] sm:$0xff] }
 0x48c   : > { %v11851_v45 = vadd.f32 1.0, %v11834_v41  ;;  %v4222_v35 = vand.u32 2147483647, %v13842_v5  ;;  %5166 = vrot.lane.b32.xlu1 %v11829_v14, %s8296_s28  ;;  %v4866_v8 = vmul.f32 %v11705_v23, %v4738_v48  ;;  %8190 = vpow2.f32 %v4386_v1  ;;  %v11871_v23 = vpop.permute.xlu0 %5142  ;;  %v13845_v1 = vld [vmem:[#allocation252_spill] sm:$0xff] }
 0x48d   : > { %v4946_v6 = vsel %vm4818_vm8, %v4754_v53, %v4882_v3  ;;  %v4753_v39 = vmul.f32 %v8181_v51, %v4689_v49  ;;  %vm4817_vm0 = vcmp.ge.f32.partialorder %v13812_v10, 0.0  ;;  %v4237_v3 = vand.u32 2147483647, %v13845_v1 }
 0x48e   : > { %8192 = vrcp.f32 %v11851_v45  ;;  %v4286_v37 = vsub.f32 0.0, %v4222_v35  ;;  %5196 = vrot.lane.b32.xlu0 %v11844_v46, %s8296_s28  ;;  %v11866_v29 = vmul.f32 %v13843_v38, %v4946_v6  ;;  %v4930_v22 = vsel %vm4802_vm15, %v4738_v48, %v4866_v8  ;;  %v13846_v35 = vld [vmem:[#allocation57_spill] sm:$0xff]  ;;  %v13848_v6 = vld [vmem:[#allocation236_spill] sm:$0xff]  ;;  %v11880_v48 = vpop.permute.xlu1 %5110 }
 0x48f   : > { %v4881_v53 = vmul.f32 %v11715_v47, %v4753_v39  ;;  %8194 = vpow2.f32 %v4416_v40  ;;  %v11877_v49 = vmul.f32 %v13846_v35, %v4930_v22  ;;  %v4221_v38 = vand.u32 2147483647, %v13848_v6  ;;  %v13849_v47 = vld [vmem:[#allocation68_spill] sm:$0xff] }
 0x490   : > { %13844 = vst [vmem:[#allocation239_spill] sm:$0xff] %v11866_v29  ;;  %v4384_v51 = vmul.f32 1.442695, %v4286_v37  ;;  %5164 = vrot.lane.b32.xlu1 %v11848_v33, %s8296_s28  ;;  %v4301_v13 = vsub.f32 0.0, %v4237_v3  ;;  %v13851_v37 = vld [vmem:[#allocation253_spill] sm:$0xff]  ;;  %vm4801_vm1 = vcmp.ge.f32.partialorder %v13823_v18, 0.0 }
 0x491   : > { %13847 = vst [vmem:[#allocation252_spill] sm:$0xff] %v11877_v49  ;;  %v4945_v12 = vsel %vm4817_vm0, %v4753_v39, %v4881_v53  ;;  %v4285_v8 = vsub.f32 0.0, %v4221_v38  ;;  %v4236_v11 = vand.u32 2147483647, %v13851_v37  ;;  %v11890_v53 = vpop.permute.xlu0 %5140  ;;  %vm4816_vm2 = vcmp.ge.f32.partialorder %v13824_v43, 0.0  ;;  %v13853_v35 = vld [vmem:[#allocation56_spill] sm:$0xff] }
 0x492   : > { %8196 = vpow2.f32 %v4384_v51  ;;  %5194 = vrot.lane.b32.xlu0 %v11866_v29, %s8296_s28  ;;  %v11885_v40 = vmul.f32 %v13849_v47, %v4945_v12  ;;  %v4414_v10 = vmul.f32 1.442695, %v4301_v13  ;;  %v13852_v51 = vld [vmem:[#allocation237_spill] sm:$0xff]  ;;  %v11897_v57 = vpop.permute.xlu1 %5108  ;;  %vm4800_vm7 = vcmp.ge.f32.partialorder %v13825_v62, 0.0 }
 0x493   : > { %v4382_v22 = vmul.f32 1.442695, %v4285_v8  ;;  %v4300_v39 = vsub.f32 0.0, %v4236_v11  ;;  %v4220_v3 = vand.u32 2147483647, %v13852_v51  ;;  %vm4815_vm13 = vcmp.ge.f32.partialorder %v13826_v36, 0.0 }
 0x494   : > { %13850 = vst [vmem:[#allocation236_spill] sm:$0xff] %v11885_v40  ;;  %5162 = vrot.lane.b32.xlu1 %v11877_v49, %s8296_s28  ;;  %8198 = vpow2.f32 %v4414_v10  ;;  %vm4799_vm3 = vcmp.ge.f32.partialorder %v13829_v30, 0.0  ;;  %vm4814_vm5 = vcmp.ge.f32.partialorder %v13830_v16, 0.0  ;;  %vm4798_vm6 = vcmp.ge.f32.partialorder %v13842_v5, 0.0 }
 0x495   : > { %v8185_v32 = vpop.eup %8184  ;;  %8200 = vpow2.f32 %v4382_v22  ;;  %v4412_v12 = vmul.f32 1.442695, %v4300_v39  ;;  %v4284_v13 = vsub.f32 0.0, %v4220_v3  ;;  %v11903_v39 = vpop.permute.xlu0 %5138  ;;  %vm4813_vm14 = vcmp.ge.f32.partialorder %v13845_v1, 0.0 }
 0x496   : > { %v4609_v17 = vmul.f32 %v8185_v32, %v11809_v54  ;;  %v8187_v2 = vpop.eup %8186  ;;  %5192 = vrot.lane.b32.xlu0 %v11885_v40, %s8296_s28  ;;  %v11912_v15 = vpop.permute.xlu1 %5106  ;;  %vm4797_vm9 = vcmp.ge.f32.partialorder %v13848_v6, 0.0  ;;  %vm4812_vm4 = vcmp.ge.f32.partialorder %v13851_v37, 0.0  ;;  %vm4796_vm10 = vcmp.ge.f32.partialorder %v13852_v51, 0.0 }
 0x497   : > { %v4624_v47 = vmul.f32 %v8187_v2, %v11819_v56  ;;  %8202 = vpow2.f32 %v4412_v12  ;;  %v4380_v8 = vmul.f32 1.442695, %v4284_v13  ;;  %vm6304_vm11 = vcmask 253952  }
 0x498   : > { %v4673_v38 = vsub.f32 2.0, %v4609_v17  ;;  %v8189_v11 = vpop.eup %8188 }
 0x499   : > { %v11899_v44 = vpop.eup %8190  ;;  %v4688_v54 = vsub.f32 2.0, %v4624_v47  ;;  %v4608_v10 = vmul.f32 %v8189_v11, %v4480_v7  ;;  %8204 = vpow2.f32 %v4380_v8 }
 0x49a   : > { %v4737_v52 = vmul.f32 %v8185_v32, %v4673_v38  ;;  %v4479_v22 = vadd.f32 1.0, %v11899_v44 }
 0x49b   : > { %v8193_v58 = vpop.eup %8192  ;;  %v4752_v3 = vmul.f32 %v8187_v2, %v4688_v54  ;;  %v4672_v12 = vsub.f32 2.0, %v4608_v10  ;;  %v11928_v10 = vpop.permute.xlu0 %5136 }
 0x49c   : > { %v11905_v17 = vpop.eup %8194  ;;  %v4865_v56 = vmul.f32 %v11768_v26, %v4737_v52  ;;  %v4623_v13 = vmul.f32 %v8193_v58, %v11851_v45  ;;  %8206 = vrcp.f32 %v4479_v22 }
 0x49d   : > { %v4494_v32 = vadd.f32 1.0, %v11905_v17  ;;  %v4880_v47 = vmul.f32 %v11785_v19, %v4752_v3  ;;  %v4736_v38 = vmul.f32 %v8189_v11, %v4672_v12  ;;  %v13855_v19 = vld [vmem:[#allocation67_spill] sm:$0xff] }
 0x49e   : > { %v4929_v7 = vsel %vm4801_vm1, %v4737_v52, %v4865_v56  ;;  %v4687_v8 = vsub.f32 2.0, %v4623_v13 }
 0x49f   : > { %v11914_v4 = vpop.eup %8196  ;;  %v11917_v26 = vmul.f32 %v13853_v35, %v4929_v7  ;;  %8208 = vrcp.f32 %v4494_v32  ;;  %v4944_v2 = vsel %vm4816_vm2, %v4752_v3, %v4880_v47  ;;  %v4864_v45 = vmul.f32 %v11793_v59, %v4736_v38 }
 0x4a0   : > { %v4751_v54 = vmul.f32 %v8193_v58, %v4687_v8  ;;  %v4478_v52 = vadd.f32 1.0, %v11914_v4  ;;  %v11925_v11 = vmul.f32 %v13855_v19, %v4944_v2  ;;  %v13857_v58 = vld [vmem:[#allocation55_spill] sm:$0xff]  ;;  %v11941_v8 = vpop.permute.xlu1 %5104 }
 0x4a1   : > { %13854 = vst [vmem:[#allocation253_spill] sm:$0xff] %v11917_v26  ;;  %5160 = vrot.lane.b32.xlu1 %v11917_v26, %s8296_s28  ;;  %v4928_v56 = vsel %vm4800_vm7, %v4736_v38, %v4864_v45  ;;  %v11931_v3 = vpop.eup %8198 }
 0x4a2   : > { %13856 = vst [vmem:[#allocation237_spill] sm:$0xff] %v11925_v11  ;;  %v4879_v12 = vmul.f32 %v11834_v41, %v4751_v54  ;;  %8210 = vrcp.f32 %v4478_v52  ;;  %5190 = vrot.lane.b32.xlu0 %v11925_v11, %s8296_s28  ;;  %v11936_v59 = vmul.f32 %v13857_v58, %v4928_v56  ;;  %v11938_v13 = vpop.eup %8200  ;;  %v4493_v47 = vadd.f32 1.0, %v11931_v3  ;;  %v13859_v41 = vld [vmem:[#allocation66_spill] sm:$0xff]  ;;  %v11954_v56 = vpop.permute.xlu0 %5134 }
 0x4a3   : > { %v4477_v2 = vadd.f32 1.0, %v11938_v13 }
 0x4a4   : > { %13858 = vst [vmem:[#allocation307_spill] sm:$0xff] %v11936_v59  ;;  %v4943_v7 = vsel %vm4815_vm13, %v4751_v54, %v4879_v12  ;;  %v11949_v45 = vpop.eup %8202  ;;  %8212 = vrcp.f32 %v4493_v47 }
 0x4a5   : > { %5158 = vrot.lane.b32.xlu1 %v11936_v59, %s8296_s28  ;;  %v11946_v38 = vmul.f32 %v13859_v41, %v4943_v7  ;;  %8214 = vrcp.f32 %v4477_v2  ;;  %v4492_v54 = vadd.f32 1.0, %v11949_v45  ;;  %v11959_v41 = vpop.permute.xlu1 %5102 }
 0x4a6   : > { %v11956_v12 = vpop.eup %8204  ;;  %v11961_v31 = vpop.permute.xlu0 %5132 }
 0x4a7   : > { %13860 = vst [vmem:[#allocation308_spill] sm:$0xff] %v11946_v38  ;;  %5188 = vrot.lane.b32.xlu0 %v11946_v38, %s8296_s28  ;;  %8216 = vrcp.f32 %v4492_v54  ;;  %v4476_v19 = vadd.f32 1.0, %v11956_v12 }
 0x4a9   : > { %v8207_v7 = vpop.eup %8206  ;;  %8218 = vrcp.f32 %v4476_v19  ;;  %v11964_v59 = vpop.permute.xlu1 %5100 }
 0x4aa   : > { %v4607_v43 = vmul.f32 %v8207_v7, %v4479_v22 }
 0x4ac   : > { %v8209_v36 = vpop.eup %8208  ;;  %v4671_v25 = vsub.f32 2.0, %v4607_v43 }
 0x4ad   : > { %v4622_v35 = vmul.f32 %v8209_v36, %v4494_v32  ;;  %v11969_v32 = vpop.permute.xlu0 %5130 }
 0x4ae   : > { %v4735_v18 = vmul.f32 %v8207_v7, %v4671_v25  ;;  %v13861_v25 = vld [vmem:[#allocation54_spill] sm:$0xff] }
 0x4af   : > { %v8211_v58 = vpop.eup %8210  ;;  %v4686_v62 = vsub.f32 2.0, %v4622_v35 }
 0x4b0   : > { %v4606_v38 = vmul.f32 %v8211_v58, %v4478_v52  ;;  %v4863_v11 = vmul.f32 %v11899_v44, %v4735_v18 }
 0x4b1   : > { %v4750_v26 = vmul.f32 %v8209_v36, %v4686_v62  ;;  %v8213_v40 = vpop.eup %8212  ;;  %v13862_v62 = vld [vmem:[#allocation65_spill] sm:$0xff] }
 0x4b2   : > { %v4670_v22 = vsub.f32 2.0, %v4606_v38  ;;  %v4927_v49 = vsel %vm4799_vm3, %v4735_v18, %v4863_v11  ;;  %v8215_v29 = vpop.eup %8214  ;;  %v4621_v52 = vmul.f32 %v8213_v40, %v4493_v47  ;;  %v11981_v38 = vpop.permute.xlu1 %5098 }
 0x4b3   : > { %v4878_v43 = vmul.f32 %v11905_v17, %v4750_v26  ;;  %v11972_v35 = vmul.f32 %v13861_v25, %v4927_v49  ;;  %v4605_v44 = vmul.f32 %v8215_v29, %v4477_v2  ;;  %v13863_v2 = vld [vmem:[#allocation53_spill] sm:$0xff] }
 0x4b4   : > { %v4734_v7 = vmul.f32 %v8211_v58, %v4670_v22  ;;  %v8217_v36 = vpop.eup %8216  ;;  %v4685_v11 = vsub.f32 2.0, %v4621_v52 }
 0x4b5   : > { %v4942_v30 = vsel %vm4814_vm5, %v4750_v26, %v4878_v43  ;;  %5156 = vrot.lane.b32.xlu1 %v11972_v35, %s8296_s28  ;;  %v4669_v49 = vsub.f32 2.0, %v4605_v44  ;;  %v4620_v16 = vmul.f32 %v8217_v36, %v4492_v54  ;;  %v13864_v54 = vld [vmem:[#allocation169_spill] sm:$0xff] }
 0x4b6   : > { %v11978_v18 = vmul.f32 %v13862_v62, %v4942_v30  ;;  %v4862_v17 = vmul.f32 %v11914_v4, %v4734_v7  ;;  %v8219_v58 = vpop.eup %8218  ;;  %v4749_v47 = vmul.f32 %v8213_v40, %v4685_v11  ;;  %v11989_v4 = vpop.permute.xlu0 %5128  ;;  %v5309_v44 = vmul.f32 %v13864_v54, %v11744_v50  ;;  %v13866_v50 = vld [vmem:[#allocation137_spill] sm:$0xff] }
 0x4b7   : > { %v4733_v30 = vmul.f32 %v8215_v29, %v4669_v49  ;;  %v4684_v43 = vsub.f32 2.0, %v4620_v16  ;;  %v4604_v62 = vmul.f32 %v8219_v58, %v4476_v19  ;;  %v11999_v16 = vpop.permute.xlu1 %5096  ;;  %v13865_v29 = vld [vmem:[#allocation64_spill] sm:$0xff]  ;;  %v5293_v54 = vmul.f32 %v13866_v50, %v11783_v20  ;;  %v13868_v20 = vld [vmem:[#allocation63_spill] sm:$0xff] }
 0x4b8   : > { %5186 = vrot.lane.b32.xlu0 %v11978_v18, %s8296_s28  ;;  %v4926_v26 = vsel %vm4798_vm6, %v4734_v7, %v4862_v17  ;;  %v4877_v52 = vmul.f32 %v11931_v3, %v4749_v47 }
 0x4b9   : > { %v11987_v22 = vmul.f32 %v13863_v2, %v4926_v26  ;;  %v4861_v40 = vmul.f32 %v11938_v13, %v4733_v30  ;;  %v4748_v7 = vmul.f32 %v8217_v36, %v4684_v43  ;;  %v4668_v17 = vsub.f32 2.0, %v4604_v62  ;;  %v13867_v13 = vld [vmem:[#allocation52_spill] sm:$0xff] }
 0x4ba   : > { %v4941_v11 = vsel %vm4813_vm14, %v4749_v47, %v4877_v52  ;;  %v12013_v62 = vpop.permute.xlu0 %5126  ;;  %v13869_v52 = vld [vmem:[#allocation170_spill] sm:$0xff] }
 0x4bb   : > { %5154 = vrot.lane.b32.xlu1 %v11987_v22, %s8296_s28  ;;  %v12002_v19 = vmul.f32 %v13865_v29, %v4941_v11  ;;  %v4925_v3 = vsel %vm4797_vm9, %v4733_v30, %v4861_v40  ;;  %v4876_v49 = vmul.f32 %v11949_v45, %v4748_v7  ;;  %v4732_v26 = vmul.f32 %v8219_v58, %v4668_v17  ;;  %v12017_v45 = vpop.permute.xlu1 %5094  ;;  %v13871_v11 = vld [vmem:[#allocation138_spill] sm:$0xff] }
 0x4bc   : > { %v12011_v36 = vmul.f32 %v13867_v13, %v4925_v3  ;;  %v5292_v3 = vmul.f32 %v11811_v9, %v13871_v11  ;;  %v13875_v9 = vld [vmem:[#allocation134_spill] sm:$0xff] }
 0x4bd   : > { %5184 = vrot.lane.b32.xlu0 %v12002_v19, %s8296_s28  ;;  %v4940_v47 = vsel %vm4812_vm4, %v4748_v7, %v4876_v49  ;;  %v4860_v30 = vmul.f32 %v11956_v12, %v4732_v26  ;;  %v13870_v12 = vld [vmem:[#allocation51_spill] sm:$0xff]  ;;  %v13872_v49 = vld [vmem:[#allocation165_spill] sm:$0xff] }
 0x4be   : > { %v12023_v58 = vmul.f32 %v13868_v20, %v4940_v47  ;;  %v5125_v40 = vpop.permute.xlu0 %5124  ;;  %v5307_v50 = vmul.f32 %v13872_v49, %v11832_v60  ;;  %v5290_v60 = vmul.f32 %v11880_v48, %v13875_v9 }
 0x4bf   : > { %5596 = vrot.lane.b32.xlu1 %v5309_v44, %s8297_s20  ;;  %v4924_v43 = vsel %vm4796_vm10, %v4732_v26, %v4860_v30  ;;  %v5308_v44 = vmul.f32 %v11760_v34, %v13869_v52  ;;  %v5093_v17 = vpop.permute.xlu1 %5092  ;;  %v13873_v26 = vld [vmem:[#allocation133_spill] sm:$0xff]  ;;  %v13874_v30 = vld [vmem:[#allocation166_spill] sm:$0xff] }
 0x4c0   : > { %v12031_v7 = vmul.f32 %v13870_v12, %v4924_v43  ;;  %v5306_v43 = vmul.f32 %v11871_v23, %v13874_v30  ;;  %v13878_v23 = vld [vmem:[#allocation162_spill] sm:$0xff]  ;;  %v13880_v30 = vld [vmem:[#allocation157_spill] sm:$0xff] }
 0x4c1   : > { %5152 = vrot.lane.b32.xlu0 %v12011_v36, %s8296_s28 }
 0x4c2   : > { %v5123_v34 = vpop.permute.xlu0 %5122 }
 0x4c3   : > { %5564 = vrot.lane.b32.xlu1 %v5293_v54, %s8297_s20  ;;  %v5291_v54 = vmul.f32 %v13873_v26, %v11854_v42  ;;  %v5091_v47 = vpop.permute.xlu1 %5090  ;;  %v13879_v26 = vld [vmem:[#allocation130_spill] sm:$0xff] }
 0x4c5   : > { %5182 = vrot.lane.b32.xlu0 %v12023_v58, %s8296_s28 }
 0x4c6   : > { %v5121_v52 = vpop.permute.xlu0 %5120 }
 0x4c7   : > { %5594 = vrot.lane.b32.xlu1 %v5308_v44, %s8297_s20  ;;  %v13876_v44 = vld [vmem:[#allocation161_spill] sm:$0xff]  ;;  %v5089_v42 = vpop.permute.xlu1 %5088 }
 0x4c8   : > { %v5305_v11 = vmul.f32 %v13876_v44, %v11890_v53 }
 0x4c9   : > { %5150 = vrot.lane.b32.xlu0 %v12031_v7, %s8296_s28 }
 0x4ca   : > { %v5119_v48 = vpop.permute.xlu0 %5118 }
 0x4cb   : > { %5562 = vrot.lane.b32.xlu1 %v5292_v3, %s8297_s20  ;;  %v13877_v3 = vld [vmem:[#allocation129_spill] sm:$0xff]  ;;  %v5087_v53 = vpop.permute.xlu1 %5086 }
 0x4cc   : > { %v5289_v49 = vmul.f32 %v13877_v3, %v11897_v57  ;;  %v13881_v57 = vld [vmem:[#allocation125_spill] sm:$0xff] }
 0x4cd   : > { %5592 = vrot.lane.b32.xlu0 %v5307_v50, %s8297_s20  ;;  %v5304_v50 = vmul.f32 %v11903_v39, %v13878_v23  ;;  %v5287_v9 = vmul.f32 %v13881_v57, %v11941_v8  ;;  %v13885_v23 = vld [vmem:[#allocation121_spill] sm:$0xff] }
 0x4ce   : > { %v5213_v39 = vpop.permute.xlu0 %5212 }
 0x4cf   : > { %5560 = vrot.lane.b32.xlu1 %v5291_v54, %s8297_s20  ;;  %v5288_v54 = vmul.f32 %v11912_v15, %v13879_v26  ;;  %v5181_v15 = vpop.permute.xlu1 %5180  ;;  %v13886_v26 = vld [vmem:[#allocation154_spill] sm:$0xff] }
 0x4d1   : > { %5590 = vrot.lane.b32.xlu0 %v5306_v43, %s8297_s20  ;;  %v5303_v43 = vmul.f32 %v13880_v30, %v11928_v10  ;;  %v13884_v10 = vld [vmem:[#allocation153_spill] sm:$0xff] }
 0x4d2   : > { %v5211_v8 = vpop.permute.xlu0 %5210 }
 0x4d3   : > { %5558 = vrot.lane.b32.xlu1 %v5290_v60, %s8297_s20  ;;  %v13882_v60 = vld [vmem:[#allocation158_spill] sm:$0xff] }
 0x4d4   : > { %v5302_v44 = vmul.f32 %v11954_v56, %v13882_v60 }
 0x4d5   : > { %5588 = vrot.lane.b32.xlu0 %v5305_v11, %s8297_s20  ;;  %v13883_v11 = vld [vmem:[#allocation126_spill] sm:$0xff] }
 0x4d6   : > { %v5286_v3 = vmul.f32 %v11959_v41, %v13883_v11  ;;  %v13887_v41 = vld [vmem:[#allocation122_spill] sm:$0xff] }
 0x4d7   : > { %5556 = vrot.lane.b32.xlu1 %v5289_v49, %s8297_s20  ;;  %v5301_v49 = vmul.f32 %v13884_v10, %v11961_v31  ;;  %v5284_v30 = vmul.f32 %v11981_v38, %v13887_v41  ;;  %v13891_v11 = vld [vmem:[#allocation118_spill] sm:$0xff]  ;;  %v13892_v10 = vld [vmem:[#allocation145_spill] sm:$0xff] }
 0x4d8   : > { %v13895_v41 = vld [vmem:[#allocation114_spill] sm:$0xff] }
 0x4d9   : > { %5586 = vrot.lane.b32.xlu0 %v5304_v50, %s8297_s20  ;;  %v5285_v50 = vmul.f32 %v13885_v23, %v11964_v59  ;;  %v13893_v23 = vld [vmem:[#allocation113_spill] sm:$0xff] }
 0x4db   : > { %5554 = vrot.lane.b32.xlu1 %v5288_v54, %s8297_s20  ;;  %v5179_v56 = vpop.permute.xlu1 %5178  ;;  %v5300_v54 = vmul.f32 %v11969_v32, %v13886_v26  ;;  %v13890_v32 = vld [vmem:[#allocation150_spill] sm:$0xff] }
 0x4dc   : > { %v13894_v26 = vld [vmem:[#allocation146_spill] sm:$0xff] }
 0x4dd   : > { %5584 = vrot.lane.b32.xlu0 %v5303_v43, %s8297_s20  ;;  %v5209_v31 = vpop.permute.xlu0 %5208  ;;  %v13888_v43 = vld [vmem:[#allocation149_spill] sm:$0xff] }
 0x4de   : > { %v5299_v57 = vmul.f32 %v13888_v43, %v11989_v4 }
 0x4df   : > { %5552 = vrot.lane.b32.xlu1 %v5287_v9, %s8297_s20  ;;  %v5177_v59 = vpop.permute.xlu1 %5176  ;;  %v13889_v9 = vld [vmem:[#allocation117_spill] sm:$0xff] }
 0x4e0   : > { %v5283_v60 = vmul.f32 %v13889_v9, %v11999_v16  ;;  %v5281_v16 = vmul.f32 %v13893_v23, %v5093_v17 }
 0x4e1   : > { %5582 = vrot.lane.b32.xlu0 %v5302_v44, %s8297_s20  ;;  %v5298_v44 = vmul.f32 %v12013_v62, %v13890_v32  ;;  %v5207_v38 = vpop.permute.xlu0 %5206  ;;  %v5296_v62 = vmul.f32 %v5123_v34, %v13894_v26  ;;  %v13899_v34 = vld [vmem:[#allocation110_spill] sm:$0xff] }
 0x4e3   : > { %5550 = vrot.lane.b32.xlu1 %v5286_v3, %s8297_s20  ;;  %v5282_v3 = vmul.f32 %v12017_v45, %v13891_v11  ;;  %v5175_v4 = vpop.permute.xlu1 %5174  ;;  %v13896_v45 = vld [vmem:[#allocation141_spill] sm:$0xff] }
 0x4e4   : > { %v5295_v43 = vmul.f32 %v13896_v45, %v5121_v52 }
 0x4e5   : > { %5580 = vrot.lane.b32.xlu0 %v5301_v49, %s8297_s20  ;;  %v5297_v49 = vmul.f32 %v13892_v10, %v5125_v40  ;;  %v13901_v10 = vld [vmem:[#allocation186_spill] sm:$0xff] }
 0x4e7   : > { %5548 = vrot.lane.b32.xlu1 %v5285_v50, %s8297_s20 }
 0x4e9   : > { %5578 = vrot.lane.b32.xlu0 %v5300_v54, %s8297_s20 }
 0x4eb   : > { %5546 = vrot.lane.b32.xlu1 %v5284_v30, %s8297_s20  ;;  %v5280_v30 = vmul.f32 %v5091_v47, %v13895_v41  ;;  %v13900_v47 = vld [vmem:[#allocation202_spill] sm:$0xff] }
 0x4ed   : > { %5576 = vrot.lane.b32.xlu0 %v5299_v57, %s8297_s20  ;;  %v13897_v57 = vld [vmem:[#allocation109_spill] sm:$0xff] }
 0x4ee   : > { %v5205_v50 = vpop.permute.xlu0 %5204  ;;  %v5279_v9 = vmul.f32 %v13897_v57, %v5089_v42  ;;  %v13902_v42 = vld [vmem:[#allocation203_spill] sm:$0xff]  ;;  %v13907_v57 = vld [vmem:[#allocation185_spill] sm:$0xff] }
 0x4ef   : > { %5544 = vrot.lane.b32.xlu1 %v5283_v60, %s8297_s20  ;;  %v13898_v60 = vld [vmem:[#allocation142_spill] sm:$0xff]  ;;  %v5340_v23 = vmul.f32 %v5211_v8, %v13902_v42  ;;  %v13913_v42 = vld [vmem:[#allocation180_spill] sm:$0xff] }
 0x4f0   : > { %v5294_v32 = vmul.f32 %v5119_v48, %v13898_v60 }
 0x4f1   : > { %5574 = vrot.lane.b32.xlu0 %v5298_v44, %s8297_s20  ;;  %v5278_v44 = vmul.f32 %v5087_v53, %v13899_v34 }
 0x4f2   : > { %v5173_v54 = vpop.permute.xlu1 %5172 }
 0x4f3   : > { %5542 = vrot.lane.b32.xlu1 %v5282_v3, %s8297_s20  ;;  %v5341_v3 = vmul.f32 %v13900_v47, %v5213_v39  ;;  %v13905_v39 = vld [vmem:[#allocation184_spill] sm:$0xff] }
 0x4f4   : > { %v5203_v40 = vpop.permute.xlu0 %5202 }
 0x4f5   : > { %5572 = vrot.lane.b32.xlu0 %v5297_v49, %s8297_s20  ;;  %v5325_v49 = vmul.f32 %v13901_v10, %v5181_v15  ;;  %v13906_v15 = vld [vmem:[#allocation201_spill] sm:$0xff] }
 0x4f6   : > { %v5171_v17 = vpop.permute.xlu1 %5170 }
 0x4f7   : > { %5540 = vrot.lane.b32.xlu1 %v5281_v16, %s8297_s20  ;;  %v13903_v16 = vld [vmem:[#allocation187_spill] sm:$0xff] }
 0x4f8   : > { %v5201_v11 = vpop.permute.xlu0 %5200  ;;  %v5324_v26 = vmul.f32 %v5179_v56, %v13903_v16  ;;  %v13908_v56 = vld [vmem:[#allocation194_spill] sm:$0xff] }
 0x4f9   : > { %5570 = vrot.lane.b32.xlu0 %v5296_v62, %s8297_s20  ;;  %v13904_v62 = vld [vmem:[#allocation198_spill] sm:$0xff]  ;;  %v5337_v60 = vmul.f32 %v13908_v56, %v5205_v50 }
 0x4fa   : > { %v5169_v52 = vpop.permute.xlu1 %5168  ;;  %v5339_v41 = vmul.f32 %v13904_v62, %v5209_v31 }
 0x4fb   : > { %5538 = vrot.lane.b32.xlu1 %v5280_v30, %s8297_s20  ;;  %v5323_v30 = vmul.f32 %v13905_v39, %v5177_v59 }
 0x4fc   : > { %v5199_v48 = vpop.permute.xlu0 %5198 }
 0x4fd   : > { %5568 = vrot.lane.b32.xlu0 %v5295_v43, %s8297_s20  ;;  %v5338_v43 = vmul.f32 %v5207_v38, %v13906_v15  ;;  %v13911_v38 = vld [vmem:[#allocation183_spill] sm:$0xff] }
 0x4fe   : > { %v5167_v53 = vpop.permute.xlu1 %5166 }
 0x4ff   : > { %5536 = vrot.lane.b32.xlu1 %v5279_v9, %s8297_s20  ;;  %v5322_v9 = vmul.f32 %v5175_v4, %v13907_v57  ;;  %v13912_v4 = vld [vmem:[#allocation199_spill] sm:$0xff] }
 0x500   : > { %v5197_v45 = vpop.permute.xlu0 %5196  ;;  %v13919_v57 = vld [vmem:[#allocation179_spill] sm:$0xff] }
 0x501   : > { %5566 = vrot.lane.b32.xlu0 %v5294_v32, %s8297_s20  ;;  %v13909_v32 = vld [vmem:[#allocation182_spill] sm:$0xff] }
 0x502   : > { %v5165_v8 = vpop.permute.xlu1 %5164  ;;  %v5321_v34 = vmul.f32 %v13909_v32, %v5173_v54  ;;  %v13914_v54 = vld [vmem:[#allocation200_spill] sm:$0xff] }
 0x503   : > { %5534 = vrot.lane.b32.xlu1 %v5278_v44, %s8297_s20  ;;  %v13910_v44 = vld [vmem:[#allocation196_spill] sm:$0xff]  ;;  %v5334_v16 = vmul.f32 %v5199_v48, %v13914_v54 }
 0x504   : > { %v5195_v31 = vpop.permute.xlu0 %5194  ;;  %v5336_v47 = vmul.f32 %v5203_v40, %v13910_v44 }
 0x505   : > { %5660 = vrot.lane.b32.xlu0 %v5341_v3, %s8297_s20  ;;  %v5320_v3 = vmul.f32 %v5171_v17, %v13911_v38 }
 0x506   : > { %v5163_v59 = vpop.permute.xlu1 %5162 }
 0x507   : > { %5628 = vrot.lane.b32.xlu1 %v5325_v49, %s8297_s20  ;;  %v5335_v49 = vmul.f32 %v13912_v4, %v5201_v11  ;;  %v13917_v11 = vld [vmem:[#allocation178_spill] sm:$0xff] }
 0x508   : > { %v5193_v10 = vpop.permute.xlu0 %5192 }
 0x509   : > { %5658 = vrot.lane.b32.xlu0 %v5340_v23, %s8297_s20  ;;  %v5319_v23 = vmul.f32 %v13913_v42, %v5169_v52  ;;  %v13918_v52 = vld [vmem:[#allocation197_spill] sm:$0xff] }
 0x50b   : > { %5626 = vrot.lane.b32.xlu1 %v5324_v26, %s8297_s20  ;;  %v13915_v26 = vld [vmem:[#allocation181_spill] sm:$0xff] }
 0x50c   : > { %v5318_v62 = vmul.f32 %v5167_v53, %v13915_v26  ;;  %v13920_v53 = vld [vmem:[#allocation192_spill] sm:$0xff] }
 0x50d   : > { %5656 = vrot.lane.b32.xlu0 %v5339_v41, %s8297_s20  ;;  %v13916_v41 = vld [vmem:[#allocation195_spill] sm:$0xff]  ;;  %v5331_v56 = vmul.f32 %v13920_v53, %v5193_v10 }
 0x50e   : > { %v5333_v39 = vmul.f32 %v13916_v41, %v5197_v45 }
 0x50f   : > { %5624 = vrot.lane.b32.xlu1 %v5323_v30, %s8297_s20  ;;  %v5317_v30 = vmul.f32 %v13917_v11, %v5165_v8 }
 0x511   : > { %5654 = vrot.lane.b32.xlu0 %v5338_v43, %s8297_s20  ;;  %v5332_v43 = vmul.f32 %v5195_v31, %v13918_v52  ;;  %v13923_v31 = vld [vmem:[#allocation177_spill] sm:$0xff] }
 0x513   : > { %5622 = vrot.lane.b32.xlu1 %v5322_v9, %s8297_s20  ;;  %v5161_v50 = vpop.permute.xlu1 %5160  ;;  %v5316_v9 = vmul.f32 %v5163_v59, %v13919_v57 }
 0x514   : > { %v5191_v40 = vpop.permute.xlu0 %5190 }
 0x515   : > { %5652 = vrot.lane.b32.xlu0 %v5337_v60, %s8297_s20  ;;  %v13921_v60 = vld [vmem:[#allocation176_spill] sm:$0xff] }
 0x516   : > { %v5315_v32 = vmul.f32 %v13921_v60, %v5161_v50  ;;  %v13925_v50 = vld [vmem:[#allocation174_spill] sm:$0xff] }
 0x517   : > { %5620 = vrot.lane.b32.xlu1 %v5321_v34, %s8297_s20  ;;  %v5159_v17 = vpop.permute.xlu1 %5158  ;;  %v13922_v34 = vld [vmem:[#allocation193_spill] sm:$0xff] }
 0x518   : > { %v5330_v44 = vmul.f32 %v5191_v40, %v13922_v34 }
 0x519   : > { %5650 = vrot.lane.b32.xlu0 %v5336_v47, %s8297_s20  ;;  %v5189_v15 = vpop.permute.xlu0 %5188  ;;  %v5314_v47 = vmul.f32 %v5159_v17, %v13923_v31  ;;  %v13927_v17 = vld [vmem:[#allocation175_spill] sm:$0xff] }
 0x51b   : > { %5618 = vrot.lane.b32.xlu1 %v5320_v3, %s8297_s20  ;;  %v13924_v3 = vld [vmem:[#allocation190_spill] sm:$0xff] }
 0x51c   : > { %v5329_v10 = vmul.f32 %v13924_v3, %v5189_v15  ;;  %v13933_v3 = vld [vmem:[#allocation23_spill] sm:$0xff] }
 0x51d   : > { %5648 = vrot.lane.b32.xlu0 %v5335_v49, %s8297_s20 }
 0x51f   : > { %5616 = vrot.lane.b32.xlu1 %v5319_v23, %s8297_s20 }
 0x521   : > { %5646 = vrot.lane.b32.xlu0 %v5334_v16, %s8297_s20  ;;  %v13926_v16 = vld [vmem:[#allocation191_spill] sm:$0xff] }
 0x523   : > { %5614 = vrot.lane.b32.xlu1 %v5318_v62, %s8297_s20 }
 0x525   : > { %5644 = vrot.lane.b32.xlu0 %v5333_v39, %s8297_s20 }
 0x527   : > { %5612 = vrot.lane.b32.xlu1 %v5317_v30, %s8297_s20  ;;  %v5157_v48 = vpop.permute.xlu1 %5156  ;;  %v13928_v30 = vld [vmem:[#allocation188_spill] sm:$0xff] }
 0x528   : > { %v5313_v42 = vmul.f32 %v13925_v50, %v5157_v48  ;;  %v13929_v48 = vld [vmem:[#allocation172_spill] sm:$0xff]  ;;  %v13934_v50 = vld [vmem:[#allocation93_spill] sm:$0xff] }
 0x529   : > { %5642 = vrot.lane.b32.xlu0 %v5332_v43, %s8297_s20 }
 0x52a   : > { %v5187_v45 = vpop.permute.xlu0 %5186 }
 0x52b   : > { %5610 = vrot.lane.b32.xlu1 %v5316_v9, %s8297_s20  ;;  %v5328_v40 = vmul.f32 %v5187_v45, %v13926_v16 }
 0x52d   : > { %v5155_v8 = vpop.permute.xlu1 %5154  ;;  %5640 = vrot.lane.b32.xlu0 %v5331_v56, %s8297_s20  ;;  %v13930_v56 = vld [vmem:[#allocation189_spill] sm:$0xff] }
 0x52e   : > { %v5312_v41 = vmul.f32 %v5155_v8, %v13927_v17  ;;  %v13931_v8 = vld [vmem:[#allocation173_spill] sm:$0xff] }
 0x52f   : > { %5608 = vrot.lane.b32.xlu1 %v5315_v32, %s8297_s20  ;;  %v5185_v38 = vpop.permute.xlu0 %5184 }
 0x530   : > { %v5327_v15 = vmul.f32 %v13928_v30, %v5185_v38 }
 0x531   : > { %v5597_v59 = vpop.permute.xlu1 %5596  ;;  %5638 = vrot.lane.b32.xlu0 %v5330_v44, %s8297_s20 }
 0x532   : > { %7373 = vmatprep.subr.mxu1 %v5597_v59  ;;  %v13932_v59 = vld [vmem:[#allocation92_spill] sm:$0xff] }
 0x533   : > { %5606 = vrot.lane.b32.xlu1 %v5314_v47, %s8297_s20  ;;  %v5153_v4 = vpop.permute.xlu0 %5152 }
 0x534   : > { %v5311_v57 = vmul.f32 %v13929_v48, %v5153_v4  ;;  %v13941_v48 = vld [vmem:[#allocation80_spill] sm:$0xff] }
 0x535   : > { %v5565_v49 = vpop.permute.xlu1 %5564  ;;  %5636 = vrot.lane.b32.xlu0 %v5329_v10, %s8297_s20  ;;  %v7880_v10 = vpack.i.bf16 %v13933_v3, %v13932_v59 }
 0x536   : > { %7374 = vmatpush3.msra.mxu1 %v5565_v49 }
 0x537   : > { %v5183_v23 = vpop.permute.xlu0 %5182 }
 0x538   : > { %v5326_v45 = vmul.f32 %v5183_v23, %v13930_v56  ;;  %v13942_v56 = vld [vmem:[#allocation97_spill] sm:$0xff] }
 0x539   : > { %v5595_v54 = vpop.permute.xlu1 %5594  ;;  %5604 = vrot.lane.b32.xlu0 %v5313_v42, %s8297_s20  ;;  %v13935_v42 = vld [vmem:[#allocation14_spill] sm:$0xff] }
 0x53a   : > { %7375 = vmatprep.subr.mxu1 %v5595_v54  ;;  %v7882_v23 = vpack.i.bf16 %v13935_v42, %v13934_v50  ;;  %v13950_v42 = vld [vmem:[#allocation99_spill] sm:$0xff] }
 0x53b   : > { %v5151_v26 = vpop.permute.xlu0 %5150 }
 0x53c   : > { %v5310_v34 = vmul.f32 %v5151_v26, %v13931_v8  ;;  %v13937_v26 = vld [vmem:[#allocation16_spill] sm:$0xff] }
 0x53d   : > { %v5563_v62 = vpop.permute.xlu1 %5562  ;;  %5634 = vrot.lane.b32.xlu0 %v5328_v40, %s8297_s20  ;;  %v13936_v40 = vld [vmem:[#allocation94_spill] sm:$0xff] }
 0x53e   : > { %7376 = vmatpush3.msra.mxu1 %v5563_v62  ;;  %v7884_v62 = vpack.i.bf16 %v13937_v26, %v13936_v40  ;;  %v13952_v26 = vld [vmem:[#allocation144_spill] sm:$0xff] }
 0x53f   : > { %v5593_v39 = vpop.permute.xlu0 %5592 }
 0x540   : > { %7377 = vmatprep.subr.mxu1 %v5593_v39  ;;  %v13938_v39 = vld [vmem:[#allocation95_spill] sm:$0xff] }
 0x541   : > { %v5561_v11 = vpop.permute.xlu1 %5560  ;;  %5602 = vrot.lane.b32.xlu0 %v5312_v41, %s8297_s20 }
 0x542   : > { %7378 = vmatpush3.msra.mxu1 %v5561_v11  ;;  %v13939_v11 = vld [vmem:[#allocation79_spill] sm:$0xff] }
 0x543   : > { %v5591_v52 = vpop.permute.xlu0 %5590  ;;  %v7886_v30 = vpack.i.bf16 %v13939_v11, %v13938_v39  ;;  %v13955_v39 = vld [vmem:[#allocation84_spill] sm:$0xff] }
 0x544   : > { %7379 = vmatprep.subr.mxu1 %v5591_v52 }
 0x545   : > { %v5559_v43 = vpop.permute.xlu1 %5558  ;;  %5632 = vrot.lane.b32.xlu0 %v5327_v15, %s8297_s20 }
 0x546   : > { %7380 = vmatpush3.msra.mxu1 %v5559_v43  ;;  %v13940_v43 = vld [vmem:[#allocation96_spill] sm:$0xff] }
 0x547   : > { %v5589_v9 = vpop.permute.xlu0 %5588 }
 0x548   : > { %7381 = vmatprep.subr.mxu1 %v5589_v9 }
 0x549   : > { %v5557_v53 = vpop.permute.xlu1 %5556  ;;  %5600 = vrot.lane.b32.xlu0 %v5311_v57, %s8297_s20  ;;  %v7888_v57 = vpack.i.bf16 %v13941_v48, %v13940_v43  ;;  %v13958_v48 = vld [vmem:[#allocation101_spill] sm:$0xff] }
 0x54a   : > { %7382 = vmatpush3.msra.mxu1 %v5557_v53 }
 0x54b   : > { %v5587_v60 = vpop.permute.xlu0 %5586 }
 0x54c   : > { %7383 = vmatprep.subr.mxu1 %v5587_v60 }
 0x54d   : > { %v5555_v32 = vpop.permute.xlu1 %5554  ;;  %5630 = vrot.lane.b32.xlu0 %v5326_v45, %s8297_s20  ;;  %v13943_v45 = vld [vmem:[#allocation81_spill] sm:$0xff] }
 0x54e   : > { %7384 = vmatpush3.msra.mxu1 %v5555_v32  ;;  %v7890_v60 = vpack.i.bf16 %v13943_v45, %v13942_v56  ;;  %v13960_v56 = vld [vmem:[#allocation148_spill] sm:$0xff] }
 0x54f   : > { %v5585_v44 = vpop.permute.xlu0 %5584  ;;  %v13961_v45 = vld [vmem:[#allocation116_spill] sm:$0xff] }
 0x550   : > { %7385 = vmatprep.subr.mxu1 %v5585_v44  ;;  %v13945_v44 = vld [vmem:[#allocation108_spill] sm:$0xff] }
 0x551   : > { %v5553_v31 = vpop.permute.xlu1 %5552  ;;  %5598 = vrot.lane.b32.xlu0 %v5310_v34, %s8297_s20  ;;  %v13944_v34 = vld [vmem:[#allocation140_spill] sm:$0xff] }
 0x552   : > { %7386 = vmatpush3.msra.mxu1 %v5553_v31  ;;  %v7922_v31 = vpack.i.bf16 %v13945_v44, %v13944_v34  ;;  %v13964_v44 = vld [vmem:[#allocation151_spill] sm:$0xff] }
 0x553   : > { %v5583_v47 = vpop.permute.xlu0 %5582 }
 0x554   : > { %7387 = vmatprep.subr.mxu1 %v5583_v47  ;;  %v13946_v47 = vld [vmem:[#allocation98_spill] sm:$0xff] }
 0x555   : > { %v5551_v38 = vpop.permute.xlu1 %5550 }
 0x556   : > { %7388 = vmatpush3.msra.mxu1 %v5551_v38  ;;  %v13947_v38 = vld [vmem:[#allocation82_spill] sm:$0xff] }
 0x557   : > { %v5581_v4 = vpop.permute.xlu0 %5580  ;;  %v7892_v59 = vpack.i.bf16 %v13947_v38, %v13946_v47 }
 0x558   : > { %7389 = vmatprep.subr.mxu1 %v5581_v4  ;;  %v13948_v4 = vld [vmem:[#allocation143_spill] sm:$0xff] }
 0x559   : > { %v5549_v49 = vpop.permute.xlu1 %5548 }
 0x55a   : > { %7390 = vmatpush3.msra.mxu1 %v5549_v49  ;;  %v13949_v49 = vld [vmem:[#allocation111_spill] sm:$0xff] }
 0x55b   : > { %v5579_v54 = vpop.permute.xlu0 %5578  ;;  %v7924_v50 = vpack.i.bf16 %v13949_v49, %v13948_v4  ;;  %v13968_v4 = vld [vmem:[#allocation152_spill] sm:$0xff] }
 0x55c   : > { %7881 = vxpose.xlu1.b32.start [1/16] (narrow) %v7880_v10, 16  ;;  %7391 = vmatprep.subr.mxu1 %v5579_v54  ;;  %v13969_v49 = vld [vmem:[#allocation120_spill] sm:$0xff] }
 0x55d   : > { %v5547_v16 = vpop.permute.xlu1 %5546 }
 0x55e   : > { %7392 = vmatpush3.msra.mxu1 %v5547_v16 }
 0x55f   : > { %v5577_v17 = vpop.permute.xlu0 %5576 }
 0x560   : > { %7883 = vxpose.xlu1.b32.cont [2/16] (narrow) %v7882_v23, 16  ;;  %7393 = vmatprep.subr.mxu1 %v5577_v17  ;;  %v13951_v23 = vld [vmem:[#allocation83_spill] sm:$0xff] }
 0x561   : > { %v5545_v41 = vpop.permute.xlu1 %5544  ;;  %v7894_v54 = vpack.i.bf16 %v13951_v23, %v13950_v42  ;;  %v13970_v42 = vld [vmem:[#allocation104_spill] sm:$0xff] }
 0x562   : > { %7394 = vmatpush3.msra.mxu1 %v5545_v41  ;;  %v13954_v41 = vld [vmem:[#allocation100_spill] sm:$0xff] }
 0x563   : > { %v5575_v15 = vpop.permute.xlu0 %5574  ;;  %v7896_v11 = vpack.i.bf16 %v13955_v39, %v13954_v41  ;;  %v13971_v23 = vld [vmem:[#allocation88_spill] sm:$0xff]  ;;  %v13975_v41 = vld [vmem:[#allocation89_spill] sm:$0xff] }
 0x564   : > { %7885 = vxpose.xlu1.b32.cont [3/16] (narrow) %v7884_v62, 16  ;;  %7395 = vmatprep.subr.mxu1 %v5575_v15  ;;  %v13953_v62 = vld [vmem:[#allocation112_spill] sm:$0xff]  ;;  %v13956_v15 = vld [vmem:[#allocation147_spill] sm:$0xff] }
 0x565   : > { %v5543_v52 = vpop.permute.xlu1 %5542  ;;  %v7926_v17 = vpack.i.bf16 %v13953_v62, %v13952_v26  ;;  %v13973_v26 = vld [vmem:[#allocation123_spill] sm:$0xff] }
 0x566   : > { %7396 = vmatpush3.msra.mxu1 %v5543_v52  ;;  %v13957_v52 = vld [vmem:[#allocation115_spill] sm:$0xff] }
 0x567   : > { %v5573_v9 = vpop.permute.xlu0 %5572  ;;  %v7928_v43 = vpack.i.bf16 %v13957_v52, %v13956_v15 }
 0x568   : > { %7887 = vxpose.xlu1.b32.cont [4/16] (narrow) %v7886_v30, 16  ;;  %7397 = vmatprep.subr.mxu1 %v5573_v9 }
 0x569   : > { %v5541_v53 = vpop.permute.xlu1 %5540 }
 0x56a   : > { %7398 = vmatpush3.msra.mxu1 %v5541_v53 }
 0x56b   : > { %v5571_v32 = vpop.permute.xlu0 %5570 }
 0x56c   : > { %7889 = vxpose.xlu1.b32.cont [5/16] (narrow) %v7888_v57, 16  ;;  %7399 = vmatprep.subr.mxu1 %v5571_v32  ;;  %v13959_v57 = vld [vmem:[#allocation85_spill] sm:$0xff]  ;;  %v13962_v32 = vld [vmem:[#allocation102_spill] sm:$0xff] }
 0x56d   : > { %v5539_v8 = vpop.permute.xlu1 %5538  ;;  %v7898_v9 = vpack.i.bf16 %v13959_v57, %v13958_v48  ;;  %v13979_v48 = vld [vmem:[#allocation90_spill] sm:$0xff] }
 0x56e   : > { %7400 = vmatpush3.msra.mxu1 %v5539_v8  ;;  %v13963_v8 = vld [vmem:[#allocation86_spill] sm:$0xff] }
 0x56f   : > { %v5569_v3 = vpop.permute.xlu0 %5568  ;;  %7923 = vxpose.xlu0.b32.start [1/16] (narrow) %v7922_v31, 16  ;;  %v7900_v34 = vpack.i.bf16 %v13963_v8, %v13962_v32  ;;  %v13965_v31 = vld [vmem:[#allocation119_spill] sm:$0xff] }
 0x570   : > { %7891 = vxpose.xlu1.b32.cont [6/16] (narrow) %v7890_v60, 16  ;;  %7401 = vmatprep.subr.mxu1 %v5569_v3  ;;  %v7930_v60 = vpack.i.bf16 %v13961_v45, %v13960_v56  ;;  %v7932_v47 = vpack.i.bf16 %v13965_v31, %v13964_v44  ;;  %v13967_v3 = vld [vmem:[#allocation87_spill] sm:$0xff]  ;;  %v13984_v31 = vld [vmem:[#allocation160_spill] sm:$0xff] }
 0x571   : > { %v5537_v10 = vpop.permute.xlu1 %5536  ;;  %v13981_v56 = vld [vmem:[#allocation127_spill] sm:$0xff] }
 0x572   : > { %7402 = vmatpush3.msra.mxu1 %v5537_v10  ;;  %v13982_v32 = vld [vmem:[#allocation107_spill] sm:$0xff] }
 0x573   : > { %v5567_v16 = vpop.permute.xlu0 %5566  ;;  %7925 = vxpose.xlu0.b32.cont [2/16] (narrow) %v7924_v50, 16  ;;  %v7934_v50 = vpack.i.bf16 %v13969_v49, %v13968_v4  ;;  %v13983_v8 = vld [vmem:[#allocation91_spill] sm:$0xff] }
 0x574   : > { %7893 = vxpose.xlu1.b32.cont [7/16] (narrow) %v7892_v59, 16  ;;  %7403 = vmatprep.subr.mxu1 %v5567_v16  ;;  %v13966_v59 = vld [vmem:[#allocation103_spill] sm:$0xff] }
 0x575   : > { %v5535_v40 = vpop.permute.xlu1 %5534  ;;  %v7902_v10 = vpack.i.bf16 %v13967_v3, %v13966_v59  ;;  %v13987_v4 = vld [vmem:[#allocation131_spill] sm:$0xff] }
 0x576   : > { %7404 = vmatpush3.msra.mxu1 %v5535_v40  ;;  %v13972_v40 = vld [vmem:[#allocation155_spill] sm:$0xff] }
 0x577   : > { %v5661_v30 = vpop.permute.xlu0 %5660  ;;  %7927 = vxpose.xlu0.b32.cont [3/16] (narrow) %v7926_v17, 16  ;;  %v7936_v62 = vpack.i.bf16 %v13973_v26, %v13972_v40  ;;  %v13974_v17 = vld [vmem:[#allocation105_spill] sm:$0xff] }
 0x578   : > { %7895 = vxpose.xlu1.b32.cont [8/16] (narrow) %v7894_v54, 16  ;;  %7411 = vmatprep.subr.mxu1 %v5661_v30  ;;  %v7904_v54 = vpack.i.bf16 %v13971_v23, %v13970_v42  ;;  %v7906_v39 = vpack.i.bf16 %v13975_v41, %v13974_v17  ;;  %v13977_v30 = vld [vmem:[#allocation124_spill] sm:$0xff]  ;;  %v13991_v17 = vld [vmem:[#allocation135_spill] sm:$0xff] }
 0x579   : > { %v13988_v42 = vld [vmem:[#allocation164_spill] sm:$0xff] }
 0x57a   : > { %v13989_v23 = vld [vmem:[#allocation132_spill] sm:$0xff] }
 0x57b   : > { %v12206_v53 = vpop.permute.xlu0 %5658  ;;  %7929 = vxpose.xlu0.b32.cont [4/16] (narrow) %v7928_v43, 16  ;;  %v13978_v43 = vld [vmem:[#allocation106_spill] sm:$0xff] }
 0x57c   : > { %7897 = vxpose.xlu1.b32.cont [9/16] (narrow) %v7896_v11, 16  ;;  %v13976_v11 = vld [vmem:[#allocation156_spill] sm:$0xff]  ;;  %v7908_v57 = vpack.i.bf16 %v13979_v48, %v13978_v43  ;;  %v13994_v48 = vld [vmem:[#allocation171_spill] sm:$0xff] }
 0x57d   : > { %v7938_v15 = vpack.i.bf16 %v13977_v30, %v13976_v11  ;;  %v13992_v11 = vld [vmem:[#allocation168_spill] sm:$0xff] }
 0x57e   : > { %v13993_v30 = vld [vmem:[#allocation136_spill] sm:$0xff] }
 0x57f   : > { %7931 = vxpose.xlu0.b32.cont [5/16] (narrow) %v7930_v60, 16  ;;  %v12214_v38 = vpop.permute.xlu0 %5656  ;;  %v5629_v60 = vpop.permute.xlu1 %5628 }
 0x580   : > { %7899 = vxpose.xlu1.b32.cont [10/16] (narrow) %v7898_v9, 16  ;;  %v13980_v9 = vld [vmem:[#allocation159_spill] sm:$0xff] }
 0x581   : > { %v7940_v45 = vpack.i.bf16 %v13981_v56, %v13980_v9 }
 0x583   : > { %7933 = vxpose.xlu0.b32.cont [6/16] (narrow) %v7932_v47, 16  ;;  %v12222_v16 = vpop.permute.xlu0 %5654  ;;  %v13985_v47 = vld [vmem:[#allocation128_spill] sm:$0xff]  ;;  %v5627_v3 = vpop.permute.xlu1 %5626 }
 0x584   : > { %7901 = vxpose.xlu1.b32.cont [11/16] (narrow) %v7900_v34, 16  ;;  %v7910_v34 = vpack.i.bf16 %v13983_v8, %v13982_v32  ;;  %v7942_v59 = vpack.i.bf16 %v13985_v47, %v13984_v31 }
 0x587   : > { %7935 = vxpose.xlu0.b32.cont [7/16] (narrow) %v7934_v50, 16  ;;  %v12230_v52 = vpop.permute.xlu0 %5652  ;;  %v5625_v40 = vpop.permute.xlu1 %5624 }
 0x588   : > { %7903 = vxpose.xlu1.b32.cont [12/16] (narrow) %v7902_v10, 16  ;;  %v13986_v10 = vld [vmem:[#allocation163_spill] sm:$0xff] }
 0x589   : > { %v7944_v49 = vpack.i.bf16 %v13987_v4, %v13986_v10 }
 0x58b   : > { %7937 = vxpose.xlu0.b32.cont [8/16] (narrow) %v7936_v62, 16  ;;  %v5651_v44 = vpop.permute.xlu0 %5650  ;;  %v13990_v62 = vld [vmem:[#allocation167_spill] sm:$0xff] }
 0x58c   : > { %7905 = vxpose.xlu1.b32.cont [13/16] (narrow) %v7904_v54, 16  ;;  %v7946_v54 = vpack.i.bf16 %v13989_v23, %v13988_v42  ;;  %v7948_v41 = vpack.i.bf16 %v13991_v17, %v13990_v62 }
 0x58f   : > { %7939 = vxpose.xlu0.b32.cont [9/16] (narrow) %v7938_v15, 16  ;;  %v5649_v50 = vpop.permute.xlu0 %5648  ;;  %v7950_v15 = vpack.i.bf16 %v13993_v30, %v13992_v11 }
 0x590   : > { %7907 = vxpose.xlu1.b32.cont [14/16] (narrow) %v7906_v39, 16  ;;  %v5623_v39 = vpop.permute.xlu1 %5622 }
 0x593   : > { %7941 = vxpose.xlu0.b32.cont [10/16] (narrow) %v7940_v45, 16  ;;  %v5647_v26 = vpop.permute.xlu0 %5646 }
 0x594   : > { %7909 = vxpose.xlu1.b32.cont [15/16] (narrow) %v7908_v57, 16  ;;  %v13995_v57 = vld [vmem:[#allocation139_spill] sm:$0xff]  ;;  %v5621_v56 = vpop.permute.xlu1 %5620 }
 0x595   : > { %v7952_v9 = vpack.i.bf16 %v13995_v57, %v13994_v48 }
 0x597   : > { %7943 = vxpose.xlu0.b32.cont [11/16] (narrow) %v7942_v59, 16  ;;  %v5645_v43 = vpop.permute.xlu0 %5644 }
 0x598   : > { %7911 = vxpose.xlu1.b32.end [16/16] (narrow) %v7910_v34, 16  ;;  %v5619_v32 = vpop.permute.xlu1 %5618 }
 0x59b   : > { %7945 = vxpose.xlu0.b32.cont [12/16] (narrow) %v7944_v49, 16  ;;  %v5643_v45 = vpop.permute.xlu0 %5642 }
 0x59c   : > { %v5617_v34 = vpop.permute.xlu1 %5616 }
 0x59f   : > { %7947 = vxpose.xlu0.b32.cont [13/16] (narrow) %v7946_v54, 16  ;;  %v5641_v8 = vpop.permute.xlu0 %5640 }
 0x5a0   : > { %v5615_v47 = vpop.permute.xlu1 %5614 }
 0x5a3   : > { %7949 = vxpose.xlu0.b32.cont [14/16] (narrow) %v7948_v41, 16  ;;  %v5639_v31 = vpop.permute.xlu0 %5638 }
 0x5a4   : > { %v5613_v10 = vpop.permute.xlu1 %5612 }
 0x5a7   : > { %7951 = vxpose.xlu0.b32.cont [15/16] (narrow) %v7950_v15, 16  ;;  %v5637_v59 = vpop.permute.xlu0 %5636 }
 0x5a8   : > { %v5611_v49 = vpop.permute.xlu1 %5610 }
 0x5ab   : > { %7953 = vxpose.xlu0.b32.end [16/16] (narrow) %v7952_v9, 16  ;;  %v5605_v4 = vpop.permute.xlu0 %5604 }
 0x5ac   : > { %v5609_v23 = vpop.permute.xlu1 %5608 }
 0x5af   : > { %v5635_v42 = vpop.permute.xlu0 %5634 }
 0x5b0   : > { %v5607_v62 = vpop.permute.xlu1 %5606 }
 0x5b3   : > { %v5603_v54 = vpop.permute.xlu0 %5602 }
 0x5b7   : > { %v5633_v17 = vpop.permute.xlu0 %5632 }
 0x5bb   : > { %v5601_v48 = vpop.permute.xlu0 %5600 }
 0x5d8   : > { %v12250_v41 = vpop.trf.xlu1 }
 0x5d9   : > { %v7913_v11 = vunpack.i.l.bf16 %v12250_v41  ;;  %v13232_v30 = vunpack.i.h.bf16 %v12250_v41 }
 0x5db   : > { %5790 = vmatprep.mubr.f32.mxu1 %v7913_v11 }
 0x5dc   : > { %5791 = vmatmul.mubr.f32.vlgmr.msra.gmra.mxu1 %v13232_v30  ;;  %v12258_v15 = vpop.trf.xlu1  ;;  %v5631_v30 = vpop.permute.xlu0 %5630 }
 0x5dd   : > { %7412 = vmatpush3.msra.mxu1 %v5629_v60  ;;  %v7921_v57 = vunpack.i.h.bf16 %v12258_v15  ;;  %v7918_v9 = vunpack.i.l.bf16 %v12258_v15 }
 0x5de   : > { %7413 = vmatprep.subr.mxu1 %v12206_v53 }
 0x5df   : > { %7414 = vmatpush3.msra.mxu1 %v5627_v3  ;;  %5795 = vmatprep.mubr.f32.mxu1 %v7918_v9 }
 0x5e0   : > { %7415 = vmatprep.subr.mxu1 %v12214_v38  ;;  %5796 = vmatmul.mubr.f32.gmra.mxu1 %v7921_v57  ;;  %v5599_v53 = vpop.permute.xlu0 %5598 }
 0x5e1   : > { %7416 = vmatpush3.msra.mxu1 %v5625_v40  ;;  %v13996_v40 = vld [vmem:[#allocation207_spill] sm:$0xff] }
 0x5e2   : > { %7417 = vmatprep.subr.mxu1 %v12222_v16 }
 0x5e3   : > { %7418 = vmatpush3.msra.mxu1 %v5623_v39  ;;  %v13997_v39 = vld [vmem:[#allocation12_spill] sm:$0xff] }
 0x5e4   : > { %7419 = vmatprep.subr.mxu1 %v12230_v52  ;;  %v12277_v52 = vld [vmem:[#allocation5] ss:$0 sm:$0xff] }
 0x5e5   : > { %7420 = vmatpush3.msra.mxu1 %v5621_v56  ;;  %v6042_v3 = vsub.f32 %v13725_v21, %v12277_v52  ;;  %v13998_v56 = vld [vmem:[#allocation13_spill] sm:$0xff] }
 0x5e6   : > { %7421 = vmatprep.subr.mxu1 %v5651_v44  ;;  %v6041_v44 = vsub.f32 %v13729_v27, %v12277_v52  ;;  %v13999_v27 = vld [vmem:[#allocation206_spill] sm:$0xff] }
 0x5e7   : > { %7422 = vmatpush3.msra.mxu1 %v5619_v32 }
 0x5e8   : > { %7423 = vmatprep.subr.mxu1 %v5649_v50 }
 0x5e9   : > { %7424 = vmatpush3.msra.mxu1 %v5617_v34  ;;  %v14000_v34 = vld [vmem:[#allocation15_spill] sm:$0xff] }
 0x5ea   : > { %7425 = vmatprep.subr.mxu1 %v5647_v26  ;;  %v6043_v26 = vsub.f32 %v13996_v40, %v12277_v52  ;;  %v14006_v40 = vld [vmem:[#allocation208_spill] sm:$0xff] }
 0x5eb   : > { %7426 = vmatpush3.msra.mxu1 %v5615_v47  ;;  %v12270_v38 = vpop.trf.xlu0 }
 0x5ec   : > { %7427 = vmatprep.subr.mxu1 %v5645_v43  ;;  %v7955_v60 = vunpack.i.l.bf16 %v12270_v38  ;;  %v7958_v50 = vunpack.i.h.bf16 %v12270_v38  ;;  %v6105_v43 = vmul.f32 %v13997_v39, %v6041_v44  ;;  %v6107_v21 = vmul.f32 %v14000_v34, %v6043_v26  ;;  %v14007_v39 = vld [vmem:[#allocation18_spill] sm:$0xff]  ;;  %v14110_v38 = vld [vmem:[#allocation55_spill] sm:$0xff] }
 0x5ed   : > { %7428 = vmatpush3.msra.mxu1 %v5613_v10  ;;  %v14001_v10 = vld [vmem:[#allocation275_spill] sm:$0xff]  ;;  %v6046_v26 = vsub.f32 %v14006_v40, %v12277_v52  ;;  %v14015_v40 = vld [vmem:[#allocation20_spill] sm:$0xff] }
 0x5ee   : > { %7429 = vmatprep.subr.mxu1 %v5643_v45  ;;  %5865 = vmatprep.mubr.f32.mxu1 %v7955_v60  ;;  %v6106_v45 = vmul.f32 %v13998_v56, %v6042_v3  ;;  %v14005_v3 = vld [vmem:[#allocation276_spill] sm:$0xff]  ;;  %v6173_v56 = vsel %vm3137_vm12, %v6107_v21, 0.0 }
 0x5ef   : > { %7430 = vmatpush3.msra.mxu1 %v5611_v49  ;;  %v12275_v16 = vpop.trf.xlu0 }
 0x5f0   : > { %7431 = vmatprep.subr.mxu1 %v5641_v8  ;;  %v7960_v32 = vunpack.i.l.bf16 %v12275_v16  ;;  %v6044_v8 = vsub.f32 %v13999_v27, %v12277_v52  ;;  %v6308_v47 = vmul.f32 %v6106_v45, %v6106_v45  ;;  %v14008_v27 = vld [vmem:[#allocation278_spill] sm:$0xff] }
 0x5f1   : > { %7432 = vmatpush3.msra.mxu1 %v5609_v23 }
 0x5f2   : > { %7433 = vmatprep.subr.mxu1 %v5639_v31  ;;  %v6307_v31 = vmul.f32 %v6105_v43, %v6105_v43  ;;  %v6372_v44 = vsel %vm3137_vm12, %v6308_v47, 0.0  ;;  %v14010_v47 = vld [vmem:[#allocation211_spill] sm:$0xff] }
 0x5f3   : > { %7434 = vmatpush3.msra.mxu1 %v5607_v62  ;;  %v6171_v62 = vsel %vm3137_vm12, %v6106_v45, 0.0 }
 0x5f4   : > { %7435 = vmatprep.subr.mxu1 %v5637_v59  ;;  %v7963_v59 = vunpack.i.h.bf16 %v12275_v16 }
 0x5f5   : > { %7436 = vmatpush3.msra.mxu1 %v5605_v4  ;;  %v14002_v4 = vld [vmem:[#allocation209_spill] sm:$0xff] }
 0x5f6   : > { %7437 = vmatprep.subr.mxu1 %v5635_v42  ;;  %v6045_v49 = vsub.f32 %v14002_v4, %v12277_v52  ;;  %v14003_v42 = vld [vmem:[#allocation17_spill] sm:$0xff]  ;;  %v6047_v4 = vsub.f32 %v14010_v47, %v12277_v52 }
 0x5f7   : > { %7438 = vmatpush3.msra.mxu1 %v5603_v54  ;;  %v6108_v23 = vmul.f32 %v14003_v42, %v6044_v8  ;;  %v6170_v54 = vsel %vm3137_vm12, %v6105_v43, 0.0  ;;  %v14011_v42 = vld [vmem:[#allocation19_spill] sm:$0xff] }
 0x5f8   : > { %7439 = vmatprep.subr.mxu1 %v5633_v17  ;;  %v14004_v17 = vld [vmem:[#allocation277_spill] sm:$0xff]  ;;  %v6109_v43 = vmul.f32 %v14007_v39, %v6045_v49  ;;  %v6111_v39 = vmul.f32 %v14015_v40, %v6047_v4  ;;  %v14020_v4 = vld [vmem:[#allocation268_spill] sm:$0xff] }
 0x5f9   : > { %7440 = vmatpush3.msra.mxu1 %v5601_v48  ;;  %v6309_v48 = vmul.f32 %v6107_v21, %v6107_v21  ;;  %v6310_v45 = vmul.f32 %v6108_v23, %v6108_v23  ;;  %v6175_v49 = vsel %vm3137_vm12, %v6108_v23, 0.0 }
 0x5fa   : > { %7441 = vmatprep.subr.mxu1 %v5631_v30  ;;  %v6172_v30 = vadd.f32 %v6171_v62, %v6170_v54  ;;  %v6110_v54 = vmul.f32 %v14011_v42, %v6046_v26  ;;  %v6311_v21 = vmul.f32 %v6109_v43, %v6109_v43  ;;  %v14012_v62 = vld [vmem:[#allocation280_spill] sm:$0xff]  ;;  %v6177_v26 = vsel %vm3137_vm12, %v6109_v43, 0.0 }
 0x5fb   : > { %7442 = vmatpush3.msra.mxu1 %v5599_v53  ;;  %v6371_v53 = vsel %vm3137_vm12, %v6307_v31, 0.0  ;;  %v14009_v31 = vld [vmem:[#allocation279_spill] sm:$0xff]  ;;  %v6181_v40 = vsel %vm3137_vm12, %v6111_v39, 0.0 }
 0x5fc   : > { %5866 = vmatmul.mubr.f32.vlgmr.msra.gmra.mxu1 %v7958_v50  ;;  %7449 = vmatprep.subr.mxu1 %v14001_v10  ;;  %v6174_v8 = vadd.f32 %v6173_v56, %v6172_v30  ;;  %v6373_v34 = vadd.f32 %v6372_v44, %v6371_v53  ;;  %v6374_v10 = vsel %vm3137_vm12, %v6309_v48, 0.0  ;;  %v6376_v48 = vsel %vm3137_vm12, %v6310_v45, 0.0  ;;  %v14013_v53 = vld [vmem:[#allocation281_spill] sm:$0xff]  ;;  %v14014_v44 = vld [vmem:[#allocation210_spill] sm:$0xff] }
 0x5fd   : > { %7450 = vmatpush3.msra.mxu1 %v14004_v17  ;;  %5870 = vmatprep.mubr.f32.mxu1 %v7960_v32  ;;  %v6312_v23 = vmul.f32 %v6110_v54, %v6110_v54  ;;  %v14016_v56 = vld [vmem:[#allocation282_spill] sm:$0xff]  ;;  %v14018_v45 = vld [vmem:[#allocation213_spill] sm:$0xff]  ;;  %v6179_v42 = vsel %vm3137_vm12, %v6110_v54, 0.0 }
 0x5fe   : > { %7451 = vmatprep.subr.mxu1 %v14005_v3  ;;  %v6176_v17 = vadd.f32 %v6175_v49, %v6174_v8  ;;  %v6375_v30 = vadd.f32 %v6374_v10, %v6373_v34  ;;  %v6048_v3 = vsub.f32 %v14014_v44, %v12277_v52  ;;  %v14017_v8 = vld [vmem:[#allocation273_spill] sm:$0xff]  ;;  %v6049_v34 = vsub.f32 %v14018_v45, %v12277_v52 }
 0x5ff   : > { %7452 = vmatpush3.msra.mxu1 %v14008_v27  ;;  %v14019_v10 = vld [vmem:[#allocation21_spill] sm:$0xff]  ;;  %v6313_v49 = vmul.f32 %v6111_v39, %v6111_v39 }
 0x600   : > { %5871 = vmatmul.mubr.f32.gmra.mxu1 %v7963_v59  ;;  %7453 = vmatprep.subr.mxu1 %v14009_v31  ;;  %v6178_v27 = vadd.f32 %v6177_v26, %v6176_v17  ;;  %v6377_v31 = vadd.f32 %v6376_v48, %v6375_v30  ;;  %v6112_v47 = vmul.f32 %v14019_v10, %v6048_v3  ;;  %v14021_v17 = vld [vmem:[#allocation274_spill] sm:$0xff]  ;;  %v14024_v3 = vld [vmem:[#allocation269_spill] sm:$0xff] }
 0x601   : > { %7454 = vmatpush3.msra.mxu1 %v14012_v62  ;;  %5946 = vmatprep.mubr.f32.mxu1 %v7913_v11  ;;  %v6378_v11 = vsel %vm3137_vm12, %v6311_v21, 0.0  ;;  %v14022_v21 = vld [vmem:[#allocation212_spill] sm:$0xff]  ;;  %v14023_v48 = vld [vmem:[#allocation22_spill] sm:$0xff] }
 0x602   : > { %7455 = vmatprep.subr.mxu1 %v14013_v53  ;;  %v6180_v43 = vadd.f32 %v6179_v42, %v6178_v27  ;;  %v6379_v62 = vadd.f32 %v6378_v11, %v6377_v31  ;;  %v6380_v53 = vsel %vm3137_vm12, %v6312_v23, 0.0  ;;  %v6050_v30 = vsub.f32 %v14022_v21, %v12277_v52  ;;  %v14025_v27 = vld [vmem:[#allocation270_spill] sm:$0xff]  ;;  %v14026_v23 = vld [vmem:[#allocation215_spill] sm:$0xff] }
 0x603   : > { %7456 = vmatpush3.msra.mxu1 %v14016_v56  ;;  %v6113_v44 = vmul.f32 %v14023_v48, %v6049_v34  ;;  %v6314_v26 = vmul.f32 %v6112_v47, %v6112_v47  ;;  %v6051_v31 = vsub.f32 %v14026_v23, %v12277_v52  ;;  %v14027_v11 = vld [vmem:[#allocation26_spill] sm:$0xff]  ;;  %v6183_v10 = vsel %vm3137_vm12, %v6112_v47, 0.0  ;;  %v14028_v34 = vld [vmem:[#allocation283_spill] sm:$0xff] }
 0x604   : > { %7457 = vmatprep.subr.mxu1 %v14017_v8  ;;  %v6182_v54 = vadd.f32 %v6181_v40, %v6180_v43  ;;  %v6381_v56 = vadd.f32 %v6380_v53, %v6379_v62  ;;  %v6382_v8 = vsel %vm3137_vm12, %v6313_v49, 0.0  ;;  %v6114_v45 = vmul.f32 %v14027_v11, %v6050_v30  ;;  %v14029_v43 = vld [vmem:[#allocation204_spill] sm:$0xff]  ;;  %v14030_v49 = vld [vmem:[#allocation214_spill] sm:$0xff]  ;;  %v14032_v30 = vld [vmem:[#allocation271_spill] sm:$0xff] }
 0x605   : > { %7458 = vmatpush3.msra.mxu1 %v14020_v4  ;;  %v6315_v42 = vmul.f32 %v6113_v44, %v6113_v44  ;;  %v6052_v62 = vsub.f32 %v14030_v49, %v12277_v52  ;;  %v14031_v53 = vld [vmem:[#allocation32_spill] sm:$0xff]  ;;  %v6185_v48 = vsel %vm3137_vm12, %v6113_v44, 0.0 }
 0x606   : > { %7459 = vmatprep.subr.mxu1 %v14021_v17  ;;  %v6184_v39 = vadd.f32 %v6183_v10, %v6182_v54  ;;  %v6383_v4 = vadd.f32 %v6382_v8, %v6381_v56  ;;  %v6384_v17 = vsel %vm3137_vm12, %v6314_v26, 0.0  ;;  %v6115_v21 = vmul.f32 %v14031_v53, %v6051_v31  ;;  %v14033_v54 = vld [vmem:[#allocation272_spill] sm:$0xff]  ;;  %v14034_v26 = vld [vmem:[#allocation217_spill] sm:$0xff] }
 0x607   : > { %7460 = vmatpush3.msra.mxu1 %v14024_v3  ;;  %v6316_v40 = vmul.f32 %v6114_v45, %v6114_v45  ;;  %v6053_v56 = vsub.f32 %v14034_v26, %v12277_v52  ;;  %v14035_v8 = vld [vmem:[#allocation33_spill] sm:$0xff]  ;;  %v6187_v11 = vsel %vm3137_vm12, %v6114_v45, 0.0 }
 0x608   : > { %7461 = vmatprep.subr.mxu1 %v14025_v27  ;;  %v6186_v47 = vadd.f32 %v6185_v48, %v6184_v39  ;;  %v6385_v3 = vadd.f32 %v6384_v17, %v6383_v4  ;;  %v6386_v27 = vsel %vm3137_vm12, %v6315_v42, 0.0  ;;  %v6116_v23 = vmul.f32 %v14035_v8, %v6052_v62  ;;  %v14036_v31 = vld [vmem:[#allocation205_spill] sm:$0xff]  ;;  %v14037_v39 = vld [vmem:[#allocation284_spill] sm:$0xff]  ;;  %v14039_v17 = vld [vmem:[#allocation34_spill] sm:$0xff] }
 0x609   : > { %7462 = vmatpush3.msra.mxu1 %v14028_v34  ;;  %v6317_v10 = vmul.f32 %v6115_v21, %v6115_v21  ;;  %v14038_v42 = vld [vmem:[#allocation216_spill] sm:$0xff]  ;;  %v6117_v49 = vmul.f32 %v14039_v17, %v6053_v56  ;;  %v6189_v53 = vsel %vm3137_vm12, %v6115_v21, 0.0  ;;  %v14040_v62 = vld [vmem:[#allocation285_spill] sm:$0xff] }
 0x60a   : > { %7463 = vmatprep.subr.mxu1 %v14029_v43  ;;  %v6188_v44 = vadd.f32 %v6187_v11, %v6186_v47  ;;  %v6387_v34 = vadd.f32 %v6386_v27, %v6385_v3  ;;  %v6388_v43 = vsel %vm3137_vm12, %v6316_v40, 0.0  ;;  %v6054_v4 = vsub.f32 %v14038_v42, %v12277_v52  ;;  %v14041_v47 = vld [vmem:[#allocation287_spill] sm:$0xff]  ;;  %v14044_v56 = vld [vmem:[#allocation288_spill] sm:$0xff] }
 0x60b   : > { %7464 = vmatpush3.msra.mxu1 %v14032_v30  ;;  %v6318_v48 = vmul.f32 %v6116_v23, %v6116_v23  ;;  %v14042_v40 = vld [vmem:[#allocation219_spill] sm:$0xff]  ;;  %v6191_v8 = vsel %vm3137_vm12, %v6116_v23, 0.0  ;;  %v6319_v11 = vmul.f32 %v6117_v49, %v6117_v49  ;;  %v6193_v17 = vsel %vm3137_vm12, %v6117_v49, 0.0 }
 0x60c   : > { %7465 = vmatprep.subr.mxu1 %v14033_v54  ;;  %v6190_v45 = vadd.f32 %v6189_v53, %v6188_v44  ;;  %v6389_v30 = vadd.f32 %v6388_v43, %v6387_v34  ;;  %v6390_v54 = vsel %vm3137_vm12, %v6317_v10, 0.0  ;;  %v6055_v3 = vsub.f32 %v14042_v40, %v12277_v52  ;;  %v14043_v27 = vld [vmem:[#allocation35_spill] sm:$0xff]  ;;  %v14045_v44 = vld [vmem:[#allocation289_spill] sm:$0xff]  ;;  %v14046_v10 = vld [vmem:[#allocation218_spill] sm:$0xff] }
 0x60d   : > { %7466 = vmatpush3.msra.mxu1 %v14036_v31  ;;  %v6118_v26 = vmul.f32 %v14043_v27, %v6054_v4  ;;  %v6056_v34 = vsub.f32 %v14046_v10, %v12277_v52  ;;  %v14047_v43 = vld [vmem:[#allocation36_spill] sm:$0xff]  ;;  %v14048_v4 = vld [vmem:[#allocation290_spill] sm:$0xff] }
 0x60e   : > { %7467 = vmatprep.subr.mxu1 %v14037_v39  ;;  %v6192_v21 = vadd.f32 %v6191_v8, %v6190_v45  ;;  %v6391_v31 = vadd.f32 %v6390_v54, %v6389_v30  ;;  %v6392_v39 = vsel %vm3137_vm12, %v6318_v48, 0.0  ;;  %v6119_v42 = vmul.f32 %v14047_v43, %v6055_v3  ;;  %v14049_v45 = vld [vmem:[#allocation291_spill] sm:$0xff]  ;;  %v14050_v48 = vld [vmem:[#allocation221_spill] sm:$0xff]  ;;  %v14052_v3 = vld [vmem:[#allocation292_spill] sm:$0xff] }
 0x60f   : > { %7468 = vmatpush3.msra.mxu1 %v14040_v62  ;;  %v6320_v53 = vmul.f32 %v6118_v26, %v6118_v26  ;;  %v6057_v30 = vsub.f32 %v14050_v48, %v12277_v52  ;;  %v14051_v54 = vld [vmem:[#allocation37_spill] sm:$0xff]  ;;  %v6195_v27 = vsel %vm3137_vm12, %v6118_v26, 0.0 }
 0x610   : > { %7469 = vmatprep.subr.mxu1 %v14041_v47  ;;  %v6194_v23 = vadd.f32 %v6193_v17, %v6192_v21  ;;  %v6393_v62 = vadd.f32 %v6392_v39, %v6391_v31  ;;  %v6394_v47 = vsel %vm3137_vm12, %v6319_v11, 0.0  ;;  %v6120_v40 = vmul.f32 %v14051_v54, %v6056_v34  ;;  %v14053_v21 = vld [vmem:[#allocation293_spill] sm:$0xff]  ;;  %v14054_v11 = vld [vmem:[#allocation220_spill] sm:$0xff]  ;;  %v14056_v34 = vld [vmem:[#allocation294_spill] sm:$0xff] }
 0x611   : > { %7470 = vmatpush3.msra.mxu1 %v14044_v56  ;;  %v6321_v8 = vmul.f32 %v6119_v42, %v6119_v42  ;;  %v6058_v31 = vsub.f32 %v14054_v11, %v12277_v52  ;;  %v14055_v39 = vld [vmem:[#allocation29_spill] sm:$0xff]  ;;  %v6197_v43 = vsel %vm3137_vm12, %v6119_v42, 0.0 }
 0x612   : > { %7471 = vmatprep.subr.mxu1 %v14045_v44  ;;  %v6196_v49 = vadd.f32 %v6195_v27, %v6194_v23  ;;  %v6395_v56 = vadd.f32 %v6394_v47, %v6393_v62  ;;  %v6396_v44 = vsel %vm3137_vm12, %v6320_v53, 0.0  ;;  %v6121_v10 = vmul.f32 %v14055_v39, %v6057_v30  ;;  %v14057_v23 = vld [vmem:[#allocation295_spill] sm:$0xff]  ;;  %v14059_v47 = vld [vmem:[#allocation30_spill] sm:$0xff]  ;;  %v14060_v30 = vld [vmem:[#allocation296_spill] sm:$0xff] }
 0x613   : > { %7472 = vmatpush3.msra.mxu1 %v14048_v4  ;;  %v6322_v17 = vmul.f32 %v6120_v40, %v6120_v40  ;;  %v14058_v53 = vld [vmem:[#allocation223_spill] sm:$0xff]  ;;  %v6122_v48 = vmul.f32 %v14059_v47, %v6058_v31  ;;  %v6199_v54 = vsel %vm3137_vm12, %v6120_v40, 0.0  ;;  %v14064_v31 = vld [vmem:[#allocation286_spill] sm:$0xff] }
 0x614   : > { %7473 = vmatprep.subr.mxu1 %v14049_v45  ;;  %v6198_v26 = vadd.f32 %v6197_v43, %v6196_v49  ;;  %v6397_v4 = vadd.f32 %v6396_v44, %v6395_v56  ;;  %v6398_v45 = vsel %vm3137_vm12, %v6321_v8, 0.0  ;;  %v6059_v62 = vsub.f32 %v14058_v53, %v12277_v52  ;;  %v14061_v49 = vld [vmem:[#allocation297_spill] sm:$0xff]  ;;  %v14062_v8 = vld [vmem:[#allocation222_spill] sm:$0xff]  ;;  %v14063_v44 = vld [vmem:[#allocation31_spill] sm:$0xff] }
 0x615   : > { %7474 = vmatpush3.msra.mxu1 %v14052_v3  ;;  %v6323_v27 = vmul.f32 %v6121_v10, %v6121_v10  ;;  %v6060_v56 = vsub.f32 %v14062_v8, %v12277_v52  ;;  %v6201_v39 = vsel %vm3137_vm12, %v6121_v10, 0.0  ;;  %v6324_v43 = vmul.f32 %v6122_v48, %v6122_v48  ;;  %v14068_v53 = vld [vmem:[#allocation38_spill] sm:$0xff] }
 0x616   : > { %7475 = vmatprep.subr.mxu1 %v14053_v21  ;;  %v6200_v42 = vadd.f32 %v6199_v54, %v6198_v26  ;;  %v6399_v3 = vadd.f32 %v6398_v45, %v6397_v4  ;;  %v6400_v21 = vsel %vm3137_vm12, %v6322_v17, 0.0  ;;  %v6123_v11 = vmul.f32 %v14063_v44, %v6059_v62  ;;  %v14066_v17 = vld [vmem:[#allocation298_spill] sm:$0xff]  ;;  %v14067_v4 = vld [vmem:[#allocation225_spill] sm:$0xff]  ;;  %v14069_v54 = vld [vmem:[#allocation299_spill] sm:$0xff] }
 0x617   : > { %7476 = vmatpush3.msra.mxu1 %v14056_v34  ;;  %v14065_v26 = vunpack.i.h.bf16 %v12250_v41  ;;  %v6061_v45 = vsub.f32 %v14067_v4, %v12277_v52  ;;  %v6124_v47 = vmul.f32 %v14068_v53, %v6060_v56  ;;  %v6203_v62 = vsel %vm3137_vm12, %v6122_v48, 0.0  ;;  %v14073_v44 = vld [vmem:[#allocation301_spill] sm:$0xff]  ;;  %v14077_v4 = vld [vmem:[#allocation303_spill] sm:$0xff] }
 0x618   : > { %7477 = vmatprep.subr.mxu1 %v14057_v23  ;;  %v6202_v40 = vadd.f32 %v6201_v39, %v6200_v42  ;;  %v6401_v34 = vadd.f32 %v6400_v21, %v6399_v3  ;;  %v6402_v23 = vsel %vm3137_vm12, %v6323_v27, 0.0  ;;  %v6325_v10 = vmul.f32 %v6123_v11, %v6123_v11  ;;  %v14070_v42 = vld [vmem:[#allocation300_spill] sm:$0xff] }
 0x619   : > { %7478 = vmatpush3.msra.mxu1 %v14060_v30  ;;  %v6404_v41 = vsel %vm3137_vm12, %v6324_v43, 0.0  ;;  %v14071_v3 = vld [vmem:[#allocation224_spill] sm:$0xff]  ;;  %v6205_v56 = vsel %vm3137_vm12, %v6123_v11, 0.0  ;;  %v6326_v48 = vmul.f32 %v6124_v47, %v6124_v47  ;;  %v14074_v43 = vld [vmem:[#allocation302_spill] sm:$0xff] }
 0x61a   : > { %7479 = vmatprep.subr.mxu1 %v14061_v49  ;;  %v6204_v30 = vadd.f32 %v6203_v62, %v6202_v40  ;;  %v6403_v27 = vadd.f32 %v6402_v23, %v6401_v34  ;;  %v6062_v21 = vsub.f32 %v14071_v3, %v12277_v52  ;;  %v14072_v49 = vld [vmem:[#allocation39_spill] sm:$0xff]  ;;  %v14076_v23 = vld [vmem:[#allocation40_spill] sm:$0xff]  ;;  %v14079_v62 = vld [vmem:[#allocation226_spill] sm:$0xff] }
 0x61b   : > { %7480 = vmatpush3.msra.mxu1 %v14064_v31  ;;  %v6125_v8 = vmul.f32 %v14072_v49, %v6061_v45  ;;  %v6406_v31 = vsel %vm3137_vm12, %v6325_v10, 0.0  ;;  %v14075_v40 = vld [vmem:[#allocation227_spill] sm:$0xff]  ;;  %v6408_v15 = vsel %vm3137_vm12, %v6326_v48, 0.0  ;;  %v6064_v10 = vsub.f32 %v14079_v62, %v12277_v52  ;;  %v14083_v49 = vld [vmem:[#allocation229_spill] sm:$0xff]  ;;  %v14084_v48 = vld [vmem:[#allocation42_spill] sm:$0xff] }
 0x61c   : > { %5947 = vmatmul.mubr.f32.vlgmr.msra.gmra.mxu1 %v14065_v26  ;;  %7487 = vmatprep.subr.mxu1 %v14066_v17  ;;  %v6206_v39 = vadd.f32 %v6205_v56, %v6204_v30  ;;  %v6063_v34 = vsub.f32 %v14075_v40, %v12277_v52  ;;  %v6126_v26 = vmul.f32 %v14076_v23, %v6062_v21  ;;  %v6207_v17 = vsel %vm3137_vm12, %v6124_v47, 0.0  ;;  %v14082_v21 = vld [vmem:[#allocation306_spill] sm:$0xff]  ;;  %v14085_v40 = vld [vmem:[#allocation228_spill] sm:$0xff]  ;;  %v14086_v23 = vld [vmem:[#allocation43_spill] sm:$0xff] }
 0x61d   : > { %5951 = vmatprep.mubr.f32.mxu1 %v7918_v9  ;;  %7488 = vmatpush3.msra.mxu1 %v14069_v54  ;;  %v6405_v9 = vadd.f32 %v6404_v41, %v6403_v27  ;;  %v6327_v11 = vmul.f32 %v6125_v8, %v6125_v8  ;;  %v14080_v54 = vld [vmem:[#allocation41_spill] sm:$0xff]  ;;  %v6209_v27 = vsel %vm3137_vm12, %v6125_v8, 0.0  ;;  %v6065_v56 = vsub.f32 %v14083_v49, %v12277_v52 }
 0x61e   : > { %7489 = vmatprep.subr.mxu1 %v14070_v42  ;;  %v6208_v45 = vadd.f32 %v6207_v17, %v6206_v39  ;;  %v6127_v30 = vmul.f32 %v14080_v54, %v6063_v34  ;;  %v6328_v47 = vmul.f32 %v6126_v26, %v6126_v26  ;;  %v14081_v41 = vld [vmem:[#allocation305_spill] sm:$0xff]  ;;  %v6211_v39 = vsel %vm3137_vm12, %v6126_v26, 0.0 }
 0x61f   : > { %7490 = vmatpush3.msra.mxu1 %v14073_v44  ;;  %v6407_v53 = vadd.f32 %v6406_v31, %v6405_v9  ;;  %v6128_v44 = vmul.f32 %v14084_v48, %v6064_v10  ;;  %v6066_v34 = vsub.f32 %v14085_v40, %v12277_v52  ;;  %v6129_v17 = vmul.f32 %v14086_v23, %v6065_v56  ;;  %v14091_v49 = vld [vmem:[#allocation233_spill] sm:$0xff] }
 0x620   : > { %5952 = vmatmul.mubr.f32.gmra.mxu1 %v7921_v57  ;;  %7491 = vmatprep.subr.mxu1 %v14074_v43  ;;  %v14078_v57 = vld [vmem:[#allocation304_spill] sm:$0xff]  ;;  %v6210_v42 = vadd.f32 %v6209_v27, %v6208_v45  ;;  %v6329_v9 = vmul.f32 %v6127_v30, %v6127_v30  ;;  %v6412_v43 = vsel %vm3137_vm12, %v6328_v47, 0.0  ;;  %v14089_v27 = vld [vmem:[#allocation230_spill] sm:$0xff]  ;;  %v6069_v56 = vsub.f32 %v14091_v49, %v12277_v52 }
 0x621   : > { %7492 = vmatpush3.msra.mxu1 %v14077_v4  ;;  %6021 = vmatprep.mubr.f32.mxu1 %v7955_v60  ;;  %v6409_v3 = vadd.f32 %v6408_v15, %v6407_v53  ;;  %v6410_v60 = vsel %vm3137_vm12, %v6327_v11, 0.0  ;;  %v6213_v11 = vsel %vm3137_vm12, %v6127_v30, 0.0  ;;  %v6330_v4 = vmul.f32 %v6128_v44, %v6128_v44  ;;  %v14087_v53 = vld [vmem:[#allocation231_spill] sm:$0xff] }
 0x622   : > { %7493 = vmatprep.subr.mxu1 %v14078_v57  ;;  %v6212_v8 = vadd.f32 %v6211_v39, %v6210_v42  ;;  %v6067_v15 = vsub.f32 %v14087_v53, %v12277_v52  ;;  %v6215_v62 = vsel %vm3137_vm12, %v6128_v44, 0.0  ;;  %v6331_v10 = vmul.f32 %v6129_v17, %v6129_v17 }
 0x623   : > { %7494 = vmatpush3.msra.mxu1 %v14081_v41  ;;  %v6411_v31 = vadd.f32 %v6410_v60, %v6409_v3  ;;  %v6068_v47 = vsub.f32 %v14089_v27, %v12277_v52  ;;  %v6217_v42 = vsel %vm3137_vm12, %v6129_v17, 0.0  ;;  %v14101_v27 = vld [vmem:[#allocation237_spill] sm:$0xff] }
 0x624   : > { %7495 = vmatprep.subr.mxu1 %v14082_v21  ;;  %v6214_v26 = vadd.f32 %v6213_v11, %v6212_v8  ;;  %v14096_v11 = vld [vmem:[#allocation252_spill] sm:$0xff] }
 0x625   : > { %7496 = vmatpush3.msra.mxu1 %v11752_v24  ;;  %v6413_v45 = vadd.f32 %v6412_v43, %v6411_v31  ;;  %v6414_v24 = vsel %vm3137_vm12, %v6329_v9, 0.0  ;;  %v14093_v31 = vld [vmem:[#allocation239_spill] sm:$0xff]  ;;  %v14094_v43 = vld [vmem:[#allocation232_spill] sm:$0xff] }
 0x626   : > { %7497 = vmatprep.subr.mxu1 %v11765_v0  ;;  %v14088_v0 = vld [vmem:[#allocation44_spill] sm:$0xff]  ;;  %v6216_v54 = vadd.f32 %v6215_v62, %v6214_v26  ;;  %v6070_v40 = vsub.f32 %v14094_v43, %v12277_v52 }
 0x627   : > { %7498 = vmatpush3.msra.mxu1 %v11778_v61  ;;  %v6130_v57 = vmul.f32 %v14088_v0, %v6066_v34  ;;  %v6415_v30 = vadd.f32 %v6414_v24, %v6413_v45  ;;  %v6416_v61 = vsel %vm3137_vm12, %v6330_v4, 0.0  ;;  %v14097_v45 = vld [vmem:[#allocation236_spill] sm:$0xff]  ;;  %v14098_v24 = vld [vmem:[#allocation235_spill] sm:$0xff] }
 0x628   : > { %7499 = vmatprep.subr.mxu1 %v11788_v63  ;;  %v14090_v63 = vld [vmem:[#allocation45_spill] sm:$0xff]  ;;  %v6218_v60 = vadd.f32 %v6217_v42, %v6216_v54  ;;  %v6071_v53 = vsub.f32 %v14098_v24, %v12277_v52 }
 0x629   : > { %7500 = vmatpush3.msra.mxu1 %v11798_v55  ;;  %v6131_v41 = vmul.f32 %v14090_v63, %v6067_v15  ;;  %v6332_v3 = vmul.f32 %v6130_v57, %v6130_v57  ;;  %v6417_v21 = vadd.f32 %v6416_v61, %v6415_v30  ;;  %v6418_v55 = vsel %vm3137_vm12, %v6331_v10, 0.0  ;;  %v14099_v15 = vld [vmem:[#allocation48_spill] sm:$0xff]  ;;  %v14100_v10 = vld [vmem:[#allocation253_spill] sm:$0xff] }
 0x62a   : > { %7501 = vmatprep.subr.mxu1 %v11805_v28  ;;  %v14092_v28 = vld [vmem:[#allocation46_spill] sm:$0xff]  ;;  %v6219_v44 = vsel %vm3137_vm12, %v6130_v57, 0.0  ;;  %v6134_v0 = vmul.f32 %v14099_v15, %v6070_v40  ;;  %v6074_v40 = vsub.f32 %v13848_v6, %v12277_v52  ;;  %v14108_v15 = vld [vmem:[#allocation241_spill] sm:$0xff] }
 0x62b   : > { %7502 = vmatpush3.msra.mxu1 %v11829_v14  ;;  %v6132_v48 = vmul.f32 %v14092_v28, %v6068_v47  ;;  %v6333_v39 = vmul.f32 %v6131_v41, %v6131_v41  ;;  %v6220_v9 = vadd.f32 %v6219_v44, %v6218_v60  ;;  %v6419_v8 = vadd.f32 %v6418_v55, %v6417_v21  ;;  %v14102_v47 = vld [vmem:[#allocation234_spill] sm:$0xff]  ;;  %v14104_v21 = vld [vmem:[#allocation307_spill] sm:$0xff]  ;;  %v14105_v28 = vld [vmem:[#allocation308_spill] sm:$0xff] }
 0x62c   : > { %7503 = vmatprep.subr.mxu1 %v11844_v46  ;;  %v6420_v14 = vsel %vm3137_vm12, %v6332_v3, 0.0  ;;  %v14095_v46 = vld [vmem:[#allocation47_spill] sm:$0xff]  ;;  %v6221_v23 = vsel %vm3137_vm12, %v6131_v41, 0.0  ;;  %v6072_v63 = vsub.f32 %v14102_v47, %v12277_v52  ;;  %v14103_v41 = vld [vmem:[#allocation49_spill] sm:$0xff]  ;;  %v6336_v60 = vmul.f32 %v6134_v0, %v6134_v0  ;;  %v14106_v44 = vld [vmem:[#allocation50_spill] sm:$0xff] }
 0x62d   : > { %7504 = vmatpush3.msra.mxu1 %v11848_v33  ;;  %v6133_v34 = vmul.f32 %v14095_v46, %v6069_v56  ;;  %v6334_v17 = vmul.f32 %v6132_v48, %v6132_v48  ;;  %v6222_v4 = vadd.f32 %v6221_v23, %v6220_v9  ;;  %v6421_v26 = vadd.f32 %v6420_v14, %v6419_v8 }
 0x62e   : > { %7505 = vmatprep.subr.mxu1 %v14093_v31  ;;  %v6422_v33 = vsel %vm3137_vm12, %v6333_v39, 0.0  ;;  %v6223_v57 = vsel %vm3137_vm12, %v6132_v48, 0.0  ;;  %v6135_v42 = vmul.f32 %v14103_v41, %v6071_v53  ;;  %v6073_v48 = vsub.f32 %v13852_v51, %v12277_v52 }
 0x62f   : > { %7506 = vmatpush3.msra.mxu1 %v14096_v11  ;;  %v6335_v62 = vmul.f32 %v6133_v34, %v6133_v34  ;;  %v6224_v54 = vadd.f32 %v6223_v57, %v6222_v4  ;;  %v6423_v30 = vadd.f32 %v6422_v33, %v6421_v26  ;;  %v6424_v61 = vsel %vm3137_vm12, %v6334_v17, 0.0  ;;  %v14107_v33 = vld [vmem:[#allocation238_spill] sm:$0xff] }
 0x630   : > { %7507 = vmatprep.subr.mxu1 %v14097_v45  ;;  %v6225_v3 = vsel %vm3137_vm12, %v6133_v34, 0.0  ;;  %v6136_v39 = vmul.f32 %v14106_v44, %v6072_v63  ;;  %v6227_v9 = vsel %vm3137_vm12, %v6134_v0, 0.0  ;;  %v6337_v8 = vmul.f32 %v6135_v42, %v6135_v42  ;;  %v14114_v44 = vld [vmem:[#allocation57_spill] sm:$0xff] }
 0x631   : > { %7508 = vmatpush3.msra.mxu1 %v14100_v10  ;;  %v6226_v55 = vadd.f32 %v6225_v3, %v6224_v54  ;;  %v6425_v49 = vadd.f32 %v6424_v61, %v6423_v30  ;;  %v6426_v56 = vsel %vm3137_vm12, %v6335_v62, 0.0  ;;  %v6428_v43 = vsel %vm3137_vm12, %v6336_v60, 0.0  ;;  %v14109_v54 = vld [vmem:[#allocation240_spill] sm:$0xff] }
 0x632   : > { %7509 = vmatprep.subr.mxu1 %v14101_v27  ;;  %v6137_v46 = vmul.f32 %v13870_v12, %v6073_v48  ;;  %v6229_v51 = vsel %vm3137_vm12, %v6135_v42, 0.0  ;;  %v6338_v34 = vmul.f32 %v6136_v39, %v6136_v39  ;;  %v6075_v11 = vsub.f32 %v13842_v5, %v12277_v52  ;;  %v14112_v42 = vld [vmem:[#allocation56_spill] sm:$0xff] }
 0x633   : > { %7510 = vmatpush3.msra.mxu1 %v14104_v21  ;;  %v6228_v14 = vadd.f32 %v6227_v9, %v6226_v55  ;;  %v6427_v31 = vadd.f32 %v6426_v56, %v6425_v49  ;;  %v6231_v6 = vsel %vm3137_vm12, %v6136_v39, 0.0  ;;  %v6076_v45 = vsub.f32 %v14107_v33, %v12277_v52 }
 0x634   : > { %7511 = vmatprep.subr.mxu1 %v14105_v28  ;;  %v6339_v4 = vmul.f32 %v6137_v46, %v6137_v46  ;;  %v6233_v5 = vsel %vm3137_vm12, %v6137_v46, 0.0  ;;  %v6078_v30 = vsub.f32 %v14109_v54, %v12277_v52  ;;  %v14113_v28 = vld [vmem:[#allocation242_spill] sm:$0xff] }
 0x635   : > { %7512 = vmatpush3.msra.mxu1 %v11972_v35  ;;  %v6230_v23 = vadd.f32 %v6229_v51, %v6228_v14  ;;  %v6429_v17 = vadd.f32 %v6428_v43, %v6427_v31  ;;  %v6430_v35 = vsel %vm3137_vm12, %v6337_v8, 0.0  ;;  %v6140_v0 = vmul.f32 %v13861_v25, %v6076_v45  ;;  %v14115_v31 = vld [vmem:[#allocation245_spill] sm:$0xff] }
 0x636   : > { %7513 = vmatprep.subr.mxu1 %v11978_v18  ;;  %v6138_v18 = vmul.f32 %v13867_v13, %v6074_v40  ;;  %v6142_v3 = vmul.f32 %v14112_v42, %v6078_v30  ;;  %v6080_v48 = vsub.f32 %v14113_v28, %v12277_v52  ;;  %v6081_v43 = vsub.f32 %v14115_v31, %v12277_v52  ;;  %v14116_v40 = vld [vmem:[#allocation58_spill] sm:$0xff] }
 0x637   : > { %7514 = vmatpush3.msra.mxu1 %v11987_v22  ;;  %v6232_v12 = vadd.f32 %v6231_v6, %v6230_v23  ;;  %v6431_v26 = vadd.f32 %v6430_v35, %v6429_v17  ;;  %v6432_v22 = vsel %vm3137_vm12, %v6338_v34, 0.0  ;;  %v6342_v27 = vmul.f32 %v6140_v0, %v6140_v0  ;;  %v14118_v6 = vld [vmem:[#allocation24_spill] sm:$0xff] }
 0x638   : > { %7515 = vmatprep.subr.mxu1 %v12002_v19  ;;  %v6139_v19 = vmul.f32 %v13863_v2, %v6075_v11  ;;  %v6340_v24 = vmul.f32 %v6138_v18, %v6138_v18  ;;  %v6235_v57 = vsel %vm3137_vm12, %v6138_v18, 0.0  ;;  %v6239_v60 = vsel %vm3137_vm12, %v6140_v0, 0.0  ;;  %v14117_v11 = vld [vmem:[#allocation244_spill] sm:$0xff] }
 0x639   : > { %7516 = vmatpush3.msra.mxu1 %v12011_v36  ;;  %v6234_v13 = vadd.f32 %v6233_v5, %v6232_v12  ;;  %v6433_v53 = vadd.f32 %v6432_v22, %v6431_v26  ;;  %v6434_v36 = vsel %vm3137_vm12, %v6339_v4, 0.0  ;;  %v6440_v56 = vsel %vm3137_vm12, %v6342_v27, 0.0 }
 0x63a   : > { %7517 = vmatprep.subr.mxu1 %v12023_v58  ;;  %v6077_v58 = vsub.f32 %v14108_v15, %v12277_v52  ;;  %v6341_v2 = vmul.f32 %v6139_v19, %v6139_v19  ;;  %v6436_v10 = vsel %vm3137_vm12, %v6340_v24, 0.0  ;;  %v6237_v61 = vsel %vm3137_vm12, %v6139_v19, 0.0  ;;  %v14119_v19 = vld [vmem:[#allocation247_spill] sm:$0xff] }
 0x63b   : > { %7518 = vmatpush3.msra.mxu1 %v12031_v7  ;;  %v6236_v62 = vadd.f32 %v6235_v57, %v6234_v13  ;;  %v6435_v7 = vadd.f32 %v6434_v36, %v6433_v53  ;;  %v6144_v46 = vmul.f32 %v14116_v40, %v6080_v48  ;;  %v6243_v51 = vsel %vm3137_vm12, %v6142_v3, 0.0  ;;  %v14120_v24 = vld [vmem:[#allocation59_spill] sm:$0xff]  ;;  %v14121_v57 = vld [vmem:[#allocation246_spill] sm:$0xff] }
 0x63c   : > { %6022 = vmatmul.mubr.f32.vlgmr.msra.gmra.mxu1 %v7958_v50  ;;  %v6141_v50 = vmul.f32 %v14110_v38, %v6077_v58  ;;  %v6438_v63 = vsel %vm3137_vm12, %v6341_v2, 0.0  ;;  %v6082_v18 = vsub.f32 %v14117_v11, %v12277_v52  ;;  %v6145_v4 = vmul.f32 %v14118_v6, %v6081_v43 }
 0x63d   : > { %6026 = vmatprep.mubr.f32.mxu1 %v7960_v32  ;;  %v6238_v47 = vadd.f32 %v6237_v61, %v6236_v62  ;;  %v6437_v25 = vadd.f32 %v6436_v10, %v6435_v7  ;;  %v14111_v32 = vld [vmem:[#allocation243_spill] sm:$0xff]  ;;  %v6346_v26 = vmul.f32 %v6144_v46, %v6144_v46  ;;  %v6083_v5 = vsub.f32 %v14119_v19, %v12277_v52  ;;  %v14122_v62 = vld [vmem:[#allocation60_spill] sm:$0xff]  ;;  %v14123_v61 = vld [vmem:[#allocation249_spill] sm:$0xff] }
 0x63e   : > { %v6079_v41 = vsub.f32 %v14111_v32, %v12277_v52  ;;  %v6343_v21 = vmul.f32 %v6141_v50, %v6141_v50  ;;  %v6241_v16 = vsel %vm3137_vm12, %v6141_v50, 0.0  ;;  %v6146_v13 = vmul.f32 %v14120_v24, %v6082_v18 }
 0x63f   : > { %v6240_v55 = vadd.f32 %v6239_v60, %v6238_v47  ;;  %v6439_v49 = vadd.f32 %v6438_v63, %v6437_v25  ;;  %v6247_v53 = vsel %vm3137_vm12, %v6144_v46, 0.0  ;;  %v6347_v36 = vmul.f32 %v6145_v4, %v6145_v4  ;;  %v14124_v47 = vld [vmem:[#allocation25_spill] sm:$0xff]  ;;  %v14125_v60 = vld [vmem:[#allocation248_spill] sm:$0xff] }
 0x640   : > { %6027 = vmatmul.mubr.f32.gmra.mxu1 %v7963_v59  ;;  %v6143_v39 = vmul.f32 %v14114_v44, %v6079_v41  ;;  %v6344_v59 = vmul.f32 %v6142_v3, %v6142_v3  ;;  %v6442_v14 = vsel %vm3137_vm12, %v6343_v21, 0.0  ;;  %v6448_v0 = vsel %vm3137_vm12, %v6346_v26, 0.0  ;;  %v14131_v26 = vld [vmem:[#allocation28_spill] sm:$0xff] }
 0x641   : > { %v6242_v9 = vadd.f32 %v6241_v16, %v6240_v55  ;;  %v6441_v8 = vadd.f32 %v6440_v56, %v6439_v49  ;;  %v6084_v2 = vsub.f32 %v14121_v57, %v12277_v52  ;;  %v6147_v7 = vmul.f32 %v14122_v62, %v6083_v5  ;;  %v14126_v55 = vld [vmem:[#allocation61_spill] sm:$0xff]  ;;  %v14127_v16 = vld [vmem:[#allocation251_spill] sm:$0xff] }
 0x642   : > { %v6345_v34 = vmul.f32 %v6143_v39, %v6143_v39  ;;  %v6444_v35 = vsel %vm3137_vm12, %v6344_v59, 0.0  ;;  %v6245_v12 = vsel %vm3137_vm12, %v6143_v39, 0.0  ;;  %v6249_v10 = vsel %vm3137_vm12, %v6145_v4, 0.0  ;;  %v14132_v57 = vld [vmem:[#allocation255_spill] sm:$0xff] }
 0x643   : > { %v6244_v23 = vadd.f32 %v6243_v51, %v6242_v9  ;;  %v6443_v17 = vadd.f32 %v6442_v14, %v6441_v8  ;;  %v6348_v54 = vmul.f32 %v6146_v13, %v6146_v13  ;;  %v6450_v50 = vsel %vm3137_vm12, %v6347_v36, 0.0  ;;  %v14128_v9 = vld [vmem:[#allocation27_spill] sm:$0xff]  ;;  %v14129_v51 = vld [vmem:[#allocation250_spill] sm:$0xff] }
 0x644   : > { %v6446_v45 = vsel %vm3137_vm12, %v6345_v34, 0.0  ;;  %v6085_v27 = vsub.f32 %v14123_v61, %v12277_v52  ;;  %v6148_v25 = vmul.f32 %v14124_v47, %v6084_v2  ;;  %v6251_v63 = vsel %vm3137_vm12, %v6146_v13, 0.0 }
 0x645   : > { %v6246_v22 = vadd.f32 %v6245_v12, %v6244_v23  ;;  %v6445_v33 = vadd.f32 %v6444_v35, %v6443_v17  ;;  %v6349_v32 = vmul.f32 %v6147_v7, %v6147_v7  ;;  %v6452_v3 = vsel %vm3137_vm12, %v6348_v54, 0.0  ;;  %v14130_v23 = vld [vmem:[#allocation62_spill] sm:$0xff] }
 0x646   : > { %v6086_v21 = vsub.f32 %v14125_v60, %v12277_v52  ;;  %v6149_v49 = vmul.f32 %v14126_v55, %v6085_v27  ;;  %v6253_v56 = vsel %vm3137_vm12, %v6147_v7, 0.0  ;;  %v6350_v28 = vmul.f32 %v6148_v25, %v6148_v25 }
 0x647   : > { %v6248_v15 = vadd.f32 %v6247_v53, %v6246_v22  ;;  %v6447_v58 = vadd.f32 %v6446_v45, %v6445_v33  ;;  %v6454_v39 = vsel %vm3137_vm12, %v6349_v32, 0.0  ;;  %v6087_v59 = vsub.f32 %v14127_v16, %v12277_v52 }
 0x648   : > { %v6150_v8 = vmul.f32 %v14128_v9, %v6086_v21  ;;  %v6255_v14 = vsel %vm3137_vm12, %v6148_v25, 0.0  ;;  %v6351_v31 = vmul.f32 %v6149_v49, %v6149_v49  ;;  %v6456_v46 = vsel %vm3137_vm12, %v6350_v28, 0.0  ;;  %v14137_v28 = vld [vmem:[#allocation256_spill] sm:$0xff] }
 0x649   : > { %v6250_v30 = vadd.f32 %v6249_v10, %v6248_v15  ;;  %v6449_v38 = vadd.f32 %v6448_v0, %v6447_v58  ;;  %v6088_v34 = vsub.f32 %v14129_v51, %v12277_v52  ;;  %v6151_v17 = vmul.f32 %v14130_v23, %v6087_v59 }
 0x64a   : > { %v6257_v35 = vsel %vm3137_vm12, %v6149_v49, 0.0  ;;  %v6352_v11 = vmul.f32 %v6150_v8, %v6150_v8  ;;  %v6458_v4 = vsel %vm3137_vm12, %v6351_v31, 0.0  ;;  %v6089_v12 = vsub.f32 %v13851_v37, %v12277_v52  ;;  %v14139_v31 = vld [vmem:[#allocation259_spill] sm:$0xff] }
 0x64b   : > { %v6252_v41 = vadd.f32 %v6251_v63, %v6250_v30  ;;  %v6451_v42 = vadd.f32 %v6450_v50, %v6449_v38  ;;  %v6152_v22 = vmul.f32 %v14131_v26, %v6088_v34  ;;  %v6259_v33 = vsel %vm3137_vm12, %v6150_v8, 0.0  ;;  %v14134_v50 = vld [vmem:[#allocation65_spill] sm:$0xff] }
 0x64c   : > { %v6353_v45 = vmul.f32 %v6151_v17, %v6151_v17  ;;  %v6460_v24 = vsel %vm3137_vm12, %v6352_v11, 0.0  ;;  %v6090_v13 = vsub.f32 %v13845_v1, %v12277_v52  ;;  %v6153_v53 = vmul.f32 %v13868_v20, %v6089_v12  ;;  %v14133_v20 = vld [vmem:[#allocation254_spill] sm:$0xff] }
 0x64d   : > { %v6254_v48 = vadd.f32 %v6253_v56, %v6252_v41  ;;  %v6453_v44 = vadd.f32 %v6452_v3, %v6451_v42  ;;  %v6261_v36 = vsel %vm3137_vm12, %v6151_v17, 0.0  ;;  %v6354_v15 = vmul.f32 %v6152_v22, %v6152_v22  ;;  %v14136_v42 = vld [vmem:[#allocation66_spill] sm:$0xff] }
 0x64e   : > { %v6462_v37 = vsel %vm3137_vm12, %v6353_v45, 0.0  ;;  %v6091_v2 = vsub.f32 %v14132_v57, %v12277_v52  ;;  %v6154_v62 = vmul.f32 %v13865_v29, %v6090_v13  ;;  %v6263_v7 = vsel %vm3137_vm12, %v6152_v22, 0.0  ;;  %v14135_v29 = vld [vmem:[#allocation257_spill] sm:$0xff]  ;;  %v14141_v11 = vld [vmem:[#allocation258_spill] sm:$0xff] }
 0x64f   : > { %v6256_v43 = vadd.f32 %v6255_v14, %v6254_v48  ;;  %v6455_v40 = vadd.f32 %v6454_v39, %v6453_v44  ;;  %v6355_v10 = vmul.f32 %v6153_v53, %v6153_v53  ;;  %v6464_v1 = vsel %vm3137_vm12, %v6354_v15, 0.0  ;;  %v14138_v44 = vld [vmem:[#allocation67_spill] sm:$0xff] }
 0x650   : > { %v6092_v38 = vsub.f32 %v14133_v20, %v12277_v52  ;;  %v6155_v61 = vmul.f32 %v14134_v50, %v6091_v2  ;;  %v6265_v27 = vsel %vm3137_vm12, %v6153_v53, 0.0  ;;  %v6356_v47 = vmul.f32 %v6154_v62, %v6154_v62  ;;  %v14146_v2 = vld [vmem:[#allocation71_spill] sm:$0xff]  ;;  %v14148_v50 = vld [vmem:[#allocation72_spill] sm:$0xff] }
 0x651   : > { %v6258_v18 = vadd.f32 %v6257_v35, %v6256_v43  ;;  %v6457_v6 = vadd.f32 %v6456_v46, %v6455_v40  ;;  %v6466_v32 = vsel %vm3137_vm12, %v6355_v10, 0.0  ;;  %v6093_v41 = vsub.f32 %v14135_v29, %v12277_v52  ;;  %v14140_v40 = vld [vmem:[#allocation68_spill] sm:$0xff]  ;;  %v14147_v20 = vld [vmem:[#allocation263_spill] sm:$0xff]  ;;  %v14149_v29 = vld [vmem:[#allocation262_spill] sm:$0xff] }
 0x652   : > { %v6156_v3 = vmul.f32 %v14136_v42, %v6092_v38  ;;  %v6267_v60 = vsel %vm3137_vm12, %v6154_v62, 0.0  ;;  %v6357_v21 = vmul.f32 %v6155_v61, %v6155_v61  ;;  %v6468_v56 = vsel %vm3137_vm12, %v6356_v47, 0.0  ;;  %v14150_v42 = vld [vmem:[#allocation73_spill] sm:$0xff] }
 0x653   : > { %v6260_v19 = vadd.f32 %v6259_v33, %v6258_v18  ;;  %v6459_v5 = vadd.f32 %v6458_v4, %v6457_v6  ;;  %v6094_v48 = vsub.f32 %v14137_v28, %v12277_v52  ;;  %v6157_v39 = vmul.f32 %v14138_v44, %v6093_v41  ;;  %v14142_v6 = vld [vmem:[#allocation69_spill] sm:$0xff]  ;;  %v14152_v44 = vld [vmem:[#allocation74_spill] sm:$0xff] }
 0x654   : > { %v6269_v16 = vsel %vm3137_vm12, %v6155_v61, 0.0  ;;  %v6358_v59 = vmul.f32 %v6156_v3, %v6156_v3  ;;  %v6470_v14 = vsel %vm3137_vm12, %v6357_v21, 0.0  ;;  %v6095_v43 = vsub.f32 %v14139_v31, %v12277_v52  ;;  %v14151_v28 = vld [vmem:[#allocation265_spill] sm:$0xff]  ;;  %v14153_v31 = vld [vmem:[#allocation264_spill] sm:$0xff] }
 0x655   : > { %v6262_v58 = vadd.f32 %v6261_v36, %v6260_v19  ;;  %v6461_v0 = vadd.f32 %v6460_v24, %v6459_v5  ;;  %v6158_v46 = vmul.f32 %v14140_v40, %v6094_v48  ;;  %v6271_v51 = vsel %vm3137_vm12, %v6156_v3, 0.0  ;;  %v14143_v19 = vld [vmem:[#allocation261_spill] sm:$0xff]  ;;  %v14144_v24 = vld [vmem:[#allocation70_spill] sm:$0xff]  ;;  %v14154_v40 = vld [vmem:[#allocation75_spill] sm:$0xff] }
 0x656   : > { %v6359_v34 = vmul.f32 %v6157_v39, %v6157_v39  ;;  %v6472_v35 = vsel %vm3137_vm12, %v6358_v59, 0.0  ;;  %v6096_v18 = vsub.f32 %v14141_v11, %v12277_v52  ;;  %v6159_v4 = vmul.f32 %v14142_v6, %v6095_v43  ;;  %v14155_v11 = vld [vmem:[#allocation267_spill] sm:$0xff]  ;;  %v14156_v6 = vld [vmem:[#allocation76_spill] sm:$0xff] }
 0x657   : > { %v6264_v54 = vadd.f32 %v6263_v7, %v6262_v58  ;;  %v6463_v30 = vadd.f32 %v6462_v37, %v6461_v0  ;;  %v6273_v12 = vsel %vm3137_vm12, %v6157_v39, 0.0  ;;  %v6360_v26 = vmul.f32 %v6158_v46, %v6158_v46  ;;  %v14145_v37 = vld [vmem:[#allocation260_spill] sm:$0xff] }
 0x658   : > { %v6474_v45 = vsel %vm3137_vm12, %v6359_v34, 0.0  ;;  %v6097_v5 = vsub.f32 %v14143_v19, %v12277_v52  ;;  %v6160_v13 = vmul.f32 %v14144_v24, %v6096_v18  ;;  %v6275_v53 = vsel %vm3137_vm12, %v6158_v46, 0.0  ;;  %v14157_v19 = vld [vmem:[#allocation266_spill] sm:$0xff]  ;;  %v14158_v24 = vld [vmem:[#allocation77_spill] sm:$0xff] }
 0x659   : > { %v6266_v25 = vadd.f32 %v6265_v27, %v6264_v54  ;;  %v6465_v63 = vadd.f32 %v6464_v1, %v6463_v30  ;;  %v6361_v36 = vmul.f32 %v6159_v4, %v6159_v4  ;;  %v6476_v0 = vsel %vm3137_vm12, %v6360_v26, 0.0 }
 0x65a   : > { %v6098_v57 = vsub.f32 %v14145_v37, %v12277_v52  ;;  %v6161_v62 = vmul.f32 %v14146_v2, %v6097_v5  ;;  %v6277_v7 = vsel %vm3137_vm12, %v6159_v4, 0.0  ;;  %v6362_v10 = vmul.f32 %v6160_v13, %v6160_v13  ;;  %v14159_v37 = vld [vmem:[#allocation78_spill] sm:$0xff] }
 0x65b   : > { %v6268_v55 = vadd.f32 %v6267_v60, %v6266_v25  ;;  %v6467_v49 = vadd.f32 %v6466_v32, %v6465_v63  ;;  %v6478_v1 = vsel %vm3137_vm12, %v6361_v36, 0.0  ;;  %v6099_v38 = vsub.f32 %v14147_v20, %v12277_v52 }
 0x65c   : > { %v6162_v61 = vmul.f32 %v14148_v50, %v6098_v57  ;;  %v6279_v27 = vsel %vm3137_vm12, %v6160_v13, 0.0  ;;  %v6363_v47 = vmul.f32 %v6161_v62, %v6161_v62  ;;  %v6480_v32 = vsel %vm3137_vm12, %v6362_v10, 0.0 }
 0x65d   : > { %v6270_v9 = vadd.f32 %v6269_v16, %v6268_v55  ;;  %v6469_v8 = vadd.f32 %v6468_v56, %v6467_v49  ;;  %v6100_v41 = vsub.f32 %v14149_v29, %v12277_v52  ;;  %v6163_v3 = vmul.f32 %v14150_v42, %v6099_v38 }
 0x65e   : > { %v6281_v60 = vsel %vm3137_vm12, %v6161_v62, 0.0  ;;  %v6364_v21 = vmul.f32 %v6162_v61, %v6162_v61  ;;  %v6482_v56 = vsel %vm3137_vm12, %v6363_v47, 0.0  ;;  %v6101_v48 = vsub.f32 %v14151_v28, %v12277_v52  ;;  %v6169_v28 = vld [vmem:[#allocation5 + $0x1] sm:$0x1] }
 0x65f   : > { %v6272_v23 = vadd.f32 %v6271_v51, %v6270_v9  ;;  %v6471_v17 = vadd.f32 %v6470_v14, %v6469_v8  ;;  %v6164_v39 = vmul.f32 %v14152_v44, %v6100_v41  ;;  %v6283_v16 = vsel %vm3137_vm12, %v6162_v61, 0.0 }
 0x660   : > { %v6365_v59 = vmul.f32 %v6163_v3, %v6163_v3  ;;  %v6484_v14 = vsel %vm3137_vm12, %v6364_v21, 0.0  ;;  %v6102_v43 = vsub.f32 %v14153_v31, %v12277_v52  ;;  %v6165_v46 = vmul.f32 %v14154_v40, %v6101_v48  ;;  %v6306_v48 = vld [vmem:[#allocation5 + $0x2] sm:$0x1] }
 0x661   : > { %v6274_v22 = vadd.f32 %v6273_v12, %v6272_v23  ;;  %v6473_v33 = vadd.f32 %v6472_v35, %v6471_v17  ;;  %v6285_v51 = vsel %vm3137_vm12, %v6163_v3, 0.0  ;;  %v6366_v34 = vmul.f32 %v6164_v39, %v6164_v39 }
 0x662   : > { %v6486_v35 = vsel %vm3137_vm12, %v6365_v59, 0.0  ;;  %v6103_v18 = vsub.f32 %v14155_v11, %v12277_v52  ;;  %v6166_v4 = vmul.f32 %v14156_v6, %v6102_v43  ;;  %v6287_v12 = vsel %vm3137_vm12, %v6164_v39, 0.0  ;;  %v5021_v6 = vld [vmem:[#allocation3 + $0x8] sm:$0xff] }
 0x663   : > { %v6276_v15 = vadd.f32 %v6275_v53, %v6274_v22  ;;  %v6475_v58 = vadd.f32 %v6474_v45, %v6473_v33  ;;  %v6367_v26 = vmul.f32 %v6165_v46, %v6165_v46  ;;  %v6488_v45 = vsel %vm3137_vm12, %v6366_v34, 0.0 }
 0x664   : > { %v6104_v5 = vsub.f32 %v14157_v19, %v12277_v52  ;;  %v6167_v13 = vmul.f32 %v14158_v24, %v6103_v18  ;;  %v6289_v53 = vsel %vm3137_vm12, %v6165_v46, 0.0  ;;  %v6368_v36 = vmul.f32 %v6166_v4, %v6166_v4 }
 0x665   : > { %v6278_v54 = vadd.f32 %v6277_v7, %v6276_v15  ;;  %v6477_v30 = vadd.f32 %v6476_v0, %v6475_v58  ;;  %v6490_v0 = vsel %vm3137_vm12, %v6367_v26, 0.0  ;;  %v6291_v2 = vsel %vm3137_vm12, %v6166_v4, 0.0 }
 0x666   : > { %v6168_v57 = vmul.f32 %v14159_v37, %v6104_v5  ;;  %v6369_v62 = vmul.f32 %v6167_v13, %v6167_v13  ;;  %v6492_v7 = vsel %vm3137_vm12, %v6368_v36, 0.0  ;;  %v6293_v52 = vsel %vm3137_vm12, %v6167_v13, 0.0 }
 0x667   : > { %v6280_v25 = vadd.f32 %v6279_v27, %v6278_v54  ;;  %v6479_v63 = vadd.f32 %v6478_v1, %v6477_v30 }
 0x668   : > { %v6370_v30 = vmul.f32 %v6168_v57, %v6168_v57  ;;  %v6494_v1 = vsel %vm3137_vm12, %v6369_v62, 0.0  ;;  %v6295_v50 = vsel %vm3137_vm12, %v6168_v57, 0.0 }
 0x669   : > { %v6282_v55 = vadd.f32 %v6281_v60, %v6280_v25  ;;  %v6481_v49 = vadd.f32 %v6480_v32, %v6479_v63 }
 0x66a   : > { %v6496_v61 = vsel %vm3137_vm12, %v6370_v30, 0.0 }
 0x66b   : > { %v6284_v9 = vadd.f32 %v6283_v16, %v6282_v55  ;;  %v6483_v8 = vadd.f32 %v6482_v56, %v6481_v49 }
 0x66d   : > { %v6286_v23 = vadd.f32 %v6285_v51, %v6284_v9  ;;  %v6485_v17 = vadd.f32 %v6484_v14, %v6483_v8  ;;  %v5020_v51 = vld [vmem:[#allocation3] sm:$0xff] }
 0x66f   : > { %v6288_v22 = vadd.f32 %v6287_v12, %v6286_v23  ;;  %v6487_v33 = vadd.f32 %v6486_v35, %v6485_v17 }
 0x671   : > { %v6290_v15 = vadd.f32 %v6289_v53, %v6288_v22  ;;  %v6489_v58 = vadd.f32 %v6488_v45, %v6487_v33  ;;  %v5880_v53 = vld [vmem:[#allocation4] sm:$0xff] }
 0x673   : > { %v6292_v10 = vadd.f32 %v6291_v2, %v6290_v15  ;;  %v6491_v54 = vadd.f32 %v6490_v0, %v6489_v58  ;;  %v5881_v2 = vld [vmem:[#allocation4 + $0x8] sm:$0xff] }
 0x675   : > { %v6294_v20 = vadd.f32 %v6293_v52, %v6292_v10  ;;  %v6493_v38 = vadd.f32 %v6492_v7, %v6491_v54 }
 0x677   : > { %v6296_v27 = vadd.f32 %v6295_v50, %v6294_v20  ;;  %v6495_v47 = vadd.f32 %v6494_v1, %v6493_v38 }
 0x679   : > { %v6297_v25 = vrot.slane %v6296_v27, 4  ;;  %v6497_v63 = vadd.f32 %v6496_v61, %v6495_v47 }
 0x67b   : > { %v6298_v32 = vadd.f32 %v6297_v25, %v6296_v27  ;;  %v6498_v29 = vrot.slane %v6497_v63, 4 }
 0x67d   : > { %v6299_v41 = vrot.slane %v6298_v32, 2  ;;  %v6499_v42 = vadd.f32 %v6498_v29, %v6497_v63 }
 0x67f   : > { %v6300_v3 = vadd.f32 %v6299_v41, %v6298_v32  ;;  %v6500_v60 = vrot.slane %v6499_v42, 2 }
 0x681   : > { %v6301_v21 = vrot.slane %v6300_v3, 1  ;;  %v6501_v55 = vadd.f32 %v6500_v60, %v6499_v42 }
 0x683   : > { %v6302_v49 = vadd.f32 %v6301_v21, %v6300_v3  ;;  %v6502_v56 = vrot.slane %v6501_v55, 1 }
 0x685   : > { %v6303_v44 = vadd.f32 %v6302_v49, %v6169_v28  ;;  %v6503_v39 = vadd.f32 %v6502_v56, %v6501_v55 }
 0x687   : > { %6305 = vst.msk [vmem:[#allocation5 + $0x1] sm:$0x1] %vm6304_vm11, %v6303_v44  ;;  %v6504_v16 = vadd.f32 %v6503_v39, %v6306_v48 }
 0x689   : > { %6505 = vst.msk [vmem:[#allocation5 + $0x2] sm:$0x1] %vm6304_vm11, %v6504_v16 }
 0x69c   : > { %v7405_v59 = vpop.f32.mrf.mxu1 }
 0x69e   : > { %v7406_v9 = vpop.f32.mrf.mxu1 }
 0x69f   : > { %v7407_v40 = vadd.f32 %v7406_v9, %v7405_v59 }
 0x6a0   : > { %v7408_v8 = vpop.f32.mrf.mxu1 }
 0x6a2   : > { %v7409_v14 = vpop.f32.mrf.mxu1 }
 0x6a3   : > { %v7410_v35 = vadd.f32 %v7409_v14, %v7408_v8 }
 0x6bc   : > { %v7443_v31 = vpop.f32.mrf.mxu1 }
 0x6be   : > { %v7444_v43 = vpop.f32.mrf.mxu1 }
 0x6bf   : > { %v7445_v46 = vadd.f32 %v7444_v43, %v7443_v31 }
 0x6c0   : > { %v7446_v34 = vpop.f32.mrf.mxu1 }
 0x6c1   : > { %v5868_v23 = vadd.f32 %v7445_v46, %v7407_v40 }
 0x6c2   : > { %v7447_v17 = vpop.f32.mrf.mxu1 }
 0x6c3   : > { %v5876_v11 = vadd.f32 %v5868_v23, %v5020_v51  ;;  %v7448_v18 = vadd.f32 %v7447_v17, %v7446_v34 }
 0x6c5   : > { %5878 = vst.msk [vmem:[#allocation3] sm:$0xff] %vm3137_vm12, %v5876_v11  ;;  %v5873_v4 = vadd.f32 %v7448_v18, %v7410_v35 }
 0x6c7   : > { %v5877_v12 = vadd.f32 %v5873_v4, %v5021_v6 }
 0x6c9   : > { %5879 = vst.msk [vmem:[#allocation3 + $0x8] sm:$0xff] %vm3137_vm12, %v5877_v12 }
 0x6dc   : > { %v7481_v26 = vpop.f32.mrf.mxu1 }
 0x6de   : > { %v7482_v22 = vpop.f32.mrf.mxu1 }
 0x6df   : > { %v7483_v24 = vadd.f32 %v7482_v22, %v7481_v26 }
 0x6e0   : > { %v7484_v33 = vpop.f32.mrf.mxu1 }
 0x6e2   : > { %v7485_v45 = vpop.f32.mrf.mxu1 }
 0x6e3   : > { %v7486_v0 = vadd.f32 %v7485_v45, %v7484_v33 }
 0x6fc   : > { %v7519_v19 = vpop.f32.mrf.mxu1 }
 0x6fe   : > { %v7520_v5 = vpop.f32.mrf.mxu1 }
 0x6ff   : > { %v7521_v13 = vadd.f32 %v7520_v5, %v7519_v19 }
 0x700   : > { %v7522_v36 = vpop.f32.mrf.mxu1 }
 0x701   : > { %v6024_v15 = vadd.f32 %v7521_v13, %v7483_v24 }
 0x702   : > { %v7523_v58 = vpop.f32.mrf.mxu1 }
 0x703   : > { %v6032_v37 = vadd.f32 %v6024_v15, %v5880_v53  ;;  %v7524_v57 = vadd.f32 %v7523_v58, %v7522_v36 }
 0x705   : > { %6034 = vst.msk [vmem:[#allocation4] sm:$0xff] %vm3137_vm12, %v6032_v37  ;;  %v6029_v62 = vadd.f32 %v7524_v57, %v7486_v0  ;;  %6509 = sbr.rel (%p7158_p5) target bundleno = 2132 (0x854), region = 80 }
 0x707   : > { %v6033_v7 = vadd.f32 %v6029_v62, %v5881_v2 }
 0x709   : > { %6035 = vst.msk [vmem:[#allocation4 + $0x8] sm:$0xff] %vm3137_vm12, %v6033_v7 }
 0x70a   : > { %v7159_v30 = vld [vmem:[%s12755_s8] ss:$0 sm:$0xff]  ;;  %v6510_v25 = vld [vmem:[#allocation3] sm:$0xff]  ;;  %v6511_v29 = vld [vmem:[#allocation3 + $0x8] sm:$0xff]  ;;  %vm6538_vm8 = vcmask 1048320  }
 0x70b   : > { %6574 = vrot.lane.b32.xlu1 %v7159_v30, %s8298_s16  ;;  %v7160_v20 = vld [vmem:[%s12756_s9] ss:$0 sm:$0xff]  ;;  %v6527_v55 = vld [vmem:[#allocation2 + $0x8] sm:$0xff]  ;;  %v6608_v18 = vld [vmem:[#allocation5 + $0x1] sm:$0x1] }
 0x70c   : > { %v6512_v10 = vld [vmem:[#allocation4] sm:$0xff]  ;;  %v6609_v6 = vmul.f32 0.001, %v6608_v18  ;;  %v6612_v12 = vld [vmem:[#allocation5 + $0x2] sm:$0x1] }
 0x70d   : > { %v6514_v54 = vadd.f32 1e-06, %v6512_v10  ;;  %v6526_v60 = vld [vmem:[#allocation2] sm:$0xff]  ;;  %v6613_v26 = vmul.f32 0.001, %v6612_v12 }
 0x70e   : > { %v6614_v22 = vmul.f32 %v6609_v6, %v6609_v6  ;;  %v6610_v58 = vld [vmem:[#allocation5] sm:$0x1]  ;;  %v6616_v0 = vld [vmem:[%s12757_s10] sm:$0x1] }
 0x70f   : > { %8220 = vrcp.f32 %v6514_v54  ;;  %6585 = vrot.lane.b32.xlu1 %v7160_v20, %s8298_s16  ;;  %v6611_v37 = vadd.f32 %v6610_v58, %v6609_v6  ;;  %v6621_v7 = vld [vmem:[%s12758_s11] sm:$0x1] }
 0x710   : > { %v6513_v52 = vld [vmem:[#allocation4 + $0x8] sm:$0xff]  ;;  %v6615_v45 = vsub.f32 %v6613_v26, %v6614_v22 }
 0x711   : > { %v6515_v1 = vadd.f32 1e-06, %v6513_v52 }
 0x712   : > { %v6617_v5 = vadd.f32 1e-05, %v6615_v45 }
 0x713   : > { %8222 = vrcp.f32 %v6515_v1 }
 0x714   : > { %8224 = vrsqrt.f32 %v6617_v5 }
 0x71c   : > { %v8221_v38 = vpop.eup %8220 }
 0x71d   : > { %v6518_v61 = vmul.f32 %v8221_v38, %v6514_v54 }
 0x71f   : > { %v6520_v47 = vsub.f32 2.0, %v6518_v61 }
 0x720   : > { %v8223_v50 = vpop.eup %8222 }
 0x721   : > { %v6519_v27 = vmul.f32 %v8223_v50, %v6515_v1  ;;  %v6522_v32 = vmul.f32 %v8221_v38, %v6520_v47  ;;  %v8225_v15 = vpop.eup %8224 }
 0x722   : > { %v6619_v57 = vmul.f32 %v8225_v15, %v6616_v0 }
 0x723   : > { %v6521_v63 = vsub.f32 2.0, %v6519_v27  ;;  %v6524_v42 = vmul.f32 %v6522_v32, %v6510_v25  ;;  %v6591_v32 = vld [vmem:[%s12747_s0 + $0x8] sm:$0xff] }
 0x724   : > { %6620 = vst.msk [vmem:[#allocation8] sm:$0x1] %vm6304_vm11, %v6619_v57  ;;  %v6622_v62 = vmul.f32 %v6619_v57, %v6611_v37 }
 0x725   : > { %v6523_v41 = vmul.f32 %v8223_v50, %v6521_v63  ;;  %6530 = vrot.lane.b32.xlu0 %v6524_v42, %s8298_s16 }
 0x726   : > { %v6623_v10 = vsub.f32 %v6621_v7, %v6622_v62 }
 0x727   : > { %v6525_v3 = vmul.f32 %v6523_v41, %v6511_v29  ;;  %v6590_v29 = vld [vmem:[%s12747_s0] sm:$0xff] }
 0x728   : > { %6624 = vst.msk [vmem:[#allocation8 + $0x1] sm:$0x1] %vm6304_vm11, %v6623_v10 }
 0x729   : > { %6532 = vrot.lane.b32.xlu0 %v6525_v3, %s8298_s16 }
 0x77d   : > { %v6575_v2 = vpop.permute.xlu1 %6574 }
 0x781   : > { %v6586_v1 = vpop.permute.xlu1 %6585 }
 0x797   : > { %v6531_v21 = vpop.permute.xlu0 %6530 }
 0x798   : > { %v6536_v49 = vadd.f32 %v6531_v21, %v6526_v60 }
 0x79a   : > { %v6539_v48 = vsel %vm6538_vm8, %v6536_v49, 0.0 }
 0x79b   : > { %v6533_v56 = vpop.permute.xlu0 %6532 }
 0x79c   : > { %v6537_v28 = vadd.f32 %v6533_v56, %v6527_v55 }
 0x79e   : > { %v6540_v44 = vsel %vm6538_vm8, %v6537_v28, 0.0 }
 0x79f   : > { %v6541_v39 = vadd.f32 %v6540_v44, %v6539_v48 }
 0x7a1   : > { %v6542_v16 = vrot.slane %v6541_v39, 4 }
 0x7a3   : > { %v6543_v59 = vadd.f32 %v6542_v16, %v6541_v39 }
 0x7a5   : > { %v6544_v9 = vrot.slane %v6543_v59, 2 }
 0x7a7   : > { %v6545_v8 = vadd.f32 %v6544_v9, %v6543_v59 }
 0x7a9   : > { %v6546_v14 = vrot.slane %v6545_v8, 1 }
 0x7ab   : > { %v6547_v31 = vadd.f32 %v6546_v14, %v6545_v8 }
 0x7ad   : > { %v6549_v43 = vmul.f32 0.0625, %v6547_v31 }
 0x7af   : > { %v6551_v40 = vsub.f32 %v6537_v28, %v6549_v43  ;;  %v6550_v46 = vsub.f32 %v6536_v49, %v6549_v43 }
 0x7b1   : > { %v6553_v51 = vmul.f32 %v6551_v40, %v6551_v40  ;;  %v6552_v34 = vmul.f32 %v6550_v46, %v6550_v46 }
 0x7b3   : > { %v6555_v23 = vsel %vm6538_vm8, %v6553_v51, 0.0  ;;  %v6554_v17 = vsel %vm6538_vm8, %v6552_v34, 0.0 }
 0x7b4   : > { %v6556_v35 = vadd.f32 %v6555_v23, %v6554_v17 }
 0x7b6   : > { %v6557_v11 = vrot.slane %v6556_v35, 4 }
 0x7b8   : > { %v6558_v4 = vadd.f32 %v6557_v11, %v6556_v35 }
 0x7ba   : > { %v6559_v33 = vrot.slane %v6558_v4, 2 }
 0x7bc   : > { %v6560_v19 = vadd.f32 %v6559_v33, %v6558_v4 }
 0x7be   : > { %v6561_v24 = vrot.slane %v6560_v19, 1 }
 0x7c0   : > { %v6562_v13 = vadd.f32 %v6561_v24, %v6560_v19 }
 0x7c2   : > { %v6563_v53 = vmul.f32 0.0625, %v6562_v13 }
 0x7c4   : > { %v6564_v36 = vadd.f32 1e-05, %v6563_v53 }
 0x7c6   : > { %8226 = vrsqrt.f32 %v6564_v36 }
 0x7d3   : > { %v8227_v54 = vpop.eup %8226 }
 0x7d4   : > { %v6566_v52 = vmul.f32 %v8227_v54, %v6550_v46  ;;  %v6567_v30 = vmul.f32 %v8227_v54, %v6551_v40 }
 0x7d6   : > { %v6577_v20 = vmul.f32 %v6575_v2, %v6566_v52  ;;  %v6578_v38 = vmul.f32 %v6575_v2, %v6567_v30 }
 0x7d8   : > { %v6588_v50 = vadd.f32 %v6586_v1, %v6577_v20  ;;  %v6589_v61 = vadd.f32 %v6586_v1, %v6578_v38 }
 0x7da   : > { %v6592_v27 = vmax.f32 %v6588_v50, 0.0  ;;  %v6593_v47 = vmax.f32 %v6589_v61, 0.0 }
 0x7dc   : > { %v6594_v25 = vmin.f32 %v6592_v27, 6.0  ;;  %v6595_v63 = vmin.f32 %v6593_v47, 6.0 }
 0x7de   : > { %6600 = vrot.lane.b32.xlu1 %v6595_v63, %s8299_s18  ;;  %6598 = vrot.lane.b32.xlu0 %v6594_v25, %s8299_s18 }
 0x850   : > { %v6601_v41 = vpop.permute.xlu1 %6600  ;;  %v6599_v42 = vpop.permute.xlu0 %6598 }
 0x851   : > { %v6605_v3 = vadd.f32 %v6601_v41, %v6591_v32  ;;  %v6604_v60 = vadd.f32 %v6599_v42, %v6590_v29 }
 0x853   : > { %6607 = vst.msk [vmem:[#allocation6 + $0x8] sm:$0xff] %vm3137_vm12, %v6605_v3  ;;  %6606 = vst.msk [vmem:[#allocation6] sm:$0xff] %vm3137_vm12, %v6604_v60 }
 0x854 PF: > { %p7852_p6 = scmp.eq.s32.totalorder %s8385_s30, 1  ;;  %s8300_s21 = smov [#allocation6]  }
 0x855   : > { %s6636_s23 = sshll.u32 %s8300_s21, 4  ;;  %s6637_s23 = int_to_ptr.vmem [resolvable:$true] %s6636_s23 }
 0x856   : > { %s8228_s16 = scalar_lea.vmem %s6637_s23, 256  ;;  %p8235_p10 = scmp.lt.s32.totalorder %s6637_s23, %s6637_s23 }
 0x857   : > { %p8229_p7 = scmp.ne.s32.totalorder %s6637_s23, %s8228_s16  ;;  %p8236_p11 = scmp.lt.s32.totalorder %s8228_s16, %s8228_s16 }
 0x859   : > { %p8230_p8 = pnand %p8229_p7, %p7852_p6  ;;  %p8237_p12 = por %p8236_p11, %p8235_p10 }
 0x85b   : > { %p8231_p9 = pneg %p8230_p8 }
 0x85d   : > { %p8238_p13 = pnand %p8237_p12, %p8231_p9 }
 0x85f   : > { %8241 = shalt.err (!%p8238_p13)
}
 0x860   : > { %s8301_s22 = smov 128   ;;  %s8302_s24 = smov 8  }
 0x861   : > { %7845 = dma.vmem_to_hbm [thread:$0]  (%p7852_p6), %s6637_s23, 256, %s12759_s12, [#allocation7], %s8301_s22, %s8301_s22, %s8302_s24  }
 0x862   : > { %s8303_s15 = smov [#allocation8]  }
 0x863   : > { %s6654_s17 = sshll.u32 %s8303_s15, 4  ;;  %s6655_s17 = int_to_ptr.vmem [resolvable:$true] %s6654_s17 }
 0x864   : > { %s8252_s18 = scalar_lea.vmem %s6655_s17, 32  ;;  %p8259_p3 = scmp.lt.s32.totalorder %s6655_s17, %s6655_s17 }
 0x865   : > { %p8253_p0 = scmp.ne.s32.totalorder %s6655_s17, %s8252_s18  ;;  %p8260_p4 = scmp.lt.s32.totalorder %s8252_s18, %s8252_s18 }
 0x867   : > { %p8254_p1 = pnand %p8253_p0, %p7852_p6  ;;  %p8261_p5 = por %p8260_p4, %p8259_p3 }
 0x869   : > { %p8255_p2 = pneg %p8254_p1 }
 0x86b   : > { %p8262_p7 = pnand %p8261_p5, %p8255_p2 }
 0x86d   : > { %8265 = shalt.err (!%p8262_p7)
}
 0x86e   : > { %7847 = dma.vmem_to_hbm [thread:$0]  (%p7852_p6), %s6655_s17, 32, %s12761_s14, [#allocation9]  }
 0x86f   : > { %8281 = dma.done.wait (%p7852_p6), [#allocation7], 256  }
 0x870   : > { %8283 = vsyncadd (%p7852_p6), [#allocation7], 4294967040 }
 0x871   : > { %8285 = dma.done.wait (%p7852_p6), [#allocation9], 32  }
 0x872   : > { %8287 = vsyncadd (%p7852_p6), [#allocation9], 4294967264 }
 0x873 PF: > { %s27_s29 = sadd.s32 1, %s8290_s29  }
 0x874   : > { %p24_p8 = scmp.ge.s32.totalorder %s27_s29, 4  }
 0x876   :  { %26 = sbr.rel (!%p24_p8) target bundleno = 2 (0x2), region = 133 }
 0x87b   :  { %6679 = vsyncpa [#allocation7], 1 }
 0x87c   :  { %6681 = vsyncpa [#allocation7 + $0x1], 1 }
 0x87d   :  { %6682 = vsyncpa [#allocation9], 1 }

</bundles_post_ra>
